<compile_context>
chip_gen: v5e
topology: v5e:2x2
jax: 0.10.0
libtpu: 0.0.40
codegen_flags: <defaults>
</compile_context>

<pallas_src>
import jax
import jax.numpy as jnp
from jax.experimental import pallas as pl
from jax.experimental.pallas import tpu as pltpu

# ----------------------- configuration (small synthetic sizes) ---------------
# (real F5/Vocos: dim=512, intermediate=1536, 8 blocks, n_fft=1024, hop=256)
TARGET_RMS = 0.15
N_MELS = 100                  # fixed by the PyTorch module
DIM = 64                      # Vocos backbone width (synthetic)
INTER = 128                   # ConvNeXt pointwise intermediate width
N_BLOCKS = 2                  # ConvNeXt blocks
N_FFT = 512                   # ISTFT fft size (synthetic; real 1024)
HOP = 128                     # ISTFT hop (synthetic; real 256) -> lane-dense
F_BINS = N_FFT // 2 + 1       # 257 spectral bins
LANE = 128
FB_PAD = ((F_BINS + LANE - 1) // LANE) * LANE   # 384: lane-padded bin count
HEAD_W = 2 * FB_PAD           # padded head width: [mag | phase]
T_TOTAL = 40                  # total mel frames fed to decode
REF_LEN = 8                   # reference-prompt frames sliced away
T_GEN = T_TOTAL - REF_LEN     # 32 generated frames
LN_EPS = 1e-6
K_TAPS = 7                    # conv kernel size (embed + depthwise)
PAD = K_TAPS // 2
N_OVL = N_FFT // HOP          # 4 overlapping slabs in the overlap-add
L_FULL = (T_GEN - 1) * HOP + N_FFT
L_OUT = (T_GEN - 1) * HOP     # torch.istft(center=True) trims n_fft//2 each end
N_CHUNKS = T_GEN + N_OVL - 1  # L_FULL // HOP
N_TRIM = (N_FFT // 2) // HOP  # chunks trimmed from each end
assert (N_FFT // 2) % HOP == 0 and N_CHUNKS * HOP == L_FULL
assert HOP % LANE == 0        # lane-dense OLA / output (holds for real HOP=256)


# ----------------------- shared math ------------------------------------------
def _layernorm(x, g, b):
    mu = jnp.mean(x, axis=-1, keepdims=True)
    var = jnp.mean(jnp.square(x - mu), axis=-1, keepdims=True)
    return (x - mu) * jax.lax.rsqrt(var + LN_EPS) * g + b


def _bdot(a, b):
    """bf16-operand matmul with f32 accumulation (MXU-friendly)."""
    return jnp.dot(a.astype(jnp.bfloat16), b.astype(jnp.bfloat16),
                   preferred_element_type=jnp.float32)


# erf via Abramowitz-Stegun 7.1.26 (|err| < 1.5e-7): only exp + VPU ops, so it
# lowers on Mosaic and matches PyTorch's erf-exact nn.GELU() to ~1e-7.
def _erf_poly(x):
    a1, a2, a3 = 0.254829592, -0.284496736, 1.421413741
    a4, a5, p = -1.453152027, 1.061405429, 0.3275911
    s = jnp.where(x >= 0.0, 1.0, -1.0)
    ax = jnp.abs(x)
    t = 1.0 / (1.0 + p * ax)
    poly = ((((a5 * t + a4) * t + a3) * t + a2) * t + a1) * t
    return s * (1.0 - poly * jnp.exp(-ax * ax))


def _gelu_exact_kernel(x):
    return 0.5 * x * (1.0 + _erf_poly(x * 0.7071067811865476))


# ----------------------- fused Pallas kernel ----------------------------------
def f5_fused_kernel(reflen_ref,                                   # scalar prefetch (SMEM)
                    mel_ref, ew_ref, eb_ref, eg_ref, ebt_ref,     # mel + embed (const)
                    dww_ref, dwb_ref, bg_ref, bbt_ref,            # ConvNeXt blk (streamed)
                    w1_ref, b1_ref, w2_ref, b2_ref, gls_ref,      # ConvNeXt blk (streamed)
                    fg_ref, fbt_ref, hw_ref, hb_ref,              # final LN + head (const)
                    istft_ref, ienv_ref,                          # ISTFT constants (const)
                    out_ref,                                      # (T_GEN-1, HOP)
                    h_ref, melp_ref, xcat_ref, hpad_ref, ola_ref):  # VMEM scratch
    blk = pl.program_id(0)

    # ---------------- embed path (only on the first block step) --------------
    @pl.when(blk == 0)
    def _embed():
        start = reflen_ref[0]
        # mel slice (denoised[:, ref_len:, :]) + zero halo for the k=7 conv
        melp_ref[...] = jnp.zeros_like(melp_ref)
        melp_ref[PAD:PAD + T_GEN, 0:N_MELS] = mel_ref[pl.ds(start, T_GEN), :]
        # Conv1d(N_MELS->DIM, k=7, pad=3) as ONE im2col matmul; each tap is a
        # lane-aligned 128-wide slab (weight rows at lane padding are zero).
        for j in range(K_TAPS):
            xcat_ref[:, j * LANE:(j + 1) * LANE] = melp_ref[j:j + T_GEN, :]
        x = _bdot(xcat_ref[...], ew_ref[...])
        h_ref[...] = _layernorm(x + eb_ref[...], eg_ref[...], ebt_ref[...])
        hpad_ref[...] = jnp.zeros_like(hpad_ref)   # halo rows stay zero forever

    # ---------------- ConvNeXt block `blk` (weights streamed via grid) -------
    h = h_ref[...]
    hpad_ref[PAD:PAD + T_GEN, :] = h
    dw = dww_ref[0]                                # (K_TAPS, DIM)
    acc = jnp.zeros((T_GEN, DIM), jnp.float32)
    # TODO(synk): the 7 sublane-offset stencil reads could use pltpu.roll +
    # wrap masks to ride the XLU slot; kept as slices at these tiny sizes.
    for j in range(K_TAPS):                        # depthwise conv (VPU, f32)
        acc = acc + hpad_ref[j:j + T_GEN, :] * dw[j:j + 1, :]
    acc = acc + dwb_ref[0]
    hn = _layernorm(acc, bg_ref[0], bbt_ref[0])
    hh = _bdot(hn, w1_ref[0]) + b1_ref[0]
    hh = _gelu_exact_kernel(hh)                    # erf-exact GELU (PyTorch nn.GELU)
    hh = _bdot(hh, w2_ref[0]) + b2_ref[0]
    h_ref[...] = h + gls_ref[0] * hh               # layer-scale + residual

    # ---------------- head + fused inverse-rDFT + OLA + RMS (last step) ------
    @pl.when(blk == N_BLOCKS - 1)
    def _head():
        hn2 = _layernorm(h_ref[...], fg_ref[...], fbt_ref[...])
        y = _bdot(hn2, hw_ref[...]) + hb_ref[...]          # (T_GEN, 2*FB_PAD)
        mag = jnp.minimum(jnp.exp(y[:, :FB_PAD]), 1e2)     # torch: clip(exp(x), max=1e2)
        p = y[:, FB_PAD:]
        # fused rDFT: [real | imag] @ [cmat*win ; -smat*win]  (one MXU matmul,
        # window folded into the basis, pad rows are zero)
        ri = jnp.concatenate([mag * jnp.cos(p), mag * jnp.sin(p)], axis=-1)
        frames = _bdot(ri, istft_ref[...])                 # (T_GEN, N_FFT)

        # dense overlap-add of N_OVL lane-aligned 128-wide slabs
        ola_ref[...] = jnp.zeros_like(ola_ref)
        for k in range(N_OVL):
            ola_ref[k:k + T_GEN, :] = (ola_ref[k:k + T_GEN, :]
                                       + frames[:, k * HOP:(k + 1) * HOP])
        sig = ola_ref[...] * ienv_ref[...]                 # precomputed 1/env
        trimmed = sig[N_TRIM:N_TRIM + (T_GEN - 1), :]      # center=True trimming
        scale = TARGET_RMS * jax.lax.rsqrt(jnp.mean(jnp.square(trimmed)))
        out_ref[...] = trimmed * scale


# ----------------------- pallas_call wrapper ----------------------------------
def _const_spec(shape):
    n = len(shape)
    return pl.BlockSpec(shape, lambda b, rl, n=n: (0,) * n)


def _block_spec(shape):
    n = len(shape)
    return pl.BlockSpec((1,) + tuple(shape[1:]),
                        lambda b, rl, n=n: (b,) + (0,) * (n - 1))


def _f5_decode_pallas(packed, denoised, ref_signal_len):
    # denoised: (1, T_TOTAL, N_MELS); ref_signal_len: int32 scalar.
    # TODO(synk): the PyTorch slice has a dynamic output length; JAX needs a
    #             static length, so the generated-frame count (T_GEN) is fixed
    #             and must be enforced by the caller.
    reflen = jnp.reshape(ref_signal_len.astype(jnp.int32), (1,))
    mel_full = denoised[0]                                  # (T_TOTAL, N_MELS)

    const_a = [mel_full,
               packed["embed_w_cat"], packed["embed_b"],
               packed["embed_ln_g"], packed["embed_ln_b"]]
    block_a = [packed["blk_dww"], packed["blk_dwb"],
               packed["blk_ln_g"], packed["blk_ln_b"],
               packed["blk_w1"], packed["blk_b1"],
               packed["blk_w2"], packed["blk_b2"], packed["blk_gls"]]
    tail_a = [packed["final_ln_g"], packed["final_ln_b"],
              packed["head_w_pad"], packed["head_b_pad"],
              packed["istft_mat"], packed["inv_env"]]
    args = const_a + block_a + tail_a
    in_specs = ([_const_spec(a.shape) for a in const_a]
                + [_block_spec(a.shape) for a in block_a]
                + [_const_spec(a.shape) for a in tail_a])

    scratch_shapes = [
        pltpu.VMEM((T_GEN, DIM), jnp.float32),              # persistent h
        pltpu.VMEM((T_GEN + 2 * PAD, LANE), jnp.float32),   # padded mel
        pltpu.VMEM((T_GEN, K_TAPS * LANE), jnp.float32),    # im2col
        pltpu.VMEM((T_GEN + 2 * PAD, DIM), jnp.float32),    # conv halo
        pltpu.VMEM((N_CHUNKS, HOP), jnp.float32),           # overlap-add
    ]
    scratch_bytes = 4 * (T_GEN * DIM + (T_GEN + 2 * PAD) * LANE
                         + T_GEN * K_TAPS * LANE + (T_GEN + 2 * PAD) * DIM
                         + N_CHUNKS * HOP)
    in_bytes = int(sum(a.size * a.dtype.itemsize for a in args)) + 4
    out_bytes = (T_GEN - 1) * HOP * 4
    # resident footprint: <=2 buffers per input/output + scratch; generous 2x
    # headroom for register spill / internal scratch, min 16 MiB.
    vmem_limit = max(2 * (2 * in_bytes + 2 * out_bytes + scratch_bytes),
                     16 * 1024 * 1024)

    flops = 2 * T_GEN * (K_TAPS * LANE * DIM
                         + N_BLOCKS * 2 * DIM * INTER
                         + DIM * HEAD_W + HEAD_W * N_FFT)
    transcendentals = T_GEN * (3 * FB_PAD) + N_BLOCKS * T_GEN * INTER

    out = pl.pallas_call(
        f5_fused_kernel,
        out_shape=jax.ShapeDtypeStruct((T_GEN - 1, HOP), jnp.float32),
        grid_spec=pltpu.PrefetchScalarGridSpec(
            num_scalar_prefetch=1,
            grid=(N_BLOCKS,),                       # stream ConvNeXt block weights
            in_specs=in_specs,
            out_specs=pl.BlockSpec((T_GEN - 1, HOP), lambda b, rl: (0, 0)),
            scratch_shapes=scratch_shapes),
        compiler_params=pltpu.CompilerParams(
            # TODO(synk): add a leading "parallel" axis (batch / time tiles with
            # a 3-row halo) at real sizes so v7x's second TensorCore is used.
            dimension_semantics=("arbitrary",),
            vmem_limit_bytes=int(vmem_limit)),
        cost_estimate=pl.CostEstimate(flops=int(flops),
                                      transcendentals=int(transcendentals),
                                      bytes_accessed=int(in_bytes + out_bytes)),
    )(reflen, *args)
    return out.reshape(1, L_OUT)


f5_decode_pallas = jax.jit(_f5_decode_pallas)


# ----------------------- pure-JAX reference ----------------------------------
# Mirrors the kernel's bf16-operand / f32-accumulate matmul precision so the
# comparison isolates kernel correctness.
def _embed_math(xpad, w, b, g, beta):
    t = xpad.shape[0] - 2 * PAD
    out = jnp.zeros((t, w.shape[2]), jnp.float32)
    for j in range(K_TAPS):
        out = out + _bdot(xpad[j:j + t, :], w[j])
    return _layernorm(out + b, g, beta)


def _convnext_math(xpad, dww, dwb, g, beta, w1, b1, w2, b2, gls):
    t = xpad.shape[0] - 2 * PAD
    d = xpad.shape[1]
    residual = xpad[PAD:PAD + t, :]
    acc = jnp.zeros((t, d), jnp.float32)
    for j in range(K_TAPS):
        acc = acc + xpad[j:j + t, :] * dww[j:j + 1, :]
    acc = acc + dwb
    h = _layernorm(acc, g, beta)
    h = _bdot(h, w1) + b1
    h = jax.nn.gelu(h, approximate=False)          # PyTorch nn.GELU() (erf-exact)
    h = _bdot(h, w2) + b2
    return residual + gls * h


def _head_math(x, g, beta, w, b):
    xn = _layernorm(x, g, beta)
    y = _bdot(xn, w) + b
    mag = jnp.minimum(jnp.exp(y[:, :F_BINS]), 1e2)
    p = y[:, F_BINS:]
    return mag, jnp.cos(p), jnp.sin(p)


def _istft_frames_math(mag, c, s, cmat, smat):
    # cmat/smat already include the synthesis window.
    return _bdot(mag * c, cmat) - _bdot(mag * s, smat)


def _overlap_add_scatter(frames, win1d):
    idx = (jnp.arange(T_GEN)[:, None] * HOP
           + jnp.arange(N_FFT)[None, :]).reshape(-1)
    sig = jnp.zeros((L_FULL,), jnp.float32).at[idx].add(frames.reshape(-1))
    env = jnp.zeros((L_FULL,), jnp.float32).at[idx].add(
        jnp.tile(win1d * win1d, (T_GEN,)))
    sig = sig / jnp.maximum(env, 1e-11)
    return sig[N_FFT // 2: L_FULL - N_FFT // 2]


def reference_forward(params, denoised, ref_signal_len):
    mel = jax.lax.dynamic_slice_in_dim(denoised[0], ref_signal_len, T_GEN, axis=0)
    h = _embed_math(jnp.pad(mel, ((PAD, PAD), (0, 0))), params["embed_w"],
                    params["embed_b"], params["embed_ln_g"], params["embed_ln_b"])
    for blk in params["blocks"]:
        h = _convnext_math(jnp.pad(h, ((PAD, PAD), (0, 0))), *blk)
    mag, c, s = _head_math(h, params["final_ln_g"], params["final_ln_b"],
                           params["head_w"], params["head_b"])
    frames = _istft_frames_math(mag, c, s, params["cmat"], params["smat"])
    sig = _overlap_add_scatter(frames, params["win1d"])
    return sig[None, :] * TARGET_RMS / jnp.sqrt(jnp.mean(jnp.square(sig)))


# ----------------------- deterministic parameter init ------------------------
def init_params(key):
    keys = iter(jax.random.split(key, 32))

    def nrm(shape, scale):
        return jax.random.normal(next(keys), shape, jnp.float32) * scale

    p = {
        "embed_w": nrm((K_TAPS, N_MELS, DIM), 0.05),
        "embed_b": nrm((1, DIM), 0.01),
        "embed_ln_g": jnp.ones((1, DIM), jnp.float32),
        "embed_ln_b": jnp.zeros((1, DIM), jnp.float32),
    }
    blocks = []
    for _ in range(N_BLOCKS):
        blocks.append((
            nrm((K_TAPS, DIM), 0.1),               # depthwise conv weight
            nrm((1, DIM), 0.01),                   # depthwise conv bias
            jnp.ones((1, DIM), jnp.float32),       # LN gamma
            jnp.zeros((1, DIM), jnp.float32),      # LN beta
            nrm((DIM, INTER), 0.05),               # pwconv1 weight
            nrm((1, INTER), 0.01),                 # pwconv1 bias
            nrm((INTER, DIM), 0.05),               # pwconv2 weight
            nrm((1, DIM), 0.01),                   # pwconv2 bias
            jnp.full((1, DIM), 0.5, jnp.float32),  # layer-scale gamma
        ))
    p["blocks"] = blocks
    p["final_ln_g"] = jnp.ones((1, DIM), jnp.float32)
    p["final_ln_b"] = jnp.zeros((1, DIM), jnp.float32)
    p["head_w"] = nrm((DIM, N_FFT + 2), 0.05)
    p["head_b"] = nrm((1, N_FFT + 2), 0.01)

    # Inverse-rDFT basis (hermitian-symmetry weights folded in) with the
    # periodic Hann synthesis window pre-multiplied into its columns.
    kk = jnp.arange(F_BINS, dtype=jnp.float32)[:, None]
    nn = jnp.arange(N_FFT, dtype=jnp.float32)[None, :]
    ang = 2.0 * jnp.pi * kk * nn / N_FFT
    wk = jnp.full((F_BINS, 1), 2.0 / N_FFT, jnp.float32)
    wk = wk.at[0, 0].set(1.0 / N_FFT).at[-1, 0].set(1.0 / N_FFT)
    win = (0.5 - 0.5 * jnp.cos(2.0 * jnp.pi * jnp.arange(N_FFT) / N_FFT)
           ).astype(jnp.float32)
    p["cmat"] = (wk * jnp.cos(ang) * win[None, :]).astype(jnp.float32)
    p["smat"] = (wk * jnp.sin(ang) * win[None, :]).astype(jnp.float32)
    p["win1d"] = win
    return p


def pack_params(p):
    """Repack reference params into the fused-kernel layout (bf16 matmul weights)."""
    bf16 = jnp.bfloat16
    # im2col'd embed weight, lane-padded to 128 per tap (zero rows at padding).
    ew = jnp.zeros((K_TAPS * LANE, DIM), jnp.float32)
    for j in range(K_TAPS):
        ew = ew.at[j * LANE:j * LANE + N_MELS, :].set(p["embed_w"][j])

    blocks = p["blocks"]
    stack = lambda i: jnp.stack([b[i] for b in blocks], axis=0)

    # Head weight/bias padded so mag occupies lanes [0,FB_PAD) and phase
    # [FB_PAD, 2*FB_PAD); pad columns are zero (inert: rDFT pad rows are zero).
    hw = jnp.zeros((DIM, HEAD_W), jnp.float32)
    hw = hw.at[:, 0:F_BINS].set(p["head_w"][:, :F_BINS])
    hw = hw.at[:, FB_PAD:FB_PAD + F_BINS].set(p["head_w"][:, F_BINS:])
    hb = jnp.zeros((1, HEAD_W), jnp.float32)
    hb = hb.at[:, 0:F_BINS].set(p["head_b"][:, :F_BINS])
    hb = hb.at[:, FB_PAD:FB_PAD + F_BINS].set(p["head_b"][:, F_BINS:])

    # Fused inverse-rDFT basis: [cmat*win ; -smat*win], zero pad rows.
    istft = jnp.zeros((HEAD_W, N_FFT), jnp.float32)
    istft = istft.at[0:F_BINS, :].set(p["cmat"])
    istft = istft.at[FB_PAD:FB_PAD + F_BINS, :].set(-p["smat"])

    # Precompute the (data-independent) squared-window overlap envelope.
    idx = (jnp.arange(T_GEN)[:, None] * HOP
           + jnp.arange(N_FFT)[None, :]).reshape(-1)
    env = jnp.zeros((L_FULL,), jnp.float32).at[idx].add(
        jnp.tile(p["win1d"] * p["win1d"], (T_GEN,)))
    inv_env = (1.0 / jnp.maximum(env, 1e-11)).reshape(N_CHUNKS, HOP)

    return {
        "embed_w_cat": ew.astype(bf16),
        "embed_b": p["embed_b"],
        "embed_ln_g": p["embed_ln_g"],
        "embed_ln_b": p["embed_ln_b"],
        "blk_dww": stack(0), "blk_dwb": stack(1)[:, None, :].reshape(N_BLOCKS, 1, DIM)
        if stack(1).ndim == 2 else stack(1),
        "blk_ln_g": stack(2), "blk_ln_b": stack(3),
        "blk_w1": stack(4).astype(bf16), "blk_b1": stack(5),
        "blk_w2": stack(6).astype(bf16), "blk_b2": stack(7),
        "blk_gls": stack(8),
        "final_ln_g": p["final_ln_g"], "final_ln_b": p["final_ln_b"],
        "head_w_pad": hw.astype(bf16), "head_b_pad": hb,
        "istft_mat": istft.astype(bf16),
        "inv_env": inv_env,
    }


# ----------------------- main -------------------------------------------------
if __name__ == "__main__":
    root = jax.random.PRNGKey(0)
    pkey, dkey = jax.random.split(root)
    params = init_params(pkey)
    packed = pack_params(params)
    denoised = jax.random.normal(dkey, (1, T_TOTAL, N_MELS), jnp.float32) * 0.5
    ref_signal_len = jnp.array(REF_LEN, jnp.int32)

    # The exported graph fixes the generated-frame count; assert it holds.
    assert T_TOTAL - int(ref_signal_len) == T_GEN

    out = jax.block_until_ready(f5_decode_pallas(packed, denoised, ref_signal_len))
    ref = jax.block_until_ready(reference_forward(params, denoised, ref_signal_len))

    assert out.shape == (1, L_OUT), out.shape
    if not bool(jnp.allclose(out, ref, rtol=2e-2, atol=3e-3)):
        raise AssertionError(
            "Pallas output mismatch vs reference, max abs diff = %e"
            % float(jnp.max(jnp.abs(out - ref))))

    print("KERNEL_OK")
</pallas_src>

<mosaic_0001>
module attributes {stable_mosaic.version = 11 : i64} {
  func.func @f5_fused_kernel(%arg0: i32, %arg1: memref<1xi32, #tpu.memory_space<smem>>, %arg2: memref<40x100xf32, #tpu.memory_space<vmem>>, %arg3: memref<896x64xbf16, #tpu.memory_space<vmem>>, %arg4: memref<1x64xf32, #tpu.memory_space<vmem>>, %arg5: memref<1x64xf32, #tpu.memory_space<vmem>>, %arg6: memref<1x64xf32, #tpu.memory_space<vmem>>, %arg7: memref<1x7x64xf32, #tpu.memory_space<vmem>>, %arg8: memref<1x1x64xf32, #tpu.memory_space<vmem>>, %arg9: memref<1x1x64xf32, #tpu.memory_space<vmem>>, %arg10: memref<1x1x64xf32, #tpu.memory_space<vmem>>, %arg11: memref<1x64x128xbf16, #tpu.memory_space<vmem>>, %arg12: memref<1x1x128xf32, #tpu.memory_space<vmem>>, %arg13: memref<1x128x64xbf16, #tpu.memory_space<vmem>>, %arg14: memref<1x1x64xf32, #tpu.memory_space<vmem>>, %arg15: memref<1x1x64xf32, #tpu.memory_space<vmem>>, %arg16: memref<1x64xf32, #tpu.memory_space<vmem>>, %arg17: memref<1x64xf32, #tpu.memory_space<vmem>>, %arg18: memref<64x768xbf16, #tpu.memory_space<vmem>>, %arg19: memref<1x768xf32, #tpu.memory_space<vmem>>, %arg20: memref<768x512xbf16, #tpu.memory_space<vmem>>, %arg21: memref<35x128xf32, #tpu.memory_space<vmem>>, %arg22: memref<31x128xf32, #tpu.memory_space<vmem>>, %arg23: memref<32x64xf32, #tpu.memory_space<vmem>>, %arg24: memref<38x128xf32, #tpu.memory_space<vmem>>, %arg25: memref<32x896xf32, #tpu.memory_space<vmem>>, %arg26: memref<38x64xf32, #tpu.memory_space<vmem>>, %arg27: memref<35x128xf32, #tpu.memory_space<vmem>>) attributes {dimension_semantics = [#tpu.dimension_semantics<arbitrary>], iteration_bounds = array<i64: 2>, scalar_prefetch = 1 : i64, scratch_operands = 5 : i64, tpu.core_type = #tpu.core_type<tc>, window_params = [{pipeline_mode = #tpu.pipeline_mode<synchronous>, transform_indices = @transform_0, window_bounds = array<i64: 40, 100>}, {pipeline_mode = #tpu.pipeline_mode<synchronous>, transform_indices = @transform_1, window_bounds = array<i64: 896, 64>}, {pipeline_mode = #tpu.pipeline_mode<synchronous>, transform_indices = @transform_2, window_bounds = array<i64: 1, 64>}, {pipeline_mode = #tpu.pipeline_mode<synchronous>, transform_indices = @transform_3, window_bounds = array<i64: 1, 64>}, {pipeline_mode = #tpu.pipeline_mode<synchronous>, transform_indices = @transform_4, window_bounds = array<i64: 1, 64>}, {transform_indices = @transform_5, window_bounds = array<i64: 1, 7, 64>}, {transform_indices = @transform_6, window_bounds = array<i64: 1, 1, 64>}, {transform_indices = @transform_7, window_bounds = array<i64: 1, 1, 64>}, {transform_indices = @transform_8, window_bounds = array<i64: 1, 1, 64>}, {transform_indices = @transform_9, window_bounds = array<i64: 1, 64, 128>}, {transform_indices = @transform_10, window_bounds = array<i64: 1, 1, 128>}, {transform_indices = @transform_11, window_bounds = array<i64: 1, 128, 64>}, {transform_indices = @transform_12, window_bounds = array<i64: 1, 1, 64>}, {transform_indices = @transform_13, window_bounds = array<i64: 1, 1, 64>}, {pipeline_mode = #tpu.pipeline_mode<synchronous>, transform_indices = @transform_14, window_bounds = array<i64: 1, 64>}, {pipeline_mode = #tpu.pipeline_mode<synchronous>, transform_indices = @transform_15, window_bounds = array<i64: 1, 64>}, {pipeline_mode = #tpu.pipeline_mode<synchronous>, transform_indices = @transform_16, window_bounds = array<i64: 64, 768>}, {pipeline_mode = #tpu.pipeline_mode<synchronous>, transform_indices = @transform_17, window_bounds = array<i64: 1, 768>}, {pipeline_mode = #tpu.pipeline_mode<synchronous>, transform_indices = @transform_18, window_bounds = array<i64: 768, 512>}, {pipeline_mode = #tpu.pipeline_mode<synchronous>, transform_indices = @transform_19, window_bounds = array<i64: 35, 128>}, {pipeline_mode = #tpu.pipeline_mode<synchronous>, transform_indices = @transform_20, window_bounds = array<i64: 31, 128>}]} {
    %c0_i32 = arith.constant 0 : i32
    %0 = arith.cmpi eq, %arg0, %c0_i32 : i32
    %1 = arith.extui %0 : i1 to i32
    %c0_i32_0 = arith.constant 0 : i32
    %2 = arith.cmpi ne, %1, %c0_i32_0 : i32
    scf.if %2 {
      %c0_65 = arith.constant 0 : index
      %139 = memref.load %arg1[%c0_65] : memref<1xi32, #tpu.memory_space<smem>>
      %cst_66 = arith.constant 0.000000e+00 : f32
      %140 = vector.broadcast %cst_66 : f32 to vector<38x128xf32>
      %c0_67 = arith.constant 0 : index
      %c0_68 = arith.constant 0 : index
      %141 = vector.load %arg24[%c0_67, %c0_68] : memref<38x128xf32, #tpu.memory_space<vmem>>, vector<38x128xf32>
      tpu.vector_store %arg24[%c0_67, %c0_68], %140 {strides = array<i32>} : memref<38x128xf32, #tpu.memory_space<vmem>>, vector<38x128xf32>,
      %142 = arith.index_cast %139 : i32 to index
      %c0_69 = arith.constant 0 : index
      %143 = vector.load %arg2[%142, %c0_69] : memref<40x100xf32, #tpu.memory_space<vmem>>, vector<32x100xf32>
      %c3_70 = arith.constant 3 : index
      %c0_71 = arith.constant 0 : index
      %144 = vector.load %arg24[%c3_70, %c0_71] : memref<38x128xf32, #tpu.memory_space<vmem>>, vector<32x100xf32>
      tpu.vector_store %arg24[%c3_70, %c0_71], %143 {strides = array<i32>} : memref<38x128xf32, #tpu.memory_space<vmem>>, vector<32x100xf32>,
      %c0_72 = arith.constant 0 : index
      %c0_73 = arith.constant 0 : index
      %145 = vector.load %arg24[%c0_72, %c0_73] : memref<38x128xf32, #tpu.memory_space<vmem>>, vector<32x128xf32>
      %c0_74 = arith.constant 0 : index
      %c0_75 = arith.constant 0 : index
      %146 = vector.load %arg25[%c0_74, %c0_75] : memref<32x896xf32, #tpu.memory_space<vmem>>, vector<32x128xf32>
      tpu.vector_store %arg25[%c0_74, %c0_75], %145 {strides = array<i32>} : memref<32x896xf32, #tpu.memory_space<vmem>>, vector<32x128xf32>,
      %c1_76 = arith.constant 1 : index
      %c0_77 = arith.constant 0 : index
      %147 = vector.load %arg24[%c1_76, %c0_77] : memref<38x128xf32, #tpu.memory_space<vmem>>, vector<32x128xf32>
      %c0_78 = arith.constant 0 : index
      %c128 = arith.constant 128 : index
      %148 = vector.load %arg25[%c0_78, %c128] : memref<32x896xf32, #tpu.memory_space<vmem>>, vector<32x128xf32>
      tpu.vector_store %arg25[%c0_78, %c128], %147 {strides = array<i32>} : memref<32x896xf32, #tpu.memory_space<vmem>>, vector<32x128xf32>,
      %c2_79 = arith.constant 2 : index
      %c0_80 = arith.constant 0 : index
      %149 = vector.load %arg24[%c2_79, %c0_80] : memref<38x128xf32, #tpu.memory_space<vmem>>, vector<32x128xf32>
      %c0_81 = arith.constant 0 : index
      %c256 = arith.constant 256 : index
      %150 = vector.load %arg25[%c0_81, %c256] : memref<32x896xf32, #tpu.memory_space<vmem>>, vector<32x128xf32>
      tpu.vector_store %arg25[%c0_81, %c256], %149 {strides = array<i32>} : memref<32x896xf32, #tpu.memory_space<vmem>>, vector<32x128xf32>,
      %c3_82 = arith.constant 3 : index
      %c0_83 = arith.constant 0 : index
      %151 = vector.load %arg24[%c3_82, %c0_83] : memref<38x128xf32, #tpu.memory_space<vmem>>, vector<32x128xf32>
      %c0_84 = arith.constant 0 : index
      %c384 = arith.constant 384 : index
      %152 = vector.load %arg25[%c0_84, %c384] : memref<32x896xf32, #tpu.memory_space<vmem>>, vector<32x128xf32>
      tpu.vector_store %arg25[%c0_84, %c384], %151 {strides = array<i32>} : memref<32x896xf32, #tpu.memory_space<vmem>>, vector<32x128xf32>,
      %c4_85 = arith.constant 4 : index
      %c0_86 = arith.constant 0 : index
      %153 = vector.load %arg24[%c4_85, %c0_86] : memref<38x128xf32, #tpu.memory_space<vmem>>, vector<32x128xf32>
      %c0_87 = arith.constant 0 : index
      %c512 = arith.constant 512 : index
      %154 = vector.load %arg25[%c0_87, %c512] : memref<32x896xf32, #tpu.memory_space<vmem>>, vector<32x128xf32>
      tpu.vector_store %arg25[%c0_87, %c512], %153 {strides = array<i32>} : memref<32x896xf32, #tpu.memory_space<vmem>>, vector<32x128xf32>,
      %c5_88 = arith.constant 5 : index
      %c0_89 = arith.constant 0 : index
      %155 = vector.load %arg24[%c5_88, %c0_89] : memref<38x128xf32, #tpu.memory_space<vmem>>, vector<32x128xf32>
      %c0_90 = arith.constant 0 : index
      %c640 = arith.constant 640 : index
      %156 = vector.load %arg25[%c0_90, %c640] : memref<32x896xf32, #tpu.memory_space<vmem>>, vector<32x128xf32>
      tpu.vector_store %arg25[%c0_90, %c640], %155 {strides = array<i32>} : memref<32x896xf32, #tpu.memory_space<vmem>>, vector<32x128xf32>,
      %c6_91 = arith.constant 6 : index
      %c0_92 = arith.constant 0 : index
      %157 = vector.load %arg24[%c6_91, %c0_92] : memref<38x128xf32, #tpu.memory_space<vmem>>, vector<32x128xf32>
      %c0_93 = arith.constant 0 : index
      %c768 = arith.constant 768 : index
      %158 = vector.load %arg25[%c0_93, %c768] : memref<32x896xf32, #tpu.memory_space<vmem>>, vector<32x128xf32>
      tpu.vector_store %arg25[%c0_93, %c768], %157 {strides = array<i32>} : memref<32x896xf32, #tpu.memory_space<vmem>>, vector<32x128xf32>,
      %c0_94 = arith.constant 0 : index
      %c0_95 = arith.constant 0 : index
      %159 = vector.load %arg25[%c0_94, %c0_95] : memref<32x896xf32, #tpu.memory_space<vmem>>, vector<32x896xf32>
      %c0_96 = arith.constant 0 : index
      %c0_97 = arith.constant 0 : index
      %160 = vector.load %arg3[%c0_96, %c0_97] : memref<896x64xbf16, #tpu.memory_space<vmem>>, vector<896x64xbf16>
      %161 = arith.truncf %159 : vector<32x896xf32> to vector<32x896xbf16>
      %cst_98 = arith.constant dense<0.000000e+00> : vector<32x64xf32>
      %162 = tpu.matmul %161, %160, %cst_98 {dimension_numbers = #tpu.dot_dimension_numbers<[1], [0], [0], [1], [0, 0, 1, 1], [], []>} : vector<32x896xbf16>, vector<896x64xbf16>, vector<32x64xf32> -> vector<32x64xf32>
      %c0_99 = arith.constant 0 : index
      %c0_100 = arith.constant 0 : index
      %163 = vector.load %arg4[%c0_99, %c0_100] : memref<1x64xf32, #tpu.memory_space<vmem>>, vector<1x64xf32>
      %164 = vector.broadcast %163 : vector<1x64xf32> to vector<32x64xf32>
      %165 = arith.addf %162, %164 : vector<32x64xf32>
      %c0_101 = arith.constant 0 : index
      %c0_102 = arith.constant 0 : index
      %166 = vector.load %arg5[%c0_101, %c0_102] : memref<1x64xf32, #tpu.memory_space<vmem>>, vector<1x64xf32>
      %c0_103 = arith.constant 0 : index
      %c0_104 = arith.constant 0 : index
      %167 = vector.load %arg6[%c0_103, %c0_104] : memref<1x64xf32, #tpu.memory_space<vmem>>, vector<1x64xf32>
      %cst_105 = arith.constant dense<0.000000e+00> : vector<32xf32>
      %168 = vector.multi_reduction <add>, %165, %cst_105 [1] : vector<32x64xf32> to vector<32xf32>
      %169 = vector.shape_cast %168 : vector<32xf32> to vector<32x1xf32>
      %cst_106 = arith.constant 6.400000e+01 : f32
      %170 = vector.broadcast %cst_106 : f32 to vector<32x1xf32>
      %171 = arith.divf %169, %170 : vector<32x1xf32>
      %172 = vector.broadcast %171 : vector<32x1xf32> to vector<32x64xf32>
      %173 = arith.subf %165, %172 : vector<32x64xf32>
      %174 = arith.mulf %173, %173 : vector<32x64xf32>
      %cst_107 = arith.constant dense<0.000000e+00> : vector<32xf32>
      %175 = vector.multi_reduction <add>, %174, %cst_107 [1] : vector<32x64xf32> to vector<32xf32>
      %176 = vector.shape_cast %175 : vector<32xf32> to vector<32x1xf32>
      %cst_108 = arith.constant 6.400000e+01 : f32
      %177 = vector.broadcast %cst_108 : f32 to vector<32x1xf32>
      %178 = arith.divf %176, %177 : vector<32x1xf32>
      %179 = vector.broadcast %171 : vector<32x1xf32> to vector<32x64xf32>
      %180 = arith.subf %165, %179 : vector<32x64xf32>
      %cst_109 = arith.constant 9.99999997E-7 : f32
      %181 = vector.broadcast %cst_109 : f32 to vector<32x1xf32>
      %182 = arith.addf %178, %181 : vector<32x1xf32>
      %183 = math.rsqrt %182 : vector<32x1xf32>
      %184 = vector.broadcast %183 : vector<32x1xf32> to vector<32x64xf32>
      %185 = arith.mulf %180, %184 : vector<32x64xf32>
      %186 = vector.broadcast %166 : vector<1x64xf32> to vector<32x64xf32>
      %187 = arith.mulf %185, %186 : vector<32x64xf32>
      %188 = vector.broadcast %167 : vector<1x64xf32> to vector<32x64xf32>
      %189 = arith.addf %187, %188 : vector<32x64xf32>
      %c0_110 = arith.constant 0 : index
      %c0_111 = arith.constant 0 : index
      %190 = vector.load %arg23[%c0_110, %c0_111] : memref<32x64xf32, #tpu.memory_space<vmem>>, vector<32x64xf32>
      tpu.vector_store %arg23[%c0_110, %c0_111], %189 {strides = array<i32>} : memref<32x64xf32, #tpu.memory_space<vmem>>, vector<32x64xf32>,
      %cst_112 = arith.constant 0.000000e+00 : f32
      %191 = vector.broadcast %cst_112 : f32 to vector<38x64xf32>
      %c0_113 = arith.constant 0 : index
      %c0_114 = arith.constant 0 : index
      %192 = vector.load %arg26[%c0_113, %c0_114] : memref<38x64xf32, #tpu.memory_space<vmem>>, vector<38x64xf32>
      tpu.vector_store %arg26[%c0_113, %c0_114], %191 {strides = array<i32>} : memref<38x64xf32, #tpu.memory_space<vmem>>, vector<38x64xf32>,
    } else {
    }
    %c0 = arith.constant 0 : index
    %c0_1 = arith.constant 0 : index
    %3 = vector.load %arg23[%c0, %c0_1] : memref<32x64xf32, #tpu.memory_space<vmem>>, vector<32x64xf32>
    %c3 = arith.constant 3 : index
    %c0_2 = arith.constant 0 : index
    %4 = vector.load %arg26[%c3, %c0_2] : memref<38x64xf32, #tpu.memory_space<vmem>>, vector<32x64xf32>
    tpu.vector_store %arg26[%c3, %c0_2], %3 {strides = array<i32>} : memref<38x64xf32, #tpu.memory_space<vmem>>, vector<32x64xf32>,
    %c0_3 = arith.constant 0 : index
    %c0_4 = arith.constant 0 : index
    %c0_5 = arith.constant 0 : index
    %5 = vector.load %arg7[%c0_3, %c0_4, %c0_5] : memref<1x7x64xf32, #tpu.memory_space<vmem>>, vector<1x7x64xf32>
    %6 = vector.shape_cast %5 : vector<1x7x64xf32> to vector<7x64xf32>
    %cst = arith.constant 0.000000e+00 : f32
    %7 = vector.broadcast %cst : f32 to vector<32x64xf32>
    %c0_6 = arith.constant 0 : index
    %c0_7 = arith.constant 0 : index
    %8 = vector.load %arg26[%c0_6, %c0_7] : memref<38x64xf32, #tpu.memory_space<vmem>>, vector<32x64xf32>
    %9 = vector.extract_strided_slice %6 {offsets = [0, 0], sizes = [1, 64], strides = [1, 1]} : vector<7x64xf32> to vector<1x64xf32>
    %10 = vector.broadcast %9 : vector<1x64xf32> to vector<32x64xf32>
    %11 = arith.mulf %8, %10 : vector<32x64xf32>
    %12 = arith.addf %7, %11 : vector<32x64xf32>
    %c1 = arith.constant 1 : index
    %c0_8 = arith.constant 0 : index
    %13 = vector.load %arg26[%c1, %c0_8] : memref<38x64xf32, #tpu.memory_space<vmem>>, vector<32x64xf32>
    %14 = vector.extract_strided_slice %6 {offsets = [1, 0], sizes = [1, 64], strides = [1, 1]} : vector<7x64xf32> to vector<1x64xf32>
    %15 = vector.broadcast %14 : vector<1x64xf32> to vector<32x64xf32>
    %16 = arith.mulf %13, %15 : vector<32x64xf32>
    %17 = arith.addf %12, %16 : vector<32x64xf32>
    %c2 = arith.constant 2 : index
    %c0_9 = arith.constant 0 : index
    %18 = vector.load %arg26[%c2, %c0_9] : memref<38x64xf32, #tpu.memory_space<vmem>>, vector<32x64xf32>
    %19 = vector.extract_strided_slice %6 {offsets = [2, 0], sizes = [1, 64], strides = [1, 1]} : vector<7x64xf32> to vector<1x64xf32>
    %20 = vector.broadcast %19 : vector<1x64xf32> to vector<32x64xf32>
    %21 = arith.mulf %18, %20 : vector<32x64xf32>
    %22 = arith.addf %17, %21 : vector<32x64xf32>
    %c3_10 = arith.constant 3 : index
    %c0_11 = arith.constant 0 : index
    %23 = vector.load %arg26[%c3_10, %c0_11] : memref<38x64xf32, #tpu.memory_space<vmem>>, vector<32x64xf32>
    %24 = vector.extract_strided_slice %6 {offsets = [3, 0], sizes = [1, 64], strides = [1, 1]} : vector<7x64xf32> to vector<1x64xf32>
    %25 = vector.broadcast %24 : vector<1x64xf32> to vector<32x64xf32>
    %26 = arith.mulf %23, %25 : vector<32x64xf32>
    %27 = arith.addf %22, %26 : vector<32x64xf32>
    %c4 = arith.constant 4 : index
    %c0_12 = arith.constant 0 : index
    %28 = vector.load %arg26[%c4, %c0_12] : memref<38x64xf32, #tpu.memory_space<vmem>>, vector<32x64xf32>
    %29 = vector.extract_strided_slice %6 {offsets = [4, 0], sizes = [1, 64], strides = [1, 1]} : vector<7x64xf32> to vector<1x64xf32>
    %30 = vector.broadcast %29 : vector<1x64xf32> to vector<32x64xf32>
    %31 = arith.mulf %28, %30 : vector<32x64xf32>
    %32 = arith.addf %27, %31 : vector<32x64xf32>
    %c5 = arith.constant 5 : index
    %c0_13 = arith.constant 0 : index
    %33 = vector.load %arg26[%c5, %c0_13] : memref<38x64xf32, #tpu.memory_space<vmem>>, vector<32x64xf32>
    %34 = vector.extract_strided_slice %6 {offsets = [5, 0], sizes = [1, 64], strides = [1, 1]} : vector<7x64xf32> to vector<1x64xf32>
    %35 = vector.broadcast %34 : vector<1x64xf32> to vector<32x64xf32>
    %36 = arith.mulf %33, %35 : vector<32x64xf32>
    %37 = arith.addf %32, %36 : vector<32x64xf32>
    %c6 = arith.constant 6 : index
    %c0_14 = arith.constant 0 : index
    %38 = vector.load %arg26[%c6, %c0_14] : memref<38x64xf32, #tpu.memory_space<vmem>>, vector<32x64xf32>
    %39 = vector.extract_strided_slice %6 {offsets = [6, 0], sizes = [1, 64], strides = [1, 1]} : vector<7x64xf32> to vector<1x64xf32>
    %40 = vector.broadcast %39 : vector<1x64xf32> to vector<32x64xf32>
    %41 = arith.mulf %38, %40 : vector<32x64xf32>
    %42 = arith.addf %37, %41 : vector<32x64xf32>
    %c0_15 = arith.constant 0 : index
    %c0_16 = arith.constant 0 : index
    %c0_17 = arith.constant 0 : index
    %43 = vector.load %arg8[%c0_15, %c0_16, %c0_17] : memref<1x1x64xf32, #tpu.memory_space<vmem>>, vector<1x1x64xf32>
    %44 = vector.shape_cast %43 : vector<1x1x64xf32> to vector<1x64xf32>
    %45 = vector.broadcast %44 : vector<1x64xf32> to vector<32x64xf32>
    %46 = arith.addf %42, %45 : vector<32x64xf32>
    %c0_18 = arith.constant 0 : index
    %c0_19 = arith.constant 0 : index
    %c0_20 = arith.constant 0 : index
    %47 = vector.load %arg9[%c0_18, %c0_19, %c0_20] : memref<1x1x64xf32, #tpu.memory_space<vmem>>, vector<1x1x64xf32>
    %48 = vector.shape_cast %47 : vector<1x1x64xf32> to vector<1x64xf32>
    %c0_21 = arith.constant 0 : index
    %c0_22 = arith.constant 0 : index
    %c0_23 = arith.constant 0 : index
    %49 = vector.load %arg10[%c0_21, %c0_22, %c0_23] : memref<1x1x64xf32, #tpu.memory_space<vmem>>, vector<1x1x64xf32>
    %50 = vector.shape_cast %49 : vector<1x1x64xf32> to vector<1x64xf32>
    %cst_24 = arith.constant dense<0.000000e+00> : vector<32xf32>
    %51 = vector.multi_reduction <add>, %46, %cst_24 [1] : vector<32x64xf32> to vector<32xf32>
    %52 = vector.shape_cast %51 : vector<32xf32> to vector<32x1xf32>
    %cst_25 = arith.constant 6.400000e+01 : f32
    %53 = vector.broadcast %cst_25 : f32 to vector<32x1xf32>
    %54 = arith.divf %52, %53 : vector<32x1xf32>
    %55 = vector.broadcast %54 : vector<32x1xf32> to vector<32x64xf32>
    %56 = arith.subf %46, %55 : vector<32x64xf32>
    %57 = arith.mulf %56, %56 : vector<32x64xf32>
    %cst_26 = arith.constant dense<0.000000e+00> : vector<32xf32>
    %58 = vector.multi_reduction <add>, %57, %cst_26 [1] : vector<32x64xf32> to vector<32xf32>
    %59 = vector.shape_cast %58 : vector<32xf32> to vector<32x1xf32>
    %cst_27 = arith.constant 6.400000e+01 : f32
    %60 = vector.broadcast %cst_27 : f32 to vector<32x1xf32>
    %61 = arith.divf %59, %60 : vector<32x1xf32>
    %62 = vector.broadcast %54 : vector<32x1xf32> to vector<32x64xf32>
    %63 = arith.subf %46, %62 : vector<32x64xf32>
    %cst_28 = arith.constant 9.99999997E-7 : f32
    %64 = vector.broadcast %cst_28 : f32 to vector<32x1xf32>
    %65 = arith.addf %61, %64 : vector<32x1xf32>
    %66 = math.rsqrt %65 : vector<32x1xf32>
    %67 = vector.broadcast %66 : vector<32x1xf32> to vector<32x64xf32>
    %68 = arith.mulf %63, %67 : vector<32x64xf32>
    %69 = vector.broadcast %48 : vector<1x64xf32> to vector<32x64xf32>
    %70 = arith.mulf %68, %69 : vector<32x64xf32>
    %71 = vector.broadcast %50 : vector<1x64xf32> to vector<32x64xf32>
    %72 = arith.addf %70, %71 : vector<32x64xf32>
    %c0_29 = arith.constant 0 : index
    %c0_30 = arith.constant 0 : index
    %c0_31 = arith.constant 0 : index
    %73 = vector.load %arg11[%c0_29, %c0_30, %c0_31] : memref<1x64x128xbf16, #tpu.memory_space<vmem>>, vector<1x64x128xbf16>
    %74 = vector.shape_cast %73 : vector<1x64x128xbf16> to vector<64x128xbf16>
    %75 = arith.truncf %72 : vector<32x64xf32> to vector<32x64xbf16>
    %cst_32 = arith.constant dense<0.000000e+00> : vector<32x128xf32>
    %76 = tpu.matmul %75, %74, %cst_32 {dimension_numbers = #tpu.dot_dimension_numbers<[1], [0], [0], [1], [0, 0, 1, 1], [], []>} : vector<32x64xbf16>, vector<64x128xbf16>, vector<32x128xf32> -> vector<32x128xf32>
    %c0_33 = arith.constant 0 : index
    %c0_34 = arith.constant 0 : index
    %c0_35 = arith.constant 0 : index
    %77 = vector.load %arg12[%c0_33, %c0_34, %c0_35] : memref<1x1x128xf32, #tpu.memory_space<vmem>>, vector<1x1x128xf32>
    %78 = vector.shape_cast %77 : vector<1x1x128xf32> to vector<1x128xf32>
    %79 = vector.broadcast %78 : vector<1x128xf32> to vector<32x128xf32>
    %80 = arith.addf %76, %79 : vector<32x128xf32>
    %cst_36 = arith.constant 5.000000e-01 : f32
    %81 = vector.broadcast %cst_36 : f32 to vector<32x128xf32>
    %82 = arith.mulf %81, %80 : vector<32x128xf32>
    %cst_37 = arith.constant 0.707106769 : f32
    %83 = vector.broadcast %cst_37 : f32 to vector<32x128xf32>
    %84 = arith.mulf %80, %83 : vector<32x128xf32>
    %cst_38 = arith.constant 0.000000e+00 : f32
    %85 = vector.broadcast %cst_38 : f32 to vector<32x128xf32>
    %86 = arith.cmpf oge, %84, %85 : vector<32x128xf32>
    %cst_39 = arith.constant 1.000000e+00 : f32
    %cst_40 = arith.constant -1.000000e+00 : f32
    %87 = vector.broadcast %cst_39 : f32 to vector<32x128xf32>
    %88 = vector.broadcast %cst_40 : f32 to vector<32x128xf32>
    %89 = arith.select %86, %87, %88 : vector<32x128xi1>, vector<32x128xf32>
    %90 = math.absf %84 : vector<32x128xf32>
    %cst_41 = arith.constant 0.327591091 : f32
    %91 = vector.broadcast %cst_41 : f32 to vector<32x128xf32>
    %92 = arith.mulf %91, %90 : vector<32x128xf32>
    %cst_42 = arith.constant 1.000000e+00 : f32
    %93 = vector.broadcast %cst_42 : f32 to vector<32x128xf32>
    %94 = arith.addf %93, %92 : vector<32x128xf32>
    %cst_43 = arith.constant 1.000000e+00 : f32
    %95 = vector.broadcast %cst_43 : f32 to vector<32x128xf32>
    %96 = arith.divf %95, %94 : vector<32x128xf32>
    %cst_44 = arith.constant 1.06140542 : f32
    %97 = vector.broadcast %cst_44 : f32 to vector<32x128xf32>
    %98 = arith.mulf %97, %96 : vector<32x128xf32>
    %cst_45 = arith.constant -1.45315206 : f32
    %99 = vector.broadcast %cst_45 : f32 to vector<32x128xf32>
    %100 = arith.addf %98, %99 : vector<32x128xf32>
    %101 = arith.mulf %100, %96 : vector<32x128xf32>
    %cst_46 = arith.constant 1.42141378 : f32
    %102 = vector.broadcast %cst_46 : f32 to vector<32x128xf32>
    %103 = arith.addf %101, %102 : vector<32x128xf32>
    %104 = arith.mulf %103, %96 : vector<32x128xf32>
    %cst_47 = arith.constant -0.284496725 : f32
    %105 = vector.broadcast %cst_47 : f32 to vector<32x128xf32>
    %106 = arith.addf %104, %105 : vector<32x128xf32>
    %107 = arith.mulf %106, %96 : vector<32x128xf32>
    %cst_48 = arith.constant 0.254829586 : f32
    %108 = vector.broadcast %cst_48 : f32 to vector<32x128xf32>
    %109 = arith.addf %107, %108 : vector<32x128xf32>
    %110 = arith.mulf %109, %96 : vector<32x128xf32>
    %cst_49 = arith.constant 0.000000e+00 : f32
    %111 = vector.broadcast %cst_49 : f32 to vector<32x128xf32>
    %112 = arith.subf %111, %90 : vector<32x128xf32>
    %113 = arith.mulf %112, %90 : vector<32x128xf32>
    %114 = math.exp %113 : vector<32x128xf32>
    %115 = arith.mulf %110, %114 : vector<32x128xf32>
    %cst_50 = arith.constant 1.000000e+00 : f32
    %116 = vector.broadcast %cst_50 : f32 to vector<32x128xf32>
    %117 = arith.subf %116, %115 : vector<32x128xf32>
    %118 = arith.mulf %89, %117 : vector<32x128xf32>
    %cst_51 = arith.constant 1.000000e+00 : f32
    %119 = vector.broadcast %cst_51 : f32 to vector<32x128xf32>
    %120 = arith.addf %119, %118 : vector<32x128xf32>
    %121 = arith.mulf %82, %120 : vector<32x128xf32>
    %c0_52 = arith.constant 0 : index
    %c0_53 = arith.constant 0 : index
    %c0_54 = arith.constant 0 : index
    %122 = vector.load %arg13[%c0_52, %c0_53, %c0_54] : memref<1x128x64xbf16, #tpu.memory_space<vmem>>, vector<1x128x64xbf16>
    %123 = vector.shape_cast %122 : vector<1x128x64xbf16> to vector<128x64xbf16>
    %124 = arith.truncf %121 : vector<32x128xf32> to vector<32x128xbf16>
    %cst_55 = arith.constant dense<0.000000e+00> : vector<32x64xf32>
    %125 = tpu.matmul %124, %123, %cst_55 {dimension_numbers = #tpu.dot_dimension_numbers<[1], [0], [0], [1], [0, 0, 1, 1], [], []>} : vector<32x128xbf16>, vector<128x64xbf16>, vector<32x64xf32> -> vector<32x64xf32>
    %c0_56 = arith.constant 0 : index
    %c0_57 = arith.constant 0 : index
    %c0_58 = arith.constant 0 : index
    %126 = vector.load %arg14[%c0_56, %c0_57, %c0_58] : memref<1x1x64xf32, #tpu.memory_space<vmem>>, vector<1x1x64xf32>
    %127 = vector.shape_cast %126 : vector<1x1x64xf32> to vector<1x64xf32>
    %128 = vector.broadcast %127 : vector<1x64xf32> to vector<32x64xf32>
    %129 = arith.addf %125, %128 : vector<32x64xf32>
    %c0_59 = arith.constant 0 : index
    %c0_60 = arith.constant 0 : index
    %c0_61 = arith.constant 0 : index
    %130 = vector.load %arg15[%c0_59, %c0_60, %c0_61] : memref<1x1x64xf32, #tpu.memory_space<vmem>>, vector<1x1x64xf32>
    %131 = vector.shape_cast %130 : vector<1x1x64xf32> to vector<1x64xf32>
    %132 = vector.broadcast %131 : vector<1x64xf32> to vector<32x64xf32>
    %133 = arith.mulf %132, %129 : vector<32x64xf32>
    %134 = arith.addf %3, %133 : vector<32x64xf32>
    %c0_62 = arith.constant 0 : index
    %c0_63 = arith.constant 0 : index
    %135 = vector.load %arg23[%c0_62, %c0_63] : memref<32x64xf32, #tpu.memory_space<vmem>>, vector<32x64xf32>
    tpu.vector_store %arg23[%c0_62, %c0_63], %134 {strides = array<i32>} : memref<32x64xf32, #tpu.memory_space<vmem>>, vector<32x64xf32>,
    %c1_i32 = arith.constant 1 : i32
    %136 = arith.cmpi eq, %arg0, %c1_i32 : i32
    %137 = arith.extui %136 : i1 to i32
    %c0_i32_64 = arith.constant 0 : i32
    %138 = arith.cmpi ne, %137, %c0_i32_64 : i32
    scf.if %138 {
      %c0_65 = arith.constant 0 : index
      %c0_66 = arith.constant 0 : index
      %139 = vector.load %arg23[%c0_65, %c0_66] : memref<32x64xf32, #tpu.memory_space<vmem>>, vector<32x64xf32>
      %c0_67 = arith.constant 0 : index
      %c0_68 = arith.constant 0 : index
      %140 = vector.load %arg16[%c0_67, %c0_68] : memref<1x64xf32, #tpu.memory_space<vmem>>, vector<1x64xf32>
      %c0_69 = arith.constant 0 : index
      %c0_70 = arith.constant 0 : index
      %141 = vector.load %arg17[%c0_69, %c0_70] : memref<1x64xf32, #tpu.memory_space<vmem>>, vector<1x64xf32>
      %cst_71 = arith.constant dense<0.000000e+00> : vector<32xf32>
      %142 = vector.multi_reduction <add>, %139, %cst_71 [1] : vector<32x64xf32> to vector<32xf32>
      %143 = vector.shape_cast %142 : vector<32xf32> to vector<32x1xf32>
      %cst_72 = arith.constant 6.400000e+01 : f32
      %144 = vector.broadcast %cst_72 : f32 to vector<32x1xf32>
      %145 = arith.divf %143, %144 : vector<32x1xf32>
      %146 = vector.broadcast %145 : vector<32x1xf32> to vector<32x64xf32>
      %147 = arith.subf %139, %146 : vector<32x64xf32>
      %148 = arith.mulf %147, %147 : vector<32x64xf32>
      %cst_73 = arith.constant dense<0.000000e+00> : vector<32xf32>
      %149 = vector.multi_reduction <add>, %148, %cst_73 [1] : vector<32x64xf32> to vector<32xf32>
      %150 = vector.shape_cast %149 : vector<32xf32> to vector<32x1xf32>
      %cst_74 = arith.constant 6.400000e+01 : f32
      %151 = vector.broadcast %cst_74 : f32 to vector<32x1xf32>
      %152 = arith.divf %150, %151 : vector<32x1xf32>
      %153 = vector.broadcast %145 : vector<32x1xf32> to vector<32x64xf32>
      %154 = arith.subf %139, %153 : vector<32x64xf32>
      %cst_75 = arith.constant 9.99999997E-7 : f32
      %155 = vector.broadcast %cst_75 : f32 to vector<32x1xf32>
      %156 = arith.addf %152, %155 : vector<32x1xf32>
      %157 = math.rsqrt %156 : vector<32x1xf32>
      %158 = vector.broadcast %157 : vector<32x1xf32> to vector<32x64xf32>
      %159 = arith.mulf %154, %158 : vector<32x64xf32>
      %160 = vector.broadcast %140 : vector<1x64xf32> to vector<32x64xf32>
      %161 = arith.mulf %159, %160 : vector<32x64xf32>
      %162 = vector.broadcast %141 : vector<1x64xf32> to vector<32x64xf32>
      %163 = arith.addf %161, %162 : vector<32x64xf32>
      %c0_76 = arith.constant 0 : index
      %c0_77 = arith.constant 0 : index
      %164 = vector.load %arg18[%c0_76, %c0_77] : memref<64x768xbf16, #tpu.memory_space<vmem>>, vector<64x768xbf16>
      %165 = arith.truncf %163 : vector<32x64xf32> to vector<32x64xbf16>
      %cst_78 = arith.constant dense<0.000000e+00> : vector<32x768xf32>
      %166 = tpu.matmul %165, %164, %cst_78 {dimension_numbers = #tpu.dot_dimension_numbers<[1], [0], [0], [1], [0, 0, 1, 1], [], []>} : vector<32x64xbf16>, vector<64x768xbf16>, vector<32x768xf32> -> vector<32x768xf32>
      %c0_79 = arith.constant 0 : index
      %c0_80 = arith.constant 0 : index
      %167 = vector.load %arg19[%c0_79, %c0_80] : memref<1x768xf32, #tpu.memory_space<vmem>>, vector<1x768xf32>
      %168 = vector.broadcast %167 : vector<1x768xf32> to vector<32x768xf32>
      %169 = arith.addf %166, %168 : vector<32x768xf32>
      %170 = vector.extract_strided_slice %169 {offsets = [0, 0], sizes = [32, 384], strides = [1, 1]} : vector<32x768xf32> to vector<32x384xf32>
      %171 = math.exp %170 : vector<32x384xf32>
      %cst_81 = arith.constant 1.000000e+02 : f32
      %172 = vector.broadcast %cst_81 : f32 to vector<32x384xf32>
      %173 = arith.minimumf %171, %172 : vector<32x384xf32>
      %174 = vector.extract_strided_slice %169 {offsets = [0, 384], sizes = [32, 384], strides = [1, 1]} : vector<32x768xf32> to vector<32x384xf32>
      %175 = math.cos %174 : vector<32x384xf32>
      %176 = arith.mulf %173, %175 : vector<32x384xf32>
      %177 = math.sin %174 : vector<32x384xf32>
      %178 = arith.mulf %173, %177 : vector<32x384xf32>
      %179 = tpu.concatenate %176, %178 in 1 : vector<32x384xf32>, vector<32x384xf32> -> vector<32x768xf32>
      %c0_82 = arith.constant 0 : index
      %c0_83 = arith.constant 0 : index
      %180 = vector.load %arg20[%c0_82, %c0_83] : memref<768x512xbf16, #tpu.memory_space<vmem>>, vector<768x512xbf16>
      %181 = arith.truncf %179 : vector<32x768xf32> to vector<32x768xbf16>
      %cst_84 = arith.constant dense<0.000000e+00> : vector<32x512xf32>
      %182 = tpu.matmul %181, %180, %cst_84 {dimension_numbers = #tpu.dot_dimension_numbers<[1], [0], [0], [1], [0, 0, 1, 1], [], []>} : vector<32x768xbf16>, vector<768x512xbf16>, vector<32x512xf32> -> vector<32x512xf32>
      %cst_85 = arith.constant 0.000000e+00 : f32
      %183 = vector.broadcast %cst_85 : f32 to vector<35x128xf32>
      %c0_86 = arith.constant 0 : index
      %c0_87 = arith.constant 0 : index
      %184 = vector.load %arg27[%c0_86, %c0_87] : memref<35x128xf32, #tpu.memory_space<vmem>>, vector<35x128xf32>
      tpu.vector_store %arg27[%c0_86, %c0_87], %183 {strides = array<i32>} : memref<35x128xf32, #tpu.memory_space<vmem>>, vector<35x128xf32>,
      %c0_88 = arith.constant 0 : index
      %c0_89 = arith.constant 0 : index
      %185 = vector.load %arg27[%c0_88, %c0_89] : memref<35x128xf32, #tpu.memory_space<vmem>>, vector<32x128xf32>
      %186 = vector.extract_strided_slice %182 {offsets = [0, 0], sizes = [32, 128], strides = [1, 1]} : vector<32x512xf32> to vector<32x128xf32>
      %187 = arith.addf %185, %186 : vector<32x128xf32>
      %c0_90 = arith.constant 0 : index
      %c0_91 = arith.constant 0 : index
      %188 = vector.load %arg27[%c0_90, %c0_91] : memref<35x128xf32, #tpu.memory_space<vmem>>, vector<32x128xf32>
      tpu.vector_store %arg27[%c0_90, %c0_91], %187 {strides = array<i32>} : memref<35x128xf32, #tpu.memory_space<vmem>>, vector<32x128xf32>,
      %c1_92 = arith.constant 1 : index
      %c0_93 = arith.constant 0 : index
      %189 = vector.load %arg27[%c1_92, %c0_93] : memref<35x128xf32, #tpu.memory_space<vmem>>, vector<32x128xf32>
      %190 = vector.extract_strided_slice %182 {offsets = [0, 128], sizes = [32, 128], strides = [1, 1]} : vector<32x512xf32> to vector<32x128xf32>
      %191 = arith.addf %189, %190 : vector<32x128xf32>
      %c1_94 = arith.constant 1 : index
      %c0_95 = arith.constant 0 : index
      %192 = vector.load %arg27[%c1_94, %c0_95] : memref<35x128xf32, #tpu.memory_space<vmem>>, vector<32x128xf32>
      tpu.vector_store %arg27[%c1_94, %c0_95], %191 {strides = array<i32>} : memref<35x128xf32, #tpu.memory_space<vmem>>, vector<32x128xf32>,
      %c2_96 = arith.constant 2 : index
      %c0_97 = arith.constant 0 : index
      %193 = vector.load %arg27[%c2_96, %c0_97] : memref<35x128xf32, #tpu.memory_space<vmem>>, vector<32x128xf32>
      %194 = vector.extract_strided_slice %182 {offsets = [0, 256], sizes = [32, 128], strides = [1, 1]} : vector<32x512xf32> to vector<32x128xf32>
      %195 = arith.addf %193, %194 : vector<32x128xf32>
      %c2_98 = arith.constant 2 : index
      %c0_99 = arith.constant 0 : index
      %196 = vector.load %arg27[%c2_98, %c0_99] : memref<35x128xf32, #tpu.memory_space<vmem>>, vector<32x128xf32>
      tpu.vector_store %arg27[%c2_98, %c0_99], %195 {strides = array<i32>} : memref<35x128xf32, #tpu.memory_space<vmem>>, vector<32x128xf32>,
      %c3_100 = arith.constant 3 : index
      %c0_101 = arith.constant 0 : index
      %197 = vector.load %arg27[%c3_100, %c0_101] : memref<35x128xf32, #tpu.memory_space<vmem>>, vector<32x128xf32>
      %198 = vector.extract_strided_slice %182 {offsets = [0, 384], sizes = [32, 128], strides = [1, 1]} : vector<32x512xf32> to vector<32x128xf32>
      %199 = arith.addf %197, %198 : vector<32x128xf32>
      %c3_102 = arith.constant 3 : index
      %c0_103 = arith.constant 0 : index
      %200 = vector.load %arg27[%c3_102, %c0_103] : memref<35x128xf32, #tpu.memory_space<vmem>>, vector<32x128xf32>
      tpu.vector_store %arg27[%c3_102, %c0_103], %199 {strides = array<i32>} : memref<35x128xf32, #tpu.memory_space<vmem>>, vector<32x128xf32>,
      %c0_104 = arith.constant 0 : index
      %c0_105 = arith.constant 0 : index
      %201 = vector.load %arg27[%c0_104, %c0_105] : memref<35x128xf32, #tpu.memory_space<vmem>>, vector<35x128xf32>
      %c0_106 = arith.constant 0 : index
      %c0_107 = arith.constant 0 : index
      %202 = vector.load %arg21[%c0_106, %c0_107] : memref<35x128xf32, #tpu.memory_space<vmem>>, vector<35x128xf32>
      %203 = arith.mulf %201, %202 : vector<35x128xf32>
      %204 = vector.extract_strided_slice %203 {offsets = [2, 0], sizes = [31, 128], strides = [1, 1]} : vector<35x128xf32> to vector<31x128xf32>
      %205 = arith.mulf %204, %204 : vector<31x128xf32>
      %206 = vector.shape_cast %205 : vector<31x128xf32> to vector<1x31x128xf32>
      %cst_108 = arith.constant dense<0.000000e+00> : vector<1xf32>
      %207 = vector.multi_reduction <add>, %206, %cst_108 [1, 2] : vector<1x31x128xf32> to vector<1xf32>
      %208 = vector.shape_cast %207 : vector<1xf32> to vector<1x1x1xf32>
      %209 = vector.extract %208[0, 0, 0] : f32 from vector<1x1x1xf32>
      %cst_109 = arith.constant 3.968000e+03 : f32
      %210 = arith.divf %209, %cst_109 : f32
      %211 = math.rsqrt %210 : f32
      %cst_110 = arith.constant 1.500000e-01 : f32
      %212 = arith.mulf %cst_110, %211 : f32
      %213 = vector.broadcast %212 : f32 to vector<31x128xf32>
      %214 = arith.mulf %204, %213 : vector<31x128xf32>
      %c0_111 = arith.constant 0 : index
      %c0_112 = arith.constant 0 : index
      %215 = vector.load %arg22[%c0_111, %c0_112] : memref<31x128xf32, #tpu.memory_space<vmem>>, vector<31x128xf32>
      tpu.vector_store %arg22[%c0_111, %c0_112], %214 {strides = array<i32>} : memref<31x128xf32, #tpu.memory_space<vmem>>, vector<31x128xf32>,
    } else {
    }
    return
  }
  func.func @transform_0(%arg0: i32, %arg1: memref<1xi32, #tpu.memory_space<smem>>) -> (i32, i32) {
    %c0_i32 = arith.constant 0 : i32
    %c0_i32_0 = arith.constant 0 : i32
    %c0_i32_1 = arith.constant 0 : i32
    return %c0_i32, %c0_i32_0 : i32, i32
  }
  func.func @transform_1(%arg0: i32, %arg1: memref<1xi32, #tpu.memory_space<smem>>) -> (i32, i32) {
    %c0_i32 = arith.constant 0 : i32
    %c0_i32_0 = arith.constant 0 : i32
    %c0_i32_1 = arith.constant 0 : i32
    return %c0_i32, %c0_i32_0 : i32, i32
  }
  func.func @transform_2(%arg0: i32, %arg1: memref<1xi32, #tpu.memory_space<smem>>) -> (i32, i32) {
    %c0_i32 = arith.constant 0 : i32
    %c0_i32_0 = arith.constant 0 : i32
    %c0_i32_1 = arith.constant 0 : i32
    return %c0_i32, %c0_i32_0 : i32, i32
  }
  func.func @transform_3(%arg0: i32, %arg1: memref<1xi32, #tpu.memory_space<smem>>) -> (i32, i32) {
    %c0_i32 = arith.constant 0 : i32
    %c0_i32_0 = arith.constant 0 : i32
    %c0_i32_1 = arith.constant 0 : i32
    return %c0_i32, %c0_i32_0 : i32, i32
  }
  func.func @transform_4(%arg0: i32, %arg1: memref<1xi32, #tpu.memory_space<smem>>) -> (i32, i32) {
    %c0_i32 = arith.constant 0 : i32
    %c0_i32_0 = arith.constant 0 : i32
    %c0_i32_1 = arith.constant 0 : i32
    return %c0_i32, %c0_i32_0 : i32, i32
  }
  func.func @transform_5(%arg0: i32, %arg1: memref<1xi32, #tpu.memory_space<smem>>) -> (i32, i32, i32) {
    %c0_i32 = arith.constant 0 : i32
    %c0_i32_0 = arith.constant 0 : i32
    %c0_i32_1 = arith.constant 0 : i32
    return %arg0, %c0_i32, %c0_i32_0 : i32, i32, i32
  }
  func.func @transform_6(%arg0: i32, %arg1: memref<1xi32, #tpu.memory_space<smem>>) -> (i32, i32, i32) {
    %c0_i32 = arith.constant 0 : i32
    %c0_i32_0 = arith.constant 0 : i32
    %c0_i32_1 = arith.constant 0 : i32
    return %arg0, %c0_i32, %c0_i32_0 : i32, i32, i32
  }
  func.func @transform_7(%arg0: i32, %arg1: memref<1xi32, #tpu.memory_space<smem>>) -> (i32, i32, i32) {
    %c0_i32 = arith.constant 0 : i32
    %c0_i32_0 = arith.constant 0 : i32
    %c0_i32_1 = arith.constant 0 : i32
    return %arg0, %c0_i32, %c0_i32_0 : i32, i32, i32
  }
  func.func @transform_8(%arg0: i32, %arg1: memref<1xi32, #tpu.memory_space<smem>>) -> (i32, i32, i32) {
    %c0_i32 = arith.constant 0 : i32
    %c0_i32_0 = arith.constant 0 : i32
    %c0_i32_1 = arith.constant 0 : i32
    return %arg0, %c0_i32, %c0_i32_0 : i32, i32, i32
  }
  func.func @transform_9(%arg0: i32, %arg1: memref<1xi32, #tpu.memory_space<smem>>) -> (i32, i32, i32) {
    %c0_i32 = arith.constant 0 : i32
    %c0_i32_0 = arith.constant 0 : i32
    %c0_i32_1 = arith.constant 0 : i32
    return %arg0, %c0_i32, %c0_i32_0 : i32, i32, i32
  }
  func.func @transform_10(%arg0: i32, %arg1: memref<1xi32, #tpu.memory_space<smem>>) -> (i32, i32, i32) {
    %c0_i32 = arith.constant 0 : i32
    %c0_i32_0 = arith.constant 0 : i32
    %c0_i32_1 = arith.constant 0 : i32
    return %arg0, %c0_i32, %c0_i32_0 : i32, i32, i32
  }
  func.func @transform_11(%arg0: i32, %arg1: memref<1xi32, #tpu.memory_space<smem>>) -> (i32, i32, i32) {
    %c0_i32 = arith.constant 0 : i32
    %c0_i32_0 = arith.constant 0 : i32
    %c0_i32_1 = arith.constant 0 : i32
    return %arg0, %c0_i32, %c0_i32_0 : i32, i32, i32
  }
  func.func @transform_12(%arg0: i32, %arg1: memref<1xi32, #tpu.memory_space<smem>>) -> (i32, i32, i32) {
    %c0_i32 = arith.constant 0 : i32
    %c0_i32_0 = arith.constant 0 : i32
    %c0_i32_1 = arith.constant 0 : i32
    return %arg0, %c0_i32, %c0_i32_0 : i32, i32, i32
  }
  func.func @transform_13(%arg0: i32, %arg1: memref<1xi32, #tpu.memory_space<smem>>) -> (i32, i32, i32) {
    %c0_i32 = arith.constant 0 : i32
    %c0_i32_0 = arith.constant 0 : i32
    %c0_i32_1 = arith.constant 0 : i32
    return %arg0, %c0_i32, %c0_i32_0 : i32, i32, i32
  }
  func.func @transform_14(%arg0: i32, %arg1: memref<1xi32, #tpu.memory_space<smem>>) -> (i32, i32) {
    %c0_i32 = arith.constant 0 : i32
    %c0_i32_0 = arith.constant 0 : i32
    %c0_i32_1 = arith.constant 0 : i32
    return %c0_i32, %c0_i32_0 : i32, i32
  }
  func.func @transform_15(%arg0: i32, %arg1: memref<1xi32, #tpu.memory_space<smem>>) -> (i32, i32) {
    %c0_i32 = arith.constant 0 : i32
    %c0_i32_0 = arith.constant 0 : i32
    %c0_i32_1 = arith.constant 0 : i32
    return %c0_i32, %c0_i32_0 : i32, i32
  }
  func.func @transform_16(%arg0: i32, %arg1: memref<1xi32, #tpu.memory_space<smem>>) -> (i32, i32) {
    %c0_i32 = arith.constant 0 : i32
    %c0_i32_0 = arith.constant 0 : i32
    %c0_i32_1 = arith.constant 0 : i32
    return %c0_i32, %c0_i32_0 : i32, i32
  }
  func.func @transform_17(%arg0: i32, %arg1: memref<1xi32, #tpu.memory_space<smem>>) -> (i32, i32) {
    %c0_i32 = arith.constant 0 : i32
    %c0_i32_0 = arith.constant 0 : i32
    %c0_i32_1 = arith.constant 0 : i32
    return %c0_i32, %c0_i32_0 : i32, i32
  }
  func.func @transform_18(%arg0: i32, %arg1: memref<1xi32, #tpu.memory_space<smem>>) -> (i32, i32) {
    %c0_i32 = arith.constant 0 : i32
    %c0_i32_0 = arith.constant 0 : i32
    %c0_i32_1 = arith.constant 0 : i32
    return %c0_i32, %c0_i32_0 : i32, i32
  }
  func.func @transform_19(%arg0: i32, %arg1: memref<1xi32, #tpu.memory_space<smem>>) -> (i32, i32) {
    %c0_i32 = arith.constant 0 : i32
    %c0_i32_0 = arith.constant 0 : i32
    %c0_i32_1 = arith.constant 0 : i32
    return %c0_i32, %c0_i32_0 : i32, i32
  }
  func.func @transform_20(%arg0: i32, %arg1: memref<1xi32, #tpu.memory_space<smem>>) -> (i32, i32) {
    %c0_i32 = arith.constant 0 : i32
    %c0_i32_0 = arith.constant 0 : i32
    %c0_i32_1 = arith.constant 0 : i32
    return %c0_i32, %c0_i32_0 : i32, i32
  }
}

</mosaic_0001>

<bundles_post_ra>
// kernel: _f5_decode_pallas.1
= control target key start
LH: loop header
LB: loop body
LE: loop exit
PB: predicated region body
PF: predicated region fallthrough
CT: control target
= control target key end

     0   :  { %s13051_s0 = inlined_call_operand.<no memory space> [shape: s32[1], index: 0, kind: input, shape index: {}]   ;;  %s13052_s1 = inlined_call_operand.vmem [shape: f32[40,100], index: 1, kind: input, shape index: {}]   ;;  %s13053_s2 = inlined_call_operand.vmem [shape: bf16[896,64], index: 2, kind: input, shape index: {}]   ;;  %s13054_s3 = inlined_call_operand.vmem [shape: f32[1,64], index: 3, kind: input, shape index: {}]   ;;  %s13055_s4 = inlined_call_operand.vmem [shape: f32[1,64], index: 4, kind: input, shape index: {}]   ;;  %s13056_s5 = inlined_call_operand.vmem [shape: f32[1,64], index: 5, kind: input, shape index: {}]   ;;  %s13057_s6 = inlined_call_operand.vmem [shape: f32[2,7,64], index: 6, kind: input, shape index: {}]   ;;  %s13058_s7 = inlined_call_operand.vmem [shape: f32[2,1,64], index: 7, kind: input, shape index: {}]   ;;  %s13059_s8 = inlined_call_operand.vmem [shape: f32[2,1,64], index: 8, kind: input, shape index: {}]   ;;  %s13060_s9 = inlined_call_operand.vmem [shape: f32[2,1,64], index: 9, kind: input, shape index: {}]   ;;  %s13061_s10 = inlined_call_operand.vmem [shape: bf16[2,64,128], index: 10, kind: input, shape index: {}]   ;;  %s13062_s11 = inlined_call_operand.vmem [shape: f32[2,1,128], index: 11, kind: input, shape index: {}]   ;;  %s13063_s12 = inlined_call_operand.vmem [shape: bf16[2,128,64], index: 12, kind: input, shape index: {}]   ;;  %s13064_s13 = inlined_call_operand.vmem [shape: f32[2,1,64], index: 13, kind: input, shape index: {}]   ;;  %s13065_s14 = inlined_call_operand.vmem [shape: f32[2,1,64], index: 14, kind: input, shape index: {}]   ;;  %s13066_s15 = inlined_call_operand.vmem [shape: f32[1,64], index: 15, kind: input, shape index: {}]   ;;  %s13067_s16 = inlined_call_operand.vmem [shape: f32[1,64], index: 16, kind: input, shape index: {}]   ;;  %s13068_s17 = inlined_call_operand.vmem [shape: bf16[64,768], index: 17, kind: input, shape index: {}]   ;;  %s13069_s18 = inlined_call_operand.vmem [shape: f32[1,768], index: 18, kind: input, shape index: {}]   ;;  %s13070_s19 = inlined_call_operand.hbm [shape: bf16[768,512], index: 19, kind: input, shape index: {}]   ;;  %s13071_s20 = inlined_call_operand.vmem [shape: f32[35,128], index: 20, kind: input, shape index: {}]   ;;  %s13072_s21 = inlined_call_operand.vmem [shape: f32[31,128], index: 21, kind: output, shape index: {}]  }
   0x1   :  { %13184 = sst [smem:[#allocation57_spill]] %s13051_s0 }
   0x2   :  { %13185 = sst [smem:[#allocation58_spill]] %s13052_s1 }
   0x3   :  { %13186 = sst [smem:[#allocation59_spill]] %s13053_s2 }
   0x4   :  { %13187 = sst [smem:[#allocation60_spill]] %s13054_s3 }
   0x5   :  { %13188 = sst [smem:[#allocation61_spill]] %s13055_s4 }
   0x6   :  { %13189 = sst [smem:[#allocation62_spill]] %s13056_s5 }
   0x7   :  { %13190 = sst [smem:[#allocation63_spill]] %s13069_s18 }
   0x8   :  { %13191 = sst [smem:[#allocation64_spill]] %s13070_s19 }
   0x9   :  { %13192 = sst [smem:[#allocation65_spill]] %s13071_s20 }
   0xa   :  { %13193 = sst [smem:[#allocation66_spill]] %s13072_s21 }
   0xb   :  { %s13194_s26 = sld [smem:[#allocation57_spill]] }
  0x11   :  { %26 = sst [smem:[#allocation8]] %s13194_s26 }
  0x12   :  { %27 = vsyncpa [#allocation10], 0  ;;  %s10012_s27 = smov 0  }
  0x13 LB: > { %13195 = sst [smem:[#allocation12_spill]] %s9881_s27  ;;  %s10021_s0 = sadd.s32 4294967295, %s9881_s27   ;;  %s9881_s27 = sphi %s10012_s27, %s33_s27  }
  0x14   : > { %s13196_s19 = sld [smem:[#allocation64_spill]]  ;;  %p8168_p0 = scmp.ge.s32.totalorder %s9881_s27, 1 }
  0x15   : > { %p524_p1 = scmp.lt.s32.totalorder %s9881_s27, 3  ;;  %p8169_p2 = scmp.ne.s32.totalorder %s10021_s0, 0 }
  0x16   : > { %p9732_p3 = scmp.eq.s32.totalorder %s10021_s0, 0  ;;  %s9883_s4 = smov [#allocation9]  }
  0x17   : > { %p525_p4 = pnand %p8168_p0, %p524_p1  ;;  %s564_s30 = sshll.u32 %s9883_s4, 4  ;;  %s565_s30 = int_to_ptr.vmem [resolvable:$true] %s564_s30 }
  0x18   : > { %s9884_s5 = smov 256   ;;  %s9885_s22 = smov 16  }
  0x19   : > { %p9728_p5 = pneg %p525_p4  ;;  %642 = sbr.rel (%p525_p4) target bundleno = 2706 (0xa92), region = 100 }
  0x1a   : > { %s562_s29 = sshll.u32 %s13196_s19, 4  ;;  %s563_s29 = int_to_ptr.hbm [resolvable:$true] %s562_s29 }
  0x1b   : > { %p9729_p6 = pnand %p9732_p3, %p9728_p5 }
  0x1d   : > { %9731 = dma.hbm_to_vmem [thread:$0]  (!%p9729_p6), %s563_s29, 24576, %s565_s30, [#allocation10], %s9884_s5, %s9884_s5, %s9885_s22  }
  0x1e   : > { %9876 = dma.done.wait (%p9732_p3), [#allocation10], 24576  }
  0x1f   : > { %9878 = vsyncadd (%p9732_p3), [#allocation10], 4294942720  ;;  %p723_p7 = scmp.lt.s32.totalorder %s10021_s0, 1  ;;  %s13197_s24 = sld [smem:[#allocation59_spill]] (!%p8169_p2) }
  0x20   : > { %s760_s30 = sld [smem:[#allocation8]] (!%p8169_p2) }
  0x21   : > { %s10029_s23 = scalar_select %p723_p7, %s10021_s0, 1 }
  0x22   : > { %759 = sbr.rel (%p8169_p2) target bundleno = 532 (0x214), region = 108  ;;  %s13199_s3 = sld [smem:[#allocation60_spill]] (!%p8169_p2) }
  0x23   : > { %s8173_s1 = sshll.u32 %s10029_s23, 3  ;;  %s9404_s27 = sshll.u32 %s10029_s23, 5 }
  0x24   : > { %s10039_s28 = scalar_lea.vmem %s13057_s6, %s8173_s1  ;;  %s10053_s18 = scalar_lea.vmem %s13061_s10, %s9404_s27 }
  0x25   : > { %s9405_s1 = sshll.u32 %s10029_s23, 6  ;;  %s13200_s22 = sld [smem:[#allocation61_spill]] (!%p8169_p2) }
  0x26   : > { %s10067_s5 = scalar_lea.vmem %s13063_s12, %s9405_s1  ;;  %s13198_s1 = sld [smem:[#allocation58_spill]] (!%p8169_p2) }
  0x27   : > { %v9413_v0 = vld [vmem:[%s13197_s24 + $0x38] sm:$0xff]  ;;  %v9886_v4 = vmov 0.0   ;;  %vm1579_vm0 = vcmask 521216   ;;  %v9412_v5 = vld [vmem:[%s13197_s24 + $0x30] sm:$0xff]  ;;  %v9411_v9 = vld [vmem:[%s13197_s24 + $0x28] sm:$0xff]  ;;  %vm771_vm1 = vcmask 818176  }
  0x28   : > { %v9421_v1 = vld [vmem:[%s13197_s24 + $0x78] sm:$0xff]  ;;  %761 = vst [vmem:[#allocation3] sm:$0xff] %v9886_v4  ;;  %1326 = vmatpush.bf16.msra.mxu0 %v9413_v0  ;;  %v9420_v6 = vld [vmem:[%s13197_s24 + $0x70] sm:$0xff]  ;;  %v9419_v10 = vld [vmem:[%s13197_s24 + $0x68] sm:$0xff]  ;;  %vm1461_vm2 = vcmask 523264   ;;  %s13201_s27 = sld [smem:[#allocation62_spill]] }
  0x29   : > { %v9429_v2 = vld [vmem:[%s13197_s24 + $0xb8] sm:$0xff]  ;;  %1345 = vmatpush.bf16.msra.mxu1 %v9421_v1  ;;  %762 = vst [vmem:[#allocation3 + $0x8] sm:$0xff] %v9886_v4  ;;  %v9428_v7 = vld [vmem:[%s13197_s24 + $0xb0] sm:$0xff]  ;;  %v9427_v11 = vld [vmem:[%s13197_s24 + $0xa8] sm:$0xff] }
  0x2a   : > { %v9437_v3 = vld [vmem:[%s13197_s24 + $0xf8] sm:$0xff]  ;;  %1364 = vmatpush.bf16.msra.mxu2 %v9429_v2  ;;  %v9436_v8 = vld [vmem:[%s13197_s24 + $0xf0] sm:$0xff]  ;;  %763 = vst [vmem:[#allocation3 + $0x10] sm:$0xff] %v9886_v4  ;;  %v9435_v12 = vld [vmem:[%s13197_s24 + $0xe8] sm:$0xff] }
  0x2b   : > { %1383 = vmatpush.bf16.msra.mxu3 %v9437_v3  ;;  %1580 = vst.msk [vmem:[#allocation5 + $0x20] sm:$0x3f] %vm1579_vm0, %v9886_v4  ;;  %v9410_v13 = vld [vmem:[%s13197_s24 + $0x20] sm:$0xff]  ;;  %v9409_v19 = vld [vmem:[%s13197_s24 + $0x18] sm:$0xff]  ;;  %v9408_v25 = vld [vmem:[%s13197_s24 + $0x10] sm:$0xff] }
  0x2c   : > { %764 = vst [vmem:[#allocation3 + $0x18] sm:$0xff] %v9886_v4  ;;  %1327 = vmatpush.bf16.msra.mxu0 %v9412_v5  ;;  %s766_s4 = scalar_lea.vmem %s13198_s1, %s760_s30  ;;  %v9418_v14 = vld [vmem:[%s13197_s24 + $0x60] sm:$0xff]  ;;  %v9417_v20 = vld [vmem:[%s13197_s24 + $0x58] sm:$0xff]  ;;  %v9416_v26 = vld [vmem:[%s13197_s24 + $0x50] sm:$0xff] }
  0x2d   : > { %1346 = vmatpush.bf16.msra.mxu1 %v9420_v6  ;;  %765 = vst [vmem:[#allocation3 + $0x20] sm:$0x3f] %v9886_v4  ;;  %v767_v15 = vld [vmem:[%s766_s4] sm:$0xff]  ;;  %v768_v18 = vld [vmem:[%s766_s4 + $0x8] sm:$0xff]  ;;  %v9425_v21 = vld [vmem:[%s13197_s24 + $0x98] sm:$0xff] }
  0x2e   : > { %1365 = vmatpush.bf16.msra.mxu2 %v9428_v7  ;;  %v9426_v16 = vld [vmem:[%s13197_s24 + $0xa0] sm:$0xff]  ;;  %772 = vst.msk [vmem:[#allocation3 + $0x3] sm:$0xff] %vm771_vm1, %v767_v15  ;;  %v9433_v22 = vld [vmem:[%s13197_s24 + $0xd8] sm:$0xff]  ;;  %v769_v23 = vld [vmem:[%s766_s4 + $0x10] sm:$0xff] }
  0x2f   : > { %1384 = vmatpush.bf16.msra.mxu3 %v9436_v8  ;;  %v9434_v17 = vld [vmem:[%s13197_s24 + $0xe0] sm:$0xff]  ;;  %773 = vst.msk [vmem:[#allocation3 + $0xb] sm:$0xff] %vm771_vm1, %v768_v18  ;;  %v770_v24 = vld [vmem:[%s766_s4 + $0x18] sm:$0xff]  ;;  %v9424_v27 = vld [vmem:[%s13197_s24 + $0x90] sm:$0xff] }
  0x30   : > { %1328 = vmatpush.bf16.msra.mxu0 %v9411_v9  ;;  %774 = vst.msk [vmem:[#allocation3 + $0x13] sm:$0xff] %vm771_vm1, %v769_v23  ;;  %v9432_v28 = vld [vmem:[%s13197_s24 + $0xd0] sm:$0xff]  ;;  %v9407_v29 = vld [vmem:[%s13197_s24 + $0x8] sm:$0xff]  ;;  %v9406_v33 = vld [vmem:[%s13197_s24] sm:$0xff] }
  0x31   : > { %1347 = vmatpush.bf16.msra.mxu1 %v9419_v10  ;;  %775 = vst.msk [vmem:[#allocation3 + $0x1b] sm:$0xff] %vm771_vm1, %v770_v24  ;;  %v9415_v30 = vld [vmem:[%s13197_s24 + $0x48] sm:$0xff]  ;;  %v9414_v34 = vld [vmem:[%s13197_s24 + $0x40] sm:$0xff]  ;;  %v9461_v45 = vld [vmem:[%s13197_s24 + $0x1b8] sm:$0xff] }
  0x32   : > { %1366 = vmatpush.bf16.msra.mxu2 %v9427_v11  ;;  %v9423_v31 = vld [vmem:[%s13197_s24 + $0x88] sm:$0xff]  ;;  %v9422_v35 = vld [vmem:[%s13197_s24 + $0x80] sm:$0xff]  ;;  %v9445_v46 = vld [vmem:[%s13197_s24 + $0x138] sm:$0xff]  ;;  %1575 = vst.msk [vmem:[#allocation5] sm:$0xff] %vm1461_vm2, %v9886_v4 }
  0x33   : > { %1385 = vmatpush.bf16.msra.mxu3 %v9435_v12  ;;  %v9431_v32 = vld [vmem:[%s13197_s24 + $0xc8] sm:$0xff]  ;;  %v9430_v36 = vld [vmem:[%s13197_s24 + $0xc0] sm:$0xff]  ;;  %v9453_v51 = vld [vmem:[%s13197_s24 + $0x178] sm:$0xff]  ;;  %1576 = vst.msk [vmem:[#allocation5 + $0x8] sm:$0xff] %vm1461_vm2, %v9886_v4 }
  0x34   : > { %1329 = vmatpush.bf16.msra.mxu0 %v9410_v13  ;;  %v9460_v52 = vld [vmem:[%s13197_s24 + $0x1b0] sm:$0xff]  ;;  %v9459_v55 = vld [vmem:[%s13197_s24 + $0x1a8] sm:$0xff]  ;;  %v9458_v58 = vld [vmem:[%s13197_s24 + $0x1a0] sm:$0xff]  ;;  %1577 = vst.msk [vmem:[#allocation5 + $0x10] sm:$0xff] %vm1461_vm2, %v9886_v4 }
  0x35   : > { %1348 = vmatpush.bf16.msra.mxu1 %v9418_v14  ;;  %v776_v37 = vld [vmem:[#allocation3] sm:$0xff]  ;;  %v9444_v53 = vld [vmem:[%s13197_s24 + $0x130] sm:$0xff]  ;;  %v9443_v56 = vld [vmem:[%s13197_s24 + $0x128] sm:$0xff]  ;;  %1578 = vst.msk [vmem:[#allocation5 + $0x18] sm:$0xff] %vm1461_vm2, %v9886_v4 }
  0x36   : > { %1367 = vmatpush.bf16.msra.mxu2 %v9426_v16  ;;  %v784_v38 = vld [vmem:[#allocation3 + $0x1] sm:$0xff]  ;;  %v785_v40 = vld [vmem:[#allocation3 + $0x9] sm:$0xff]  ;;  %v9457_v6 = vld [vmem:[%s13197_s24 + $0x198] sm:$0xff] }
  0x37   : > { %1386 = vmatpush.bf16.msra.mxu3 %v9434_v17  ;;  %v777_v39 = vld [vmem:[#allocation3 + $0x8] sm:$0xff]  ;;  %v973_v48 = vpack.c.bf16 %v785_v40, %v784_v38  ;;  %v9452_v54 = vld [vmem:[%s13197_s24 + $0x170] sm:$0xff]  ;;  %v9442_v59 = vld [vmem:[%s13197_s24 + $0x120] sm:$0xff] }
  0x38   : > { %1330 = vmatpush.bf16.msra.mxu0 %v9409_v19  ;;  %v792_v41 = vld [vmem:[#allocation3 + $0x2] sm:$0xff]  ;;  %v793_v42 = vld [vmem:[#allocation3 + $0xa] sm:$0xff]  ;;  %v972_v47 = vpack.c.bf16 %v777_v39, %v776_v37  ;;  %v779_v63 = vld [vmem:[#allocation3 + $0x18] sm:$0xff] }
  0x39   : > { %1349 = vmatpush.bf16.msra.mxu1 %v9417_v20  ;;  %v800_v43 = vld [vmem:[#allocation3 + $0x3] sm:$0xff]  ;;  %v801_v44 = vld [vmem:[#allocation3 + $0xb] sm:$0xff]  ;;  %v974_v49 = vpack.c.bf16 %v793_v42, %v792_v41  ;;  %v787_v0 = vld [vmem:[#allocation3 + $0x19] sm:$0xff] }
  0x3a   : > { %1368 = vmatpush.bf16.msra.mxu2 %v9425_v21  ;;  %v975_v50 = vpack.c.bf16 %v801_v44, %v800_v43  ;;  %v9451_v57 = vld [vmem:[%s13197_s24 + $0x168] sm:$0xff]  ;;  %v9450_v60 = vld [vmem:[%s13197_s24 + $0x160] sm:$0xff]  ;;  %v778_v61 = vld [vmem:[#allocation3 + $0x10] sm:$0xff] }
  0x3b   : > { %1387 = vmatpush.bf16.msra.mxu3 %v9433_v22  ;;  %v786_v62 = vld [vmem:[#allocation3 + $0x11] sm:$0xff]  ;;  %v795_v2 = vld [vmem:[#allocation3 + $0x1a] sm:$0xff]  ;;  %v979_v8 = vpack.c.bf16 %v779_v63, %v778_v61  ;;  %v9455_v16 = vld [vmem:[%s13197_s24 + $0x188] sm:$0xff] }
  0x3c   : > { %1331 = vmatpush.bf16.msra.mxu0 %v9408_v25  ;;  %v794_v1 = vld [vmem:[#allocation3 + $0x12] sm:$0xff]  ;;  %v803_v5 = vld [vmem:[#allocation3 + $0x1b] sm:$0xff]  ;;  %v980_v9 = vpack.c.bf16 %v787_v0, %v786_v62  ;;  %v9439_v17 = vld [vmem:[%s13197_s24 + $0x108] sm:$0xff] }
  0x3d   : > { %1350 = vmatpush.bf16.msra.mxu1 %v9416_v26  ;;  %v802_v3 = vld [vmem:[#allocation3 + $0x13] sm:$0xff]  ;;  %v981_v10 = vpack.c.bf16 %v795_v2, %v794_v1  ;;  %v9447_v18 = vld [vmem:[%s13197_s24 + $0x148] sm:$0xff]  ;;  %v9454_v19 = vld [vmem:[%s13197_s24 + $0x180] sm:$0xff] }
  0x3e   : > { %1369 = vmatpush.bf16.msra.mxu2 %v9424_v27  ;;  %v9441_v7 = vld [vmem:[%s13197_s24 + $0x118] sm:$0xff]  ;;  %v982_v11 = vpack.c.bf16 %v803_v5, %v802_v3  ;;  %v9456_v13 = vld [vmem:[%s13197_s24 + $0x190] sm:$0xff]  ;;  %v9438_v20 = vld [vmem:[%s13197_s24 + $0x100] sm:$0xff] }
  0x3f   : > { %1388 = vmatpush.bf16.msra.mxu3 %v9432_v28  ;;  %v9449_v12 = vld [vmem:[%s13197_s24 + $0x158] sm:$0xff]  ;;  %v9440_v14 = vld [vmem:[%s13197_s24 + $0x110] sm:$0xff]  ;;  %v9446_v21 = vld [vmem:[%s13197_s24 + $0x140] sm:$0xff] }
  0x40   : > { %1332 = vmatpush.bf16.msra.mxu0 %v9407_v29  ;;  %v9448_v15 = vld [vmem:[%s13197_s24 + $0x150] sm:$0xff]  ;;  %v808_v22 = vld [vmem:[#allocation3 + $0x4] sm:$0xff]  ;;  %v811_v25 = vld [vmem:[#allocation3 + $0x1c] sm:$0xff] }
  0x41   : > { %1351 = vmatpush.bf16.msra.mxu1 %v9415_v30  ;;  %v809_v23 = vld [vmem:[#allocation3 + $0xc] sm:$0xff]  ;;  %v810_v24 = vld [vmem:[#allocation3 + $0x14] sm:$0xff]  ;;  %v827_v37 = vld [vmem:[#allocation3 + $0x1e] sm:$0xff] }
  0x42   : > { %1370 = vmatpush.bf16.msra.mxu2 %v9423_v31  ;;  %v816_v26 = vld [vmem:[#allocation3 + $0x5] sm:$0xff]  ;;  %v817_v27 = vld [vmem:[#allocation3 + $0xd] sm:$0xff]  ;;  %v976_v30 = vpack.c.bf16 %v809_v23, %v808_v22  ;;  %v983_v31 = vpack.c.bf16 %v811_v25, %v810_v24 }
  0x43   : > { %1389 = vmatpush.bf16.msra.mxu3 %v9431_v32  ;;  %v824_v28 = vld [vmem:[#allocation3 + $0x6] sm:$0xff]  ;;  %v825_v29 = vld [vmem:[#allocation3 + $0xe] sm:$0xff]  ;;  %v977_v32 = vpack.c.bf16 %v817_v27, %v816_v26 }
  0x44   : > { %1333 = vmatpush.bf16.msra.mxu0 %v9406_v33  ;;  %v978_v33 = vpack.c.bf16 %v825_v29, %v824_v28 }
  0x45   : > { %1352 = vmatpush.bf16.msra.mxu1 %v9414_v34  ;;  %v818_v34 = vld [vmem:[#allocation3 + $0x15] sm:$0xff] }
  0x46   : > { %1371 = vmatpush.bf16.msra.mxu2 %v9422_v35  ;;  %v819_v35 = vld [vmem:[#allocation3 + $0x1d] sm:$0xff] }
  0x47   : > { %1390 = vmatpush.bf16.msra.mxu3 %v9430_v36  ;;  %1334 = vmatmul.bf16.vlgmr.msra.gmra.mxu0 %v972_v47  ;;  %v826_v36 = vld [vmem:[#allocation3 + $0x16] sm:$0xff]  ;;  %v984_v38 = vpack.c.bf16 %v819_v35, %v818_v34 }
  0x48   : > { %1402 = vmatpush.bf16.msrb.mxu0 %v9445_v46  ;;  %1353 = vmatmul.bf16.vlgmr.msra.gmra.mxu1 %v973_v48  ;;  %v985_v39 = vpack.c.bf16 %v827_v37, %v826_v36  ;;  %v9887_v37 = vmov 64.0  }
  0x49   : > { %1372 = vmatmul.bf16.vlgmr.msra.gmra.mxu2 %v974_v49  ;;  %1421 = vmatpush.bf16.msrb.mxu1 %v9453_v51  ;;  %v9758_v49 = vld [vmem:[%s13199_s3] ss:$0 sm:$0xff]  ;;  %9761 = vrcp.f32 %v9887_v37 }
  0x4a   : > { %1440 = vmatpush.bf16.msrb.mxu2 %v9461_v45  ;;  %1391 = vmatmul.bf16.vlgmr.msra.gmra.mxu3 %v975_v50 }
  0x4b   : > { %9690 = vmatpush.bf16.msrb.mxu3 %v9445_v46 }
  0x4c   : > { %1403 = vmatpush.bf16.msrb.mxu0 %v9444_v53 }
  0x4d   : > { %1422 = vmatpush.bf16.msrb.mxu1 %v9452_v54 }
  0x4e   : > { %1441 = vmatpush.bf16.msrb.mxu2 %v9460_v52 }
  0x4f   : > { %9691 = vmatpush.bf16.msrb.mxu3 %v9444_v53 }
  0x50   : > { %1404 = vmatpush.bf16.msrb.mxu0 %v9443_v56 }
  0x51   : > { %1423 = vmatpush.bf16.msrb.mxu1 %v9451_v57 }
  0x52   : > { %1442 = vmatpush.bf16.msrb.mxu2 %v9459_v55 }
  0x53   : > { %9692 = vmatpush.bf16.msrb.mxu3 %v9443_v56 }
  0x54   : > { %1405 = vmatpush.bf16.msrb.mxu0 %v9442_v59 }
  0x55   : > { %1424 = vmatpush.bf16.msrb.mxu1 %v9450_v60 }
  0x56   : > { %1443 = vmatpush.bf16.msrb.mxu2 %v9458_v58 }
  0x57   : > { %9693 = vmatpush.bf16.msrb.mxu3 %v9442_v59  ;;  %1339 = vmatmul.bf16.gmra.mxu0 %v979_v8 }
  0x58   : > { %1406 = vmatpush.bf16.msrb.mxu0 %v9441_v7  ;;  %1358 = vmatmul.bf16.gmra.mxu1 %v980_v9 }
  0x59   : > { %1377 = vmatmul.bf16.gmra.mxu2 %v981_v10  ;;  %1425 = vmatpush.bf16.msrb.mxu1 %v9449_v12 }
  0x5a   : > { %1444 = vmatpush.bf16.msrb.mxu2 %v9457_v6  ;;  %1396 = vmatmul.bf16.gmra.mxu3 %v982_v11 }
  0x5b   : > { %9694 = vmatpush.bf16.msrb.mxu3 %v9441_v7 }
  0x5c   : > { %1407 = vmatpush.bf16.msrb.mxu0 %v9440_v14 }
  0x5d   : > { %1426 = vmatpush.bf16.msrb.mxu1 %v9448_v15 }
  0x5e   : > { %1445 = vmatpush.bf16.msrb.mxu2 %v9456_v13 }
  0x5f   : > { %9695 = vmatpush.bf16.msrb.mxu3 %v9440_v14 }
  0x60   : > { %1408 = vmatpush.bf16.msrb.mxu0 %v9439_v17 }
  0x61   : > { %1427 = vmatpush.bf16.msrb.mxu1 %v9447_v18 }
  0x62   : > { %1446 = vmatpush.bf16.msrb.mxu2 %v9455_v16 }
  0x63   : > { %9696 = vmatpush.bf16.msrb.mxu3 %v9439_v17 }
  0x64   : > { %1409 = vmatpush.bf16.msrb.mxu0 %v9438_v20 }
  0x65   : > { %1428 = vmatpush.bf16.msrb.mxu1 %v9446_v21 }
  0x66   : > { %1447 = vmatpush.bf16.msrb.mxu2 %v9454_v19 }
  0x67   : > { %9697 = vmatpush.bf16.msrb.mxu3 %v9438_v20  ;;  %1410 = vmatmul.bf16.vlgmr.msrb.gmra.mxu0 %v976_v30 }
  0x68   : > { %1429 = vmatmul.bf16.vlgmr.msrb.gmra.mxu1 %v977_v32 }
  0x69   : > { %1448 = vmatmul.bf16.vlgmr.msrb.gmra.mxu2 %v978_v33 }
  0x6a   : > { %1415 = vmatmul.bf16.vlgmr.msrb.gmra.mxu3 %v983_v31 }
  0x78   : > { %1434 = vmatmul.bf16.gmra.mxu1 %v984_v38  ;;  %v9762_v38 = vpop.eup %9761 }
  0x79   : > { %1453 = vmatmul.bf16.gmra.mxu2 %v985_v39  ;;  %v1475_v39 = vmul.f32 64.0, %v9762_v38  ;;  %vm1479_vm3 = vweird.f32 %v9762_v38 }
  0xc4   : > { %v1335_v40 = vpop.f32.mrf.mxu0 }
  0xc5   : > { %v1354_v41 = vpop.f32.mrf.mxu1  ;;  %v1336_v51 = vadd.f32 %v9758_v49, %v1335_v40  ;;  %v1476_v40 = vsub.f32 1.0, %v1475_v39 }
  0xc7   : > { %v1355_v55 = vadd.f32 %v1354_v41, %v1336_v51  ;;  %v1477_v41 = vmul.f32 %v9762_v38, %v1476_v40 }
  0xcc   : > { %v1373_v42 = vpop.f32.mrf.mxu2  ;;  %v1337_v44 = vpop.f32.mrf.mxu0 }
  0xcd   : > { %v1392_v43 = vpop.f32.mrf.mxu3  ;;  %v1356_v45 = vpop.f32.mrf.mxu1  ;;  %v1374_v57 = vadd.f32 %v1373_v42, %v1355_v55  ;;  %v1338_v58 = vadd.f32 %v9758_v49, %v1337_v44  ;;  %v1478_v42 = vadd.f32 %v9762_v38, %v1477_v41 }
  0xcf   : > { %v1393_v61 = vadd.f32 %v1392_v43, %v1374_v57  ;;  %v1357_v62 = vadd.f32 %v1356_v45, %v1338_v58  ;;  %v1480_v43 = vsel %vm1479_vm3, %v9762_v38, %v1478_v42 }
  0xd4   : > { %v1375_v46 = vpop.f32.mrf.mxu2  ;;  %v1340_v47 = vpop.f32.mrf.mxu0 }
  0xd5   : > { %v1359_v48 = vpop.f32.mrf.mxu1  ;;  %v1394_v50 = vpop.f32.mrf.mxu3  ;;  %v1376_v0 = vadd.f32 %v1375_v46, %v1357_v62  ;;  %v1341_v2 = vadd.f32 %v9758_v49, %v1340_v47 }
  0xd7   : > { %v1395_v7 = vadd.f32 %v1394_v50, %v1376_v0  ;;  %v1360_v10 = vadd.f32 %v1359_v48, %v1341_v2 }
  0xdc   : > { %v1378_v52 = vpop.f32.mrf.mxu2  ;;  %v1342_v53 = vpop.f32.mrf.mxu0 }
  0xdd   : > { %v1361_v54 = vpop.f32.mrf.mxu1  ;;  %v1397_v56 = vpop.f32.mrf.mxu3  ;;  %v1379_v13 = vadd.f32 %v1378_v52, %v1360_v10  ;;  %v1343_v17 = vadd.f32 %v9758_v49, %v1342_v53 }
  0xdf   : > { %v1398_v20 = vadd.f32 %v1397_v56, %v1379_v13  ;;  %v1362_v22 = vadd.f32 %v1361_v54, %v1343_v17  ;;  %v9759_v17 = vld [vmem:[%s13200_s22] ss:$0 sm:$0xff] }
  0xe4   : > { %v1380_v59 = vpop.f32.mrf.mxu2  ;;  %v1411_v60 = vpop.f32.mrf.mxu0 }
  0xe5   : > { %v1430_v4 = vpop.f32.mrf.mxu1  ;;  %v1412_v63 = vadd.f32 %v1411_v60, %v1393_v61  ;;  %v1399_v1 = vpop.f32.mrf.mxu3  ;;  %v1381_v24 = vadd.f32 %v1380_v59, %v1362_v22 }
  0xe7   : > { %v1431_v3 = vadd.f32 %v1430_v4, %v1412_v63  ;;  %v1400_v29 = vadd.f32 %v1399_v1, %v1381_v24 }
  0xec   : > { %v1449_v5 = vpop.f32.mrf.mxu2  ;;  %v1413_v6 = vpop.f32.mrf.mxu0 }
  0xed   : > { %v1450_v8 = vadd.f32 %v1449_v5, %v1431_v3  ;;  %v1432_v9 = vpop.f32.mrf.mxu1  ;;  %v1414_v11 = vadd.f32 %v1413_v6, %v1395_v7  ;;  %v1416_v15 = vpop.f32.mrf.mxu3 }
  0xee   : > { %v1417_v23 = vadd.f32 %v1416_v15, %v1398_v20  ;;  %v9760_v20 = vld [vmem:[%s13201_s27] ss:$0 sm:$0xff] }
  0xef   : > { %v1462_v12 = vsel %vm1461_vm2, %v1450_v8, 0.0  ;;  %v1433_v14 = vadd.f32 %v1432_v9, %v1414_v11 }
  0xf0   : > { %1463 = vadd.xlane.f32.xlu0 %v1462_v12 }
  0xf4   : > { %v1451_v16 = vpop.f32.mrf.mxu2 }
  0xf5   : > { %v1452_v18 = vadd.f32 %v1451_v16, %v1433_v14  ;;  %v1435_v19 = vpop.f32.mrf.mxu1  ;;  %v1418_v28 = vpop.f32.mrf.mxu3 }
  0xf6   : > { %v1436_v25 = vadd.f32 %v1435_v19, %v1417_v23  ;;  %v1419_v32 = vadd.f32 %v1418_v28, %v1400_v29 }
  0xf7   : > { %v1465_v21 = vsel %vm1461_vm2, %v1452_v18, 0.0 }
  0xf8   : > { %1466 = vadd.xlane.f32.xlu0 %v1465_v21 }
  0xfc   : > { %v1454_v26 = vpop.f32.mrf.mxu2 }
  0xfd   : > { %v1455_v27 = vadd.f32 %v1454_v26, %v1436_v25  ;;  %v1437_v31 = vpop.f32.mrf.mxu1 }
  0xfe   : > { %v1438_v33 = vadd.f32 %v1437_v31, %v1419_v32 }
  0xff   : > { %v1468_v30 = vsel %vm1461_vm2, %v1455_v27, 0.0 }
 0x100   : > { %1469 = vadd.xlane.f32.xlu1 %v1468_v30 }
 0x104   : > { %v1456_v34 = vpop.f32.mrf.mxu2 }
 0x105   : > { %v1457_v35 = vadd.f32 %v1456_v34, %v1438_v33 }
 0x107   : > { %v1471_v36 = vsel %vm1461_vm2, %v1457_v35, 0.0 }
 0x108   : > { %1472 = vadd.xlane.f32.xlu1 %v1471_v36 }
 0x163   : > { %v1464_v44 = vpop.xlane.xlu0 %1463 }
 0x164   : > { %v1481_v45 = vmul.f32 %v1480_v43, %v1464_v44 }
 0x166   : > { %v1485_v46 = vsub.f32 %v1450_v8, %v1481_v45 }
 0x168   : > { %v1489_v47 = vmul.f32 %v1485_v46, %v1485_v46 }
 0x16a   : > { %v1493_v48 = vsel %vm1461_vm2, %v1489_v47, 0.0 }
 0x16b   : > { %1494 = vadd.xlane.f32.xlu2 %v1493_v48  ;;  %v1467_v49 = vpop.xlane.xlu0 %1466 }
 0x16c   : > { %v1482_v50 = vmul.f32 %v1480_v43, %v1467_v49 }
 0x16e   : > { %v1486_v51 = vsub.f32 %v1452_v18, %v1482_v50 }
 0x170   : > { %v1490_v52 = vmul.f32 %v1486_v51, %v1486_v51 }
 0x172   : > { %v1496_v53 = vsel %vm1461_vm2, %v1490_v52, 0.0 }
 0x173   : > { %v1470_v54 = vpop.xlane.xlu1 %1469  ;;  %1497 = vadd.xlane.f32.xlu2 %v1496_v53 }
 0x174   : > { %v1483_v55 = vmul.f32 %v1480_v43, %v1470_v54 }
 0x176   : > { %v10273_v56 = vsub.f32 %v1455_v27, %v1483_v55 }
 0x178   : > { %v1491_v57 = vmul.f32 %v10273_v56, %v10273_v56 }
 0x17a   : > { %v1499_v58 = vsel %vm1461_vm2, %v1491_v57, 0.0 }
 0x17b   : > { %v1473_v59 = vpop.xlane.xlu1 %1472  ;;  %1500 = vadd.xlane.f32.xlu0 %v1499_v58 }
 0x17c   : > { %v1484_v60 = vmul.f32 %v1480_v43, %v1473_v59 }
 0x17e   : > { %v10278_v61 = vsub.f32 %v1457_v35, %v1484_v60 }
 0x180   : > { %v1492_v4 = vmul.f32 %v10278_v61, %v10278_v61 }
 0x182   : > { %v1502_v62 = vsel %vm1461_vm2, %v1492_v4, 0.0 }
 0x183   : > { %1503 = vadd.xlane.f32.xlu1 %v1502_v62 }
 0x1de   : > { %v1495_v63 = vpop.xlane.xlu2 %1494 }
 0x1df   : > { %v1505_v0 = vmul.f32 %v1495_v63, %v1480_v43 }
 0x1e1   : > { %v1509_v1 = vadd.f32 1e-06, %v1505_v0 }
 0x1e3   : > { %9763 = vrsqrt.f32 %v1509_v1  ;;  %vm1519_vm5 = vweird.f32 %v1509_v1 }
 0x1e6   : > { %v1498_v2 = vpop.xlane.xlu2 %1497 }
 0x1e7   : > { %v1506_v3 = vmul.f32 %v1498_v2, %v1480_v43 }
 0x1e9   : > { %v9764_v5 = vpop.eup %9763  ;;  %v1510_v6 = vadd.f32 1e-06, %v1506_v3 }
 0x1ea   : > { %v1514_v7 = vmul.f32 %v9764_v5, %v1509_v1  ;;  %vm1520_vm4 = vweird.f32 %v9764_v5 }
 0x1eb   : > { %9765 = vrsqrt.f32 %v1510_v6  ;;  %vm1521_vm6 = vmor %vm1519_vm5, %vm1520_vm4  ;;  %vm1529_vm8 = vweird.f32 %v1510_v6 }
 0x1ec   : > { %v1515_v8 = vmul.f32 %v9764_v5, %v1514_v7 }
 0x1ee   : > { %v1516_v9 = vmul.f32 0.5, %v1515_v8  ;;  %v1501_v10 = vpop.xlane.xlu0 %1500 }
 0x1ef   : > { %v1507_v11 = vmul.f32 %v1501_v10, %v1480_v43 }
 0x1f0   : > { %v1517_v12 = vsub.f32 1.5, %v1516_v9 }
 0x1f1   : > { %v9766_v13 = vpop.eup %9765  ;;  %v1511_v14 = vadd.f32 1e-06, %v1507_v11 }
 0x1f2   : > { %v1518_v15 = vmul.f32 %v9764_v5, %v1517_v12  ;;  %v1524_v16 = vmul.f32 %v9766_v13, %v1510_v6  ;;  %vm1530_vm7 = vweird.f32 %v9766_v13 }
 0x1f3   : > { %9767 = vrsqrt.f32 %v1511_v14  ;;  %vm1531_vm9 = vmor %vm1529_vm8, %vm1530_vm7  ;;  %vm1539_vm11 = vweird.f32 %v1511_v14 }
 0x1f4   : > { %v1522_v18 = vsel %vm1521_vm6, %v9764_v5, %v1518_v15  ;;  %v1525_v19 = vmul.f32 %v9766_v13, %v1524_v16 }
 0x1f5   : > { %v1553_v21 = vmul.f32 %v1522_v18, %v1485_v46 }
 0x1f6   : > { %v1526_v22 = vmul.f32 0.5, %v1525_v19  ;;  %v1504_v23 = vpop.xlane.xlu1 %1503 }
 0x1f7   : > { %v1560_v24 = vmul.f32 %v9759_v17, %v1553_v21  ;;  %v1508_v25 = vmul.f32 %v1504_v23, %v1480_v43 }
 0x1f8   : > { %v1527_v26 = vsub.f32 1.5, %v1526_v22 }
 0x1f9   : > { %v9768_v27 = vpop.eup %9767  ;;  %v1567_v28 = vadd.f32 %v9760_v20, %v1560_v24  ;;  %v1512_v29 = vadd.f32 1e-06, %v1508_v25 }
 0x1fa   : > { %v1528_v30 = vmul.f32 %v9766_v13, %v1527_v26  ;;  %v1534_v31 = vmul.f32 %v9768_v27, %v1511_v14  ;;  %vm1540_vm10 = vweird.f32 %v9768_v27 }
 0x1fb   : > { %1571 = vst.msk [vmem:[#allocation2] sm:$0xff] %vm1461_vm2, %v1567_v28  ;;  %9769 = vrsqrt.f32 %v1512_v29  ;;  %vm1541_vm12 = vmor %vm1539_vm11, %vm1540_vm10  ;;  %vm1549_vm14 = vweird.f32 %v1512_v29 }
 0x1fc   : > { %v1532_v32 = vsel %vm1531_vm9, %v9766_v13, %v1528_v30  ;;  %v1535_v33 = vmul.f32 %v9768_v27, %v1534_v31 }
 0x1fd   : > { %v1554_v34 = vmul.f32 %v1532_v32, %v1486_v51 }
 0x1fe   : > { %v1536_v35 = vmul.f32 0.5, %v1535_v33 }
 0x1ff   : > { %v1561_v36 = vmul.f32 %v9759_v17, %v1554_v34 }
 0x200   : > { %v1537_v37 = vsub.f32 1.5, %v1536_v35 }
 0x201   : > { %v9770_v38 = vpop.eup %9769  ;;  %v1568_v39 = vadd.f32 %v9760_v20, %v1561_v36 }
 0x202   : > { %v1538_v40 = vmul.f32 %v9768_v27, %v1537_v37  ;;  %v1544_v41 = vmul.f32 %v9770_v38, %v1512_v29  ;;  %vm1550_vm13 = vweird.f32 %v9770_v38 }
 0x203   : > { %1572 = vst.msk [vmem:[#allocation2 + $0x8] sm:$0xff] %vm1461_vm2, %v1568_v39  ;;  %vm1551_vm15 = vmor %vm1549_vm14, %vm1550_vm13 }
 0x204   : > { %v1542_v42 = vsel %vm1541_vm12, %v9768_v27, %v1538_v40  ;;  %v1545_v43 = vmul.f32 %v9770_v38, %v1544_v41 }
 0x205   : > { %v1555_v44 = vmul.f32 %v1542_v42, %v10273_v56 }
 0x206   : > { %v1546_v45 = vmul.f32 0.5, %v1545_v43 }
 0x207   : > { %v1562_v46 = vmul.f32 %v9759_v17, %v1555_v44 }
 0x208   : > { %v1547_v47 = vsub.f32 1.5, %v1546_v45 }
 0x209   : > { %v1569_v48 = vadd.f32 %v9760_v20, %v1562_v46 }
 0x20a   : > { %v1548_v49 = vmul.f32 %v9770_v38, %v1547_v47 }
 0x20b   : > { %1573 = vst.msk [vmem:[#allocation2 + $0x10] sm:$0xff] %vm1461_vm2, %v1569_v48 }
 0x20c   : > { %v1552_v50 = vsel %vm1551_vm15, %v9770_v38, %v1548_v49 }
 0x20d   : > { %v1556_v51 = vmul.f32 %v1552_v50, %v10278_v61 }
 0x20f   : > { %v1563_v52 = vmul.f32 %v9759_v17, %v1556_v51 }
 0x211   : > { %v1570_v53 = vadd.f32 %v9760_v20, %v1563_v52 }
 0x213   : > { %1574 = vst.msk [vmem:[#allocation2 + $0x18] sm:$0xff] %vm1461_vm2, %v1570_v53 }
 0x214 PF: > { %v10295_v54 = vld [vmem:[#allocation2 + $0x8] sm:$0xff]  ;;  %v10297_v55 = vld [vmem:[#allocation2 + $0x10] sm:$0xff]  ;;  %vm1585_vm0 = vcmask 523264   ;;  %v10303_v57 = vld [vmem:[#allocation2] sm:$0xff]  ;;  %s13202_s29 = scalar_lea.vmem %s13058_s7, %s10029_s23  ;;  %s13203_s4 = scalar_lea.vmem %s13059_s8, %s10029_s23 }
 0x215   : > { %1587 = vst.msk [vmem:[#allocation5 + $0xb] sm:$0xff] %vm1585_vm0, %v10295_v54  ;;  %v1590_v58 = vld [vmem:[%s10039_s28] sm:$0x7f]  ;;  %s13204_s3 = scalar_lea.vmem %s13060_s9, %s10029_s23  ;;  %s13205_s22 = scalar_lea.vmem %s13062_s11, %s10029_s23 }
 0x216   : > { %1588 = vst.msk [vmem:[#allocation5 + $0x13] sm:$0xff] %vm1585_vm0, %v10297_v55  ;;  %v1595_v59 = vperm.slane %v1590_v58, 0  ;;  %v1608_v60 = vperm.slane %v1590_v58, 1  ;;  %v1621_v61 = vperm.slane %v1590_v58, 2  ;;  %v1634_v4 = vperm.slane %v1590_v58, 3  ;;  %s13206_s21 = scalar_lea.vmem %s13064_s13, %s10029_s23  ;;  %s13207_s30 = scalar_lea.vmem %s13065_s14, %s10029_s23 }
 0x217   : > { %1586 = vst.msk [vmem:[#allocation5 + $0x3] sm:$0xff] %vm1585_vm0, %v10303_v57  ;;  %v1647_v6 = vperm.slane %v1590_v58, 4  ;;  %v10312_v8 = vperm.slane %v1590_v58, 5  ;;  %v10314_v9 = vperm.slane %v1590_v58, 6  ;;  %p8453_p8 = scmp.ne.s32.totalorder %s10021_s0, 1 }
 0x21a   : > { %v10299_v56 = vld [vmem:[#allocation2 + $0x18] sm:$0xff] }
 0x21b   : > { %1589 = vst.msk [vmem:[#allocation5 + $0x1b] sm:$0xff] %vm1585_vm0, %v10299_v56 }
 0x21c   : > { %v1631_v36 = vld [vmem:[#allocation5 + $0xb] sm:$0xff] }
 0x21d   : > { %v1593_v62 = vld [vmem:[#allocation5 + $0x10] sm:$0xff] }
 0x21e   : > { %v1606_v63 = vld [vmem:[#allocation5 + $0x11] sm:$0xff]  ;;  %v1598_v1 = vmul.f32 %v1595_v59, %v1593_v62  ;;  %v1591_v10 = vld [vmem:[#allocation5] sm:$0xff]  ;;  %v1592_v41 = vld [vmem:[#allocation5 + $0x8] sm:$0xff] }
 0x21f   : > { %v1619_v0 = vld [vmem:[#allocation5 + $0x12] sm:$0xff]  ;;  %v1611_v2 = vmul.f32 %v1608_v60, %v1606_v63  ;;  %v1604_v11 = vld [vmem:[#allocation5 + $0x1] sm:$0xff]  ;;  %v1596_v15 = vmul.f32 %v1595_v59, %v1591_v10  ;;  %v1605_v42 = vld [vmem:[#allocation5 + $0x9] sm:$0xff]  ;;  %v1597_v47 = vmul.f32 %v1595_v59, %v1592_v41 }
 0x220   : > { %v1624_v3 = vmul.f32 %v1621_v61, %v1619_v0  ;;  %v1632_v5 = vld [vmem:[#allocation5 + $0x13] sm:$0xff]  ;;  %v1609_v16 = vmul.f32 %v1608_v60, %v1604_v11  ;;  %v1617_v17 = vld [vmem:[#allocation5 + $0x2] sm:$0xff]  ;;  %v1618_v43 = vld [vmem:[#allocation5 + $0xa] sm:$0xff]  ;;  %v1610_v48 = vmul.f32 %v1608_v60, %v1605_v42 }
 0x221   : > { %v1615_v12 = vadd.f32 %v1611_v2, %v1598_v1  ;;  %v1637_v13 = vmul.f32 %v1634_v4, %v1632_v5  ;;  %v1630_v18 = vld [vmem:[#allocation5 + $0x3] sm:$0xff]  ;;  %v1622_v20 = vmul.f32 %v1621_v61, %v1617_v17  ;;  %v1623_v53 = vmul.f32 %v1621_v61, %v1618_v43  ;;  %v1644_v58 = vld [vmem:[#allocation5 + $0xc] sm:$0xff] }
 0x222   : > { %v1645_v7 = vld [vmem:[#allocation5 + $0x14] sm:$0xff]  ;;  %v1643_v21 = vld [vmem:[#allocation5 + $0x4] sm:$0xff]  ;;  %v1613_v25 = vadd.f32 %v1609_v16, %v1596_v15  ;;  %v1635_v26 = vmul.f32 %v1634_v4, %v1630_v18  ;;  %v1646_v35 = vld [vmem:[#allocation5 + $0x1c] sm:$0xff]  ;;  %v1614_v0 = vadd.f32 %v1610_v48, %v1597_v47  ;;  %v1636_v1 = vmul.f32 %v1634_v4, %v1631_v36 }
 0x223   : > { %v1658_v14 = vld [vmem:[#allocation5 + $0x15] sm:$0xff]  ;;  %v1628_v23 = vadd.f32 %v1624_v3, %v1615_v12  ;;  %v1650_v24 = vmul.f32 %v1647_v6, %v1645_v7  ;;  %v1656_v31 = vld [vmem:[#allocation5 + $0x5] sm:$0xff]  ;;  %v1648_v40 = vmul.f32 %v1647_v6, %v1643_v21  ;;  %v1659_v52 = vld [vmem:[#allocation5 + $0x1d] sm:$0xff]  ;;  %v1651_v63 = vmul.f32 %v1647_v6, %v1646_v35 }
 0x224   : > { %v1671_v19 = vld [vmem:[#allocation5 + $0x16] sm:$0xff]  ;;  %v1663_v30 = vmul.f32 %v10312_v8, %v1658_v14  ;;  %v1626_v39 = vadd.f32 %v1622_v20, %v1613_v25  ;;  %v1669_v44 = vld [vmem:[#allocation5 + $0x6] sm:$0xff]  ;;  %v1661_v51 = vmul.f32 %v10312_v8, %v1656_v31  ;;  %v1664_v11 = vmul.f32 %v10312_v8, %v1659_v52  ;;  %v1670_v15 = vld [vmem:[#allocation5 + $0xe] sm:$0xff] }
 0x225   : > { %v1594_v22 = vld [vmem:[#allocation5 + $0x18] sm:$0xff]  ;;  %v1641_v37 = vadd.f32 %v1637_v13, %v1628_v23  ;;  %v1676_v38 = vmul.f32 %v10314_v9, %v1671_v19  ;;  %v1657_v7 = vld [vmem:[#allocation5 + $0xd] sm:$0xff]  ;;  %v1649_v12 = vmul.f32 %v1647_v6, %v1644_v58  ;;  %v1675_v23 = vmul.f32 %v10314_v9, %v1670_v15 }
 0x226   : > { %v1607_v27 = vld [vmem:[#allocation5 + $0x19] sm:$0xff]  ;;  %v1599_v32 = vmul.f32 %v1595_v59, %v1594_v22  ;;  %v1639_v50 = vadd.f32 %v1635_v26, %v1626_v39  ;;  %v9771_v3 = vld [vmem:[%s13202_s29] ss:$0 sm:$0xff]  ;;  %v1674_v59 = vmul.f32 %v10314_v9, %v1669_v44  ;;  %v1662_v18 = vmul.f32 %v10312_v8, %v1657_v7 }
 0x227   : > { %v1620_v28 = vld [vmem:[#allocation5 + $0x1a] sm:$0xff]  ;;  %v1612_v33 = vmul.f32 %v1608_v60, %v1607_v27  ;;  %v1654_v49 = vadd.f32 %v1650_v24, %v1641_v37 }
 0x228   : > { %v1633_v29 = vld [vmem:[#allocation5 + $0x1b] sm:$0xff]  ;;  %v1625_v34 = vmul.f32 %v1621_v61, %v1620_v28  ;;  %v1652_v5 = vadd.f32 %v1648_v40, %v1639_v50  ;;  %v1627_v61 = vadd.f32 %v1623_v53, %v1614_v0 }
 0x229   : > { %v1616_v45 = vadd.f32 %v1612_v33, %v1599_v32  ;;  %v1638_v46 = vmul.f32 %v1634_v4, %v1633_v29  ;;  %v1667_v2 = vadd.f32 %v1663_v30, %v1654_v49  ;;  %v1672_v60 = vld [vmem:[#allocation5 + $0x1e] sm:$0xff]  ;;  %v9888_v32 = vmov 64.0  }
 0x22a   : > { %v1665_v14 = vadd.f32 %v1661_v51, %v1652_v5  ;;  %v1677_v16 = vmul.f32 %v10314_v9, %v1672_v60  ;;  %v1640_v17 = vadd.f32 %v1636_v1, %v1627_v61  ;;  %9777 = vrcp.f32 %v9888_v32  ;;  %v9465_v1 = vld [vmem:[%s10053_s18 + $0x18] sm:$0xff]  ;;  %v9463_v5 = vld [vmem:[%s10053_s18 + $0x8] sm:$0xff]  ;;  %v9462_v7 = vld [vmem:[%s10053_s18] sm:$0xff] }
 0x22b   : > { %v1629_v62 = vadd.f32 %v1625_v34, %v1616_v45  ;;  %v1680_v13 = vadd.f32 %v1676_v38, %v1667_v2  ;;  %1849 = vmatpush.bf16.msra.mxu0 %v9465_v1  ;;  %9698 = vmatpush.bf16.msra.mxu3 %v9465_v1  ;;  %v9464_v2 = vld [vmem:[%s10053_s18 + $0x10] sm:$0xff] }
 0x22c   : > { %v1678_v20 = vadd.f32 %v1674_v59, %v1665_v14  ;;  %v1653_v22 = vadd.f32 %v1649_v12, %v1640_v17 }
 0x22d   : > { %v1642_v10 = vadd.f32 %v1638_v46, %v1629_v62  ;;  %v1688_v19 = vadd.f32 %v9771_v3, %v1680_v13 }
 0x22e   : > { %v1686_v25 = vadd.f32 %v9771_v3, %v1678_v20  ;;  %v1666_v26 = vadd.f32 %v1662_v18, %v1653_v22 }
 0x22f   : > { %v1655_v4 = vadd.f32 %v1651_v63, %v1642_v10  ;;  %v1698_v24 = vsel %vm1585_vm0, %v1688_v19, 0.0  ;;  %1850 = vmatpush.bf16.msra.mxu0 %v9464_v2  ;;  %9699 = vmatpush.bf16.msra.mxu3 %v9464_v2 }
 0x230   : > { %1699 = vadd.xlane.f32.xlu0 %v1698_v24  ;;  %v1692_v27 = vsel %vm1585_vm0, %v1686_v25, 0.0  ;;  %v1679_v29 = vadd.f32 %v1675_v23, %v1666_v26  ;;  %v9778_v9 = vpop.eup %9777 }
 0x231   : > { %v1668_v21 = vadd.f32 %v1664_v11, %v1655_v4  ;;  %1693 = vadd.xlane.f32.xlu1 %v1692_v27  ;;  %v1705_v33 = vmul.f32 64.0, %v9778_v9  ;;  %vm1709_vm1 = vweird.f32 %v9778_v9 }
 0x232   : > { %v1687_v30 = vadd.f32 %v9771_v3, %v1679_v29 }
 0x233   : > { %v1681_v6 = vadd.f32 %v1677_v16, %v1668_v21  ;;  %v1706_v34 = vsub.f32 1.0, %v1705_v33  ;;  %1851 = vmatpush.bf16.msra.mxu0 %v9463_v5  ;;  %9700 = vmatpush.bf16.msra.mxu3 %v9463_v5 }
 0x234   : > { %v1695_v31 = vsel %vm1585_vm0, %v1687_v30, 0.0 }
 0x235   : > { %v1689_v28 = vadd.f32 %v9771_v3, %v1681_v6  ;;  %v1707_v35 = vmul.f32 %v9778_v9, %v1706_v34 }
 0x237   : > { %v1701_v8 = vsel %vm1585_vm0, %v1689_v28, 0.0  ;;  %v1708_v36 = vadd.f32 %v9778_v9, %v1707_v35  ;;  %1852 = vmatpush.bf16.msra.mxu0 %v9462_v7  ;;  %9701 = vmatpush.bf16.msra.mxu3 %v9462_v7 }
 0x238   : > { %1702 = vadd.xlane.f32.xlu0 %v1701_v8 }
 0x239   : > { %1696 = vadd.xlane.f32.xlu1 %v1695_v31  ;;  %v10333_v37 = vsel %vm1709_vm1, %v9778_v9, %v1708_v36 }
 0x2a3   : > { %v1700_v38 = vpop.xlane.xlu0 %1699 }
 0x2a4   : > { %v1713_v39 = vmul.f32 %v10333_v37, %v1700_v38  ;;  %v1694_v40 = vpop.xlane.xlu1 %1693 }
 0x2a5   : > { %v1711_v42 = vmul.f32 %v10333_v37, %v1694_v40 }
 0x2a6   : > { %v10336_v41 = vsub.f32 %v1688_v19, %v1713_v39  ;;  %v9772_v39 = vld [vmem:[%s13203_s4] ss:$0 sm:$0xff] }
 0x2a7   : > { %v10339_v43 = vsub.f32 %v1686_v25, %v1711_v42 }
 0x2a8   : > { %v1721_v44 = vmul.f32 %v10336_v41, %v10336_v41 }
 0x2a9   : > { %v1719_v46 = vmul.f32 %v10339_v43, %v10339_v43 }
 0x2aa   : > { %v1729_v45 = vsel %vm1585_vm0, %v1721_v44, 0.0 }
 0x2ab   : > { %1730 = vadd.xlane.f32.xlu2 %v1729_v45  ;;  %v1703_v47 = vpop.xlane.xlu0 %1702  ;;  %v1723_v49 = vsel %vm1585_vm0, %v1719_v46, 0.0 }
 0x2ac   : > { %v1714_v48 = vmul.f32 %v10333_v37, %v1703_v47  ;;  %1724 = vadd.xlane.f32.xlu0 %v1723_v49  ;;  %v1697_v50 = vpop.xlane.xlu1 %1696 }
 0x2ad   : > { %v1712_v52 = vmul.f32 %v10333_v37, %v1697_v50 }
 0x2ae   : > { %v10348_v51 = vsub.f32 %v1689_v28, %v1714_v48 }
 0x2af   : > { %v10351_v53 = vsub.f32 %v1687_v30, %v1712_v52 }
 0x2b0   : > { %v1722_v58 = vmul.f32 %v10348_v51, %v10348_v51 }
 0x2b1   : > { %v1720_v63 = vmul.f32 %v10351_v53, %v10351_v53 }
 0x2b2   : > { %v1732_v62 = vsel %vm1585_vm0, %v1722_v58, 0.0 }
 0x2b3   : > { %1733 = vadd.xlane.f32.xlu2 %v1732_v62  ;;  %v1726_v0 = vsel %vm1585_vm0, %v1720_v63, 0.0 }
 0x2b4   : > { %1727 = vadd.xlane.f32.xlu1 %v1726_v0 }
 0x31e   : > { %v1731_v3 = vpop.xlane.xlu2 %1730 }
 0x31f   : > { %v1737_v59 = vmul.f32 %v1731_v3, %v10333_v37  ;;  %v1725_v60 = vpop.xlane.xlu0 %1724 }
 0x320   : > { %v1735_v11 = vmul.f32 %v1725_v60, %v10333_v37 }
 0x321   : > { %v1741_v10 = vadd.f32 1e-06, %v1737_v59  ;;  %v9473_v59 = vld [vmem:[%s10067_s5 + $0x38] sm:$0xff] }
 0x322   : > { %v1739_v61 = vadd.f32 1e-06, %v1735_v11  ;;  %2094 = vmatpush.bf16.msra.mxu1 %v9473_v59  ;;  %9702 = vmatpush.bf16.msra.mxu2 %v9473_v59 }
 0x323   : > { %9779 = vrsqrt.f32 %v1741_v10  ;;  %vm1769_vm3 = vweird.f32 %v1741_v10 }
 0x324   : > { %9781 = vrsqrt.f32 %v1739_v61  ;;  %vm1749_vm4 = vweird.f32 %v1739_v61 }
 0x326   : > { %v1734_v12 = vpop.xlane.xlu2 %1733 }
 0x327   : > { %v1738_v13 = vmul.f32 %v1734_v12, %v10333_v37  ;;  %v1728_v14 = vpop.xlane.xlu1 %1727 }
 0x328   : > { %v1736_v16 = vmul.f32 %v1728_v14, %v10333_v37 }
 0x329   : > { %v9780_v15 = vpop.eup %9779  ;;  %v1742_v4 = vadd.f32 1e-06, %v1738_v13 }
 0x32a   : > { %v1764_v17 = vmul.f32 %v9780_v15, %v1741_v10  ;;  %v9782_v18 = vpop.eup %9781  ;;  %v1740_v19 = vadd.f32 1e-06, %v1736_v16  ;;  %vm1770_vm2 = vweird.f32 %v9780_v15  ;;  %v9472_v10 = vld [vmem:[%s10067_s5 + $0x30] sm:$0xff] }
 0x32b   : > { %9783 = vrsqrt.f32 %v1742_v4  ;;  %v1744_v21 = vmul.f32 %v9782_v18, %v1739_v61  ;;  %vm1750_vm5 = vweird.f32 %v9782_v18  ;;  %vm1771_vm6 = vmor %vm1769_vm3, %vm1770_vm2  ;;  %vm1779_vm9 = vweird.f32 %v1742_v4  ;;  %2095 = vmatpush.bf16.msra.mxu1 %v9472_v10  ;;  %9703 = vmatpush.bf16.msra.mxu2 %v9472_v10 }
 0x32c   : > { %v1765_v20 = vmul.f32 %v9780_v15, %v1764_v17  ;;  %9785 = vrsqrt.f32 %v1740_v19  ;;  %vm1751_vm7 = vmor %vm1749_vm4, %vm1750_vm5  ;;  %vm1759_vm10 = vweird.f32 %v1740_v19 }
 0x32d   : > { %v1745_v23 = vmul.f32 %v9782_v18, %v1744_v21  ;;  %v9470_v21 = vld [vmem:[%s10067_s5 + $0x20] sm:$0xff] }
 0x32e   : > { %v1766_v22 = vmul.f32 0.5, %v1765_v20 }
 0x32f   : > { %v1746_v25 = vmul.f32 0.5, %v1745_v23 }
 0x330   : > { %v1767_v24 = vsub.f32 1.5, %v1766_v22 }
 0x331   : > { %v9784_v6 = vpop.eup %9783  ;;  %v1747_v27 = vsub.f32 1.5, %v1746_v25 }
 0x332   : > { %v1768_v26 = vmul.f32 %v9780_v15, %v1767_v24  ;;  %v1774_v28 = vmul.f32 %v9784_v6, %v1742_v4  ;;  %v9786_v29 = vpop.eup %9785  ;;  %vm1780_vm8 = vweird.f32 %v9784_v6 }
 0x333   : > { %v1748_v30 = vmul.f32 %v9782_v18, %v1747_v27  ;;  %v1754_v31 = vmul.f32 %v9786_v29, %v1740_v19  ;;  %vm1760_vm11 = vweird.f32 %v9786_v29  ;;  %vm1781_vm12 = vmor %vm1779_vm9, %vm1780_vm8 }
 0x334   : > { %v1775_v8 = vmul.f32 %v9784_v6, %v1774_v28  ;;  %v1772_v32 = vsel %vm1771_vm6, %v9780_v15, %v1768_v26  ;;  %vm1761_vm13 = vmor %vm1759_vm10, %vm1760_vm11  ;;  %v9471_v15 = vld [vmem:[%s10067_s5 + $0x28] sm:$0xff] }
 0x335   : > { %v1755_v33 = vmul.f32 %v9786_v29, %v1754_v31  ;;  %v1752_v34 = vsel %vm1751_vm7, %v9782_v18, %v1748_v30  ;;  %v1785_v38 = vmul.f32 %v1772_v32, %v10336_v41  ;;  %v9773_v41 = vld [vmem:[%s13204_s3] ss:$0 sm:$0xff]  ;;  %2096 = vmatpush.bf16.msra.mxu1 %v9471_v15  ;;  %9704 = vmatpush.bf16.msra.mxu2 %v9471_v15  ;;  %v9468_v31 = vld [vmem:[%s10067_s5 + $0x10] sm:$0xff] }
 0x336   : > { %v1776_v9 = vmul.f32 0.5, %v1775_v8  ;;  %v1783_v44 = vmul.f32 %v1752_v34, %v10339_v43 }
 0x337   : > { %v1756_v36 = vmul.f32 0.5, %v1755_v33  ;;  %v1792_v48 = vmul.f32 %v9772_v39, %v1785_v38 }
 0x338   : > { %v1777_v35 = vsub.f32 1.5, %v1776_v9  ;;  %v1790_v52 = vmul.f32 %v9772_v39, %v1783_v44 }
 0x339   : > { %v1757_v42 = vsub.f32 1.5, %v1756_v36  ;;  %v1799_v62 = vadd.f32 %v9773_v41, %v1792_v48  ;;  %2097 = vmatpush.bf16.msra.mxu1 %v9470_v21  ;;  %9705 = vmatpush.bf16.msra.mxu2 %v9470_v21 }
 0x33a   : > { %v1778_v40 = vmul.f32 %v9784_v6, %v1777_v35  ;;  %v1797_v0 = vadd.f32 %v9773_v41, %v1790_v52 }
 0x33b   : > { %v1758_v46 = vmul.f32 %v9786_v29, %v1757_v42  ;;  %v9467_v42 = vld [vmem:[%s10067_s5 + $0x8] sm:$0xff] }
 0x33c   : > { %v1782_v45 = vsel %vm1781_vm12, %v9784_v6, %v1778_v40  ;;  %v9469_v6 = vld [vmem:[%s10067_s5 + $0x18] sm:$0xff] }
 0x33d   : > { %v1786_v47 = vmul.f32 %v1782_v45, %v10348_v51  ;;  %v1762_v49 = vsel %vm1761_vm13, %v9786_v29, %v1758_v46  ;;  %2098 = vmatpush.bf16.msra.mxu1 %v9469_v6  ;;  %9706 = vmatpush.bf16.msra.mxu2 %v9469_v6 }
 0x33e   : > { %v1784_v50 = vmul.f32 %v1762_v49, %v10351_v53  ;;  %v9774_v53 = vld [vmem:[%s13205_s22] ss:$0 sm:$0xff] }
 0x33f   : > { %v1793_v58 = vmul.f32 %v9772_v39, %v1786_v47 }
 0x340   : > { %v1791_v43 = vmul.f32 %v9772_v39, %v1784_v50 }
 0x341   : > { %v1800_v63 = vadd.f32 %v9773_v41, %v1793_v58  ;;  %2099 = vmatpush.bf16.msra.mxu1 %v9468_v31  ;;  %9707 = vmatpush.bf16.msra.mxu2 %v9468_v31 }
 0x342   : > { %v1798_v51 = vadd.f32 %v9773_v41, %v1791_v43  ;;  %v9466_v43 = vld [vmem:[%s10067_s5] sm:$0xff] }
 0x343   : > { %v1810_v1 = vpack.c.bf16 %v1800_v63, %v1799_v62 }
 0x344   : > { %v1809_v2 = vpack.c.bf16 %v1798_v51, %v1797_v0 }
 0x345   : > { %8420 = vmatmul.msk.bf16.vlgmr.msra.gmra.mxu3 %vm1585_vm0, %v1810_v1  ;;  %2100 = vmatpush.bf16.msra.mxu1 %v9467_v42 }
 0x346   : > { %8419 = vmatmul.msk.bf16.vlgmr.msra.gmra.mxu0 %vm1585_vm0, %v1809_v2  ;;  %9708 = vmatpush.bf16.msra.mxu2 %v9467_v42 }
 0x349   : > { %2101 = vmatpush.bf16.msra.mxu1 %v9466_v43 }
 0x34a   : > { %9709 = vmatpush.bf16.msra.mxu2 %v9466_v43 }
 0x3c3   : > { %v1854_v3 = vpop.f32.mrf.mxu0 }
 0x3c4   : > { %v10388_v5 = vadd.f32 %v9774_v53, %v1854_v3 }
 0x3c6   : > { %v10392_v60 = vmul.f32 0.70710677, %v10388_v5 }
 0x3c8   : > { %v1859_v7 = vpop.f32.mrf.mxu3  ;;  %v1880_v11 = vand.u32 2147483647, %v10392_v60 }
 0x3c9   : > { %v10396_v61 = vadd.f32 %v9774_v53, %v1859_v7 }
 0x3ca   : > { %v1884_v12 = vmul.f32 0.3275911, %v1880_v11  ;;  %v1988_v38 = vsub.f32 0.0, %v1880_v11 }
 0x3cb   : > { %v10399_v13 = vmul.f32 0.70710677, %v10396_v61  ;;  %v1856_v14 = vpop.f32.mrf.mxu0 }
 0x3cc   : > { %v1888_v4 = vadd.f32 1.0, %v1884_v12  ;;  %v10405_v17 = vadd.f32 %v9774_v53, %v1856_v14  ;;  %v1992_v50 = vmul.f32 %v1988_v38, %v1880_v11 }
 0x3cd   : > { %v10403_v16 = vand.u32 2147483647, %v10399_v13 }
 0x3ce   : > { %9787 = vrcp.f32 %v1888_v4  ;;  %v10409_v19 = vmul.f32 0.70710677, %v10405_v17  ;;  %v1901_v33 = vand.u32 2147483647, %v1888_v4  ;;  %v1903_v34 = vand.u32 2147483648, %v1888_v4 }
 0x3cf   : > { %v1886_v18 = vmul.f32 0.3275911, %v10403_v16  ;;  %vm1897_vm15 = vweird.f32 %v1888_v4  ;;  %v1996_v7 = vmul.f32 1.442695, %v1992_v50  ;;  %v1990_v12 = vsub.f32 0.0, %v10403_v16 }
 0x3d0   : > { %v1861_v20 = vpop.f32.mrf.mxu3  ;;  %v10415_v24 = vand.u32 2147483647, %v10409_v19  ;;  %vm1902_vm2 = vcmp.eq.f32.partialorder %v1901_v33, 8.507059e+37  ;;  %v1904_v45 = vor.u32 1.1754944e-38, %v1903_v34 }
 0x3d1   : > { %v1890_v22 = vadd.f32 1.0, %v1886_v18  ;;  %v10412_v23 = vadd.f32 %v9774_v53, %v1861_v20  ;;  %v1994_v33 = vmul.f32 %v1990_v12, %v10403_v16 }
 0x3d2   : > { %v1885_v25 = vmul.f32 0.3275911, %v10415_v24  ;;  %v1989_v18 = vsub.f32 0.0, %v10415_v24 }
 0x3d3   : > { %9789 = vrcp.f32 %v1890_v22  ;;  %v10420_v27 = vmul.f32 0.70710677, %v10412_v23  ;;  %v1933_v46 = vand.u32 2147483648, %v1890_v22  ;;  %v1931_v49 = vand.u32 2147483647, %v1890_v22 }
 0x3d4   : > { %v9788_v26 = vpop.eup %9787  ;;  %v10422_v29 = vadd.f32 1.0, %v1885_v25  ;;  %vm1927_vm4 = vweird.f32 %v1890_v22 }
 0x3d5   : > { %v1893_v28 = vmul.f32 %v9788_v26, %v1888_v4  ;;  %v10425_v30 = vand.u32 2147483647, %v10420_v27  ;;  %vm1898_vm14 = vweird.f32 %v9788_v26  ;;  %v1934_v1 = vor.u32 1.1754944e-38, %v1933_v46 }
 0x3d6   : > { %9791 = vrcp.f32 %v10422_v29  ;;  %vm1899_vm1 = vmor %vm1897_vm15, %vm1898_vm14  ;;  %v1916_v51 = vand.u32 2147483647, %v10422_v29  ;;  %v1918_v2 = vand.u32 2147483648, %v10422_v29  ;;  %vm1932_vm6 = vcmp.eq.f32.partialorder %v1931_v49, 8.507059e+37 }
 0x3d7   : > { %v1894_v8 = vsub.f32 1.0, %v1893_v28  ;;  %v1887_v9 = vmul.f32 0.3275911, %v10425_v30  ;;  %vm1912_vm8 = vweird.f32 %v10422_v29  ;;  %v1991_v16 = vsub.f32 0.0, %v10425_v30 }
 0x3d8   : > { %vm1917_vm9 = vcmp.eq.f32.partialorder %v1916_v51, 8.507059e+37  ;;  %vm1872_vm15 = vcmp.ge.f32.partialorder %v10392_v60, 0.0 }
 0x3d9   : > { %v9790_v32 = vpop.eup %9789  ;;  %v1895_v35 = vmul.f32 %v9788_v26, %v1894_v8  ;;  %v10430_v39 = vadd.f32 1.0, %v1887_v9 }
 0x3da   : > { %v1923_v36 = vmul.f32 %v9790_v32, %v1890_v22  ;;  %vm1928_vm3 = vweird.f32 %v9790_v32  ;;  %v1919_v22 = vor.u32 1.1754944e-38, %v1918_v2 }
 0x3db   : > { %v1896_v44 = vadd.f32 %v9788_v26, %v1895_v35  ;;  %9793 = vrcp.f32 %v10430_v39  ;;  %vm1929_vm5 = vmor %vm1927_vm4, %vm1928_vm3  ;;  %v1946_v28 = vand.u32 2147483647, %v10430_v39  ;;  %v1948_v8 = vand.u32 2147483648, %v10430_v39 }
 0x3dc   : > { %v1924_v40 = vsub.f32 1.0, %v1923_v36  ;;  %v9792_v47 = vpop.eup %9791  ;;  %vm1942_vm12 = vweird.f32 %v10430_v39  ;;  %9795 = vpow2.f32 %v1996_v7  ;;  %vm1875_vm3 = vcmp.ge.f32.partialorder %v10420_v27, 0.0 }
 0x3dd   : > { %v1900_v48 = vsel %vm1899_vm1, %v9788_v26, %v1896_v44  ;;  %v1908_v52 = vmul.f32 %v9792_v47, %v10422_v29  ;;  %vm1913_vm7 = vweird.f32 %v9792_v47  ;;  %v1949_v44 = vor.u32 1.1754944e-38, %v1948_v8 }
 0x3de   : > { %v1925_v41 = vmul.f32 %v9790_v32, %v1924_v40  ;;  %v10435_v58 = vsel %vm1902_vm2, %v1904_v45, %v1900_v48  ;;  %vm1914_vm10 = vmor %vm1912_vm8, %vm1913_vm7  ;;  %v1993_v40 = vmul.f32 %v1989_v18, %v10415_v24  ;;  %vm1947_vm14 = vcmp.eq.f32.partialorder %v1946_v28, 8.507059e+37 }
 0x3df   : > { %v1952_v62 = vmul.f32 1.0614054, %v10435_v58  ;;  %v1909_v0 = vsub.f32 1.0, %v1908_v52  ;;  %vm1873_vm1 = vcmp.ge.f32.partialorder %v10409_v19, 0.0  ;;  %vm1874_vm2 = vcmp.ge.f32.partialorder %v10399_v13, 0.0 }
 0x3e0   : > { %v1926_v63 = vadd.f32 %v9790_v32, %v1925_v41  ;;  %v2000_v41 = vmul.f32 1.442695, %v1994_v33  ;;  %v1865_v19 = vmul.f32 0.5, %v10405_v17  ;;  %v1867_v27 = vmul.f32 0.5, %v10412_v23  ;;  %v9775_v17 = vld [vmem:[%s13206_s21] ss:$0 sm:$0xff] }
 0x3e1   : > { %v1956_v53 = vadd.f32 -1.4531521, %v1952_v62  ;;  %v9794_v59 = vpop.eup %9793  ;;  %v1910_v10 = vmul.f32 %v9792_v47, %v1909_v0  ;;  %v1998_v62 = vmul.f32 1.442695, %v1993_v40 }
 0x3e2   : > { %v1930_v3 = vsel %vm1929_vm5, %v9790_v32, %v1926_v63  ;;  %v1938_v14 = vmul.f32 %v9794_v59, %v10430_v39  ;;  %vm1943_vm11 = vweird.f32 %v9794_v59  ;;  %v9796_v51 = vpop.eup %9795  ;;  %9797 = vpow2.f32 %v2000_v41 }
 0x3e3   : > { %v1935_v11 = vsel %vm1932_vm6, %v1934_v1, %v1930_v3  ;;  %v1960_v15 = vmul.f32 %v1956_v53, %v10435_v58  ;;  %v1911_v20 = vadd.f32 %v9792_v47, %v1910_v10  ;;  %vm1944_vm13 = vmor %vm1942_vm12, %vm1943_vm11  ;;  %v1995_v1 = vmul.f32 %v1991_v16, %v10425_v30 }
 0x3e4   : > { %v1954_v4 = vmul.f32 1.0614054, %v1935_v11  ;;  %v1939_v21 = vsub.f32 1.0, %v1938_v14  ;;  %9799 = vpow2.f32 %v1998_v62 }
 0x3e5   : > { %v1964_v25 = vadd.f32 1.4214138, %v1960_v15  ;;  %v1915_v26 = vsel %vm1914_vm10, %v9792_v47, %v1911_v20  ;;  %v2002_v14 = vmul.f32 1.442695, %v1995_v1 }
 0x3e6   : > { %v1958_v6 = vadd.f32 -1.4531521, %v1954_v4  ;;  %v1940_v31 = vmul.f32 %v9794_v59, %v1939_v21  ;;  %v1920_v32 = vsel %vm1917_vm9, %v1919_v22, %v1915_v26 }
 0x3e7   : > { %v1968_v9 = vmul.f32 %v1964_v25, %v10435_v58  ;;  %v1953_v34 = vmul.f32 1.0614054, %v1920_v32  ;;  %9801 = vpow2.f32 %v2002_v14 }
 0x3e8   : > { %v1962_v29 = vmul.f32 %v1958_v6, %v1935_v11  ;;  %v1941_v36 = vadd.f32 %v9794_v59, %v1940_v31  ;;  %v9798_v18 = vpop.eup %9797  ;;  %v9889_v6 = vmov -1.0  }
 0x3e9   : > { %v1972_v35 = vadd.f32 -0.28449672, %v1968_v9  ;;  %v1957_v42 = vadd.f32 -1.4531521, %v1953_v34  ;;  %v1876_v26 = vsel %vm1872_vm15, 1.0, %v9889_v6  ;;  %v1877_v60 = vsel %vm1873_vm1, 1.0, %v9889_v6 }
 0x3ea   : > { %v1966_v38 = vadd.f32 1.4214138, %v1962_v29  ;;  %v1945_v46 = vsel %vm1944_vm13, %v9794_v59, %v1941_v36  ;;  %v9800_v25 = vpop.eup %9799 }
 0x3eb   : > { %v1976_v45 = vmul.f32 %v1972_v35, %v10435_v58  ;;  %v1961_v48 = vmul.f32 %v1957_v42, %v1920_v32  ;;  %v1950_v39 = vsel %vm1947_vm14, %v1949_v44, %v1945_v46  ;;  %v1878_v35 = vsel %vm1874_vm2, 1.0, %v9889_v6 }
 0x3ec   : > { %v1970_v47 = vmul.f32 %v1966_v38, %v1935_v11  ;;  %v1955_v50 = vmul.f32 1.0614054, %v1950_v39  ;;  %v1864_v42 = vmul.f32 0.5, %v10388_v5 }
 0x3ed   : > { %v1980_v49 = vadd.f32 0.2548296, %v1976_v45  ;;  %v1965_v43 = vadd.f32 1.4214138, %v1961_v48  ;;  %v9802_v34 = vpop.eup %9801  ;;  %v1879_v45 = vsel %vm1875_vm3, 1.0, %v9889_v6 }
 0x3ee   : > { %v1974_v52 = vadd.f32 -0.28449672, %v1970_v47  ;;  %v1959_v63 = vadd.f32 -1.4531521, %v1955_v50 }
 0x3ef   : > { %v1984_v24 = vmul.f32 %v1980_v49, %v10435_v58  ;;  %v1969_v2 = vmul.f32 %v1965_v43, %v1920_v32  ;;  %v9776_v43 = vld [vmem:[%s13207_s30] ss:$0 sm:$0xff] }
 0x3f0   : > { %v1978_v0 = vmul.f32 %v1974_v52, %v1935_v11  ;;  %v1963_v53 = vmul.f32 %v1959_v63, %v1950_v39 }
 0x3f1   : > { %v1973_v59 = vadd.f32 -0.28449672, %v1969_v2  ;;  %v2004_v7 = vmul.f32 %v9796_v51, %v1984_v24 }
 0x3f2   : > { %v1982_v3 = vadd.f32 0.2548296, %v1978_v0  ;;  %v1967_v10 = vadd.f32 1.4214138, %v1963_v53 }
 0x3f3   : > { %v1977_v15 = vmul.f32 %v1973_v59, %v1920_v32  ;;  %v2008_v20 = vsub.f32 1.0, %v2004_v7 }
 0x3f4   : > { %v1986_v12 = vmul.f32 %v1982_v3, %v1935_v11  ;;  %v1971_v4 = vmul.f32 %v1967_v10, %v1950_v39 }
 0x3f5   : > { %v1981_v58 = vadd.f32 0.2548296, %v1977_v15  ;;  %v2012_v11 = vmul.f32 %v2008_v20, %v1876_v26 }
 0x3f6   : > { %v1975_v21 = vadd.f32 -0.28449672, %v1971_v4  ;;  %v2006_v22 = vmul.f32 %v9798_v18, %v1986_v12 }
 0x3f7   : > { %v1985_v30 = vmul.f32 %v1981_v58, %v1920_v32  ;;  %v2016_v38 = vadd.f32 1.0, %v2012_v11 }
 0x3f8   : > { %v1979_v28 = vmul.f32 %v1975_v21, %v1950_v39  ;;  %v2010_v9 = vsub.f32 1.0, %v2006_v22 }
 0x3f9   : > { %v2005_v8 = vmul.f32 %v9800_v25, %v1985_v30  ;;  %v2020_v46 = vmul.f32 %v2016_v38, %v1864_v42 }
 0x3fa   : > { %v1983_v31 = vadd.f32 0.2548296, %v1979_v28  ;;  %v2014_v40 = vmul.f32 %v2010_v9, %v1878_v35 }
 0x3fb   : > { %v2009_v29 = vsub.f32 1.0, %v2005_v8 }
 0x3fc   : > { %v1987_v33 = vmul.f32 %v1983_v31, %v1950_v39  ;;  %v2018_v16 = vadd.f32 1.0, %v2014_v40  ;;  %v1866_v39 = vmul.f32 0.5, %v10396_v61 }
 0x3fd   : > { %v2013_v36 = vmul.f32 %v2009_v29, %v1877_v60 }
 0x3fe   : > { %v2007_v32 = vmul.f32 %v9802_v34, %v1987_v33  ;;  %v2022_v50 = vmul.f32 %v2018_v16, %v1866_v39 }
 0x3ff   : > { %v2017_v44 = vadd.f32 1.0, %v2013_v36 }
 0x400   : > { %v2011_v13 = vsub.f32 1.0, %v2007_v32 }
 0x401   : > { %v2021_v47 = vmul.f32 %v2017_v44, %v1865_v19 }
 0x402   : > { %v2015_v41 = vmul.f32 %v2011_v13, %v1879_v45 }
 0x403   : > { %v2040_v48 = vpack.c.bf16 %v2021_v47, %v2020_v46 }
 0x404   : > { %v2019_v49 = vadd.f32 1.0, %v2015_v41 }
 0x405   : > { %2102 = vmatmul.bf16.vlgmr.msra.gmra.mxu1 %v2040_v48 }
 0x406   : > { %v2023_v5 = vmul.f32 %v2019_v49, %v1867_v27 }
 0x408   : > { %v2041_v52 = vpack.c.bf16 %v2023_v5, %v2022_v50 }
 0x40a   : > { %2107 = vmatmul.bf16.vlgmr.msra.gmra.mxu2 %v2041_v52 }
 0x482   : > { %v2103_v62 = vpop.f32.mrf.mxu1 }
 0x483   : > { %v2104_v61 = vadd.f32 %v9775_v17, %v2103_v62 }
 0x485   : > { %v2117_v24 = vmul.f32 %v9776_v43, %v2104_v61 }
 0x487   : > { %v2121_v23 = vadd.f32 %v2117_v24, %v10303_v57 }
 0x489   : > { %2125 = vst.msk [vmem:[#allocation2] sm:$0xff] %vm1585_vm0, %v2121_v23 }
 0x48a   : > { %v2105_v63 = vpop.f32.mrf.mxu1 }
 0x48b   : > { %v2106_v0 = vadd.f32 %v9775_v17, %v2105_v63 }
 0x48d   : > { %v2118_v51 = vmul.f32 %v9776_v43, %v2106_v0  ;;  %v2108_v1 = vpop.f32.mrf.mxu2 }
 0x48e   : > { %v2109_v2 = vadd.f32 %v9775_v17, %v2108_v1 }
 0x48f   : > { %v2122_v53 = vadd.f32 %v2118_v51, %v10295_v54 }
 0x490   : > { %v2119_v3 = vmul.f32 %v9776_v43, %v2109_v2 }
 0x491   : > { %2126 = vst.msk [vmem:[#allocation2 + $0x8] sm:$0xff] %vm1585_vm0, %v2122_v53 }
 0x492   : > { %v2123_v59 = vadd.f32 %v2119_v3, %v10297_v55 }
 0x494   : > { %2127 = vst.msk [vmem:[#allocation2 + $0x10] sm:$0xff] %vm1585_vm0, %v2123_v59 }
 0x495   : > { %v2110_v7 = vpop.f32.mrf.mxu2 }
 0x496   : > { %v2111_v10 = vadd.f32 %v9775_v17, %v2110_v7 }
 0x498   : > { %v2120_v12 = vmul.f32 %v9776_v43, %v2111_v10  ;;  %2132 = sbr.rel (%p8453_p8) target bundleno = 2706 (0xa92), region = 112 }
 0x49a   : > { %v2124_v57 = vadd.f32 %v2120_v12, %v10299_v56 }
 0x49c   : > { %2128 = vst.msk [vmem:[#allocation2 + $0x18] sm:$0xff] %vm1585_vm0, %v2124_v57 }
 0x49d   : > { %v2135_v14 = vld [vmem:[#allocation2 + $0x10] sm:$0xff]  ;;  %v2133_v15 = vld [vmem:[#allocation2] sm:$0xff]  ;;  %v2134_v18 = vld [vmem:[#allocation2 + $0x8] sm:$0xff]  ;;  %s13208_s5 = sld [smem:[#allocation63_spill]] }
 0x49e   : > { %v2145_v54 = vsel %vm1585_vm0, %v2135_v14, 0.0  ;;  %v2139_v4 = vsel %vm1585_vm0, %v2133_v15, 0.0  ;;  %v2142_v20 = vsel %vm1585_vm0, %v2134_v18, 0.0  ;;  %v8528_v40 = vld [vmem:[%s13068_s17 + $0x90] sm:$0xf]  ;;  %s13399_s27 = sld [smem:[#allocation65_spill]] }
 0x49f   : > { %2146 = vadd.xlane.f32.xlu0 %v2145_v54  ;;  %2140 = vadd.xlane.f32.xlu1 %v2139_v4  ;;  %v9495_v42 = vld [vmem:[%s13068_s17 + $0xa4] sm:$0xf0]  ;;  %v9492_v19 = vld [vmem:[%s13068_s17 + $0x94] sm:$0xf]  ;;  %v8530_v13 = vld [vmem:[%s13068_s17 + $0xa8] sm:$0xf0] }
 0x4a0   : > { %v8529_v44 = vor.u32 %v9495_v42, %v8528_v40  ;;  %v8533_v45 = vor.u32 %v9492_v19, %v8530_v13  ;;  %v8504_v46 = vld [vmem:[%s13068_s17 + $0x60] sm:$0xf]  ;;  %v9489_v47 = vld [vmem:[%s13068_s17 + $0x74] sm:$0xf0]  ;;  %v9486_v41 = vld [vmem:[%s13068_s17 + $0x64] sm:$0xf] }
 0x4a1   : > { %v8505_v16 = vor.u32 %v9489_v47, %v8504_v46  ;;  %v8506_v48 = vld [vmem:[%s13068_s17 + $0x78] sm:$0xf0]  ;;  %v8480_v27 = vld [vmem:[%s13068_s17 + $0x30] sm:$0xf]  ;;  %v9483_v49 = vld [vmem:[%s13068_s17 + $0x44] sm:$0xf0] }
 0x4a2   : > { %2411 = vmatpush.bf16.msra.mxu0 %v8529_v44  ;;  %9710 = vmatpush.bf16.msra.mxu2 %v8529_v44  ;;  %v8509_v39 = vor.u32 %v9486_v41, %v8506_v48  ;;  %v9480_v50 = vld [vmem:[%s13068_s17 + $0x34] sm:$0xf]  ;;  %v8481_v5 = vor.u32 %v9483_v49, %v8480_v27  ;;  %v8482_v52 = vld [vmem:[%s13068_s17 + $0x48] sm:$0xf0]  ;;  %v8456_v23 = vld [vmem:[%s13068_s17] sm:$0xf] }
 0x4a3   : > { %v2136_v55 = vld [vmem:[#allocation2 + $0x18] sm:$0xff]  ;;  %2430 = vmatpush.bf16.msra.mxu1 %v8533_v45  ;;  %9714 = vmatpush.bf16.msra.mxu3 %v8533_v45  ;;  %v8485_v62 = vor.u32 %v9480_v50, %v8482_v52  ;;  %v9474_v0 = vld [vmem:[%s13068_s17 + $0x4] sm:$0xf]  ;;  %v8538_v7 = vld [vmem:[%s13068_s17 + $0xb0] sm:$0xf0]  ;;  %s13401_s21 = sld [smem:[#allocation66_spill]] }
 0x4a4   : > { %v2148_v58 = vsel %vm1585_vm0, %v2136_v55, 0.0  ;;  %v9477_v63 = vld [vmem:[%s13068_s17 + $0x14] sm:$0xf0]  ;;  %v8458_v53 = vld [vmem:[%s13068_s17 + $0x18] sm:$0xf0]  ;;  %s13400_s28 = smov %s13399_s27 }
 0x4a5   : > { %v8457_v2 = vor.u32 %v9477_v63, %v8456_v23  ;;  %v8461_v3 = vor.u32 %v9474_v0, %v8458_v53  ;;  %v9493_v59 = vld [vmem:[%s13068_s17 + $0x9c] sm:$0xf]  ;;  %v8536_v10 = vld [vmem:[%s13068_s17 + $0x98] sm:$0xf]  ;;  %v9496_v57 = vld [vmem:[%s13068_s17 + $0xac] sm:$0xf0] }
 0x4a6   : > { %2412 = vmatpush.bf16.msra.mxu0 %v8505_v16  ;;  %9711 = vmatpush.bf16.msra.mxu2 %v8505_v16  ;;  %v8541_v12 = vor.u32 %v9493_v59, %v8538_v7  ;;  %v9481_v44 = vld [vmem:[%s13068_s17 + $0x3c] sm:$0xf]  ;;  %v8490_v13 = vld [vmem:[%s13068_s17 + $0x50] sm:$0xf0]  ;;  %v8488_v45 = vld [vmem:[%s13068_s17 + $0x38] sm:$0xf] }
 0x4a7   : > { %2149 = vadd.xlane.f32.xlu0 %v2148_v58  ;;  %2143 = vadd.xlane.f32.xlu1 %v2142_v20  ;;  %v9494_v58 = vld [vmem:[%s13068_s17 + $0xa4] sm:$0xf]  ;;  %v8546_v20 = vld [vmem:[%s13068_s17 + $0xb8] sm:$0xf0]  ;;  %v9484_v47 = vld [vmem:[%s13068_s17 + $0x4c] sm:$0xf0]  ;;  %v8493_v48 = vor.u32 %v9481_v44, %v8490_v13 }
 0x4a8   : > { %2431 = vmatpush.bf16.msra.mxu1 %v8509_v39  ;;  %9715 = vmatpush.bf16.msra.mxu3 %v8509_v39  ;;  %v8496_v41 = vld [vmem:[%s13068_s17 + $0x40] sm:$0xf]  ;;  %v9485_v39 = vld [vmem:[%s13068_s17 + $0x54] sm:$0xf0]  ;;  %v9482_v27 = vld [vmem:[%s13068_s17 + $0x44] sm:$0xf]  ;;  %v8489_v50 = vor.u32 %v9484_v47, %v8488_v45 }
 0x4a9   : > { %v8498_v52 = vld [vmem:[%s13068_s17 + $0x58] sm:$0xf0]  ;;  %v9478_v23 = vld [vmem:[%s13068_s17 + $0x1c] sm:$0xf0]  ;;  %v9479_v53 = vld [vmem:[%s13068_s17 + $0x24] sm:$0xf0] }
 0x4aa   : > { %2413 = vmatpush.bf16.msra.mxu0 %v8481_v5  ;;  %9712 = vmatpush.bf16.msra.mxu2 %v8481_v5  ;;  %v8497_v5 = vor.u32 %v9485_v39, %v8496_v41 }
 0x4ac   : > { %2432 = vmatpush.bf16.msra.mxu1 %v8485_v62  ;;  %9716 = vmatpush.bf16.msra.mxu3 %v8485_v62 }
 0x4ae   : > { %2414 = vmatpush.bf16.msra.mxu0 %v8457_v2  ;;  %9713 = vmatpush.bf16.msra.mxu2 %v8457_v2  ;;  %v8472_v2 = vld [vmem:[%s13068_s17 + $0x10] sm:$0xf] }
 0x4af   : > { %v8473_v7 = vor.u32 %v9479_v53, %v8472_v2 }
 0x4b0   : > { %2433 = vmatpush.bf16.msra.mxu1 %v8461_v3  ;;  %9717 = vmatpush.bf16.msra.mxu3 %v8461_v3 }
 0x4b4   : > { %2468 = vmatpush.bf16.msrb.mxu3 %v8541_v12  ;;  %v8474_v12 = vld [vmem:[%s13068_s17 + $0x28] sm:$0xf0] }
 0x512   : > { %v2147_v56 = vpop.xlane.xlu0 %2146  ;;  %v2141_v21 = vpop.xlane.xlu1 %2140 }
 0x513   : > { %v2153_v22 = vmul.f32 %v2147_v56, %v10333_v37  ;;  %v2151_v30 = vmul.f32 %v2141_v21, %v10333_v37  ;;  %v9487_v56 = vld [vmem:[%s13068_s17 + $0x6c] sm:$0xf] }
 0x515   : > { %v10490_v25 = vsub.f32 %v2133_v15, %v2151_v30  ;;  %v10492_v6 = vsub.f32 %v2135_v14, %v2153_v22  ;;  %v8544_v14 = vld [vmem:[%s13068_s17 + $0xa0] sm:$0xf]  ;;  %v9497_v15 = vld [vmem:[%s13068_s17 + $0xb4] sm:$0xf0]  ;;  %v8549_v30 = vor.u32 %v9494_v58, %v8546_v20 }
 0x517   : > { %v2161_v26 = vmul.f32 %v10492_v6, %v10492_v6  ;;  %v2159_v28 = vmul.f32 %v10490_v25, %v10490_v25  ;;  %2506 = vmatpush.bf16.msrb.mxu1 %v8549_v30 }
 0x519   : > { %v2169_v8 = vsel %vm1585_vm0, %v2161_v26, 0.0  ;;  %v2163_v11 = vsel %vm1585_vm0, %v2159_v28, 0.0  ;;  %v8514_v26 = vld [vmem:[%s13068_s17 + $0x80] sm:$0xf0]  ;;  %v8512_v28 = vld [vmem:[%s13068_s17 + $0x68] sm:$0xf] }
 0x51a   : > { %2170 = vadd.xlane.f32.xlu2 %v2169_v8  ;;  %v2150_v31 = vpop.xlane.xlu0 %2149  ;;  %2164 = vadd.xlane.f32.xlu0 %v2163_v11  ;;  %v2144_v9 = vpop.xlane.xlu1 %2143  ;;  %v9490_v8 = vld [vmem:[%s13068_s17 + $0x7c] sm:$0xf0]  ;;  %v8517_v11 = vor.u32 %v9487_v56, %v8514_v26 }
 0x51b   : > { %v2154_v29 = vmul.f32 %v2150_v31, %v10333_v37  ;;  %v2152_v60 = vmul.f32 %v2144_v9, %v10333_v37  ;;  %v8513_v31 = vor.u32 %v9490_v8, %v8512_v28  ;;  %v9491_v9 = vld [vmem:[%s13068_s17 + $0x84] sm:$0xf0]  ;;  %v9803_v28 = vld [vmem:[%s13066_s15] ss:$0 sm:$0xff] }
 0x51c   : > { %2469 = vmatpush.bf16.msrb.mxu3 %v8517_v11 }
 0x51d   : > { %v10502_v33 = vsub.f32 %v2136_v55, %v2154_v29  ;;  %v10504_v34 = vsub.f32 %v2134_v18, %v2152_v60  ;;  %v8537_v55 = vor.u32 %v9496_v57, %v8536_v10  ;;  %v8545_v18 = vor.u32 %v9497_v15, %v8544_v14  ;;  %v9488_v29 = vld [vmem:[%s13068_s17 + $0x74] sm:$0xf] }
 0x51e   : > { %v9476_v10 = vld [vmem:[%s13068_s17 + $0x14] sm:$0xf] }
 0x51f   : > { %v2162_v35 = vmul.f32 %v10502_v33, %v10502_v33  ;;  %v2160_v36 = vmul.f32 %v10504_v34, %v10504_v34  ;;  %2449 = vmatpush.bf16.msrb.mxu2 %v8537_v55  ;;  %2487 = vmatpush.bf16.msrb.mxu0 %v8545_v18  ;;  %v8477_v15 = vor.u32 %v9476_v10, %v8474_v12 }
 0x520   : > { %2470 = vmatpush.bf16.msrb.mxu3 %v8493_v48 }
 0x521   : > { %v2172_v38 = vsel %vm1585_vm0, %v2162_v35, 0.0  ;;  %v2166_v32 = vsel %vm1585_vm0, %v2160_v36, 0.0 }
 0x522   : > { %2173 = vadd.xlane.f32.xlu2 %v2172_v38  ;;  %2167 = vadd.xlane.f32.xlu1 %v2166_v32  ;;  %v8522_v32 = vld [vmem:[%s13068_s17 + $0x88] sm:$0xf0] }
 0x523   : > { %v8525_v19 = vor.u32 %v9488_v29, %v8522_v32  ;;  %2450 = vmatpush.bf16.msrb.mxu2 %v8513_v31  ;;  %v9804_v29 = vld [vmem:[%s13067_s16] ss:$0 sm:$0xff] }
 0x525   : > { %2507 = vmatpush.bf16.msrb.mxu1 %v8525_v19 }
 0x527   : > { %2451 = vmatpush.bf16.msrb.mxu2 %v8489_v50 }
 0x58d   : > { %v2171_v17 = vpop.xlane.xlu2 %2170  ;;  %v2165_v43 = vpop.xlane.xlu0 %2164 }
 0x58e   : > { %v2177_v61 = vmul.f32 %v2171_v17, %v10333_v37  ;;  %v2175_v24 = vmul.f32 %v2165_v43, %v10333_v37  ;;  %v9475_v17 = vld [vmem:[%s13068_s17 + $0xc] sm:$0xf]  ;;  %v8466_v43 = vld [vmem:[%s13068_s17 + $0x20] sm:$0xf0] }
 0x58f   : > { %v8469_v0 = vor.u32 %v9475_v17, %v8466_v43 }
 0x590   : > { %v10559_v51 = vadd.f32 1e-06, %v2177_v61  ;;  %v10561_v1 = vadd.f32 1e-06, %v2175_v24  ;;  %v8501_v61 = vor.u32 %v9482_v27, %v8498_v52  ;;  %v8464_v24 = vld [vmem:[%s13068_s17 + $0x8] sm:$0xf] }
 0x591   : > { %v8465_v59 = vor.u32 %v9478_v23, %v8464_v24  ;;  %2471 = vmatpush.bf16.msrb.mxu3 %v8469_v0 }
 0x592   : > { %9805 = vrsqrt.f32 %v10559_v51  ;;  %2508 = vmatpush.bf16.msrb.mxu1 %v8501_v61  ;;  %vm2189_vm5 = vweird.f32 %v10561_v1  ;;  %vm2209_vm7 = vweird.f32 %v10559_v51 }
 0x593   : > { %9807 = vrsqrt.f32 %v10561_v1  ;;  %2452 = vmatpush.bf16.msrb.mxu2 %v8465_v59 }
 0x595   : > { %v2174_v54 = vpop.xlane.xlu2 %2173  ;;  %v2168_v4 = vpop.xlane.xlu1 %2167 }
 0x596   : > { %v2178_v21 = vmul.f32 %v2174_v54, %v10333_v37  ;;  %v2176_v22 = vmul.f32 %v2168_v4, %v10333_v37  ;;  %v8520_v37 = vld [vmem:[%s13068_s17 + $0x70] sm:$0xf]  ;;  %2509 = vmatpush.bf16.msrb.mxu1 %v8477_v15 }
 0x597   : > { %v8521_v38 = vor.u32 %v9491_v9, %v8520_v37 }
 0x598   : > { %v10615_v60 = vpop.eup %9805  ;;  %v10617_v35 = vadd.f32 1e-06, %v2178_v21  ;;  %v10619_v36 = vadd.f32 1e-06, %v2176_v22 }
 0x599   : > { %v10624_v40 = vpop.eup %9807  ;;  %v2204_v42 = vmul.f32 %v10615_v60, %v10559_v51  ;;  %2488 = vmatpush.bf16.msrb.mxu0 %v8521_v38  ;;  %vm2210_vm4 = vweird.f32 %v10615_v60 }
 0x59a   : > { %v2184_v46 = vmul.f32 %v10624_v40, %v10561_v1  ;;  %9809 = vrsqrt.f32 %v10617_v35  ;;  %vm2190_vm6 = vweird.f32 %v10624_v40  ;;  %vm2211_vm8 = vmor %vm2209_vm7, %vm2210_vm4  ;;  %vm2199_vm11 = vweird.f32 %v10619_v36 }
 0x59b   : > { %v2205_v16 = vmul.f32 %v10615_v60, %v2204_v42  ;;  %9811 = vrsqrt.f32 %v10619_v36  ;;  %vm2191_vm9 = vmor %vm2189_vm5, %vm2190_vm6  ;;  %vm2219_vm13 = vweird.f32 %v10617_v35 }
 0x59c   : > { %v2185_v49 = vmul.f32 %v10624_v40, %v2184_v46 }
 0x59d   : > { %v2206_v62 = vmul.f32 0.5, %v2205_v16  ;;  %2489 = vmatpush.bf16.msrb.mxu0 %v8497_v5  ;;  %v10729_v16 = vld [vmem:[%s13208_s5] sm:$0x3f] }
 0x59e   : > { %v2186_v63 = vmul.f32 0.5, %v2185_v49  ;;  %v10732_v48 = vperm.slane %v10729_v16, 4  ;;  %v10735_v39 = vperm.slane %v10729_v16, 5  ;;  %v10754_v10 = vperm.slane %v10729_v16, 3 }
 0x59f   : > { %v2207_v3 = vsub.f32 1.5, %v2206_v62 }
 0x5a0   : > { %v9810_v57 = vpop.eup %9809  ;;  %v2187_v14 = vsub.f32 1.5, %v2186_v63  ;;  %13210 = vst [vmem:[#allocation14_spill] sm:$0xff] %v10754_v10 }
 0x5a1   : > { %v9812_v54 = vpop.eup %9811  ;;  %v2208_v4 = vmul.f32 %v10615_v60, %v2207_v3  ;;  %v2214_v55 = vmul.f32 %v9810_v57, %v10617_v35  ;;  %2490 = vmatpush.bf16.msrb.mxu0 %v8473_v7  ;;  %vm2220_vm10 = vweird.f32 %v9810_v57 }
 0x5a2   : > { %v2188_v18 = vmul.f32 %v10624_v40, %v2187_v14  ;;  %v2194_v58 = vmul.f32 %v9812_v54, %v10619_v36  ;;  %vm2200_vm12 = vweird.f32 %v9812_v54  ;;  %vm2221_vm14 = vmor %vm2219_vm13, %vm2220_vm10 }
 0x5a3   : > { %v2215_v20 = vmul.f32 %v9810_v57, %v2214_v55  ;;  %v2212_v21 = vsel %vm2211_vm8, %v10615_v60, %v2208_v4  ;;  %vm2201_vm15 = vmor %vm2199_vm11, %vm2200_vm12 }
 0x5a4   : > { %v2195_v56 = vmul.f32 %v9812_v54, %v2194_v58  ;;  %v2192_v30 = vsel %vm2191_vm9, %v10624_v40, %v2188_v18  ;;  %v2225_v51 = vmul.f32 %v2212_v21, %v10492_v6 }
 0x5a5   : > { %v2216_v22 = vmul.f32 0.5, %v2215_v20  ;;  %v2223_v11 = vmul.f32 %v2192_v30, %v10490_v25 }
 0x5a6   : > { %v2196_v1 = vmul.f32 0.5, %v2195_v56  ;;  %v2232_v60 = vmul.f32 %v9803_v28, %v2225_v51 }
 0x5a7   : > { %v2217_v26 = vsub.f32 1.5, %v2216_v22  ;;  %v2230_v32 = vmul.f32 %v9803_v28, %v2223_v11  ;;  %v13081_v22 = vmov 683565275  }
 0x5a8   : > { %v2197_v8 = vsub.f32 1.5, %v2196_v1  ;;  %v2239_v42 = vadd.f32 %v9804_v29, %v2232_v60  ;;  %v13092_v1 = vmov 2475754826   ;;  %v13088_v60 = vmov 920167782  }
 0x5a9   : > { %v2218_v31 = vmul.f32 %v9810_v57, %v2217_v26  ;;  %v2237_v35 = vadd.f32 %v9804_v29, %v2230_v32  ;;  %v13083_v32 = vmov 1326507024  }
 0x5aa   : > { %v2198_v37 = vmul.f32 %v9812_v54, %v2197_v8  ;;  %v13085_v8 = vmov 2131351028  }
 0x5ab   : > { %v2222_v9 = vsel %vm2221_vm14, %v9810_v57, %v2218_v31 }
 0x5ac   : > { %v2226_v6 = vmul.f32 %v2222_v9, %v10502_v33  ;;  %v2202_v38 = vsel %vm2201_vm15, %v9812_v54, %v2198_v37  ;;  %v13090_v37 = vmov 2102212464  }
 0x5ad   : > { %v2224_v36 = vmul.f32 %v2202_v38, %v10504_v34 }
 0x5ae   : > { %v2233_v40 = vmul.f32 %v9803_v28, %v2226_v6 }
 0x5af   : > { %v2231_v25 = vmul.f32 %v9803_v28, %v2224_v36 }
 0x5b0   : > { %v2240_v19 = vadd.f32 %v9804_v29, %v2233_v40 }
 0x5b1   : > { %v2238_v44 = vadd.f32 %v9804_v29, %v2231_v25 }
 0x5b2   : > { %v2266_v13 = vpack.c.bf16 %v2240_v19, %v2239_v42 }
 0x5b3   : > { %v2265_v45 = vpack.c.bf16 %v2238_v44, %v2237_v35 }
 0x5b4   : > { %8551 = vmatmul.msk.bf16.vlgmr.msra.gmra.mxu2 %vm1585_vm0, %v2266_v13  ;;  %8553 = vmatmul.msk.bf16.vlgmr.msra.gmra.mxu3 %vm1585_vm0, %v2266_v13 }
 0x5b5   : > { %8550 = vmatmul.msk.bf16.vlgmr.msra.gmra.mxu0 %vm1585_vm0, %v2265_v45  ;;  %8552 = vmatmul.msk.bf16.vlgmr.msra.gmra.mxu1 %vm1585_vm0, %v2265_v45 }
 0x5c4   : > { %8554 = vmatmul.msk.bf16.vlgmr.msrb.gmra.mxu2 %vm1585_vm0, %v2265_v45  ;;  %8556 = vmatmul.msk.bf16.vlgmr.msrb.gmra.mxu3 %vm1585_vm0, %v2265_v45 }
 0x5c5   : > { %8558 = vmatmul.msk.bf16.vlgmr.msrb.gmra.mxu0 %vm1585_vm0, %v2265_v45  ;;  %8560 = vmatmul.msk.bf16.vlgmr.msrb.gmra.mxu1 %vm1585_vm0, %v2265_v45 }
 0x5d4   : > { %8555 = vmatmul.msk.bf16.gmra.mxu2 %vm1585_vm0, %v2266_v13  ;;  %8557 = vmatmul.msk.bf16.gmra.mxu3 %vm1585_vm0, %v2266_v13 }
 0x5d5   : > { %8559 = vmatmul.msk.bf16.gmra.mxu0 %vm1585_vm0, %v2266_v13  ;;  %8561 = vmatmul.msk.bf16.gmra.mxu1 %vm1585_vm0, %v2266_v13 }
 0x632   : > { %v10716_v33 = vpop.f32.mrf.mxu0  ;;  %v10718_v34 = vpop.f32.mrf.mxu1 }
 0x637   : > { %v10720_v46 = vpop.f32.mrf.mxu3 }
 0x63a   : > { %v10722_v47 = vpop.f32.mrf.mxu0  ;;  %v10724_v41 = vpop.f32.mrf.mxu1 }
 0x63f   : > { %v10737_v50 = vpop.f32.mrf.mxu3 }
 0x642   : > { %v2492_v27 = vpop.f32.mrf.mxu0  ;;  %v2511_v49 = vpop.f32.mrf.mxu1 }
 0x643   : > { %v10740_v5 = vadd.f32 %v2492_v27, %v10732_v48  ;;  %v10743_v52 = vadd.f32 %v2511_v49, %v10735_v39 }
 0x645   : > { %13209 = vst [vmem:[#allocation13_spill] sm:$0xff] %v10740_v5  ;;  %v13079_v17 = vand.u32 2147483647, %v10740_v5  ;;  %v2714_v43 = vand.u32 2139095040, %v10740_v5  ;;  %v13078_v62 = vand.u32 2147483647, %v10743_v52 }
 0x646   : > { %v2868_v61 = vand.u32 2139095040, %v10743_v52 }
 0x647   : > { %v2715_v24 = vshrl.u32 %v2714_v43, 23  ;;  %v2718_v23 = vand.u32 8388607, %v13079_v17  ;;  %v2872_v53 = vand.u32 8388607, %v13078_v62  ;;  %v2473_v14 = vpop.f32.mrf.mxu3 }
 0x648   : > { %v2869_v63 = vshrl.u32 %v2868_v61, 23  ;;  %v10759_v55 = vadd.f32 %v2473_v14, %v10754_v10 }
 0x649   : > { %v8565_v0 = vadd.s32 4294967169, %v2715_v24  ;;  %v2719_v2 = vor.u32 8388608, %v2718_v23  ;;  %v2873_v57 = vor.u32 8388608, %v2872_v53 }
 0x64a   : > { %v8568_v3 = vadd.s32 4294967169, %v2869_v63  ;;  %13211 = vst [vmem:[#allocation15_spill] sm:$0xff] %v10759_v55 }
 0x64b   : > { %v2721_v59 = vadd.s32 1, %v8565_v0  ;;  %v10756_v12 = vshll.u32 %v2719_v2, 8  ;;  %v10766_v56 = vshll.u32 %v2873_v57, 8 }
 0x64c   : > { %v2875_v7 = vadd.s32 1, %v8568_v3 }
 0x64d   : > { %vm2722_vm0 = vcmp.gt.s32.totalorder %v2721_v59, 0  ;;  %v10762_v58 = vand.u32 65535, %v10756_v12  ;;  %v2761_v28 = vshrl.u32 %v10756_v12, 16 }
 0x64e   : > { %v2723_v15 = vsel %vm2722_vm0, %v2721_v59, 0  ;;  %vm2876_vm1 = vcmp.gt.s32.totalorder %v2875_v7, 0 }
 0x64f   : > { %v2725_v54 = vand.u32 31, %v2723_v15  ;;  %v2877_v4 = vsel %vm2876_vm1, %v2875_v7, 0  ;;  %v10768_v21 = vshrl.u32 %v2723_v15, 5 }
 0x650   : > { %v10764_v20 = vand.u32 31, %v2877_v4 }
 0x651   : > { %v2726_v18 = vsub.s32 32, %v2725_v54  ;;  %v2728_v30 = vshll.u32 %v13081_v22, %v2725_v54  ;;  %v2731_v26 = vshll.u32 %v13092_v1, %v2725_v54  ;;  %v2734_v31 = vshll.u32 %v13085_v8, %v2725_v54 }
 0x652   : > { %v2737_v29 = vshll.u32 %v13090_v37, %v2725_v54  ;;  %v2740_v38 = vshll.u32 %v13088_v60, %v2725_v54  ;;  %v10782_v19 = vsub.s32 32, %v10764_v20  ;;  %vm2743_vm2 = vcmp.lt.s32.totalorder %v10768_v21, 1 }
 0x653   : > { %v2729_v51 = vshrl.u32 %v13092_v1, %v2726_v18  ;;  %v2732_v11 = vshrl.u32 %v13085_v8, %v2726_v18  ;;  %v2735_v9 = vshrl.u32 %v13090_v37, %v2726_v18  ;;  %v2738_v6 = vshrl.u32 %v13088_v60, %v2726_v18 }
 0x654   : > { %v2741_v36 = vshrl.u32 %v13083_v32, %v2726_v18  ;;  %vm2744_vm3 = vcmp.lt.s32.totalorder %v10768_v21, 2  ;;  %v2727_v13 = vshrl.u32 %v13081_v22, %v2726_v18  ;;  %vm2746_vm4 = vcmp.lt.s32.totalorder %v10768_v21, 4 }
 0x655   : > { %v2730_v40 = vor.u32 %v2729_v51, %v2728_v30  ;;  %v2733_v25 = vor.u32 %v2732_v11, %v2731_v26  ;;  %v2736_v42 = vor.u32 %v2735_v9, %v2734_v31  ;;  %v2739_v35 = vor.u32 %v2738_v6, %v2737_v29 }
 0x656   : > { %v2742_v44 = vor.u32 %v2741_v36, %v2740_v38  ;;  %vm2745_vm5 = vcmp.lt.s32.totalorder %v10768_v21, 3  ;;  %v2882_v61 = vshll.u32 %v13081_v22, %v10764_v20  ;;  %v2883_v0 = vshrl.u32 %v13092_v1, %v10782_v19 }
 0x657   : > { %v2751_v45 = vsel %vm2743_vm2, %v2730_v40, %v2733_v25  ;;  %v2755_v27 = vsel %vm2743_vm2, %v2733_v25, %v2736_v42  ;;  %v2752_v49 = vsel %vm2746_vm4, %v2739_v35, 920167782  ;;  %v2748_v24 = vsel %vm2746_vm4, %v2736_v42, 2102212464 }
 0x658   : > { %v2756_v43 = vsel %vm2746_vm4, %v2742_v44, 1326507024  ;;  %v2753_v23 = vsel %vm2745_vm5, %v2736_v42, %v2752_v49  ;;  %v2885_v3 = vshll.u32 %v13092_v1, %v10764_v20  ;;  %v2886_v59 = vshrl.u32 %v13085_v8, %v10782_v19 }
 0x659   : > { %v2757_v63 = vsel %vm2745_vm5, %v2739_v35, %v2756_v43  ;;  %v2754_v2 = vsel %vm2744_vm3, %v2751_v45, %v2753_v23  ;;  %v10811_v54 = vsel %vm2743_vm2, %v2727_v13, %v2730_v40  ;;  %v10815_v18 = vsel %vm2745_vm5, %v2733_v25, %v2748_v24 }
 0x65a   : > { %v2758_v53 = vsel %vm2744_vm3, %v2755_v27, %v2757_v63  ;;  %v2784_v14 = vand.u32 65535, %v2754_v2  ;;  %v2785_v15 = vshrl.u32 %v2754_v2, 16  ;;  %v10817_v30 = vshrl.u32 %v2877_v4, 5 }
 0x65b   : > { %v2762_v7 = vand.u32 65535, %v2758_v53  ;;  %v2763_v57 = vshrl.u32 %v2758_v53, 16  ;;  %v10819_v26 = vor.u32 %v2883_v0, %v2882_v61  ;;  %v10822_v31 = vor.u32 %v2886_v59, %v2885_v3 }
 0x65c   : > { %v2889_v9 = vshrl.u32 %v13090_v37, %v10782_v19  ;;  %v2787_v6 = vmul.u32 %v2785_v15, %v10762_v58  ;;  %v2788_v38 = vmul.u32 %v2784_v14, %v2761_v28  ;;  %v2888_v36 = vshll.u32 %v13085_v8, %v10764_v20 }
 0x65d   : > { %v2765_v51 = vmul.u32 %v2763_v57, %v10762_v58  ;;  %v2766_v11 = vmul.u32 %v2762_v7, %v2761_v28  ;;  %v2764_v29 = vmul.u32 %v2762_v7, %v10762_v58  ;;  %v2767_v4 = vmul.u32 %v2763_v57, %v2761_v28 }
 0x65e   : > { %v2786_v25 = vmul.u32 %v2784_v14, %v10762_v58  ;;  %v2789_v42 = vmul.u32 %v2785_v15, %v2761_v28  ;;  %v2790_v45 = vshll.u32 %v2787_v6, 16  ;;  %v2792_v49 = vshll.u32 %v2788_v38, 16 }
 0x65f   : > { %v2768_v40 = vshll.u32 %v2765_v51, 16  ;;  %v2769_v35 = vshrl.u32 %v2765_v51, 16  ;;  %v2770_v44 = vshll.u32 %v2766_v11, 16  ;;  %v2771_v13 = vshrl.u32 %v2766_v11, 16 }
 0x660   : > { %v10831_v43 = vor.u32 %v2889_v9, %v2888_v36  ;;  %v13094_v61 = vmov 0   ;;  %vm2794_vm7 = vc.u32 %v2786_v25, %v2790_v45  ;;  %v2796_v23 = vadd.s32 %v2790_v45, %v2786_v25 }
 0x661   : > { %vm2772_vm6 = vc.u32 %v2764_v29, %v2768_v40  ;;  %v2774_v27 = vadd.s32 %v2768_v40, %v2764_v29  ;;  %v2892_v63 = vshrl.u32 %v13088_v60, %v10782_v19  ;;  %v2795_v58 = vsel %vm2794_vm7, 1, %v13094_v61 }
 0x662   : > { %v2773_v24 = vsel %vm2772_vm6, 1, %v13094_v61  ;;  %v2891_v28 = vshll.u32 %v13090_v37, %v10764_v20  ;;  %v2797_v53 = vadd.s32 %v2795_v58, %v2789_v42  ;;  %vm2798_vm9 = vc.u32 %v2796_v23, %v2792_v49 }
 0x663   : > { %v2775_v0 = vadd.s32 %v2773_v24, %v2767_v4  ;;  %vm2776_vm8 = vc.u32 %v2774_v27, %v2770_v44  ;;  %v2894_v3 = vshll.u32 %v13088_v60, %v10764_v20  ;;  %v2799_v7 = vsel %vm2798_vm9, 1, %v13094_v61 }
 0x664   : > { %v2777_v2 = vsel %vm2776_vm8, 1, %v13094_v61  ;;  %v2893_v57 = vor.u32 %v2892_v63, %v2891_v28  ;;  %v2895_v14 = vshrl.u32 %v13083_v32, %v10782_v19  ;;  %v2791_v15 = vshrl.u32 %v2787_v6, 16 }
 0x665   : > { %v2779_v59 = vadd.s32 %v2777_v2, %v2775_v0  ;;  %v2793_v51 = vshrl.u32 %v2788_v38, 16  ;;  %v10845_v11 = vadd.s32 %v2796_v23, %v2792_v49  ;;  %v2801_v9 = vadd.s32 %v2799_v7, %v2797_v53 }
 0x666   : > { %v2896_v36 = vor.u32 %v2895_v14, %v2894_v3  ;;  %vm2897_vm10 = vcmp.lt.s32.totalorder %v10817_v30, 1  ;;  %vm2900_vm11 = vcmp.lt.s32.totalorder %v10817_v30, 4  ;;  %vm2899_vm12 = vcmp.lt.s32.totalorder %v10817_v30, 3 }
 0x667   : > { %v2780_v29 = vadd.s32 %v2779_v59, %v2769_v35  ;;  %v2802_v4 = vadd.s32 %v2801_v9, %v2791_v15  ;;  %v2905_v20 = vsel %vm2897_vm10, %v10819_v26, %v10822_v31  ;;  %v2906_v6 = vsel %vm2900_vm11, %v2893_v57, 920167782 }
 0x668   : > { %vm2898_vm13 = vcmp.lt.s32.totalorder %v10817_v30, 2  ;;  %v2907_v40 = vsel %vm2899_vm12, %v10831_v43, %v2906_v6  ;;  %v2909_v25 = vsel %vm2897_vm10, %v10822_v31, %v10831_v43  ;;  %v2910_v44 = vsel %vm2900_vm11, %v2896_v36, 1326507024 }
 0x669   : > { %v10856_v38 = vadd.s32 %v2780_v29, %v2771_v13  ;;  %v2803_v42 = vadd.s32 %v2802_v4, %v2793_v51  ;;  %v2908_v35 = vsel %vm2898_vm13, %v2905_v20, %v2907_v40  ;;  %v2914_v13 = vand.u32 65535, %v10766_v56 }
 0x66a   : > { %v2911_v45 = vsel %vm2899_vm12, %v2893_v57, %v2910_v44  ;;  %v2915_v27 = vshrl.u32 %v10766_v56, 16  ;;  %v2938_v49 = vand.u32 65535, %v2908_v35  ;;  %v2750_v24 = vsel %vm2744_vm3, %v10811_v54, %v10815_v18 }
 0x66b   : > { %vm2806_vm14 = vc.u32 %v10856_v38, %v10845_v11  ;;  %v2807_v23 = vadd.s32 1, %v2803_v42  ;;  %v2912_v63 = vsel %vm2898_vm13, %v2909_v25, %v2911_v45  ;;  %v2939_v0 = vshrl.u32 %v2908_v35, 16 }
 0x66c   : > { %v2916_v58 = vand.u32 65535, %v2912_v63  ;;  %v2917_v28 = vshrl.u32 %v2912_v63, 16  ;;  %v2942_v3 = vmul.u32 %v2938_v49, %v2915_v27  ;;  %v2804_v59 = vmul.u32 %v10756_v12, %v2750_v24 }
 0x66d   : > { %v2808_v2 = vsel %vm2806_vm14, %v2807_v23, %v2803_v42  ;;  %v2941_v53 = vmul.u32 %v2939_v0, %v2914_v13  ;;  %v2940_v14 = vmul.u32 %v2938_v49, %v2914_v13  ;;  %v2560_v51 = vand.u32 2139095040, %v10759_v55 }
 0x66e   : > { %v2919_v7 = vmul.u32 %v2917_v28, %v2914_v13  ;;  %v2920_v57 = vmul.u32 %v2916_v58, %v2915_v27  ;;  %v2809_v21 = vadd.s32 %v2808_v2, %v2804_v59  ;;  %v2918_v54 = vmul.u32 %v2916_v58, %v2914_v13 }
 0x66f   : > { %v2944_v15 = vshll.u32 %v2941_v53, 16  ;;  %v2943_v9 = vmul.u32 %v2939_v0, %v2915_v27  ;;  %v2921_v29 = vmul.u32 %v2917_v28, %v2915_v27  ;;  %v2946_v36 = vshll.u32 %v2942_v3, 16 }
 0x670   : > { %v2922_v18 = vshll.u32 %v2919_v7, 16  ;;  %v2924_v20 = vshll.u32 %v2920_v57, 16  ;;  %v2561_v13 = vshrl.u32 %v2560_v51, 23  ;;  %v2810_v45 = vadd.s32 536870912, %v2809_v21 }
 0x671   : > { %vm2948_vm15 = vc.u32 %v2940_v14, %v2944_v15  ;;  %v2950_v4 = vadd.s32 %v2944_v15, %v2940_v14  ;;  %v2902_v24 = vsel %vm2900_vm11, %v10831_v43, 2102212464  ;;  %v2923_v23 = vshrl.u32 %v2919_v7, 16 }
 0x672   : > { %vm2926_vm0 = vc.u32 %v2918_v54, %v2922_v18  ;;  %v2928_v6 = vadd.s32 %v2922_v18, %v2918_v54  ;;  %v2949_v40 = vsel %vm2948_vm15, 1, %v13094_v61  ;;  %v2945_v63 = vshrl.u32 %v2941_v53, 16 }
 0x673   : > { %v2927_v12 = vsel %vm2926_vm0, 1, %v13094_v61  ;;  %v2951_v25 = vadd.s32 %v2949_v40, %v2943_v9  ;;  %vm2952_vm1 = vc.u32 %v2950_v4, %v2946_v36  ;;  %v8562_v0 = vadd.s32 4294967169, %v2561_v13 }
 0x674   : > { %v2929_v42 = vadd.s32 %v2927_v12, %v2921_v29  ;;  %vm2930_vm2 = vc.u32 %v2928_v6, %v2924_v20  ;;  %v2953_v44 = vsel %vm2952_vm1, 1, %v13094_v61  ;;  %v2881_v58 = vshrl.u32 %v13081_v22, %v10782_v19 }
 0x675   : > { %v2931_v35 = vsel %vm2930_vm2, 1, %v13094_v61  ;;  %v2955_v49 = vadd.s32 %v2953_v44, %v2951_v25  ;;  %v2925_v28 = vshrl.u32 %v2920_v57, 16  ;;  %v2947_v59 = vshrl.u32 %v2942_v3, 16 }
 0x676   : > { %v2933_v27 = vadd.s32 %v2931_v35, %v2929_v42  ;;  %v2567_v15 = vadd.s32 1, %v8562_v0  ;;  %v10893_v54 = vshrl.u32 %v2810_v45, 30  ;;  %v2901_v51 = vsel %vm2897_vm10, %v2881_v58, %v10819_v26 }
 0x677   : > { %v2956_v14 = vadd.s32 %v2955_v49, %v2945_v63  ;;  %v2903_v43 = vsel %vm2899_vm12, %v10822_v31, %v2902_v24  ;;  %v10903_v7 = vadd.s32 %v2950_v4, %v2946_v36  ;;  %v10911_v31 = vperm.slane %v10729_v16, 0 }
 0x678   : > { %v2934_v2 = vadd.s32 %v2933_v27, %v2923_v23  ;;  %vm2568_vm3 = vcmp.gt.s32.totalorder %v2567_v15, 0  ;;  %v2904_v18 = vsel %vm2898_vm13, %v2901_v51, %v2903_v43  ;;  %v2812_v26 = vshll.u32 %v10893_v54, 30 }
 0x679   : > { %v2957_v19 = vadd.s32 %v2956_v14, %v2947_v59  ;;  %v2569_v57 = vsel %vm2568_vm3, %v2567_v15, 0  ;;  %v2958_v36 = vmul.u32 %v10766_v56, %v2904_v18  ;;  %v13077_v4 = vand.u32 2147483647, %v10759_v55 }
 0x67a   : > { %v10901_v53 = vadd.s32 %v2934_v2, %v2925_v28  ;;  %v2571_v9 = vand.u32 31, %v2569_v57  ;;  %v10918_v6 = vperm.slane %v10729_v16, 1  ;;  %v10920_v40 = vsub.s32 %v2809_v21, %v2812_v26 }
 0x67b   : > { %v2961_v3 = vadd.s32 1, %v2957_v19  ;;  %v2417_v12 = vadd.f32 %v10716_v33, %v10911_v31  ;;  %v2564_v25 = vand.u32 8388607, %v13077_v4  ;;  %v10944_v0 = vshrl.u32 %v2569_v57, 5 }
 0x67c   : > { %vm2960_vm4 = vc.u32 %v10901_v53, %v10903_v7  ;;  %v10915_v20 = vsub.s32 32, %v2571_v9  ;;  %v2436_v44 = vadd.f32 %v10718_v34, %v10918_v6  ;;  %v2815_v33 = vsub.s32 0, %v10920_v40 }
 0x67d   : > { %v2962_v29 = vsel %vm2960_vm4, %v2961_v3, %v2957_v19  ;;  %v2577_v27 = vshll.u32 %v13092_v1, %v2571_v9  ;;  %v2580_v49 = vshll.u32 %v13085_v8, %v2571_v9  ;;  %v2583_v24 = vshll.u32 %v13090_v37, %v2571_v9  ;;  %v2421_v19 = vpop.f32.mrf.mxu2 }
 0x67e   : > { %v2963_v30 = vadd.s32 %v2962_v29, %v2958_v36  ;;  %v2578_v42 = vshrl.u32 %v13085_v8, %v10915_v20  ;;  %v2581_v56 = vshrl.u32 %v13090_v37, %v10915_v20  ;;  %v2584_v35 = vshrl.u32 %v13088_v60, %v10915_v20 }
 0x67f   : > { %v2587_v21 = vshrl.u32 %v13083_v32, %v10915_v20  ;;  %v2575_v45 = vshrl.u32 %v13092_v1, %v10915_v20  ;;  %v2586_v23 = vshll.u32 %v13088_v60, %v2571_v9  ;;  %vm2814_vm5 = vcmp.lt.s32.totalorder %v10920_v40, 0 }
 0x680   : > { %v2964_v13 = vadd.s32 536870912, %v2963_v30  ;;  %v2565_v63 = vor.u32 8388608, %v2564_v25  ;;  %v2574_v34 = vshll.u32 %v13081_v22, %v2571_v9  ;;  %v10947_v58 = vor.u32 %v2578_v42, %v2577_v27 }
 0x681   : > { %v10949_v28 = vor.u32 %v2581_v56, %v2580_v49  ;;  %v2585_v2 = vor.u32 %v2584_v35, %v2583_v24  ;;  %v2588_v59 = vor.u32 %v2587_v21, %v2586_v23  ;;  %v2816_v51 = vsel %vm2814_vm5, %v2815_v33, %v10920_v40  ;;  %v2494_v49 = vpop.f32.mrf.mxu0 }
 0x682   : > { %v10951_v14 = vshrl.u32 %v2964_v13, 30  ;;  %v10953_v15 = vor.u32 %v2575_v45, %v2574_v34  ;;  %v2521_v43 = vmul.f32 1.442695, %v2417_v12  ;;  %vm2589_vm6 = vcmp.lt.s32.totalorder %v10944_v0, 1 }
 0x683   : > { %vm2592_vm7 = vcmp.lt.s32.totalorder %v10944_v0, 4  ;;  %v10958_v57 = vshll.u32 %v2565_v63, 8  ;;  %v2523_v3 = vmul.f32 1.442695, %v2436_v44  ;;  %v2601_v9 = vsel %vm2589_vm6, %v10947_v58, %v10949_v28 }
 0x684   : > { %v2598_v18 = vsel %vm2592_vm7, %v2585_v2, 920167782  ;;  %v2602_v26 = vsel %vm2592_vm7, %v2588_v59, 1326507024  ;;  %v2817_v29 = vclz %v2816_v51  ;;  %v2966_v36 = vshll.u32 %v10951_v14, 30 }
 0x685   : > { %vm2591_vm8 = vcmp.lt.s32.totalorder %v10944_v0, 3  ;;  %v2597_v12 = vsel %vm2589_vm6, %v10953_v15, %v10947_v58  ;;  %v2422_v25 = vadd.f32 %v2421_v19, %v10911_v31  ;;  %vm2590_vm9 = vcmp.lt.s32.totalorder %v10944_v0, 2 }
 0x686   : > { %v2599_v42 = vsel %vm2591_vm8, %v10949_v28, %v2598_v18  ;;  %v2603_v56 = vsel %vm2591_vm8, %v2585_v2, %v2602_v26  ;;  %v2441_v35 = vadd.f32 %v10720_v46, %v10918_v6  ;;  %v2606_v44 = vand.u32 65535, %v10958_v57 }
 0x687   : > { %v2604_v21 = vsel %vm2590_vm9, %v2601_v9, %v2603_v56  ;;  %v2600_v33 = vsel %vm2590_vm9, %v2597_v12, %v2599_v42  ;;  %v2607_v13 = vshrl.u32 %v10958_v57, 16  ;;  %9813 = vpow2.f32 %v2521_v43 }
 0x688   : > { %v2608_v45 = vand.u32 65535, %v2604_v21  ;;  %v2609_v27 = vshrl.u32 %v2604_v21, 16  ;;  %v8566_v24 = vadd.s32 4294967294, %v2817_v29  ;;  %v10989_v23 = vsub.s32 %v2963_v30, %v2966_v36 }
 0x689   : > { %9815 = vpow2.f32 %v2523_v3  ;;  %v2533_v63 = vmul.f32 1.442695, %v2422_v25  ;;  %v2535_v2 = vmul.f32 1.442695, %v2441_v35  ;;  %v2630_v59 = vand.u32 65535, %v2600_v33 }
 0x68a   : > { %v2611_v46 = vmul.u32 %v2609_v27, %v2606_v44  ;;  %v2612_v34 = vmul.u32 %v2608_v45, %v2607_v13  ;;  %v2631_v51 = vshrl.u32 %v2600_v33, 16  ;;  %v10992_v19 = vadd.f32 %v2494_v49, %v10732_v48 }
 0x68b   : > { %v2419_v18 = vadd.f32 %v10722_v47, %v10911_v31  ;;  %v2438_v9 = vadd.f32 %v10724_v41, %v10918_v6  ;;  %v2610_v43 = vmul.u32 %v2608_v45, %v2606_v44  ;;  %vm8567_vm10 = vcmp.lt.s32.totalorder %v8566_v24, 0 }
 0x68c   : > { %13212 = vst [vmem:[#allocation16_spill] sm:$0xff] %v10992_v19  ;;  %v2614_v26 = vshll.u32 %v2611_v46, 16  ;;  %vm2968_vm11 = vcmp.lt.s32.totalorder %v10989_v23, 0  ;;  %v2969_v30 = vsub.s32 0, %v10989_v23  ;;  %v2613_v3 = vmul.u32 %v2609_v27, %v2607_v13 }
 0x68d   : > { %v2616_v29 = vshll.u32 %v2612_v34, 16  ;;  %v2633_v12 = vmul.u32 %v2631_v51, %v2606_v44  ;;  %v11000_v25 = vpop.eup %9813  ;;  %9817 = vpow2.f32 %v2533_v63  ;;  %v2634_v42 = vmul.u32 %v2630_v59, %v2607_v13 }
 0x68e   : > { %vm2618_vm12 = vc.u32 %v2610_v43, %v2614_v26  ;;  %v2620_v36 = vadd.s32 %v2614_v26, %v2610_v43  ;;  %13213 = vst [vmem:[#allocation17_spill] sm:$0xff] %v11000_v25  ;;  %v3176_v41 = vand.u32 2139095040, %v10992_v19  ;;  %v2632_v21 = vmul.u32 %v2630_v59, %v2606_v44  ;;  %v2423_v59 = vpop.f32.mrf.mxu2 }
 0x68f   : > { %v2619_v47 = vsel %vm2618_vm12, 1, %v13094_v61  ;;  %v11004_v56 = vpop.eup %9815  ;;  %v2636_v33 = vshll.u32 %v2633_v12, 16  ;;  %9819 = vpow2.f32 %v2535_v2  ;;  %v11007_v45 = vsel %vm8567_vm10, 0, %v8566_v24 }
 0x690   : > { %13214 = vst [vmem:[#allocation18_spill] sm:$0xff] %v11004_v56  ;;  %v2621_v35 = vadd.s32 %v2619_v47, %v2613_v3  ;;  %vm2622_vm13 = vc.u32 %v2620_v36, %v2616_v29  ;;  %v2970_v27 = vsel %vm2968_vm11, %v2969_v30, %v10989_v23  ;;  %v2615_v63 = vshrl.u32 %v2611_v46, 16 }
 0x691   : > { %v2623_v49 = vsel %vm2622_vm13, 1, %v13094_v61  ;;  %v2635_v26 = vmul.u32 %v2631_v51, %v2607_v13  ;;  %vm2640_vm14 = vc.u32 %v2632_v21, %v2636_v33  ;;  %v2527_v4 = vmul.f32 1.442695, %v2419_v18 }
 0x692   : > { %v2625_v43 = vadd.s32 %v2623_v49, %v2621_v35  ;;  %v2638_v62 = vshll.u32 %v2634_v42, 16  ;;  %v2641_v3 = vsel %vm2640_vm14, 1, %v13094_v61  ;;  %v2642_v44 = vadd.s32 %v2636_v33, %v2632_v21 }
 0x693   : > { %v2825_v2 = vsub.s32 4294967266, %v11007_v45  ;;  %v2643_v29 = vadd.s32 %v2641_v3, %v2635_v26  ;;  %v3177_v36 = vshrl.u32 %v3176_v41, 23  ;;  %v11015_v47 = vpop.eup %9817  ;;  %v2529_v30 = vmul.f32 1.442695, %v2438_v9 }
 0x694   : > { %v2626_v24 = vadd.s32 %v2625_v43, %v2615_v63  ;;  %13215 = vst [vmem:[#allocation19_spill] sm:$0xff] %v11015_v47  ;;  %v2971_v17 = vclz %v2970_v27  ;;  %v2573_v46 = vshrl.u32 %v13081_v22, %v10915_v20  ;;  %vm2644_vm15 = vc.u32 %v2642_v44, %v2638_v62 }
 0x695   : > { %v2594_v13 = vsel %vm2592_vm7, %v10949_v28, 2102212464  ;;  %v2617_v51 = vshrl.u32 %v2612_v34, 16  ;;  %v2645_v18 = vsel %vm2644_vm15, 1, %v13094_v61  ;;  %v8574_v35 = vadd.s32 4294967169, %v3177_v36  ;;  %v11023_v21 = vpop.eup %9819 }
 0x696   : > { %13216 = vst [vmem:[#allocation20_spill] sm:$0xff] %v11023_v21  ;;  %v2424_v41 = vadd.f32 %v2423_v59, %v10911_v31  ;;  %v11027_v33 = vperm.slane %v10729_v16, 2  ;;  %v2637_v9 = vshrl.u32 %v2633_v12, 16  ;;  %v2647_v27 = vadd.s32 %v2645_v18, %v2643_v29 }
 0x697   : > { %v2826_v49 = vadd.s32 127, %v2825_v2  ;;  %v2593_v20 = vsel %vm2589_vm6, %v2573_v46, %v10953_v15  ;;  %v11032_v63 = vadd.s32 %v2626_v24, %v2617_v51  ;;  %v3183_v28 = vadd.s32 1, %v8574_v35 }
 0x698   : > { %v8569_v34 = vadd.s32 4294967294, %v2971_v17  ;;  %v2595_v43 = vsel %vm2591_vm8, %v10947_v58, %v2594_v13  ;;  %v2639_v26 = vshrl.u32 %v2634_v42, 16  ;;  %v2648_v31 = vadd.s32 %v2647_v27, %v2637_v9 }
 0x699   : > { %v2821_v12 = vsub.s32 32, %v11007_v45  ;;  %v11039_v3 = vadd.s32 %v2642_v44, %v2638_v62  ;;  %vm3184_vm0 = vcmp.gt.s32.totalorder %v3183_v28, 0  ;;  %v2443_v15 = vadd.f32 %v10737_v50, %v10918_v6 }
 0x69a   : > { %v2805_v59 = vadd.s32 %v10845_v11, %v10856_v38  ;;  %v2649_v17 = vadd.s32 %v2648_v31, %v2639_v26  ;;  %v3185_v2 = vsel %vm3184_vm0, %v3183_v28, 0  ;;  %v2827_v24 = vshll.u32 %v2826_v49, 23 }
 0x69b   : > { %v2596_v58 = vsel %vm2590_vm9, %v2593_v20, %v2595_v43  ;;  %vm2652_vm1 = vc.u32 %v11032_v63, %v11039_v3  ;;  %v3187_v42 = vand.u32 31, %v3185_v2  ;;  %9821 = vpow2.f32 %v2527_v4 }
 0x69c   : > { %v2539_v62 = vmul.f32 1.442695, %v2424_v41  ;;  %vm8570_vm2 = vcmp.lt.s32.totalorder %v8569_v34, 0  ;;  %v2653_v44 = vadd.s32 1, %v2649_v17  ;;  %9823 = vpow2.f32 %v2529_v30 }
 0x69d   : > { %v2823_v50 = vshrl.u32 %v2805_v59, %v2821_v12  ;;  %v11050_v6 = vsub.s32 32, %v3187_v42  ;;  %v2541_v11 = vmul.f32 1.442695, %v2443_v15  ;;  %v2650_v38 = vmul.u32 %v10958_v57, %v2596_v58 }
 0x69e   : > { %v2654_v36 = vsel %vm2652_vm1, %v2653_v44, %v2649_v17  ;;  %v13080_v0 = vand.u32 2147483647, %v10992_v19  ;;  %v2822_v4 = vshll.u32 %v10920_v40, %v11007_v45  ;;  %v2828_v13 = vor.u32 4788187, %v2827_v24 }
 0x69f   : > { %v2974_v51 = vsel %vm8570_vm2, 0, %v8569_v34  ;;  %9825 = vpow2.f32 %v2539_v62  ;;  %v11058_v30 = vadd.s32 %v2654_v36, %v2650_v38  ;;  %v3200_v35 = vshrl.u32 %v13088_v60, %v11050_v6 }
 0x6a0   : > { %v2824_v41 = vor.u32 %v2823_v50, %v2822_v4  ;;  %v3191_v57 = vshrl.u32 %v13092_v1, %v11050_v6  ;;  %v3194_v9 = vshrl.u32 %v13085_v8, %v11050_v6  ;;  %v3199_v27 = vshll.u32 %v13090_v37, %v3187_v42  ;;  %v2513_v4 = vpop.f32.mrf.mxu1 }
 0x6a1   : > { %v11067_v40 = vpop.eup %9821  ;;  %v2979_v45 = vsub.s32 4294967266, %v2974_v51  ;;  %v3180_v49 = vand.u32 8388607, %v13080_v0  ;;  %v11071_v20 = vshrl.u32 %v3185_v2, 5  ;;  %v3197_v28 = vshrl.u32 %v13090_v37, %v11050_v6  ;;  %v2454_v2 = vpop.f32.mrf.mxu2 }
 0x6a2   : > { %13217 = vst [vmem:[#allocation21_spill] sm:$0xff] %v11067_v40  ;;  %v11075_v34 = vpop.eup %9823  ;;  %v2829_v43 = vand.u32 2147483647, %v2828_v13  ;;  %v3190_v26 = vshll.u32 %v13081_v22, %v3187_v42  ;;  %v3193_v31 = vshll.u32 %v13092_v1, %v3187_v42  ;;  %v3201_v12 = vor.u32 %v3200_v35, %v3199_v27 }
 0x6a3   : > { %13218 = vst [vmem:[#allocation22_spill] sm:$0xff] %v11075_v34  ;;  %9827 = vpow2.f32 %v2541_v11  ;;  %v2975_v15 = vsub.s32 32, %v2974_v51  ;;  %v2656_v59 = vadd.s32 536870912, %v11058_v30  ;;  %v3196_v17 = vshll.u32 %v13085_v8, %v3187_v42 }
 0x6a4   : > { %v2831_v24 = vcvt.s32.f32 %v2824_v41  ;;  %v11081_v58 = vor.u32 %v3191_v57, %v3190_v26  ;;  %v11083_v62 = vor.u32 %v3194_v9, %v3193_v31  ;;  %v3203_v44 = vshrl.u32 %v13083_v32, %v11050_v6 }
 0x6a5   : > { %v11087_v50 = vpop.eup %9825  ;;  %vm2713_vm3 = vcmp.lt.s32.totalorder %v10740_v5, 0  ;;  %v2959_v11 = vadd.s32 %v10903_v7, %v10901_v53  ;;  %v2980_v38 = vadd.s32 127, %v2979_v45  ;;  %v3198_v36 = vor.u32 %v3197_v28, %v3196_v17 }
 0x6a6   : > { %13219 = vst [vmem:[#allocation23_spill] sm:$0xff] %v11087_v50  ;;  %vm3208_vm4 = vcmp.lt.s32.totalorder %v11071_v20, 4  ;;  %v2832_v13 = vmul.f32 %v2831_v24, %v2829_v43  ;;  %v3181_v35 = vor.u32 8388608, %v3180_v49  ;;  %v3202_v41 = vshll.u32 %v13088_v60, %v3187_v42 }
 0x6a7   : > { %v3214_v57 = vsel %vm3208_vm4, %v3201_v12, 920167782  ;;  %v2977_v9 = vshrl.u32 %v2959_v11, %v2975_v15  ;;  %v2455_v27 = vadd.f32 %v2454_v2, %v11027_v33  ;;  %v11097_v26 = vshrl.u32 %v2656_v59, 30 }
 0x6a8   : > { %vm3205_vm5 = vcmp.lt.s32.totalorder %v11071_v20, 1  ;;  %v3204_v53 = vor.u32 %v3203_v44, %v3202_v41  ;;  %vm3207_vm6 = vcmp.lt.s32.totalorder %v11071_v20, 3  ;;  %v11106_v42 = vadd.f32 %v2513_v4, %v10735_v39 }
 0x6a9   : > { %v3213_v7 = vsel %vm3205_vm5, %v11081_v58, %v11083_v62  ;;  %v11108_v45 = vpop.eup %9827  ;;  %v2981_v43 = vshll.u32 %v2980_v38, 23  ;;  %v3215_v31 = vsel %vm3207_vm6, %v3198_v36, %v3214_v57  ;;  %v2833_v15 = vxor.u32 2147483648, %v2832_v13 }
 0x6aa   : > { %13220 = vst [vmem:[#allocation24_spill] sm:$0xff] %v11108_v45  ;;  %v2976_v59 = vshll.u32 %v10989_v23, %v2974_v51  ;;  %vm3206_vm7 = vcmp.lt.s32.totalorder %v11071_v20, 2  ;;  %v11116_v17 = vshll.u32 %v3181_v35, 8  ;;  %v2835_v24 = vsub.s32 4, %v10893_v54 }
 0x6ab   : > { %v2525_v2 = vmul.f32 1.442695, %v2455_v27  ;;  %v2658_v44 = vshll.u32 %v11097_v26, 30  ;;  %v3216_v11 = vsel %vm3206_vm7, %v3213_v7, %v3215_v31  ;;  %v3217_v38 = vsel %vm3205_vm5, %v11083_v62, %v3198_v36 }
 0x6ac   : > { %v2978_v4 = vor.u32 %v2977_v9, %v2976_v59  ;;  %v3218_v23 = vsel %vm3208_vm4, %v3204_v53, 1326507024  ;;  %v3330_v51 = vand.u32 2139095040, %v11106_v42  ;;  %v2982_v35 = vor.u32 4788187, %v2981_v43 }
 0x6ad   : > { %v3219_v41 = vsel %vm3207_vm6, %v3201_v12, %v3218_v23  ;;  %v3246_v57 = vand.u32 65535, %v3216_v11  ;;  %v3247_v27 = vshrl.u32 %v3216_v11, 16  ;;  %v13221_v46 = vand.u32 2147483647, %v10740_v5 }
 0x6ae   : > { %v2834_v9 = vsel %vm2713_vm3, %v2833_v15, %v2832_v13  ;;  %v3220_v53 = vsel %vm3206_vm7, %v3217_v38, %v3219_v41  ;;  %v3222_v31 = vand.u32 65535, %v11116_v17  ;;  %v11142_v43 = vsub.s32 %v11058_v30, %v2658_v44 }
 0x6af   : > { %vm11132_vm8 = vcmp.le.f32.partialorder %v13221_v46, 0.7853982  ;;  %v3223_v12 = vshrl.u32 %v11116_v17, 16  ;;  %v3224_v59 = vand.u32 65535, %v3220_v53  ;;  %v3225_v11 = vshrl.u32 %v3220_v53, 16 }
 0x6b0   : > { %v11148_v46 = vsel %vm2713_vm3, %v2835_v24, %v10893_v54  ;;  %9829 = vpow2.f32 %v2525_v2  ;;  %v3249_v23 = vmul.u32 %v3247_v27, %v3222_v31  ;;  %v3331_v13 = vshrl.u32 %v3330_v51, 23 }
 0x6b1   : > { %v11153_v15 = vsel %vm11132_vm8, %v10740_v5, %v2834_v9  ;;  %v2983_v38 = vand.u32 2147483647, %v2982_v35  ;;  %v2985_v30 = vcvt.s32.f32 %v2978_v4  ;;  %v3250_v44 = vmul.u32 %v3246_v57, %v3223_v12 }
 0x6b2   : > { %13224 = vst [vmem:[#allocation25_spill] sm:$0xff] %v11153_v15  ;;  %v3189_v41 = vshrl.u32 %v13081_v22, %v11050_v6  ;;  %v3227_v53 = vmul.u32 %v3225_v11, %v3222_v31  ;;  %v3228_v18 = vmul.u32 %v3224_v59, %v3223_v12  ;;  %v3252_v49 = vshll.u32 %v3249_v23, 16 }
 0x6b3   : > { %vm2660_vm9 = vcmp.lt.s32.totalorder %v11142_v43, 0  ;;  %v2661_v54 = vsub.s32 0, %v11142_v43  ;;  %v3210_v24 = vsel %vm3208_vm4, %v3198_v36, 2102212464  ;;  %v3248_v2 = vmul.u32 %v3246_v57, %v3222_v31 }
 0x6b4   : > { %v3226_v51 = vmul.u32 %v3224_v59, %v3222_v31  ;;  %v3230_v9 = vshll.u32 %v3227_v53, 16  ;;  %v3251_v16 = vmul.u32 %v3247_v27, %v3223_v12  ;;  %v8577_v35 = vadd.s32 4294967169, %v3331_v13 }
 0x6b5   : > { %v3229_v4 = vmul.u32 %v3225_v11, %v3223_v12  ;;  %v3232_v28 = vshll.u32 %v3228_v18, 16  ;;  %v3254_v29 = vshll.u32 %v3250_v44, 16  ;;  %vm3256_vm10 = vc.u32 %v3248_v2, %v3252_v49 }
 0x6b6   : > { %v11161_v6 = vpop.eup %9829  ;;  %vm3234_vm11 = vc.u32 %v3226_v51, %v3230_v9  ;;  %v3236_v0 = vadd.s32 %v3230_v9, %v3226_v51  ;;  %v3257_v22 = vsel %vm3256_vm10, 1, %v13094_v61  ;;  %v3258_v32 = vadd.s32 %v3252_v49, %v3248_v2 }
 0x6b7   : > { %13225 = vst [vmem:[#allocation26_spill] sm:$0xff] %v11161_v6  ;;  %vm2867_vm12 = vcmp.lt.s32.totalorder %v10743_v52, 0  ;;  %v2986_v8 = vmul.f32 %v2985_v30, %v2983_v38  ;;  %v3209_v36 = vsel %vm3205_vm5, %v3189_v41, %v11081_v58  ;;  %v3235_v57 = vsel %vm3234_vm11, 1, %v13094_v61 }
 0x6b8   : > { %v3259_v27 = vadd.s32 %v3257_v22, %v3251_v16  ;;  %v3211_v31 = vsel %vm3207_vm6, %v11083_v62, %v3210_v24  ;;  %v3237_v12 = vadd.s32 %v3235_v57, %v3229_v4  ;;  %vm3238_vm13 = vc.u32 %v3236_v0, %v3232_v28 }
 0x6b9   : > { %vm3260_vm14 = vc.u32 %v3258_v32, %v3254_v29  ;;  %v2662_v49 = vsel %vm2660_vm9, %v2661_v54, %v11142_v43  ;;  %v3239_v59 = vsel %vm3238_vm13, 1, %v13094_v61  ;;  %v3253_v11 = vshrl.u32 %v3249_v23, 16 }
 0x6ba   : > { %v3261_v13 = vsel %vm3260_vm14, 1, %v13094_v61  ;;  %v3231_v58 = vshrl.u32 %v3227_v53, 16  ;;  %v3241_v38 = vadd.s32 %v3239_v59, %v3237_v12  ;;  %v3337_v22 = vadd.s32 1, %v8577_v35 }
 0x6bb   : > { %v3263_v30 = vadd.s32 %v3261_v13, %v3259_v27  ;;  %v11179_v16 = vmul.f32 %v11153_v15, %v11153_v15  ;;  %v2987_v62 = vxor.u32 2147483648, %v2986_v8  ;;  %v2989_v0 = vsub.s32 4, %v10951_v14 }
 0x6bc   : > { %v3233_v28 = vshrl.u32 %v3228_v18, 16  ;;  %v3242_v41 = vadd.s32 %v3241_v38, %v3231_v58  ;;  %v3255_v24 = vshrl.u32 %v3250_v44, 16  ;;  %vm3338_vm15 = vcmp.gt.s32.totalorder %v3337_v22, 0 }
 0x6bd   : > { %13226 = vst [vmem:[#allocation27_spill] sm:$0xff] %v11179_v16  ;;  %v3264_v54 = vadd.s32 %v3263_v30, %v3253_v11  ;;  %v2663_v2 = vclz %v2662_v49  ;;  %v3212_v23 = vsel %vm3206_vm7, %v3209_v36, %v3211_v31  ;;  %v13087_v53 = vand.u32 2147483647, %v11106_v42 }
 0x6be   : > { %v3339_v51 = vsel %vm3338_vm15, %v3337_v22, 0  ;;  %v11185_v9 = vadd.s32 %v3242_v41, %v3233_v28  ;;  %v11187_v35 = vadd.s32 %v3258_v32, %v3254_v29  ;;  %v13227_v44 = vand.u32 2147483647, %v10743_v52 }
 0x6bf   : > { %v3265_v4 = vadd.s32 %v3264_v54, %v3255_v24  ;;  %v3341_v57 = vand.u32 31, %v3339_v51  ;;  %v2838_v36 = vsel %vm11132_vm8, 0, %v11148_v46  ;;  %v2990_v32 = vsel %vm2867_vm12, %v2989_v0, %v10951_v14 }
 0x6c0   : > { %vm11193_vm0 = vcmp.le.f32.partialorder %v13227_v44, 0.7853982  ;;  %vm3268_vm1 = vc.u32 %v11185_v9, %v11187_v35  ;;  %v2847_v31 = vmul.f32 -0.00019511016, %v11179_v16  ;;  %v2988_v49 = vsel %vm2867_vm12, %v2987_v62, %v2986_v8 }
 0x6c1   : > { %v3269_v29 = vadd.s32 1, %v3265_v4  ;;  %v3266_v59 = vmul.u32 %v11116_v17, %v3212_v23  ;;  %v11210_v11 = vsub.s32 32, %v3341_v57  ;;  %v8563_v13 = vadd.s32 4294967294, %v2663_v2 }
 0x6c2   : > { %v3334_v46 = vand.u32 8388607, %v13087_v53  ;;  %v11214_v58 = vshrl.u32 %v3339_v51, 5  ;;  %v3353_v30 = vshll.u32 %v13090_v37, %v3341_v57  ;;  %v3356_v22 = vshll.u32 %v13088_v60, %v3341_v57 }
 0x6c3   : > { %v3270_v7 = vsel %vm3268_vm1, %v3269_v29, %v3265_v4  ;;  %v3345_v38 = vshrl.u32 %v13092_v1, %v11210_v11  ;;  %v13230_v8 = vmov 2131351028   ;;  %v3351_v62 = vshrl.u32 %v13090_v37, %v11210_v11 }
 0x6c4   : > { %v3271_v14 = vadd.s32 %v3270_v7, %v3266_v59  ;;  %v3348_v17 = vshrl.u32 %v13230_v8, %v11210_v11  ;;  %v3354_v0 = vshrl.u32 %v13088_v60, %v11210_v11  ;;  %v13231_v28 = vmov 1326507024  }
 0x6c5   : > { %v3357_v41 = vshrl.u32 %v13231_v28, %v11210_v11  ;;  %v13232_v54 = vmov 683565275   ;;  %v3347_v23 = vshll.u32 %v13092_v1, %v3341_v57  ;;  %v3350_v51 = vshll.u32 %v13230_v8, %v3341_v57 }
 0x6c6   : > { %v3272_v24 = vadd.s32 536870912, %v3271_v14  ;;  %v3344_v2 = vshll.u32 %v13232_v54, %v3341_v57  ;;  %v11234_v4 = vsel %vm11193_vm0, %v10743_v52, %v2988_v49  ;;  %v3335_v44 = vor.u32 8388608, %v3334_v46 }
 0x6c7   : > { %v3355_v29 = vor.u32 %v3354_v0, %v3353_v30  ;;  %v3358_v59 = vor.u32 %v3357_v41, %v3356_v22  ;;  %v11240_v18 = vor.u32 %v3348_v17, %v3347_v23  ;;  %v11242_v20 = vor.u32 %v3351_v62, %v3350_v51 }
 0x6c8   : > { %v11236_v7 = vshrl.u32 %v3272_v24, 30  ;;  %v11238_v27 = vor.u32 %v3345_v38, %v3344_v2  ;;  %v2848_v53 = vadd.f32 0.008332121, %v2847_v31  ;;  %v11244_v60 = vand.u32 3, %v2838_v36  ;;  %v2475_v2 = vpop.f32.mrf.mxu3 }
 0x6c9   : > { %v4716_v57 = vadd.s32 3, %v2838_v36  ;;  %v2992_v37 = vsel %vm11193_vm0, 0, %v2990_v32  ;;  %v11250_v49 = vmul.f32 %v11234_v4, %v11234_v4  ;;  %vm8564_vm2 = vcmp.lt.s32.totalorder %v8563_v13, 0 }
 0x6ca   : > { %13233 = vst [vmem:[#allocation28_spill] sm:$0xff] %v11244_v60  ;;  %v3274_v46 = vshll.u32 %v11236_v7, 30  ;;  %vm3362_vm3 = vcmp.lt.s32.totalorder %v11214_v58, 4  ;;  %vm3359_vm4 = vcmp.lt.s32.totalorder %v11214_v58, 1  ;;  %v11259_v38 = vshll.u32 %v3335_v44, 8 }
 0x6cb   : > { %v3368_v31 = vsel %vm3362_vm3, %v3355_v29, 920167782  ;;  %v3372_v36 = vsel %vm3362_vm3, %v3358_v59, 1326507024  ;;  %vm3361_vm5 = vcmp.lt.s32.totalorder %v11214_v58, 3  ;;  %v3367_v32 = vsel %vm3359_vm4, %v11238_v27, %v11240_v18 }
 0x6cc   : > { %v11261_v12 = vsub.s32 %v3271_v14, %v3274_v46  ;;  %v3371_v30 = vsel %vm3359_vm4, %v11240_v18, %v11242_v20  ;;  %v11272_v22 = vand.u32 3, %v4716_v57  ;;  %v11274_v17 = vand.u32 3, %v2992_v37 }
 0x6cd   : > { %v3369_v14 = vsel %vm3361_vm5, %v11242_v20, %v3368_v31  ;;  %v3373_v62 = vsel %vm3361_vm5, %v3355_v29, %v3372_v36  ;;  %v2849_v0 = vmul.f32 %v2848_v53, %v11179_v16  ;;  %v2994_v41 = vmul.f32 -0.001358992, %v11250_v49 }
 0x6ce   : > { %13234 = vst [vmem:[#allocation29_spill] sm:$0xff] %v11272_v22  ;;  %v3001_v24 = vmul.f32 -0.00019511016, %v11250_v49  ;;  %vm3360_vm6 = vcmp.lt.s32.totalorder %v11214_v58, 2  ;;  %v11286_v23 = vsel %vm8564_vm2, 0, %v8563_v13  ;;  %v3376_v29 = vand.u32 65535, %v11259_v38 }
 0x6cf   : > { %v3370_v51 = vsel %vm3360_vm6, %v3367_v32, %v3369_v14  ;;  %v3374_v44 = vsel %vm3360_vm6, %v3371_v30, %v3373_v62  ;;  %v3277_v53 = vsub.s32 0, %v11261_v12  ;;  %v3377_v59 = vshrl.u32 %v11259_v38, 16 }
 0x6d0   : > { %v3378_v57 = vand.u32 65535, %v3374_v44  ;;  %v3379_v46 = vshrl.u32 %v3374_v44, 16  ;;  %vm3276_vm7 = vcmp.lt.s32.totalorder %v11261_v12, 0  ;;  %v3400_v31 = vand.u32 65535, %v3370_v51 }
 0x6d1   : > { %v3401_v36 = vshrl.u32 %v3370_v51, 16  ;;  %v11297_v13 = vadd.f32 %v2475_v2, %v10754_v10  ;;  %v11299_v1 = vadd.f32 -0.16666654, %v2849_v0  ;;  %v11301_v32 = vadd.s32 3, %v2992_v37 }
 0x6d2   : > { %v3381_v30 = vmul.u32 %v3379_v46, %v3376_v29  ;;  %v3382_v14 = vmul.u32 %v3378_v57, %v3377_v59  ;;  %v2995_v62 = vadd.f32 0.041655596, %v2994_v41  ;;  %v2651_v61 = vadd.s32 %v11039_v3, %v11032_v63 }
 0x6d3   : > { %13235 = vst [vmem:[#allocation30_spill] sm:$0xff] %v11297_v13  ;;  %v2671_v22 = vsub.s32 4294967266, %v11286_v23  ;;  %v3403_v44 = vmul.u32 %v3401_v36, %v3376_v29  ;;  %v3002_v50 = vadd.f32 0.008332121, %v3001_v24  ;;  %v3278_v47 = vsel %vm3276_vm7, %v3277_v53, %v11261_v12 }
 0x6d4   : > { %v3380_v51 = vmul.u32 %v3378_v57, %v3376_v29  ;;  %v3384_v45 = vshll.u32 %v3381_v30, 16  ;;  %v3383_v2 = vmul.u32 %v3379_v46, %v3377_v59  ;;  %v3404_v21 = vmul.u32 %v3400_v31, %v3377_v59 }
 0x6d5   : > { %v3406_v0 = vshll.u32 %v3403_v44, 16  ;;  %v3022_v37 = vand.u32 2139095040, %v11297_v13  ;;  %v3386_v40 = vshll.u32 %v3382_v14, 16  ;;  %v3402_v41 = vmul.u32 %v3400_v31, %v3376_v29 }
 0x6d6   : > { %vm3388_vm8 = vc.u32 %v3380_v51, %v3384_v45  ;;  %v3390_v25 = vadd.s32 %v3384_v45, %v3380_v51  ;;  %v2667_v34 = vsub.s32 32, %v11286_v23  ;;  %v2672_v63 = vadd.s32 127, %v2671_v22 }
 0x6d7   : > { %v3279_v3 = vclz %v3278_v47  ;;  %v13236_v56 = vmov 0   ;;  %v3405_v53 = vmul.u32 %v3401_v36, %v3377_v59  ;;  %vm3410_vm10 = vc.u32 %v3402_v41, %v3406_v0 }
 0x6d8   : > { %v3389_v5 = vsel %vm3388_vm8, 1, %v13236_v56  ;;  %vm3392_vm9 = vc.u32 %v3390_v25, %v3386_v40  ;;  %v3385_v57 = vshrl.u32 %v3381_v30, 16  ;;  %v3408_v60 = vshll.u32 %v3404_v21, 16 }
 0x6d9   : > { %v3391_v24 = vadd.s32 %v3389_v5, %v3383_v2  ;;  %v3393_v46 = vsel %vm3392_vm9, 1, %v13236_v56  ;;  %v3411_v6 = vsel %vm3410_vm10, 1, %v13236_v56  ;;  %v3412_v10 = vadd.s32 %v3406_v0, %v3402_v41 }
 0x6da   : > { %v3413_v45 = vadd.s32 %v3411_v6, %v3405_v53  ;;  %v3023_v29 = vshrl.u32 %v3022_v37, 23  ;;  %v2669_v31 = vshrl.u32 %v2651_v61, %v2667_v34  ;;  %v8575_v51 = vadd.s32 4294967294, %v3279_v3 }
 0x6db   : > { %v3395_v15 = vadd.s32 %v3393_v46, %v3391_v24  ;;  %v3343_v47 = vshrl.u32 %v13232_v54, %v11210_v11  ;;  %v3364_v5 = vsel %vm3362_vm3, %v11242_v20, 2102212464  ;;  %v2673_v25 = vshll.u32 %v2672_v63, 23 }
 0x6dc   : > { %vm3414_vm11 = vc.u32 %v3412_v10, %v3408_v60  ;;  %v8571_v22 = vadd.s32 4294967169, %v3023_v29  ;;  %v2668_v59 = vshll.u32 %v11142_v43, %v11286_v23  ;;  %v3387_v61 = vshrl.u32 %v3382_v14, 16 }
 0x6dd   : > { %v3396_v40 = vadd.s32 %v3395_v15, %v3385_v57  ;;  %v3363_v6 = vsel %vm3359_vm4, %v3343_v47, %v11238_v27  ;;  %v3415_v34 = vsel %vm3414_vm11, 1, %v13236_v56  ;;  %v3365_v11 = vsel %vm3361_vm5, %v11240_v18, %v3364_v5 }
 0x6de   : > { %v3407_v36 = vshrl.u32 %v3403_v44, 16  ;;  %v3417_v20 = vadd.s32 %v3415_v34, %v3413_v45  ;;  %v3029_v30 = vadd.s32 1, %v8571_v22  ;;  %v2996_v15 = vmul.f32 %v2995_v62, %v11250_v49 }
 0x6df   : > { %v2670_v2 = vor.u32 %v2669_v31, %v2668_v59  ;;  %vm8576_vm12 = vcmp.lt.s32.totalorder %v8575_v51, 0  ;;  %v11327_v0 = vadd.s32 %v3396_v40, %v3387_v61  ;;  %v2674_v43 = vor.u32 4788187, %v2673_v25 }
 0x6e0   : > { %v3409_v23 = vshrl.u32 %v3404_v21, 16  ;;  %v3418_v37 = vadd.s32 %v3417_v20, %v3407_v36  ;;  %vm3030_vm13 = vcmp.gt.s32.totalorder %v3029_v30, 0  ;;  %v3366_v27 = vsel %vm3360_vm6, %v3363_v6, %v3365_v11 }
 0x6e1   : > { %v11331_v14 = vadd.s32 %v3412_v10, %v3408_v60  ;;  %v13121_v18 = vand.u32 2147483647, %v11297_v13  ;;  %v3031_v44 = vsel %vm3030_vm13, %v3029_v30, 0  ;;  %v11336_v41 = vmul.f32 %v11299_v1, %v11179_v16 }
 0x6e2   : > { %v11338_v62 = vsel %vm8576_vm12, 0, %v8575_v51  ;;  %v3419_v63 = vadd.s32 %v3418_v37, %v3409_v23  ;;  %v3033_v3 = vand.u32 31, %v3031_v44  ;;  %v2997_v24 = vadd.f32 -0.4999988, %v2996_v15 }
 0x6e3   : > { %v3003_v21 = vmul.f32 %v3002_v50, %v11250_v49  ;;  %v2677_v53 = vcvt.s32.f32 %v2670_v2  ;;  %vm3422_vm14 = vc.u32 %v11327_v0, %v11331_v14  ;;  %v2675_v10 = vand.u32 2147483647, %v2674_v43 }
 0x6e4   : > { %v3420_v60 = vmul.u32 %v11259_v38, %v3366_v27  ;;  %v3423_v58 = vadd.s32 1, %v3419_v63  ;;  %v11344_v57 = vsub.s32 32, %v3033_v3  ;;  %v3287_v1 = vsub.s32 4294967266, %v11338_v62 }
 0x6e5   : > { %v3026_v46 = vand.u32 8388607, %v13121_v18  ;;  %v11349_v45 = vshrl.u32 %v3031_v44, 5  ;;  %v3036_v29 = vshll.u32 %v13232_v54, %v3033_v3  ;;  %v13237_v31 = vmov 2475754826   ;;  %v2497_v44 = vpop.f32.mrf.mxu0 }
 0x6e6   : > { %v3424_v50 = vsel %vm3422_vm14, %v3423_v58, %v3419_v63  ;;  %v3037_v51 = vshrl.u32 %v13237_v31, %v11344_v57  ;;  %v3039_v47 = vshll.u32 %v13237_v31, %v3033_v3  ;;  %v3042_v38 = vshll.u32 %v13230_v8, %v3033_v3 }
 0x6e7   : > { %v3425_v5 = vadd.s32 %v3424_v50, %v3420_v60  ;;  %v3040_v25 = vshrl.u32 %v13230_v8, %v11344_v57  ;;  %v13238_v40 = vmov 2102212464   ;;  %v13239_v61 = vmov 920167782  }
 0x6e8   : > { %v3043_v22 = vshrl.u32 %v13238_v40, %v11344_v57  ;;  %v3045_v59 = vshll.u32 %v13238_v40, %v3033_v3  ;;  %v11361_v6 = vor.u32 %v3037_v51, %v3036_v29  ;;  %v3046_v34 = vshrl.u32 %v13239_v61, %v11344_v57 }
 0x6e9   : > { %v3048_v11 = vshll.u32 %v13239_v61, %v3033_v3  ;;  %v3049_v36 = vshrl.u32 %v13231_v28, %v11344_v57  ;;  %v3267_v20 = vadd.s32 %v11187_v35, %v11185_v9  ;;  %v3283_v30 = vsub.s32 32, %v11338_v62 }
 0x6ea   : > { %v3426_v15 = vadd.s32 536870912, %v3425_v5  ;;  %v11371_v2 = vor.u32 %v3040_v25, %v3039_v47  ;;  %v3027_v43 = vor.u32 8388608, %v3026_v46  ;;  %v11373_v23 = vor.u32 %v3043_v22, %v3042_v38 }
 0x6eb   : > { %v3047_v37 = vor.u32 %v3046_v34, %v3045_v59  ;;  %v3050_v27 = vor.u32 %v3049_v36, %v3048_v11  ;;  %v3288_v63 = vadd.s32 127, %v3287_v1  ;;  %vm3051_vm15 = vcmp.lt.s32.totalorder %v11349_v45, 1 }
 0x6ec   : > { %v11375_v60 = vshrl.u32 %v3426_v15, 30  ;;  %vm3054_vm0 = vcmp.lt.s32.totalorder %v11349_v45, 4  ;;  %v3004_v3 = vadd.f32 -0.16666654, %v3003_v21  ;;  %v2678_v9 = vmul.f32 %v2677_v53, %v2675_v10 }
 0x6ed   : > { %v3059_v35 = vsel %vm3051_vm15, %v11361_v6, %v11371_v2  ;;  %v3060_v58 = vsel %vm3054_vm0, %v3047_v37, 920167782  ;;  %vm2559_vm1 = vcmp.lt.s32.totalorder %v10759_v55, 0  ;;  %v3285_v46 = vshrl.u32 %v3267_v20, %v3283_v30 }
 0x6ee   : > { %v3428_v1 = vshll.u32 %v11375_v60, 30  ;;  %vm3053_vm2 = vcmp.lt.s32.totalorder %v11349_v45, 3  ;;  %v11389_v29 = vadd.f32 %v2497_v44, %v10732_v48  ;;  %vm3052_vm3 = vcmp.lt.s32.totalorder %v11349_v45, 2 }
 0x6ef   : > { %v3061_v21 = vsel %vm3053_vm2, %v11373_v23, %v3060_v58  ;;  %v3064_v53 = vsel %vm3054_vm0, %v3050_v27, 1326507024  ;;  %v11397_v10 = vshll.u32 %v3027_v43, 8  ;;  %v3289_v50 = vshll.u32 %v3288_v63, 23 }
 0x6f0   : > { %13240 = vst [vmem:[#allocation31_spill] sm:$0xff] %v11389_v29  ;;  %v11399_v51 = vsub.s32 %v3425_v5, %v3428_v1  ;;  %v3062_v47 = vsel %vm3052_vm3, %v3059_v35, %v3061_v21  ;;  %v3063_v38 = vsel %vm3051_vm15, %v11371_v2, %v11373_v23  ;;  %v2998_v25 = vmul.f32 %v2997_v24, %v11250_v49 }
 0x6f1   : > { %v11409_v22 = vand.u32 3, %v11301_v32  ;;  %v3065_v59 = vsel %vm3053_vm2, %v3047_v37, %v3064_v53  ;;  %v3093_v34 = vshrl.u32 %v3062_v47, 16  ;;  %v3005_v5 = vmul.f32 %v3004_v3, %v11250_v49 }
 0x6f2   : > { %v3284_v11 = vshll.u32 %v11261_v12, %v11338_v62  ;;  %vm3430_vm4 = vcmp.lt.s32.totalorder %v11399_v51, 0  ;;  %v3431_v36 = vsub.s32 0, %v11399_v51  ;;  %v2679_v20 = vxor.u32 2147483648, %v2678_v9 }
 0x6f3   : > { %v3066_v24 = vsel %vm3052_vm3, %v3063_v38, %v3065_v59  ;;  %v3068_v32 = vand.u32 65535, %v11397_v10  ;;  %v3638_v30 = vand.u32 2139095040, %v11389_v29  ;;  %v11423_v15 = vadd.f32 1.0, %v11336_v41 }
 0x6f4   : > { %v3286_v43 = vor.u32 %v3285_v46, %v3284_v11  ;;  %v3290_v49 = vor.u32 4788187, %v3289_v50  ;;  %v3432_v37 = vsel %vm3430_vm4, %v3431_v36, %v11399_v51  ;;  %v3070_v62 = vand.u32 65535, %v3066_v24 }
 0x6f5   : > { %13241 = vst [vmem:[#allocation32_spill] sm:$0xff] %v11423_v15  ;;  %v3433_v12 = vclz %v3432_v37  ;;  %v3092_v27 = vand.u32 65535, %v3062_v47  ;;  %v3095_v44 = vmul.u32 %v3093_v34, %v3068_v32  ;;  %v11426_v63 = vadd.f32 1.0, %v2998_v25 }
 0x6f6   : > { %v11428_v3 = vadd.f32 1.0, %v3005_v5  ;;  %v3069_v35 = vshrl.u32 %v11397_v10, 16  ;;  %v3071_v58 = vshrl.u32 %v3066_v24, 16  ;;  %v11433_v1 = vsel %vm2559_vm1, %v2679_v20, %v2678_v9 }
 0x6f7   : > { %v8578_v46 = vadd.s32 4294967294, %v3433_v12  ;;  %v3639_v21 = vshrl.u32 %v3638_v30, 23  ;;  %v3293_v53 = vcvt.s32.f32 %v3286_v43  ;;  %v3291_v25 = vand.u32 2147483647, %v3290_v49 }
 0x6f8   : > { %v3073_v50 = vmul.u32 %v3071_v58, %v3068_v32  ;;  %v3074_v38 = vmul.u32 %v3070_v62, %v3069_v35  ;;  %v3096_v59 = vmul.u32 %v3092_v27, %v3069_v35  ;;  %v3098_v5 = vshll.u32 %v3095_v44, 16 }
 0x6f9   : > { %vm8579_vm5 = vcmp.lt.s32.totalorder %v8578_v46, 0  ;;  %v3072_v36 = vmul.u32 %v3070_v62, %v3068_v32  ;;  %v3094_v37 = vmul.u32 %v3092_v27, %v3068_v32  ;;  %v3075_v9 = vmul.u32 %v3071_v58, %v3069_v35 }
 0x6fa   : > { %v3436_v11 = vsel %vm8579_vm5, 0, %v8578_v46  ;;  %v3076_v24 = vshll.u32 %v3073_v50, 16  ;;  %v3097_v20 = vmul.u32 %v3093_v34, %v3069_v35  ;;  %v8583_v15 = vadd.s32 4294967169, %v3639_v21 }
 0x6fb   : > { %v3441_v18 = vsub.s32 4294967266, %v3436_v11  ;;  %v3078_v41 = vshll.u32 %v3074_v38, 16  ;;  %vm3102_vm7 = vc.u32 %v3094_v37, %v3098_v5  ;;  %v3100_v47 = vshll.u32 %v3096_v59, 16 }
 0x6fc   : > { %vm3080_vm6 = vc.u32 %v3072_v36, %v3076_v24  ;;  %v3082_v30 = vadd.s32 %v3076_v24, %v3072_v36  ;;  %v3103_v49 = vsel %vm3102_vm7, 1, %v13236_v56  ;;  %v3104_v46 = vadd.s32 %v3098_v5, %v3094_v37 }
 0x6fd   : > { %v3442_v43 = vadd.s32 127, %v3441_v18  ;;  %v3081_v12 = vsel %vm3080_vm6, 1, %v13236_v56  ;;  %v3105_v62 = vadd.s32 %v3103_v49, %v3097_v20  ;;  %v13242_v32 = vand.u32 2147483647, %v10759_v55 }
 0x6fe   : > { %v3083_v16 = vadd.s32 %v3081_v12, %v3075_v9  ;;  %vm3084_vm8 = vc.u32 %v3082_v30, %v3078_v41  ;;  %v3294_v34 = vmul.f32 %v3293_v53, %v3291_v25  ;;  %v3421_v35 = vadd.s32 %v11331_v14, %v11327_v0 }
 0x6ff   : > { %vm11441_vm9 = vcmp.le.f32.partialorder %v13242_v32, 0.7853982  ;;  %v3056_v18 = vsel %vm3054_vm0, %v11373_v23, 2102212464  ;;  %v3085_v58 = vsel %vm3084_vm8, 1, %v13236_v56  ;;  %vm3175_vm10 = vcmp.lt.s32.totalorder %v10992_v19, 0 }
 0x700   : > { %v3437_v41 = vsub.s32 32, %v3436_v11  ;;  %v3077_v21 = vshrl.u32 %v3073_v50, 16  ;;  %v3087_v5 = vadd.s32 %v3085_v58, %v3083_v16  ;;  %vm3106_vm11 = vc.u32 %v3104_v46, %v3100_v47 }
 0x701   : > { %v3443_v36 = vshll.u32 %v3442_v43, 23  ;;  %v3035_v24 = vshrl.u32 %v13232_v54, %v11344_v57  ;;  %v3107_v53 = vsel %vm3106_vm11, 1, %v13236_v56  ;;  %v3645_v25 = vadd.s32 1, %v8583_v15 }
 0x702   : > { %v3079_v0 = vshrl.u32 %v3074_v38, 16  ;;  %v3088_v14 = vadd.s32 %v3087_v5, %v3077_v21  ;;  %v3099_v37 = vshrl.u32 %v3095_v44, 16  ;;  %v3109_v9 = vadd.s32 %v3107_v53, %v3105_v62  ;;  %v2456_v53 = vpop.f32.mrf.mxu2 }
 0x703   : > { %v3055_v23 = vsel %vm3051_vm15, %v3035_v24, %v11361_v6  ;;  %v3057_v16 = vsel %vm3053_vm2, %v11371_v2, %v3056_v18  ;;  %v3101_v50 = vshrl.u32 %v3096_v59, 16  ;;  %vm3646_vm12 = vcmp.gt.s32.totalorder %v3645_v25, 0 }
 0x704   : > { %v3439_v20 = vshrl.u32 %v3421_v35, %v3437_v41  ;;  %v11461_v30 = vadd.s32 %v3088_v14, %v3079_v0  ;;  %v3110_v57 = vadd.s32 %v3109_v9, %v3099_v37  ;;  %v3647_v43 = vsel %vm3646_vm12, %v3645_v25, 0 }
 0x705   : > { %v3295_v15 = vxor.u32 2147483648, %v3294_v34  ;;  %v3444_v38 = vor.u32 4788187, %v3443_v36  ;;  %v11463_v12 = vadd.s32 %v3104_v46, %v3100_v47  ;;  %v3649_v44 = vand.u32 31, %v3647_v43 }
 0x706   : > { %v11467_v49 = vmul.f32 %v11428_v3, %v11234_v4  ;;  %v13245_v6 = vand.u32 2147483647, %v10992_v19  ;;  %v3438_v59 = vshll.u32 %v11399_v51, %v3436_v11  ;;  %v3058_v62 = vsel %vm3052_vm3, %v3055_v23, %v3057_v16 }
 0x707   : > { %v3111_v32 = vadd.s32 %v3110_v57, %v3101_v50  ;;  %v3015_v47 = vxor.u32 2147483648, %v11426_v63  ;;  %v13248_v46 = vsub.s32 4, %v11097_v26  ;;  %vm3114_vm14 = vc.u32 %v11461_v30, %v11463_v12 }
 0x708   : > { %vm11471_vm13 = vcmp.le.f32.partialorder %v13245_v6, 0.7853982  ;;  %v11486_v3 = vsub.s32 32, %v3649_v44  ;;  %v11492_v45 = vsel %vm11441_vm9, %v10759_v55, %v11433_v1  ;;  %v3440_v51 = vor.u32 %v3439_v20, %v3438_v59 }
 0x709   : > { %v2682_v4 = vsel %vm2559_vm1, %v13248_v46, %v11097_v26  ;;  %v3115_v11 = vadd.s32 1, %v3111_v32  ;;  %v13249_v35 = vand.u32 2147483647, %v11389_v29  ;;  %v3296_v58 = vsel %vm3175_vm10, %v3295_v15, %v3294_v34 }
 0x70a   : > { %v3445_v26 = vand.u32 2147483647, %v3444_v38  ;;  %v3112_v41 = vmul.u32 %v11397_v10, %v3058_v62  ;;  %v3656_v21 = vshrl.u32 %v13230_v8, %v11486_v3  ;;  %v11501_v36 = vshrl.u32 %v3647_v43, 5 }
 0x70b   : > { %v3642_v18 = vand.u32 8388607, %v13249_v35  ;;  %v3116_v5 = vsel %vm3114_vm14, %v3115_v11, %v3111_v32  ;;  %v3659_v1 = vshrl.u32 %v13238_v40, %v11486_v3  ;;  %v3662_v24 = vshrl.u32 %v13239_v61, %v11486_v3 }
 0x70c   : > { %v3117_v25 = vadd.s32 %v3116_v5, %v3112_v41  ;;  %v3655_v0 = vshll.u32 %v13237_v31, %v3649_v44  ;;  %v3658_v34 = vshll.u32 %v13230_v8, %v3649_v44  ;;  %v3661_v10 = vshll.u32 %v13238_v40, %v3649_v44 }
 0x70d   : > { %vm3011_vm15 = vcmp.eq.s32.totalorder %v11274_v17, 0  ;;  %vm3014_vm0 = vcmp.eq.s32.totalorder %v11274_v17, 2  ;;  %vm4877_vm1 = vcmp.eq.s32.totalorder %v11409_v22, 2  ;;  %v3447_v14 = vcvt.s32.f32 %v3440_v51 }
 0x70e   : > { %v3653_v37 = vshrl.u32 %v13237_v31, %v11486_v3  ;;  %v3664_v9 = vshll.u32 %v13239_v61, %v3649_v44  ;;  %v3665_v23 = vshrl.u32 %v13231_v28, %v11486_v3  ;;  %vm4874_vm2 = vcmp.eq.s32.totalorder %v11409_v22, 0 }
 0x70f   : > { %v3118_v16 = vadd.s32 536870912, %v3117_v25  ;;  %v11519_v50 = vor.u32 %v3656_v21, %v3655_v0  ;;  %v11521_v20 = vor.u32 %v3659_v1, %v3658_v34  ;;  %v3663_v57 = vor.u32 %v3662_v24, %v3661_v10 }
 0x710   : > { %v2457_v43 = vadd.f32 %v2456_v53, %v11027_v33  ;;  %v3643_v15 = vor.u32 8388608, %v3642_v18  ;;  %v3652_v38 = vshll.u32 %v13232_v54, %v3649_v44  ;;  %v3666_v6 = vor.u32 %v3665_v23, %v3664_v9 }
 0x711   : > { %v11527_v59 = vmul.f32 %v11492_v45, %v11492_v45  ;;  %v11532_v62 = vsel %vm11471_vm13, %v10992_v19, %v3296_v58  ;;  %vm3329_vm3 = vcmp.lt.s32.totalorder %v11106_v42, 0  ;;  %v3448_v32 = vmul.f32 %v3447_v14, %v3445_v26 }
 0x712   : > { %vm3670_vm4 = vcmp.lt.s32.totalorder %v11501_v36, 4  ;;  %vm3010_vm5 = vcmp.lt.s32.totalorder %v11274_v17, 2  ;;  %vm4873_vm6 = vcmp.lt.s32.totalorder %v11409_v22, 2  ;;  %v11538_v44 = vshrl.u32 %v3118_v16, 30 }
 0x713   : > { %13250 = vst [vmem:[#allocation33_spill] sm:$0xff] %v11527_v59  ;;  %v11540_v46 = vor.u32 %v3653_v37, %v3652_v38  ;;  %vm3667_vm7 = vcmp.lt.s32.totalorder %v11501_v36, 1  ;;  %v3680_v51 = vsel %vm3670_vm4, %v3666_v6, 1326507024  ;;  %v3012_v11 = vxor.u32 2147483648, %v11467_v49 }
 0x714   : > { %vm3669_vm8 = vcmp.lt.s32.totalorder %v11501_v36, 3  ;;  %v3676_v35 = vsel %vm3670_vm4, %v3663_v57, 920167782  ;;  %v3679_v18 = vsel %vm3667_vm7, %v11519_v50, %v11521_v20  ;;  %v2684_v58 = vsel %vm11441_vm9, 0, %v2682_v4 }
 0x715   : > { %v2531_v26 = vmul.f32 1.442695, %v2457_v43  ;;  %v3681_v41 = vsel %vm3669_vm8, %v3663_v57, %v3680_v51  ;;  %v11557_v21 = vshll.u32 %v3643_v15, 8  ;;  %v2693_v5 = vmul.f32 -0.00019511016, %v11527_v59 }
 0x716   : > { %v11562_v1 = vmul.f32 %v11532_v62, %v11532_v62  ;;  %v3449_v24 = vxor.u32 2147483648, %v3448_v32  ;;  %vm3668_vm11 = vcmp.lt.s32.totalorder %v11501_v36, 2  ;;  %v3120_v53 = vshll.u32 %v11538_v44, 30 }
 0x717   : > { %v3675_v27 = vsel %vm3667_vm7, %v11540_v46, %v11519_v50  ;;  %v3677_v4 = vsel %vm3669_vm8, %v11521_v20, %v3676_v35  ;;  %v3682_v0 = vsel %vm3668_vm11, %v3679_v18, %v3681_v41  ;;  %vm3008_vm9 = vweird.f32 %v10743_v52 }
 0x718   : > { %13251 = vst [vmem:[#allocation34_spill] sm:$0xff] %v11562_v1  ;;  %v3013_v34 = vsel %vm3011_vm15, %v11426_v63, %v3012_v11  ;;  %v3016_v10 = vsel %vm3014_vm0, %v3015_v47, %v11467_v49  ;;  %v4879_v14 = vsel %vm4877_vm1, %v3015_v47, %v11467_v49  ;;  %v4561_v37 = vadd.s32 3, %v2684_v58 }
 0x719   : > { %v4876_v9 = vsel %vm4874_vm2, %v11426_v63, %v3012_v11  ;;  %v3684_v23 = vand.u32 65535, %v11557_v21  ;;  %v3686_v16 = vand.u32 65535, %v3682_v0  ;;  %v3687_v57 = vshrl.u32 %v3682_v0, 16 }
 0x71a   : > { %v2694_v43 = vadd.f32 0.008332121, %v2693_v5  ;;  %v3309_v15 = vmul.f32 -0.00019511016, %v11562_v1  ;;  %9831 = vpow2.f32 %v2531_v26  ;;  %v3678_v38 = vsel %vm3668_vm11, %v3675_v27, %v3677_v4 }
 0x71b   : > { %v3450_v6 = vsel %vm3329_vm3, %v3449_v24, %v3448_v32  ;;  %v11598_v49 = vsub.s32 %v3117_v25, %v3120_v53  ;;  %v3685_v47 = vshrl.u32 %v11557_v21, 16  ;;  %v3689_v51 = vmul.u32 %v3687_v57, %v3684_v23 }
 0x71c   : > { %v3017_v63 = vsel %vm3010_vm5, %v3013_v34, %v3016_v10  ;;  %v4880_v11 = vsel %vm4873_vm6, %v4876_v9, %v4879_v14  ;;  %v11605_v35 = vand.u32 3, %v2684_v58  ;;  %v13253_v18 = vand.u32 2147483647, %v11106_v42 }
 0x71d   : > { %v3688_v32 = vmul.u32 %v3686_v16, %v3684_v23  ;;  %v11613_v25 = vmul.u32 %v3686_v16, %v3685_v47  ;;  %v3692_v41 = vshll.u32 %v3689_v51, 16  ;;  %v3709_v5 = vshrl.u32 %v3678_v38, 16 }
 0x71e   : > { %13252 = vst [vmem:[#allocation35_spill] sm:$0xff] %v11605_v35  ;;  %vm11609_vm12 = vcmp.le.f32.partialorder %v13253_v18, 0.7853982  ;;  %v2695_v24 = vmul.f32 %v2694_v43, %v11527_v59  ;;  %v11616_v17 = vand.u32 3, %v4561_v37  ;;  %v3310_v53 = vadd.f32 0.008332121, %v3309_v15  ;;  %v2516_v15 = vpop.f32.mrf.mxu1 }
 0x71f   : > { %v11621_v22 = vsel %vm11609_vm12, %v11106_v42, %v3450_v6  ;;  %v3297_v58 = vsub.s32 4, %v11236_v7  ;;  %v3123_v27 = vsub.s32 0, %v11598_v49  ;;  %vm3696_vm14 = vc.u32 %v3688_v32, %v3692_v41 }
 0x720   : > { %13256 = vst [vmem:[#allocation36_spill] sm:$0xff] %v11616_v17  ;;  %v3698_v4 = vadd.s32 %v3692_v41, %v3688_v32  ;;  %v11625_v0 = vpop.eup %9831  ;;  %vm3122_vm15 = vcmp.lt.s32.totalorder %v11598_v49, 0  ;;  %v3691_v34 = vmul.u32 %v3687_v57, %v3685_v47  ;;  %v3697_v10 = vsel %vm3696_vm14, 1, %v13236_v56 }
 0x721   : > { %13257 = vst [vmem:[#allocation37_spill] sm:$0xff] %v11625_v0  ;;  %v3708_v14 = vand.u32 65535, %v3678_v38  ;;  %v11631_v37 = vsel %vm3008_vm9, nan, %v3017_v63  ;;  %v11635_v9 = vmul.f32 %v11621_v22, %v11621_v22  ;;  %v3694_v16 = vshll.u32 %v11613_v25, 16 }
 0x722   : > { %v3711_v43 = vmul.u32 %v3709_v5, %v3684_v23  ;;  %v11640_v6 = vsel %vm3008_vm9, nan, %v4880_v11  ;;  %v2696_v57 = vadd.f32 -0.16666654, %v2695_v24  ;;  %v3311_v18 = vmul.f32 %v3310_v53, %v11562_v1 }
 0x723   : > { %13258 = vst [vmem:[#allocation38_spill] sm:$0xff] %v11640_v6  ;;  %v3699_v38 = vadd.s32 %v3697_v10, %v3691_v34  ;;  %v3298_v63 = vsel %vm3175_vm10, %v3297_v58, %v11236_v7  ;;  %v3124_v41 = vsel %vm3122_vm15, %v3123_v27, %v11598_v49  ;;  %vm3700_vm0 = vc.u32 %v3698_v4, %v3694_v16 }
 0x724   : > { %v3451_v55 = vsub.s32 4, %v11375_v60  ;;  %v3701_v17 = vsel %vm3700_vm0, 1, %v13236_v56  ;;  %v3712_v52 = vmul.u32 %v3708_v14, %v3685_v47  ;;  %v11651_v11 = vadd.f32 %v2516_v15, %v10735_v39 }
 0x725   : > { %v3463_v24 = vmul.f32 -0.00019511016, %v11635_v9  ;;  %v3703_v53 = vadd.s32 %v3701_v17, %v3699_v38  ;;  %v3710_v34 = vmul.u32 %v3708_v14, %v3684_v23  ;;  %v3714_v10 = vshll.u32 %v3711_v43, 16 }
 0x726   : > { %13259 = vst [vmem:[#allocation39_spill] sm:$0xff] %v11651_v11  ;;  %v3312_v6 = vadd.f32 -0.16666654, %v3311_v18  ;;  %v3125_v7 = vclz %v3124_v41  ;;  %v3651_v58 = vshrl.u32 %v13232_v54, %v11486_v3  ;;  %v3693_v27 = vshrl.u32 %v3689_v51, 16 }
 0x727   : > { %v3713_v4 = vmul.u32 %v3709_v5, %v3685_v47  ;;  %v3716_v16 = vshll.u32 %v3712_v52, 16  ;;  %vm3718_vm10 = vc.u32 %v3710_v34, %v3714_v10  ;;  %v3720_v32 = vadd.s32 %v3714_v10, %v3710_v34 }
 0x728   : > { %v3456_v35 = vmul.f32 -0.001358992, %v11635_v9  ;;  %v3704_v19 = vadd.s32 %v3703_v53, %v3693_v27  ;;  %v3719_v15 = vsel %vm3718_vm10, 1, %v13236_v56  ;;  %v3792_v0 = vand.u32 2139095040, %v11651_v11 }
 0x729   : > { %v3464_v17 = vadd.f32 0.008332121, %v3463_v24  ;;  %v3672_v23 = vsel %vm3670_vm4, %v11521_v20, 2102212464  ;;  %v3721_v14 = vadd.s32 %v3719_v15, %v3713_v4  ;;  %vm3722_vm1 = vc.u32 %v3720_v32, %v3716_v16 }
 0x72a   : > { %v3452_v3 = vsel %vm3329_vm3, %v3451_v55, %v11375_v60  ;;  %v3695_v47 = vshrl.u32 %v11613_v25, 16  ;;  %v3723_v51 = vsel %vm3722_vm1, 1, %v13236_v56  ;;  %v3793_v5 = vshrl.u32 %v3792_v0, 23 }
 0x72b   : > { %v8572_v18 = vadd.s32 4294967294, %v3125_v7  ;;  %v3671_v38 = vsel %vm3667_vm7, %v3651_v58, %v11540_v46  ;;  %v3715_v41 = vshrl.u32 %v3711_v43, 16  ;;  %v3725_v24 = vadd.s32 %v3723_v51, %v3721_v14 }
 0x72c   : > { %v3457_v53 = vadd.f32 0.041655596, %v3456_v35  ;;  %v3673_v20 = vsel %vm3669_vm8, %v11519_v50, %v3672_v23  ;;  %v11673_v34 = vadd.s32 %v3704_v19, %v3695_v47  ;;  %v8586_v55 = vadd.s32 4294967169, %v3793_v5 }
 0x72d   : > { %v2697_v60 = vmul.f32 %v2696_v57, %v11527_v59  ;;  %v3465_v25 = vmul.f32 %v3464_v17, %v11635_v9  ;;  %v3717_v0 = vshrl.u32 %v3712_v52, 16  ;;  %v3726_v10 = vadd.s32 %v3725_v24, %v3715_v41 }
 0x72e   : > { %v11679_v7 = vsel %vm11471_vm13, 0, %v3298_v63  ;;  %v3454_v46 = vsel %vm11609_vm12, 0, %v3452_v3  ;;  %v11683_v35 = vadd.s32 %v3720_v32, %v3716_v16  ;;  %v3799_v43 = vadd.s32 1, %v8586_v55 }
 0x72f   : > { %13260 = vst [vmem:[#allocation40_spill] sm:$0xff] %v11679_v7  ;;  %v3313_v19 = vmul.f32 %v3312_v6, %v11562_v1  ;;  %vm8573_vm2 = vcmp.lt.s32.totalorder %v8572_v18, 0  ;;  %v3674_v50 = vsel %vm3668_vm11, %v3671_v38, %v3673_v20  ;;  %v3727_v57 = vadd.s32 %v3726_v10, %v3717_v0 }
 0x730   : > { %v3458_v52 = vmul.f32 %v3457_v53, %v11635_v9  ;;  %vm3730_vm3 = vc.u32 %v11673_v34, %v11683_v35  ;;  %v13132_v2 = vand.u32 2147483647, %v11651_v11  ;;  %vm3800_vm13 = vcmp.gt.s32.totalorder %v3799_v43, 0 }
 0x731   : > { %v11692_v26 = vadd.f32 1.0, %v2697_v60  ;;  %v3466_v63 = vadd.f32 -0.16666654, %v3465_v25  ;;  %v3731_v32 = vadd.s32 1, %v3727_v57  ;;  %v3801_v58 = vsel %vm3800_vm13, %v3799_v43, 0 }
 0x732   : > { %v11695_v6 = vadd.s32 3, %v11679_v7  ;;  %v3128_v27 = vsel %vm8573_vm2, 0, %v8572_v18  ;;  %v3728_v36 = vmul.u32 %v11557_v21, %v3674_v50  ;;  %v3803_v4 = vand.u32 31, %v3801_v58 }
 0x733   : > { %v11698_v16 = vadd.f32 1.0, %v3313_v19  ;;  %v11700_v15 = vand.u32 3, %v3454_v46  ;;  %v11702_v17 = vadd.s32 3, %v3454_v46  ;;  %v3732_v23 = vsel %vm3730_vm3, %v3731_v32, %v3727_v57 }
 0x734   : > { %13261 = vst [vmem:[#allocation41_spill] sm:$0xff] %v11695_v6  ;;  %v3459_v14 = vadd.f32 -0.4999988, %v3458_v52  ;;  %v3733_v3 = vadd.s32 %v3732_v23, %v3728_v36  ;;  %v3796_v47 = vand.u32 8388607, %v13132_v2  ;;  %v11706_v51 = vsub.s32 32, %v3803_v4 }
 0x735   : > { %13262 = vst [vmem:[#allocation42_spill] sm:$0xff] %v11698_v16  ;;  %v3467_v5 = vmul.f32 %v3466_v63, %v11635_v9  ;;  %v3129_v18 = vsub.s32 32, %v3128_v27  ;;  %v3133_v38 = vsub.s32 4294967266, %v3128_v27  ;;  %v3806_v21 = vshll.u32 %v13232_v54, %v3803_v4 }
 0x736   : > { %v3734_v41 = vadd.s32 536870912, %v3733_v3  ;;  %v3807_v24 = vshrl.u32 %v13237_v31, %v11706_v51  ;;  %v3809_v53 = vshll.u32 %v13237_v31, %v3803_v4  ;;  %v3815_v20 = vshll.u32 %v13238_v40, %v3803_v4 }
 0x737   : > { %v3810_v55 = vshrl.u32 %v13230_v8, %v11706_v51  ;;  %v3813_v60 = vshrl.u32 %v13238_v40, %v11706_v51  ;;  %v3816_v25 = vshrl.u32 %v13239_v61, %v11706_v51  ;;  %v3819_v0 = vshrl.u32 %v13231_v28, %v11706_v51 }
 0x738   : > { %v11722_v10 = vshrl.u32 %v3734_v41, 30  ;;  %v3797_v46 = vor.u32 8388608, %v3796_v47  ;;  %v11724_v43 = vshrl.u32 %v3801_v58, 5  ;;  %v3812_v19 = vshll.u32 %v13230_v8, %v3803_v4 }
 0x739   : > { %v11727_v50 = vor.u32 %v3807_v24, %v3806_v21  ;;  %v11729_v57 = vor.u32 %v3810_v55, %v3809_v53  ;;  %v3817_v52 = vor.u32 %v3816_v25, %v3815_v20  ;;  %v3818_v63 = vshll.u32 %v13239_v61, %v3803_v4  ;;  %v2478_v25 = vpop.f32.mrf.mxu3 }
 0x73a   : > { %v3113_v32 = vadd.s32 %v11463_v12, %v11461_v30  ;;  %v3143_v36 = vsub.s32 4, %v11538_v44  ;;  %v3736_v23 = vshll.u32 %v11722_v10, 30  ;;  %v11736_v41 = vor.u32 %v3813_v60, %v3812_v19 }
 0x73b   : > { %v3460_v58 = vmul.f32 %v3459_v14, %v11635_v9  ;;  %v3468_v47 = vadd.f32 1.0, %v3467_v5  ;;  %vm3021_vm4 = vcmp.lt.s32.totalorder %v11297_v13, 0  ;;  %v3134_v21 = vadd.s32 127, %v3133_v38 }
 0x73c   : > { %v3820_v24 = vor.u32 %v3819_v0, %v3818_v63  ;;  %v3131_v53 = vshrl.u32 %v3113_v32, %v3129_v18  ;;  %v11740_v20 = vsub.s32 %v3733_v3, %v3736_v23  ;;  %vm3821_vm5 = vcmp.lt.s32.totalorder %v11724_v43, 1 }
 0x73d   : > { %vm3824_vm6 = vcmp.lt.s32.totalorder %v11724_v43, 4  ;;  %v3130_v30 = vshll.u32 %v11598_v49, %v3128_v27  ;;  %v3829_v12 = vsel %vm3821_vm5, %v11727_v50, %v11729_v57  ;;  %v11751_v4 = vshll.u32 %v3797_v46, 8 }
 0x73e   : > { %v3830_v9 = vsel %vm3824_vm6, %v3817_v52, 920167782  ;;  %vm3738_vm7 = vcmp.lt.s32.totalorder %v11740_v20, 0  ;;  %v3739_v14 = vsub.s32 0, %v11740_v20  ;;  %vm3823_vm8 = vcmp.lt.s32.totalorder %v11724_v43, 3 }
 0x73f   : > { %v3833_v49 = vsel %vm3821_vm5, %v11729_v57, %v11736_v41  ;;  %v3135_v27 = vshll.u32 %v3134_v21, 23  ;;  %vm3822_vm11 = vcmp.lt.s32.totalorder %v11724_v43, 2  ;;  %v3831_v3 = vsel %vm3823_vm8, %v11736_v41, %v3830_v9  ;;  %v13263_v9 = vld [vmem:[#allocation14_spill] sm:$0xff] }
 0x740   : > { %v3834_v5 = vsel %vm3824_vm6, %v3820_v24, 1326507024  ;;  %v3132_v18 = vor.u32 %v3131_v53, %v3130_v30  ;;  %v3740_v38 = vsel %vm3738_vm7, %v3739_v14, %v11740_v20  ;;  %v3832_v55 = vsel %vm3822_vm11, %v3829_v12, %v3831_v3 }
 0x741   : > { %v3835_v60 = vsel %vm3823_vm8, %v3817_v52, %v3834_v5  ;;  %v3741_v0 = vclz %v3740_v38  ;;  %v3838_v19 = vand.u32 65535, %v11751_v4  ;;  %v3862_v63 = vand.u32 65535, %v3832_v55 }
 0x742   : > { %v3836_v46 = vsel %vm3822_vm11, %v3833_v49, %v3835_v60  ;;  %v3839_v32 = vshrl.u32 %v11751_v4, 16  ;;  %v3863_v24 = vshrl.u32 %v3832_v55, 16  ;;  %v11776_v53 = vand.u32 3, %v11702_v17 }
 0x743   : > { %v3840_v23 = vand.u32 65535, %v3836_v46  ;;  %v3841_v21 = vshrl.u32 %v3836_v46, 16  ;;  %v3136_v30 = vor.u32 4788187, %v3135_v27  ;;  %v8584_v12 = vadd.s32 4294967294, %v3741_v0 }
 0x744   : > { %v11779_v52 = vadd.f32 %v2478_v25, %v13263_v9  ;;  %v11781_v14 = vadd.f32 1.0, %v3460_v58  ;;  %v3144_v49 = vsel %vm3021_vm4, %v3143_v36, %v11538_v44  ;;  %v11787_v38 = vmul.f32 %v3468_v47, %v11621_v22 }
 0x745   : > { %v3843_v3 = vmul.u32 %v3841_v21, %v3838_v19  ;;  %v3844_v5 = vmul.u32 %v3840_v23, %v3839_v32  ;;  %vm8585_vm9 = vcmp.lt.s32.totalorder %v8584_v12, 0  ;;  %v3865_v55 = vmul.u32 %v3863_v24, %v3838_v19 }
 0x746   : > { %13264 = vst [vmem:[#allocation14_spill] sm:$0xff] %v11779_v52  ;;  %v3866_v17 = vmul.u32 %v3862_v63, %v3839_v32  ;;  %v3139_v60 = vcvt.s32.f32 %v3132_v18  ;;  %v11789_v27 = vsel %vm8585_vm9, 0, %v8584_v12  ;;  %v3842_v0 = vmul.u32 %v3840_v23, %v3838_v19 }
 0x747   : > { %v3846_v25 = vshll.u32 %v3843_v3, 16  ;;  %v3137_v46 = vand.u32 2147483647, %v3136_v30  ;;  %v3845_v58 = vmul.u32 %v3841_v21, %v3839_v32  ;;  %v3864_v2 = vmul.u32 %v3862_v63, %v3838_v19 }
 0x748   : > { %v3484_v6 = vand.u32 2139095040, %v11779_v52  ;;  %v13265_v44 = vand.u32 2147483647, %v11297_v13  ;;  %v3848_v22 = vshll.u32 %v3844_v5, 16  ;;  %v3868_v59 = vshll.u32 %v3865_v55, 16 }
 0x749   : > { %vm3850_vm14 = vc.u32 %v3842_v0, %v3846_v25  ;;  %v3852_v47 = vadd.s32 %v3846_v25, %v3842_v0  ;;  %v3749_v18 = vsub.s32 4294967266, %v11789_v27  ;;  %v3867_v12 = vmul.u32 %v3863_v24, %v3839_v32 }
 0x74a   : > { %vm11794_vm12 = vcmp.le.f32.partialorder %v13265_v44, 0.7853982  ;;  %v3851_v23 = vsel %vm3850_vm14, 1, %v13236_v56  ;;  %v3870_v30 = vshll.u32 %v3866_v17, 16  ;;  %vm3872_vm0 = vc.u32 %v3864_v2, %v3868_v59 }
 0x74b   : > { %v3853_v21 = vadd.s32 %v3851_v23, %v3845_v58  ;;  %vm3854_vm15 = vc.u32 %v3852_v47, %v3848_v22  ;;  %v3874_v19 = vadd.s32 %v3868_v59, %v3864_v2  ;;  %v3140_v63 = vmul.f32 %v3139_v60, %v3137_v46 }
 0x74c   : > { %v3826_v44 = vsel %vm3824_vm6, %v11736_v41, 2102212464  ;;  %v3855_v7 = vsel %vm3854_vm15, 1, %v13236_v56  ;;  %v3873_v0 = vsel %vm3872_vm0, 1, %v13236_v56  ;;  %v3847_v25 = vshrl.u32 %v3843_v3, 16 }
 0x74d   : > { %v3857_v1 = vadd.s32 %v3855_v7, %v3853_v21  ;;  %v3875_v16 = vadd.s32 %v3873_v0, %v3867_v12  ;;  %vm3876_vm10 = vc.u32 %v3874_v19, %v3870_v30  ;;  %vm3476_vm1 = vcmp.eq.s32.totalorder %v11700_v15, 2 }
 0x74e   : > { %v3750_v32 = vadd.s32 127, %v3749_v18  ;;  %v3805_v24 = vshrl.u32 %v13232_v54, %v11706_v51  ;;  %v3877_v59 = vsel %vm3876_vm10, 1, %v13236_v56  ;;  %v3485_v2 = vshrl.u32 %v3484_v6, 23 }
 0x74f   : > { %vm3473_vm2 = vcmp.eq.s32.totalorder %v11700_v15, 0  ;;  %v3849_v41 = vshrl.u32 %v3844_v5, 16  ;;  %v3858_v60 = vadd.s32 %v3857_v1, %v3847_v25  ;;  %v3869_v46 = vshrl.u32 %v3865_v55, 16 }
 0x750   : > { %v3879_v58 = vadd.s32 %v3877_v59, %v3875_v16  ;;  %vm5339_vm3 = vcmp.eq.s32.totalorder %v11776_v53, 0  ;;  %v3825_v7 = vsel %vm3821_vm5, %v3805_v24, %v11727_v50  ;;  %v3827_v3 = vsel %vm3823_vm8, %v11729_v57, %v3826_v44 }
 0x751   : > { %v13138_v51 = vand.u32 2147483647, %v11779_v52  ;;  %v8580_v22 = vadd.s32 4294967169, %v3485_v2  ;;  %v3745_v6 = vsub.s32 32, %v11789_v27  ;;  %v11819_v47 = vadd.s32 %v3858_v60, %v3849_v41 }
 0x752   : > { %v3871_v1 = vshrl.u32 %v3866_v17, 16  ;;  %v3880_v5 = vadd.s32 %v3879_v58, %v3869_v46  ;;  %v11823_v16 = vsel %vm11794_vm12, 0, %v3144_v49  ;;  %v3751_v55 = vshll.u32 %v3750_v32, 23 }
 0x753   : > { %13268 = vst [vmem:[#allocation43_spill] sm:$0xff] %v11823_v16  ;;  %v11825_v18 = vadd.s32 %v3874_v19, %v3870_v30  ;;  %v3491_v50 = vadd.s32 1, %v8580_v22  ;;  %v3477_v23 = vxor.u32 2147483648, %v11781_v14  ;;  %v3729_v57 = vadd.s32 %v11683_v35, %v11673_v34 }
 0x754   : > { %v3828_v12 = vsel %vm3822_vm11, %v3825_v7, %v3827_v3  ;;  %v3881_v21 = vadd.s32 %v3880_v5, %v3871_v1  ;;  %v3474_v17 = vxor.u32 2147483648, %v11787_v38  ;;  %v3141_v44 = vxor.u32 2147483648, %v3140_v63 }
 0x755   : > { %vm3884_vm13 = vc.u32 %v11819_v47, %v11825_v18  ;;  %vm3492_vm5 = vcmp.gt.s32.totalorder %v3491_v50, 0  ;;  %v3747_v49 = vshrl.u32 %v3729_v57, %v3745_v6  ;;  %v3488_v19 = vand.u32 8388607, %v13138_v51  ;;  %v2499_v6 = vpop.f32.mrf.mxu0 }
 0x756   : > { %v3885_v30 = vadd.s32 1, %v3881_v21  ;;  %v3493_v0 = vsel %vm3492_vm5, %v3491_v50, 0  ;;  %vm3472_vm6 = vcmp.lt.s32.totalorder %v11700_v15, 2  ;;  %vm5342_vm7 = vcmp.eq.s32.totalorder %v11776_v53, 2 }
 0x757   : > { %v3752_v34 = vor.u32 4788187, %v3751_v55  ;;  %v3882_v35 = vmul.u32 %v11751_v4, %v3828_v12  ;;  %v3495_v43 = vand.u32 31, %v3493_v0  ;;  %v3478_v25 = vsel %vm3476_vm1, %v3477_v23, %v11787_v38 }
 0x758   : > { %v11844_v32 = vadd.s32 3, %v11823_v16  ;;  %v3746_v24 = vshll.u32 %v11740_v20, %v11789_v27  ;;  %v3886_v59 = vsel %vm3884_vm13, %v3885_v30, %v3881_v21  ;;  %v3475_v2 = vsel %vm3473_vm2, %v11781_v14, %v3474_v17 }
 0x759   : > { %vm5338_vm8 = vcmp.lt.s32.totalorder %v11776_v53, 2  ;;  %v5344_v4 = vsel %vm5342_vm7, %v3477_v23, %v11787_v38  ;;  %v3887_v41 = vadd.s32 %v3886_v59, %v3882_v35  ;;  %v11853_v60 = vsub.s32 32, %v3495_v43 }
 0x75a   : > { %13269 = vst [vmem:[#allocation44_spill] sm:$0xff] %v11844_v32  ;;  %v5341_v46 = vsel %vm5339_vm3, %v11781_v14, %v3474_v17  ;;  %v3142_v58 = vsel %vm3021_vm4, %v3141_v44, %v3140_v63  ;;  %v3748_v20 = vor.u32 %v3747_v49, %v3746_v24  ;;  %v3489_v27 = vor.u32 8388608, %v3488_v19 }
 0x75b   : > { %vm3470_vm11 = vweird.f32 %v11106_v42  ;;  %v3753_v7 = vand.u32 2147483647, %v3752_v34  ;;  %v3888_v3 = vadd.s32 536870912, %v3887_v41  ;;  %v3499_v22 = vshrl.u32 %v13237_v31, %v11853_v60 }
 0x75c   : > { %v3507_v38 = vshll.u32 %v13238_v40, %v3495_v43  ;;  %v3502_v1 = vshrl.u32 %v13230_v8, %v11853_v60  ;;  %v3505_v14 = vshrl.u32 %v13238_v40, %v11853_v60  ;;  %v3508_v63 = vshrl.u32 %v13239_v61, %v11853_v60 }
 0x75d   : > { %v3511_v5 = vshrl.u32 %v13231_v28, %v11853_v60  ;;  %v11872_v55 = vshrl.u32 %v3888_v3, 30  ;;  %v11874_v50 = vshrl.u32 %v3493_v0, 5  ;;  %v3498_v23 = vshll.u32 %v13232_v54, %v3495_v43 }
 0x75e   : > { %v3501_v57 = vshll.u32 %v13237_v31, %v3495_v43  ;;  %v3504_v12 = vshll.u32 %v13230_v8, %v3495_v43  ;;  %v3509_v21 = vor.u32 %v3508_v63, %v3507_v38  ;;  %v3510_v17 = vshll.u32 %v13239_v61, %v3495_v43 }
 0x75f   : > { %v11881_v44 = vadd.f32 %v2499_v6, %v10732_v48  ;;  %v3755_v49 = vcvt.s32.f32 %v3748_v20  ;;  %v3890_v30 = vshll.u32 %v11872_v55, 30  ;;  %v11884_v19 = vor.u32 %v3499_v22, %v3498_v23 }
 0x760   : > { %v11886_v34 = vor.u32 %v3502_v1, %v3501_v57  ;;  %v3479_v0 = vsel %vm3472_vm6, %v3475_v2, %v3478_v25  ;;  %v11893_v35 = vsel %vm11794_vm12, %v11297_v13, %v3142_v58  ;;  %vm3637_vm4 = vcmp.lt.s32.totalorder %v11389_v29, 0 }
 0x761   : > { %13270 = vst [vmem:[#allocation45_spill] sm:$0xff] %v11893_v35  ;;  %v3506_v43 = vor.u32 %v3505_v14, %v3504_v12  ;;  %v3512_v48 = vor.u32 %v3511_v5, %v3510_v17  ;;  %v3756_v24 = vmul.f32 %v3755_v49, %v3753_v7  ;;  %v3891_v59 = vsub.s32 %v3887_v41, %v3890_v30  ;;  %v2459_v7 = vpop.f32.mrf.mxu2 }
 0x762   : > { %vm3516_vm9 = vcmp.lt.s32.totalorder %v11874_v50, 4  ;;  %v11897_v20 = vshll.u32 %v3489_v27, 8  ;;  %v11901_v3 = vsel %vm5338_vm8, %v5341_v46, %v5344_v4  ;;  %vm3513_vm14 = vcmp.lt.s32.totalorder %v11874_v50, 1 }
 0x763   : > { %v3522_v15 = vsel %vm3516_vm9, %v3509_v21, 920167782  ;;  %v4100_v36 = vand.u32 2139095040, %v11881_v44  ;;  %vm3892_vm12 = vcmp.lt.s32.totalorder %v3891_v59, 0  ;;  %v3893_v25 = vsub.s32 0, %v3891_v59 }
 0x764   : > { %vm3515_vm15 = vcmp.lt.s32.totalorder %v11874_v50, 3  ;;  %v3521_v2 = vsel %vm3513_vm14, %v11884_v19, %v11886_v34  ;;  %v11914_v53 = vsel %vm3470_vm11, nan, %v3479_v0  ;;  %v11918_v4 = vmul.f32 %v11893_v35, %v11893_v35 }
 0x765   : > { %v3523_v41 = vsel %vm3515_vm15, %v3506_v43, %v3522_v15  ;;  %v3526_v46 = vsel %vm3516_vm9, %v3512_v48, 1326507024  ;;  %v3757_v58 = vxor.u32 2147483648, %v3756_v24  ;;  %v3894_v27 = vsel %vm3892_vm12, %v3893_v25, %v3891_v59 }
 0x766   : > { %13271 = vst [vmem:[#allocation46_spill] sm:$0xff] %v11918_v4  ;;  %vm3514_vm0 = vcmp.lt.s32.totalorder %v11874_v50, 2  ;;  %v3530_v22 = vand.u32 65535, %v11897_v20  ;;  %v3895_v38 = vclz %v3894_v27  ;;  %v3525_v1 = vsel %vm3513_vm14, %v11886_v34, %v3506_v43 }
 0x767   : > { %v3524_v6 = vsel %vm3514_vm0, %v3521_v2, %v3523_v41  ;;  %v4101_v14 = vshrl.u32 %v4100_v36, 23  ;;  %v3527_v63 = vsel %vm3515_vm15, %v3509_v21, %v3526_v46  ;;  %v3531_v5 = vshrl.u32 %v11897_v20, 16 }
 0x768   : > { %v3554_v23 = vand.u32 65535, %v3524_v6  ;;  %v3555_v57 = vshrl.u32 %v3524_v6, 16  ;;  %v3155_v12 = vmul.f32 -0.00019511016, %v11918_v4  ;;  %v3883_v17 = vadd.s32 %v11825_v18, %v11819_v47 }
 0x769   : > { %v8587_v49 = vadd.s32 4294967294, %v3895_v38  ;;  %v11938_v30 = vadd.f32 %v2459_v7, %v11027_v33  ;;  %v3758_v0 = vsel %vm3637_vm4, %v3757_v58, %v3756_v24  ;;  %v3528_v48 = vsel %vm3514_vm0, %v3525_v1, %v3527_v63 }
 0x76a   : > { %v3557_v21 = vmul.u32 %v3555_v57, %v3530_v22  ;;  %v11944_v15 = vmul.u32 %v3554_v23, %v3531_v5  ;;  %v3532_v36 = vand.u32 65535, %v3528_v48  ;;  %v3533_v25 = vshrl.u32 %v3528_v48, 16 }
 0x76b   : > { %vm8588_vm10 = vcmp.lt.s32.totalorder %v8587_v49, 0  ;;  %v8592_v2 = vadd.s32 4294967169, %v4101_v14  ;;  %v3497_v47 = vshrl.u32 %v13232_v54, %v11853_v60  ;;  %v3518_v18 = vsel %vm3516_vm9, %v3506_v43, 2102212464 }
 0x76c   : > { %v3898_v41 = vsel %vm8588_vm10, 0, %v8587_v49  ;;  %v3560_v46 = vshll.u32 %v3557_v21, 16  ;;  %v3556_v58 = vmul.u32 %v3554_v23, %v3530_v22  ;;  %v3559_v7 = vmul.u32 %v3555_v57, %v3531_v5 }
 0x76d   : > { %v3899_v27 = vsub.s32 32, %v3898_v41  ;;  %v3903_v24 = vsub.s32 4294967266, %v3898_v41  ;;  %v13272_v38 = vand.u32 2147483647, %v11389_v29  ;;  %v3900_v1 = vshll.u32 %v3891_v59, %v3898_v41 }
 0x76e   : > { %v3535_v14 = vmul.u32 %v3533_v25, %v3530_v22  ;;  %v3536_v63 = vmul.u32 %v3532_v36, %v3531_v5  ;;  %v3562_v49 = vshll.u32 %v11944_v15, 16  ;;  %vm3564_vm2 = vc.u32 %v3556_v58, %v3560_v46 }
 0x76f   : > { %vm11952_vm1 = vcmp.le.f32.partialorder %v13272_v38, 0.7853982  ;;  %v3901_v60 = vshrl.u32 %v3883_v17, %v3899_v27  ;;  %v3904_v48 = vadd.s32 127, %v3903_v24  ;;  %v3566_v43 = vadd.s32 %v3560_v46, %v3556_v58 }
 0x770   : > { %v3534_v51 = vmul.u32 %v3532_v36, %v3530_v22  ;;  %v3537_v13 = vmul.u32 %v3533_v25, %v3531_v5  ;;  %v3538_v32 = vshll.u32 %v3535_v14, 16  ;;  %v3540_v23 = vshll.u32 %v3536_v63, 16 }
 0x771   : > { %v3902_v57 = vor.u32 %v3901_v60, %v3900_v1  ;;  %v3905_v16 = vshll.u32 %v3904_v48, 23  ;;  %v3565_v38 = vsel %vm3564_vm2, 1, %v13236_v56  ;;  %vm3568_vm3 = vc.u32 %v3566_v43, %v3562_v49 }
 0x772   : > { %vm3791_vm13 = vcmp.lt.s32.totalorder %v11651_v11, 0  ;;  %vm3542_vm5 = vc.u32 %v3534_v51, %v3538_v32  ;;  %v3544_v59 = vadd.s32 %v3538_v32, %v3534_v51  ;;  %v3567_v41 = vadd.s32 %v3565_v38, %v3559_v7 }
 0x773   : > { %v3569_v35 = vsel %vm3568_vm3, 1, %v13236_v56  ;;  %v13275_v17 = vand.u32 2147483647, %v11651_v11  ;;  %v3906_v22 = vor.u32 4788187, %v3905_v16  ;;  %v3517_v5 = vsel %vm3513_vm14, %v3497_v47, %v11884_v19 }
 0x774   : > { %v3519_v36 = vsel %vm3515_vm15, %v11886_v34, %v3518_v18  ;;  %v3543_v51 = vsel %vm3542_vm5, 1, %v13236_v56  ;;  %vm3546_vm7 = vc.u32 %v3544_v59, %v3540_v23  ;;  %v3561_v25 = vshrl.u32 %v3557_v21, 16 }
 0x775   : > { %vm11962_vm6 = vcmp.le.f32.partialorder %v13275_v17, 0.7853982  ;;  %v3545_v32 = vadd.s32 %v3543_v51, %v3537_v13  ;;  %v3571_v27 = vadd.s32 %v3569_v35, %v3567_v41  ;;  %v3907_v24 = vand.u32 2147483647, %v3906_v22 }
 0x776   : > { %v3909_v58 = vcvt.s32.f32 %v3902_v57  ;;  %v3547_v7 = vsel %vm3546_vm7, 1, %v13236_v56  ;;  %v4107_v1 = vadd.s32 1, %v8592_v2  ;;  %v3539_v16 = vshrl.u32 %v3535_v14, 16 }
 0x777   : > { %v3549_v60 = vadd.s32 %v3547_v7, %v3545_v32  ;;  %v3563_v48 = vshrl.u32 %v11944_v15, 16  ;;  %v3572_v19 = vadd.s32 %v3571_v27, %v3561_v25  ;;  %v3156_v47 = vadd.f32 0.008332121, %v3155_v12 }
 0x778   : > { %v11978_v34 = vsel %vm11952_vm1, %v11389_v29, %v3758_v0  ;;  %v3910_v13 = vmul.f32 %v3909_v58, %v3907_v24  ;;  %vm4108_vm8 = vcmp.gt.s32.totalorder %v4107_v1, 0  ;;  %v3541_v21 = vshrl.u32 %v3536_v63, 16 }
 0x779   : > { %13278 = vst [vmem:[#allocation47_spill] sm:$0xff] %v11978_v34  ;;  %v3550_v35 = vadd.s32 %v3549_v60, %v3539_v16  ;;  %v3573_v18 = vadd.s32 %v3572_v19, %v3563_v48  ;;  %v4109_v23 = vsel %vm4108_vm8, %v4107_v1, 0  ;;  %v2537_v2 = vmul.f32 1.442695, %v11938_v30 }
 0x77a   : > { %v3911_v57 = vxor.u32 2147483648, %v3910_v13  ;;  %v3520_v14 = vsel %vm3514_vm0, %v3517_v5, %v3519_v36  ;;  %v4111_v15 = vand.u32 31, %v4109_v23  ;;  %v11985_v12 = vadd.s32 %v3566_v43, %v3562_v49 }
 0x77b   : > { %v11983_v38 = vadd.s32 %v3550_v35, %v3541_v21  ;;  %v3577_v59 = vadd.s32 1, %v3573_v18  ;;  %v13143_v0 = vand.u32 2147483647, %v11881_v44  ;;  %v11991_v63 = vsel %vm3470_vm11, nan, %v11901_v3 }
 0x77c   : > { %13279 = vst [vmem:[#allocation48_spill] sm:$0xff] %v11991_v63  ;;  %v11995_v41 = vmul.f32 %v11978_v34, %v11978_v34  ;;  %v3912_v50 = vsel %vm3791_vm13, %v3911_v57, %v3910_v13  ;;  %v11999_v30 = vsub.s32 32, %v4111_v15  ;;  %v3157_v49 = vmul.f32 %v3156_v47, %v11918_v4 }
 0x77d   : > { %v12005_v43 = vsel %vm11962_vm6, %v11651_v11, %v3912_v50  ;;  %v3574_v42 = vmul.u32 %v11897_v20, %v3520_v14  ;;  %vm3576_vm11 = vc.u32 %v11983_v38, %v11985_v12  ;;  %9833 = vpow2.f32 %v2537_v2 }
 0x77e   : > { %v12012_v3 = vmul.f32 %v12005_v43, %v12005_v43  ;;  %v3578_v17 = vsel %vm3576_vm11, %v3577_v59, %v3573_v18  ;;  %v4115_v22 = vshrl.u32 %v13237_v31, %v11999_v30  ;;  %v3759_v5 = vsub.s32 4, %v11722_v10 }
 0x77f   : > { %v3579_v36 = vadd.s32 %v3578_v17, %v3574_v42  ;;  %v4104_v51 = vand.u32 8388607, %v13143_v0  ;;  %v4118_v20 = vshrl.u32 %v13230_v8, %v11999_v30  ;;  %v3771_v32 = vmul.f32 -0.00019511016, %v11995_v41 }
 0x780   : > { %v4114_v25 = vshll.u32 %v13232_v54, %v4111_v15  ;;  %v4121_v27 = vshrl.u32 %v13238_v40, %v11999_v30  ;;  %v4124_v24 = vshrl.u32 %v13239_v61, %v11999_v30  ;;  %v3158_v58 = vadd.f32 -0.16666654, %v3157_v49 }
 0x781   : > { %v3580_v7 = vadd.s32 536870912, %v3579_v36  ;;  %v4117_v1 = vshll.u32 %v13237_v31, %v4111_v15  ;;  %v4123_v16 = vshll.u32 %v13238_v40, %v4111_v15  ;;  %v3925_v60 = vmul.f32 -0.00019511016, %v12012_v3 }
 0x782   : > { %v12030_v48 = vshrl.u32 %v4109_v23, 5  ;;  %v12032_v19 = vor.u32 %v4115_v22, %v4114_v25  ;;  %v4120_v47 = vshll.u32 %v13230_v8, %v4111_v15  ;;  %v4127_v18 = vshrl.u32 %v13231_v28, %v11999_v30 }
 0x783   : > { %v12035_v13 = vshrl.u32 %v3580_v7, 30  ;;  %v12037_v21 = vor.u32 %v4118_v20, %v4117_v1  ;;  %v4125_v35 = vor.u32 %v4124_v24, %v4123_v16  ;;  %v12041_v57 = vpop.eup %9833  ;;  %v3760_v2 = vsel %vm3637_vm4, %v3759_v5, %v11722_v10 }
 0x784   : > { %v3772_v23 = vadd.f32 0.008332121, %v3771_v32  ;;  %v4105_v14 = vor.u32 8388608, %v4104_v51  ;;  %v4122_v59 = vor.u32 %v4121_v27, %v4120_v47  ;;  %v3913_v50 = vsub.s32 4, %v11872_v55  ;;  %v2518_v32 = vpop.f32.mrf.mxu1 }
 0x785   : > { %v3918_v49 = vmul.f32 -0.001358992, %v12012_v3  ;;  %v3582_v42 = vshll.u32 %v12035_v13, 30  ;;  %v4126_v17 = vshll.u32 %v13239_v61, %v4111_v15  ;;  %v3926_v22 = vadd.f32 0.008332121, %v3925_v60 }
 0x786   : > { %vm4129_vm9 = vcmp.lt.s32.totalorder %v12030_v48, 1  ;;  %vm4131_vm14 = vcmp.lt.s32.totalorder %v12030_v48, 3  ;;  %vm4132_vm12 = vcmp.lt.s32.totalorder %v12030_v48, 4  ;;  %v3159_v15 = vmul.f32 %v3158_v58, %v11918_v4 }
 0x787   : > { %v12053_v20 = vsub.s32 %v3579_v36, %v3582_v42  ;;  %v4128_v10 = vor.u32 %v4127_v18, %v4126_v17  ;;  %v4137_v5 = vsel %vm4129_vm9, %v12032_v19, %v12037_v21  ;;  %v4138_v51 = vsel %vm4132_vm12, %v4125_v35, 920167782 }
 0x788   : > { %v12064_v25 = vsel %vm11952_vm1, 0, %v3760_v2  ;;  %v3773_v27 = vmul.f32 %v3772_v23, %v11995_v41  ;;  %v4139_v36 = vsel %vm4131_vm14, %v4122_v59, %v4138_v51  ;;  %v3914_v24 = vsel %vm3791_vm13, %v3913_v50, %v11872_v55 }
 0x789   : > { %13280 = vst [vmem:[#allocation49_spill] sm:$0xff] %v12064_v25  ;;  %vm3584_vm4 = vcmp.lt.s32.totalorder %v12053_v20, 0  ;;  %v3585_v7 = vsub.s32 0, %v12053_v20  ;;  %vm4130_vm15 = vcmp.lt.s32.totalorder %v12030_v48, 2  ;;  %v4141_v58 = vsel %vm4129_vm9, %v12037_v21, %v4122_v59 }
 0x78a   : > { %v4140_v6 = vsel %vm4130_vm15, %v4137_v5, %v4139_v36  ;;  %v12080_v1 = vshll.u32 %v4105_v14, 8  ;;  %v12083_v16 = vadd.f32 %v2518_v32, %v10735_v39  ;;  %v3919_v60 = vadd.f32 0.041655596, %v3918_v49 }
 0x78b   : > { %v3927_v55 = vmul.f32 %v3926_v22, %v12012_v3  ;;  %v3586_v47 = vsel %vm3584_vm4, %v3585_v7, %v12053_v20  ;;  %v4142_v18 = vsel %vm4132_vm12, %v4128_v10, 1326507024  ;;  %v12089_v2 = vadd.f32 1.0, %v3159_v15 }
 0x78c   : > { %13281 = vst [vmem:[#allocation50_spill] sm:$0xff] %v12083_v16  ;;  %v12092_v23 = vand.u32 3, %v12064_v25  ;;  %v3587_v50 = vclz %v3586_v47  ;;  %v4143_v14 = vsel %vm4131_vm14, %v4125_v35, %v4142_v18  ;;  %v12096_v42 = vadd.f32 -0.16666654, %v3773_v27 }
 0x78d   : > { %v12100_v39 = vsel %vm11962_vm6, 0, %v3914_v24  ;;  %v4144_v49 = vsel %vm4130_vm15, %v4141_v58, %v4143_v14  ;;  %v4171_v17 = vshrl.u32 %v4140_v6, 16  ;;  %v4146_v10 = vand.u32 65535, %v12080_v1 }
 0x78e   : > { %13282 = vst [vmem:[#allocation51_spill] sm:$0xff] %v12092_v23  ;;  %v8581_v22 = vadd.s32 4294967294, %v3587_v50  ;;  %v4147_v5 = vshrl.u32 %v12080_v1, 16  ;;  %v4170_v51 = vand.u32 65535, %v4140_v6  ;;  %v3920_v32 = vmul.f32 %v3919_v60, %v12012_v3 }
 0x78f   : > { %13283 = vst [vmem:[#allocation52_spill] sm:$0xff] %v12100_v39  ;;  %v3928_v15 = vadd.f32 -0.16666654, %v3927_v55  ;;  %v4149_v35 = vshrl.u32 %v4144_v49, 16  ;;  %v4113_v46 = vshrl.u32 %v13232_v54, %v11999_v30  ;;  %v4148_v36 = vand.u32 65535, %v4144_v49 }
 0x790   : > { %vm8582_vm0 = vcmp.lt.s32.totalorder %v8581_v22, 0  ;;  %v4173_v24 = vmul.u32 %v4171_v17, %v4146_v10  ;;  %v3575_v7 = vadd.s32 %v11985_v12, %v11983_v38  ;;  %v3605_v47 = vsub.s32 4, %v12035_v13 }
 0x791   : > { %v3590_v58 = vsel %vm8582_vm0, 0, %v8581_v22  ;;  %v4254_v6 = vand.u32 2139095040, %v12083_v16  ;;  %v4133_v60 = vsel %vm4129_vm9, %v4113_v46, %v12032_v19  ;;  %v4134_v55 = vsel %vm4132_vm12, %v4122_v59, 2102212464 }
 0x792   : > { %v3591_v18 = vsub.s32 32, %v3590_v58  ;;  %v4174_v50 = vmul.u32 %v4170_v51, %v4147_v5  ;;  %v3921_v30 = vadd.f32 -0.4999988, %v3920_v32  ;;  %v3929_v14 = vmul.f32 %v3928_v15, %v12012_v3 }
 0x793   : > { %v3595_v49 = vsub.s32 4294967266, %v3590_v58  ;;  %v4151_v0 = vmul.u32 %v4149_v35, %v4146_v10  ;;  %v4152_v12 = vmul.u32 %v4148_v36, %v4147_v5  ;;  %v4172_v22 = vmul.u32 %v4170_v51, %v4146_v10 }
 0x794   : > { %v3593_v38 = vshrl.u32 %v3575_v7, %v3591_v18  ;;  %v4176_v27 = vshll.u32 %v4173_v24, 16  ;;  %v4150_v63 = vmul.u32 %v4148_v36, %v4146_v10  ;;  %v4175_v23 = vmul.u32 %v4171_v17, %v4147_v5 }
 0x795   : > { %v3596_v25 = vadd.s32 127, %v3595_v49  ;;  %v4154_v29 = vshll.u32 %v4151_v0, 16  ;;  %v3592_v34 = vshll.u32 %v12053_v20, %v3590_v58  ;;  %v4153_v19 = vmul.u32 %v4149_v35, %v4147_v5 }
 0x796   : > { %v4156_v46 = vshll.u32 %v4152_v12, 16  ;;  %v4178_v4 = vshll.u32 %v4174_v50, 16  ;;  %vm3483_vm10 = vcmp.lt.s32.totalorder %v11779_v52, 0  ;;  %vm4180_vm2 = vc.u32 %v4172_v22, %v4176_v27 }
 0x797   : > { %v3597_v59 = vshll.u32 %v3596_v25, 23  ;;  %vm4158_vm1 = vc.u32 %v4150_v63, %v4154_v29  ;;  %v4160_v32 = vadd.s32 %v4154_v29, %v4150_v63  ;;  %v3594_v15 = vor.u32 %v3593_v38, %v3592_v34 }
 0x798   : > { %v4159_v7 = vsel %vm4158_vm1, 1, %v13236_v56  ;;  %v4181_v51 = vsel %vm4180_vm2, 1, %v13236_v56  ;;  %v4182_v18 = vadd.s32 %v4176_v27, %v4172_v22  ;;  %v3930_v20 = vadd.f32 1.0, %v3929_v14 }
 0x799   : > { %v3598_v10 = vor.u32 4788187, %v3597_v59  ;;  %v4161_v36 = vadd.s32 %v4159_v7, %v4153_v19  ;;  %vm4162_vm3 = vc.u32 %v4160_v32, %v4156_v46  ;;  %v4183_v17 = vadd.s32 %v4181_v51, %v4175_v23 }
 0x79a   : > { %v4155_v5 = vshrl.u32 %v4151_v0, 16  ;;  %v4163_v35 = vsel %vm4162_vm3, 1, %v13236_v56  ;;  %vm4184_vm13 = vc.u32 %v4182_v18, %v4178_v4  ;;  %v13284_v25 = vand.u32 2147483647, %v11779_v52 }
 0x79b   : > { %v3599_v34 = vand.u32 2147483647, %v3598_v10  ;;  %v4165_v63 = vadd.s32 %v4163_v35, %v4161_v36  ;;  %v4185_v58 = vsel %vm4184_vm13, 1, %v13236_v56  ;;  %v4255_v27 = vshrl.u32 %v4254_v6, 23 }
 0x79c   : > { %vm12127_vm5 = vcmp.le.f32.partialorder %v13284_v25, 0.7853982  ;;  %v3601_v49 = vcvt.s32.f32 %v3594_v15  ;;  %v4135_v23 = vsel %vm4131_vm14, %v12037_v21, %v4134_v55  ;;  %v4177_v0 = vshrl.u32 %v4173_v24, 16 }
 0x79d   : > { %v4187_v14 = vadd.s32 %v4185_v58, %v4183_v17  ;;  %v3922_v38 = vmul.f32 %v3921_v30, %v12012_v3  ;;  %v4157_v22 = vshrl.u32 %v4152_v12, 16  ;;  %v4166_v19 = vadd.s32 %v4165_v63, %v4155_v5 }
 0x79e   : > { %v8595_v46 = vadd.s32 4294967169, %v4255_v27  ;;  %v12137_v59 = vmul.f32 %v3930_v20, %v12005_v43  ;;  %v3602_v32 = vmul.f32 %v3601_v49, %v3599_v34  ;;  %v4179_v7 = vshrl.u32 %v4174_v50, 16 }
 0x79f   : > { %v4188_v51 = vadd.s32 %v4187_v14, %v4177_v0  ;;  %v3933_v6 = vand.u32 3, %v12100_v39  ;;  %v12140_v15 = vadd.s32 %v4166_v19, %v4157_v22  ;;  %v12142_v10 = vadd.s32 %v4182_v18, %v4178_v4 }
 0x7a0   : > { %13287 = vst [vmem:[#allocation53_spill] sm:$0xff] %v12137_v59  ;;  %v4261_v21 = vadd.s32 1, %v8595_v46  ;;  %v3606_v3 = vsel %vm3483_vm10, %v3605_v47, %v12035_v13  ;;  %v4136_v43 = vsel %vm4130_vm15, %v4133_v60, %v4135_v23  ;;  %v12150_v30 = vadd.f32 1.0, %v3922_v38  ;;  %v2480_v60 = vpop.f32.mrf.mxu3 }
 0x7a1   : > { %v4189_v55 = vadd.s32 %v4188_v51, %v4179_v7  ;;  %vm4192_vm6 = vc.u32 %v12140_v15, %v12142_v10  ;;  %v13289_v50 = vand.u32 2147483647, %v12083_v16  ;;  %v13152_v12 = vxor.u32 2147483648, %v12137_v59 }
 0x7a2   : > { %13288 = vst [vmem:[#allocation54_spill] sm:$0xff] %v12150_v30  ;;  %vm4262_vm7 = vcmp.gt.s32.totalorder %v4261_v21, 0  ;;  %v3603_v18 = vxor.u32 2147483648, %v3602_v32  ;;  %v3775_v13 = vmul.f32 %v12096_v42, %v11995_v41  ;;  %vm3934_vm8 = vcmp.lt.s32.totalorder %v3933_v6, 2 }
 0x7a3   : > { %v4258_v4 = vand.u32 8388607, %v13289_v50  ;;  %v4193_v36 = vadd.s32 1, %v4189_v55  ;;  %v4263_v17 = vsel %vm4262_vm7, %v4261_v21, 0  ;;  %v4190_v48 = vmul.u32 %v12080_v1, %v4136_v43 }
 0x7a4   : > { %v4265_v47 = vand.u32 31, %v4263_v17  ;;  %vm3935_vm11 = vcmp.eq.s32.totalorder %v3933_v6, 0  ;;  %vm3938_vm9 = vcmp.eq.s32.totalorder %v3933_v6, 2  ;;  %v12162_v20 = vsel %vm12127_vm5, 0, %v3606_v3 }
 0x7a5   : > { %v4194_v5 = vsel %vm4192_vm6, %v4193_v36, %v4189_v55  ;;  %v13151_v35 = vxor.u32 2147483648, %v12150_v30  ;;  %v4259_v34 = vor.u32 8388608, %v4258_v4  ;;  %v3937_v42 = vsel %vm3935_vm11, %v12150_v30, %v13152_v12 }
 0x7a6   : > { %v4195_v25 = vadd.s32 %v4194_v5, %v4190_v48  ;;  %v4266_v63 = vsub.s32 32, %v4265_v47  ;;  %v3604_v1 = vsel %vm3483_vm10, %v3603_v18, %v3602_v32  ;;  %v4268_v58 = vshll.u32 %v13232_v54, %v4265_v47 }
 0x7a7   : > { %v12172_v27 = vadd.f32 %v2480_v60, %v13263_v9  ;;  %v4271_v0 = vshll.u32 %v13237_v31, %v4265_v47  ;;  %v4277_v14 = vshll.u32 %v13238_v40, %v4265_v47  ;;  %v12183_v7 = vshrl.u32 %v4263_v17, 5 }
 0x7a8   : > { %v4196_v49 = vadd.s32 536870912, %v4195_v25  ;;  %v4269_v23 = vshrl.u32 %v13237_v31, %v4266_v63  ;;  %v4272_v38 = vshrl.u32 %v13230_v8, %v4266_v63  ;;  %v4275_v22 = vshrl.u32 %v13238_v40, %v4266_v63 }
 0x7a9   : > { %v4278_v19 = vshrl.u32 %v13239_v61, %v4266_v63  ;;  %v4281_v46 = vshrl.u32 %v13231_v28, %v4266_v63  ;;  %v4274_v9 = vshll.u32 %v13230_v8, %v4265_v47  ;;  %v12186_v51 = vshll.u32 %v4259_v34, 8 }
 0x7aa   : > { %v12181_v32 = vshrl.u32 %v4196_v49, 30  ;;  %v4270_v21 = vor.u32 %v4269_v23, %v4268_v58  ;;  %v12188_v3 = vor.u32 %v4272_v38, %v4271_v0  ;;  %v4280_v55 = vshll.u32 %v13239_v61, %v4265_v47 }
 0x7ab   : > { %v4279_v43 = vor.u32 %v4278_v19, %v4277_v14  ;;  %v3940_v50 = vsel %vm3938_vm9, %v13151_v35, %v12137_v59  ;;  %v12198_v4 = vsel %vm12127_vm5, %v11779_v52, %v3604_v1  ;;  %v4276_v36 = vor.u32 %v4275_v22, %v4274_v9 }
 0x7ac   : > { %v4198_v18 = vshll.u32 %v12181_v32, 30  ;;  %v12201_v17 = vadd.f32 1.0, %v3775_v13  ;;  %v12204_v48 = vsel %vm3934_vm8, %v3937_v42, %v3940_v50  ;;  %v12207_v47 = vadd.s32 3, %v12162_v20 }
 0x7ad   : > { %v4282_v60 = vor.u32 %v4281_v46, %v4280_v55  ;;  %vm4283_vm14 = vcmp.lt.s32.totalorder %v12183_v7, 1  ;;  %vm4286_vm12 = vcmp.lt.s32.totalorder %v12183_v7, 4  ;;  %v12214_v34 = vmul.f32 %v12198_v4, %v12198_v4 }
 0x7ae   : > { %v4199_v5 = vsub.s32 %v4195_v25, %v4198_v18  ;;  %v4291_v6 = vsel %vm4283_vm14, %v4270_v21, %v12188_v3  ;;  %v4292_v13 = vsel %vm4286_vm12, %v4279_v43, 920167782  ;;  %v4300_v42 = vand.u32 65535, %v12186_v51 }
 0x7af   : > { %vm4285_vm15 = vcmp.lt.s32.totalorder %v12183_v7, 3  ;;  %v4295_v1 = vsel %vm4283_vm14, %v12188_v3, %v4276_v36  ;;  %vm4284_vm0 = vcmp.lt.s32.totalorder %v12183_v7, 2  ;;  %v4296_v49 = vsel %vm4286_vm12, %v4282_v60, 1326507024 }
 0x7b0   : > { %vm4200_vm4 = vcmp.lt.s32.totalorder %v4199_v5, 0  ;;  %v4201_v25 = vsub.s32 0, %v4199_v5  ;;  %v4293_v58 = vsel %vm4285_vm15, %v4276_v36, %v4292_v13  ;;  %v3946_v23 = vand.u32 2139095040, %v12172_v27 }
 0x7b1   : > { %v4267_v14 = vshrl.u32 %v13232_v54, %v4266_v63  ;;  %v4294_v38 = vsel %vm4284_vm0, %v4291_v6, %v4293_v58  ;;  %v4297_v22 = vsel %vm4285_vm15, %v4279_v43, %v4296_v49  ;;  %v4191_v50 = vadd.s32 %v12142_v10, %v12140_v15 }
 0x7b2   : > { %v4202_v0 = vsel %vm4200_vm4, %v4201_v25, %v4199_v5  ;;  %v4298_v46 = vsel %vm4284_vm0, %v4295_v1, %v4297_v22  ;;  %v4324_v9 = vand.u32 65535, %v4294_v38  ;;  %v4325_v55 = vshrl.u32 %v4294_v38, 16 }
 0x7b3   : > { %v4203_v19 = vclz %v4202_v0  ;;  %v4301_v18 = vshrl.u32 %v12186_v51, 16  ;;  %v4302_v60 = vand.u32 65535, %v4298_v46  ;;  %v4303_v13 = vshrl.u32 %v4298_v46, 16 }
 0x7b4   : > { %v3617_v63 = vmul.f32 -0.00019511016, %v12214_v34  ;;  %v4287_v6 = vsel %vm4283_vm14, %v4267_v14, %v4270_v21  ;;  %v4327_v43 = vmul.u32 %v4325_v55, %v4300_v42  ;;  %v4288_v58 = vsel %vm4286_vm12, %v4276_v36, 2102212464 }
 0x7b5   : > { %v8593_v25 = vadd.s32 4294967294, %v4203_v19  ;;  %v4305_v1 = vmul.u32 %v4303_v13, %v4300_v42  ;;  %v4306_v49 = vmul.u32 %v4302_v60, %v4301_v18  ;;  %v4328_v0 = vmul.u32 %v4324_v9, %v4301_v18 }
 0x7b6   : > { %v4326_v38 = vmul.u32 %v4324_v9, %v4300_v42  ;;  %v4330_v15 = vshll.u32 %v4327_v43, 16  ;;  %v3947_v10 = vshrl.u32 %v3946_v23, 23  ;;  %v4304_v35 = vmul.u32 %v4302_v60, %v4300_v42 }
 0x7b7   : > { %vm8594_vm10 = vcmp.lt.s32.totalorder %v8593_v25, 0  ;;  %v4307_v46 = vmul.u32 %v4303_v13, %v4301_v18  ;;  %v4308_v12 = vshll.u32 %v4305_v1, 16  ;;  %v4310_v29 = vshll.u32 %v4306_v49, 16 }
 0x7b8   : > { %v4206_v22 = vsel %vm8594_vm10, 0, %v8593_v25  ;;  %v4329_v30 = vmul.u32 %v4325_v55, %v4301_v18  ;;  %v4332_v59 = vshll.u32 %v4328_v0, 16  ;;  %vm13168_vm2 = vweird.f32 %v11651_v11 }
 0x7b9   : > { %v4207_v24 = vsub.s32 32, %v4206_v22  ;;  %v4211_v19 = vsub.s32 4294967266, %v4206_v22  ;;  %v4208_v21 = vshll.u32 %v4199_v5, %v4206_v22  ;;  %vm4312_vm1 = vc.u32 %v4304_v35, %v4308_v12 }
 0x7ba   : > { %v4314_v14 = vadd.s32 %v4308_v12, %v4304_v35  ;;  %v4313_v9 = vsel %vm4312_vm1, 1, %v13236_v56  ;;  %vm4334_vm3 = vc.u32 %v4326_v38, %v4330_v15  ;;  %v4336_v60 = vadd.s32 %v4330_v15, %v4326_v38 }
 0x7bb   : > { %v4209_v36 = vshrl.u32 %v4191_v50, %v4207_v24  ;;  %v4212_v39 = vadd.s32 127, %v4211_v19  ;;  %v4315_v23 = vadd.s32 %v4313_v9, %v4307_v46  ;;  %v4335_v42 = vsel %vm4334_vm3, 1, %v13236_v56 }
 0x7bc   : > { %vm4316_vm13 = vc.u32 %v4314_v14, %v4310_v29  ;;  %v4337_v5 = vadd.s32 %v4335_v42, %v4329_v30  ;;  %vm4099_vm5 = vcmp.lt.s32.totalorder %v11881_v44, 0  ;;  %v4309_v12 = vshrl.u32 %v4305_v1, 16 }
 0x7bd   : > { %v4210_v13 = vor.u32 %v4209_v36, %v4208_v21  ;;  %v4213_v25 = vshll.u32 %v4212_v39, 23  ;;  %v4317_v55 = vsel %vm4316_vm13, 1, %v13236_v56  ;;  %vm4338_vm6 = vc.u32 %v4336_v60, %v4332_v59 }
 0x7be   : > { %v4319_v35 = vadd.s32 %v4317_v55, %v4315_v23  ;;  %v8589_v24 = vadd.s32 4294967169, %v3947_v10  ;;  %v13290_v50 = vand.u32 2147483647, %v11881_v44  ;;  %v4289_v39 = vsel %vm4285_vm15, %v12188_v3, %v4288_v58 }
 0x7bf   : > { %v4214_v29 = vor.u32 4788187, %v4213_v25  ;;  %v4331_v38 = vshrl.u32 %v4327_v43, 16  ;;  %v4339_v30 = vsel %vm4338_vm6, 1, %v13236_v56  ;;  %v4311_v15 = vshrl.u32 %v4306_v49, 16  ;;  %v2461_v25 = vpop.f32.mrf.mxu2 }
 0x7c0   : > { %vm12254_vm7 = vcmp.le.f32.partialorder %v13290_v50, 0.7853982  ;;  %v4320_v22 = vadd.s32 %v4319_v35, %v4309_v12  ;;  %v4341_v1 = vadd.s32 %v4339_v30, %v4337_v5  ;;  %v3953_v46 = vadd.s32 1, %v8589_v24 }
 0x7c1   : > { %v3618_v19 = vadd.f32 0.008332121, %v3617_v63  ;;  %v4215_v10 = vand.u32 2147483647, %v4214_v29  ;;  %v4217_v21 = vcvt.s32.f32 %v4210_v13  ;;  %v13293_v14 = vand.u32 2147483647, %v12172_v27 }
 0x7c2   : > { %v12264_v9 = vadd.s32 %v4320_v22, %v4311_v15  ;;  %v4333_v23 = vshrl.u32 %v4328_v0, 16  ;;  %v4342_v42 = vadd.s32 %v4341_v1, %v4331_v38  ;;  %vm3954_vm8 = vcmp.gt.s32.totalorder %v3953_v46, 0 }
 0x7c3   : > { %v3950_v36 = vand.u32 8388607, %v13293_v14  ;;  %v4218_v3 = vmul.f32 %v4217_v21, %v4215_v10  ;;  %v4290_v43 = vsel %vm4284_vm0, %v4287_v6, %v4289_v39  ;;  %v12268_v58 = vadd.s32 %v4336_v60, %v4332_v59 }
 0x7c4   : > { %v3955_v49 = vsel %vm3954_vm8, %v3953_v46, 0  ;;  %v12273_v63 = vsel %vm13168_vm2, nan, %v12204_v48  ;;  %v12276_v13 = vand.u32 3, %v12162_v20  ;;  %v12279_v0 = vand.u32 3, %v12207_v47 }
 0x7c5   : > { %v4343_v55 = vadd.s32 %v4342_v42, %v4333_v23  ;;  %v4219_v5 = vxor.u32 2147483648, %v4218_v3  ;;  %vm4346_vm11 = vc.u32 %v12264_v9, %v12268_v58  ;;  %v2462_v59 = vadd.f32 %v2461_v25, %v11027_v33 }
 0x7c6   : > { %13294 = vst [vmem:[#allocation55_spill] sm:$0xff] %v12276_v13  ;;  %v3957_v7 = vand.u32 31, %v3955_v49  ;;  %v3619_v6 = vmul.f32 %v3618_v19, %v12214_v34  ;;  %v4221_v60 = vsub.s32 4, %v12181_v32  ;;  %v4344_v48 = vmul.u32 %v12186_v51, %v4290_v43  ;;  %v9552_v13 = vld [vmem:[#allocation9 + $0x1ac] sm:$0xf0] }
 0x7c7   : > { %13295 = vst [vmem:[#allocation56_spill] sm:$0xff] %v12279_v0  ;;  %v4347_v12 = vadd.s32 1, %v4343_v55  ;;  %v4220_v20 = vsel %vm4099_vm5, %v4219_v5, %v4218_v3  ;;  %v3951_v47 = vor.u32 8388608, %v3950_v36  ;;  %v12289_v35 = vshrl.u32 %v3955_v49, 5  ;;  %v8940_v5 = vld [vmem:[#allocation9 + $0x260] sm:$0xf] }
 0x7c8   : > { %v3958_v24 = vsub.s32 32, %v3957_v7  ;;  %v12294_v50 = vsel %vm12254_vm7, %v11881_v44, %v4220_v20  ;;  %v3960_v29 = vshll.u32 %v13232_v54, %v3957_v7  ;;  %v3963_v39 = vshll.u32 %v13237_v31, %v3957_v7 }
 0x7c9   : > { %v4348_v33 = vsel %vm4346_vm11, %v4347_v12, %v4343_v55  ;;  %v12300_v51 = vmul.f32 %v12294_v50, %v12294_v50  ;;  %v3966_v15 = vshll.u32 %v13230_v8, %v3957_v7  ;;  %v3969_v46 = vshll.u32 %v13238_v40, %v3957_v7 }
 0x7ca   : > { %v4349_v38 = vadd.s32 %v4348_v33, %v4344_v48  ;;  %v3961_v30 = vshrl.u32 %v13237_v31, %v3958_v24  ;;  %v3964_v22 = vshrl.u32 %v13230_v8, %v3958_v24  ;;  %v3967_v1 = vshrl.u32 %v13238_v40, %v3958_v24 }
 0x7cb   : > { %v3970_v19 = vshrl.u32 %v13239_v61, %v3958_v24  ;;  %v3972_v14 = vshll.u32 %v13239_v61, %v3957_v7  ;;  %v3973_v36 = vshrl.u32 %v13231_v28, %v3958_v24  ;;  %v4233_v23 = vmul.f32 -0.00019511016, %v12300_v51 }
 0x7cc   : > { %v4350_v10 = vadd.s32 536870912, %v4349_v38  ;;  %v3962_v21 = vor.u32 %v3961_v30, %v3960_v29  ;;  %vm4253_vm9 = vcmp.lt.s32.totalorder %v12083_v16, 0  ;;  %v3965_v31 = vor.u32 %v3964_v22, %v3963_v39 }
 0x7cd   : > { %v3968_v42 = vor.u32 %v3967_v1, %v3966_v15  ;;  %v3971_v25 = vor.u32 %v3970_v19, %v3969_v46  ;;  %v3974_v3 = vor.u32 %v3973_v36, %v3972_v14  ;;  %vm3975_vm14 = vcmp.lt.s32.totalorder %v12289_v35, 1 }
 0x7ce   : > { %v4351_v8 = vshrl.u32 %v4350_v10, 30  ;;  %vm3978_vm12 = vcmp.lt.s32.totalorder %v12289_v35, 4  ;;  %v3620_v40 = vadd.f32 -0.16666654, %v3619_v6  ;;  %v2543_v43 = vmul.f32 1.442695, %v2462_v59 }
 0x7cf   : > { %v3983_v61 = vsel %vm3975_vm14, %v3962_v21, %v3965_v31  ;;  %v3984_v28 = vsel %vm3978_vm12, %v3971_v25, 920167782  ;;  %v4222_v49 = vsel %vm4099_vm5, %v4221_v60, %v12181_v32  ;;  %v13296_v55 = vand.u32 2147483647, %v12083_v16 }
 0x7d0   : > { %v4352_v7 = vshll.u32 %v4351_v8, 30  ;;  %vm3977_vm15 = vcmp.lt.s32.totalorder %v12289_v35, 3  ;;  %v12328_v59 = vshll.u32 %v3951_v47, 8  ;;  %v4234_v6 = vadd.f32 0.008332121, %v4233_v23 }
 0x7d1   : > { %vm12323_vm4 = vcmp.le.f32.partialorder %v13296_v55, 0.7853982  ;;  %vm3976_vm0 = vcmp.lt.s32.totalorder %v12289_v35, 2  ;;  %v3985_v48 = vsel %vm3977_vm15, %v3968_v42, %v3984_v28  ;;  %v3988_v32 = vsel %vm3978_vm12, %v3974_v3, 1326507024 }
 0x7d2   : > { %v12335_v60 = vsub.s32 %v4349_v38, %v4352_v7  ;;  %v4375_v12 = vsub.s32 4, %v4351_v8  ;;  %v3986_v20 = vsel %vm3976_vm0, %v3983_v61, %v3985_v48  ;;  %v3987_v33 = vsel %vm3975_vm14, %v3965_v31, %v3968_v42 }
 0x7d3   : > { %v3621_v47 = vmul.f32 %v3620_v40, %v12214_v34  ;;  %9835 = vpow2.f32 %v2543_v43  ;;  %v3989_v29 = vsel %vm3977_vm15, %v3971_v25, %v3988_v32  ;;  %v4017_v39 = vshrl.u32 %v3986_v20, 16 }
 0x7d4   : > { %v12346_v30 = vsel %vm12254_vm7, 0, %v4222_v49  ;;  %vm4354_vm10 = vcmp.lt.s32.totalorder %v12335_v60, 0  ;;  %v4355_v38 = vsub.s32 0, %v12335_v60  ;;  %v4016_v15 = vand.u32 65535, %v3986_v20 }
 0x7d5   : > { %v4235_v22 = vmul.f32 %v4234_v6, %v12300_v51  ;;  %v3990_v1 = vsel %vm3976_vm0, %v3987_v33, %v3989_v29  ;;  %v3992_v46 = vand.u32 65535, %v12328_v59  ;;  %v3993_v19 = vshrl.u32 %v12328_v59, 16 }
 0x7d6   : > { %v4356_v10 = vsel %vm4354_vm10, %v4355_v38, %v12335_v60  ;;  %v4376_v18 = vsel %vm4253_vm9, %v4375_v12, %v4351_v8  ;;  %v3959_v14 = vshrl.u32 %v13232_v54, %v3958_v24  ;;  %v3980_v36 = vsel %vm3978_vm12, %v3968_v42, 2102212464 }
 0x7d7   : > { %v12361_v23 = vadd.f32 1.0, %v3621_v47  ;;  %v4357_v25 = vclz %v4356_v10  ;;  %v3994_v3 = vand.u32 65535, %v3990_v1  ;;  %v12363_v40 = vmul.u32 %v4017_v39, %v3992_v46 }
 0x7d8   : > { %v4345_v43 = vadd.s32 %v12268_v58, %v12264_v9  ;;  %v3979_v61 = vsel %vm3975_vm14, %v3959_v14, %v3962_v21  ;;  %v3995_v28 = vshrl.u32 %v3990_v1, 16  ;;  %v12369_v49 = vmul.u32 %v4016_v15, %v3993_v19 }
 0x7d9   : > { %v12371_v8 = vpop.eup %9835  ;;  %v4236_v54 = vadd.f32 -0.16666654, %v4235_v22  ;;  %v8596_v24 = vadd.s32 4294967294, %v4357_v25  ;;  %v12375_v42 = vsel %vm12323_vm4, 0, %v4376_v18  ;;  %v3981_v55 = vsel %vm3977_vm15, %v3965_v31, %v3980_v36  ;;  %v9592_v25 = vld [vmem:[#allocation9 + $0x2ec] sm:$0xf0] }
 0x7da   : > { %v3997_v7 = vmul.u32 %v3995_v28, %v3992_v46  ;;  %v12379_v6 = vmul.u32 %v3994_v3, %v3993_v19  ;;  %v4018_v9 = vmul.u32 %v4016_v15, %v3992_v46  ;;  %v4021_v58 = vmul.u32 %v4017_v39, %v3993_v19  ;;  %v8876_v15 = vld [vmem:[#allocation9 + $0x1e0] sm:$0xf] }
 0x7db   : > { %vm8597_vm1 = vcmp.lt.s32.totalorder %v8596_v24, 0  ;;  %v3996_v21 = vmul.u32 %v3994_v3, %v3992_v46  ;;  %v3999_v48 = vmul.u32 %v3995_v28, %v3993_v19  ;;  %v4022_v32 = vshll.u32 %v12363_v40, 16  ;;  %v9560_v46 = vld [vmem:[#allocation9 + $0x1ec] sm:$0xf0]  ;;  %v9004_v19 = vld [vmem:[#allocation9 + $0x2e0] sm:$0xf] }
 0x7dc   : > { %v4360_v12 = vsel %vm8597_vm1, 0, %v8596_v24  ;;  %v4000_v20 = vshll.u32 %v3997_v7, 16  ;;  %v4023_v33 = vshrl.u32 %v12363_v40, 16  ;;  %v4024_v47 = vshll.u32 %v12369_v49, 16  ;;  %v8860_v24 = vld [vmem:[#allocation9 + $0x1c0] sm:$0xf] }
 0x7dd   : > { %v4361_v29 = vsub.s32 32, %v4360_v12  ;;  %v4365_v38 = vsub.s32 4294967266, %v4360_v12  ;;  %v4001_v22 = vshrl.u32 %v3997_v7, 16  ;;  %v4002_v31 = vshll.u32 %v12379_v6, 16  ;;  %v9556_v7 = vld [vmem:[#allocation9 + $0x1cc] sm:$0xf0] }
 0x7de   : > { %v4362_v1 = vshll.u32 %v12335_v60, %v4360_v12  ;;  %vm4004_vm3 = vc.u32 %v3996_v21, %v4000_v20  ;;  %v4006_v39 = vadd.s32 %v4000_v20, %v3996_v21  ;;  %vm4026_vm13 = vc.u32 %v4018_v9, %v4022_v32  ;;  %v8988_v60 = vld [vmem:[#allocation9 + $0x2c0] sm:$0xf] }
 0x7df   : > { %v4363_v10 = vshrl.u32 %v4345_v43, %v4361_v29  ;;  %v4366_v18 = vadd.s32 127, %v4365_v38  ;;  %v4005_v14 = vsel %vm4004_vm3, 1, %v13236_v56  ;;  %v4027_v36 = vsel %vm4026_vm13, 1, %v13236_v56  ;;  %v9588_v29 = vld [vmem:[#allocation9 + $0x2cc] sm:$0xf0] }
 0x7e0   : > { %v4007_v3 = vadd.s32 %v4005_v14, %v3999_v48  ;;  %vm4008_vm5 = vc.u32 %v4006_v39, %v4002_v31  ;;  %v4028_v40 = vadd.s32 %v4022_v32, %v4018_v9  ;;  %v4029_v28 = vadd.s32 %v4027_v36, %v4021_v58  ;;  %v8748_v38 = vld [vmem:[#allocation9 + $0xe0] sm:$0xf]  ;;  %v9528_v9 = vld [vmem:[#allocation9 + $0xec] sm:$0xf0] }
 0x7e1   : > { %v4364_v12 = vor.u32 %v4363_v10, %v4362_v1  ;;  %v4367_v21 = vshll.u32 %v4366_v18, 23  ;;  %v12390_v20 = vsel %vm3976_vm0, %v3979_v61, %v3981_v55  ;;  %v4009_v43 = vsel %vm4008_vm5, 1, %v13236_v56  ;;  %v9132_v58 = vld [vmem:[#allocation9 + $0x3e0] sm:$0xf]  ;;  %v9624_v32 = vld [vmem:[#allocation9 + $0x3ec] sm:$0xf0] }
 0x7e2   : > { %v4237_v11 = vmul.f32 %v4236_v54, %v12300_v51  ;;  %v4011_v52 = vadd.s32 %v4009_v43, %v4007_v3  ;;  %vm4030_vm6 = vc.u32 %v4028_v40, %v4024_v47  ;;  %v8877_v48 = vor.u32 %v9560_v46, %v8876_v15  ;;  %v8732_v61 = vld [vmem:[#allocation9 + $0xc0] sm:$0xf]  ;;  %v9524_v36 = vld [vmem:[#allocation9 + $0xcc] sm:$0xf0] }
 0x7e3   : > { %v4368_v31 = vor.u32 4788187, %v4367_v21  ;;  %v4003_v1 = vshrl.u32 %v12379_v6, 16  ;;  %v4031_v39 = vsel %vm4030_vm6, 1, %v13236_v56  ;;  %v9005_v35 = vor.u32 %v9592_v25, %v9004_v19  ;;  %v9116_v54 = vld [vmem:[#allocation9 + $0x3c0] sm:$0xf] }
 0x7e4   : > { %v4371_v55 = vcvt.s32.f32 %v4364_v12  ;;  %v4012_v10 = vadd.s32 %v4011_v52, %v4001_v22  ;;  %v4033_v18 = vadd.s32 %v4031_v39, %v4029_v28  ;;  %7472 = vmatpush.bf16.msra.mxu3 %v8877_v48  ;;  %v8861_v14 = vor.u32 %v9556_v7, %v8860_v24  ;;  %v9620_v3 = vld [vmem:[#allocation9 + $0x3cc] sm:$0xf0]  ;;  %v8844_v21 = vld [vmem:[#allocation9 + $0x1a0] sm:$0xf] }
 0x7e5   : > { %v4369_v43 = vand.u32 2147483647, %v4368_v31  ;;  %7491 = vmatpush.bf16.msra.mxu0 %v9005_v35  ;;  %v8989_v15 = vor.u32 %v9588_v29, %v8988_v60  ;;  %v8749_v46 = vor.u32 %v9528_v9, %v8748_v38  ;;  %v9133_v0 = vor.u32 %v9624_v32, %v9132_v58  ;;  %v8972_v22 = vld [vmem:[#allocation9 + $0x2a0] sm:$0xf]  ;;  %v9584_v25 = vld [vmem:[#allocation9 + $0x2ac] sm:$0xf0] }
 0x7e6   : > { %v12396_v6 = vadd.s32 %v4012_v10, %v4003_v1  ;;  %v4025_v56 = vshrl.u32 %v12369_v49, 16  ;;  %v12399_v19 = vadd.s32 %v4028_v40, %v4024_v47  ;;  %v4034_v52 = vadd.s32 %v4033_v18, %v4023_v33  ;;  %v8828_v12 = vld [vmem:[#allocation9 + $0x180] sm:$0xf]  ;;  %v9520_v9 = vld [vmem:[#allocation9 + $0xac] sm:$0xf0] }
 0x7e7   : > { %v4372_v28 = vmul.f32 %v4371_v55, %v4369_v43  ;;  %7453 = vmatpush.bf16.msra.mxu2 %v8749_v46  ;;  %7510 = vmatpush.bf16.msra.mxu1 %v9133_v0  ;;  %v8733_v7 = vor.u32 %v9524_v36, %v8732_v61  ;;  %v9117_v60 = vor.u32 %v9620_v3, %v9116_v54  ;;  %v8716_v29 = vld [vmem:[#allocation9 + $0xa0] sm:$0xf]  ;;  %v9616_v49 = vld [vmem:[#allocation9 + $0x3ac] sm:$0xf0]  ;;  %v12403_v33 = vand.u32 3, %v12375_v42 }
 0x7e8   : > { %v4035_v38 = vadd.s32 %v4034_v52, %v4025_v56  ;;  %7473 = vmatpush.bf16.msra.mxu3 %v8861_v14  ;;  %v8845_v48 = vor.u32 %v9552_v13, %v8844_v21  ;;  %v9100_v58 = vld [vmem:[#allocation9 + $0x3a0] sm:$0xf]  ;;  %vm4038_vm7 = vc.u32 %v12396_v6, %v12399_v19  ;;  %v8973_v40 = vor.u32 %v9584_v25, %v8972_v22  ;;  %v9548_v0 = vld [vmem:[#allocation9 + $0x18c] sm:$0xf0] }
 0x7e9   : > { %v4373_v47 = vxor.u32 2147483648, %v4372_v28  ;;  %7492 = vmatpush.bf16.msra.mxu0 %v8989_v15  ;;  %v8956_v32 = vld [vmem:[#allocation9 + $0x280] sm:$0xf]  ;;  %v12408_v31 = vadd.s32 3, %v12375_v42  ;;  %v4036_v13 = vmul.u32 %v12328_v59, %v12390_v20  ;;  %v9580_v39 = vld [vmem:[#allocation9 + $0x28c] sm:$0xf0]  ;;  %v8717_v18 = vor.u32 %v9520_v9, %v8716_v29 }
 0x7ea   : > { %v4039_v1 = vadd.s32 1, %v4035_v38  ;;  %v13299_v35 = vld [vmem:[#allocation27_spill] sm:$0xff]  ;;  %v12413_v55 = vadd.f32 1.0, %v4237_v11  ;;  %v9101_v14 = vor.u32 %v9616_v49, %v9100_v58  ;;  %v8700_v36 = vld [vmem:[#allocation9 + $0x80] sm:$0xf]  ;;  %v8829_v11 = vor.u32 %v9548_v0, %v8828_v12  ;;  %v13301_v58 = vld [vmem:[#allocation32_spill] sm:$0xff] }
 0x7eb   : > { %v2840_v61 = vmul.f32 -0.001358992, %v13299_v35  ;;  %v4374_v10 = vsel %vm4253_vm9, %v4373_v47, %v4372_v28  ;;  %7454 = vmatpush.bf16.msra.mxu2 %v8733_v7  ;;  %7511 = vmatpush.bf16.msra.mxu1 %v9117_v60  ;;  %v9516_v54 = vld [vmem:[#allocation9 + $0x8c] sm:$0xf0]  ;;  %v8812_v20 = vld [vmem:[#allocation9 + $0x160] sm:$0xf]  ;;  %v8957_v21 = vor.u32 %v9580_v39, %v8956_v32  ;;  %vm13169_vm1 = vweird.f32 %v12083_v16 }
 0x7ec   : > { %v12420_v42 = vsel %vm12323_vm4, %v12083_v16, %v4374_v10  ;;  %v4040_v59 = vsel %vm4038_vm7, %v4039_v1, %v4035_v38  ;;  %7474 = vmatpush.bf16.msra.mxu3 %v8845_v48  ;;  %v9084_v3 = vld [vmem:[#allocation9 + $0x380] sm:$0xf]  ;;  %v9612_v43 = vld [vmem:[#allocation9 + $0x38c] sm:$0xf0]  ;;  %v8701_v22 = vor.u32 %v9516_v54, %v8700_v36  ;;  %vm3945_vm8 = vcmp.lt.s32.totalorder %v12172_v27, 0  ;;  %v13302_v10 = vld [vmem:[#allocation26_spill] sm:$0xff] }
 0x7ed   : > { %v12427_v15 = vmul.f32 %v12420_v42, %v12420_v42  ;;  %v4041_v46 = vadd.s32 %v4040_v59, %v4036_v13  ;;  %7493 = vmatpush.bf16.msra.mxu0 %v8973_v40  ;;  %v9544_v56 = vld [vmem:[#allocation9 + $0x16c] sm:$0xf0]  ;;  %v12429_v25 = vld [vmem:[#allocation9 + $0x60] sm:$0xf]  ;;  %v2841_v7 = vadd.f32 0.041655596, %v2840_v61  ;;  %v9085_v38 = vor.u32 %v9612_v43, %v9084_v3 }
 0x7ee   : > { %v9576_v52 = vld [vmem:[#allocation9 + $0x26c] sm:$0xf0]  ;;  %v8796_v48 = vld [vmem:[#allocation9 + $0x140] sm:$0xf]  ;;  %v8813_v47 = vor.u32 %v9544_v56, %v8812_v20  ;;  %v13303_v36 = vmin.f32 %v13302_v10, 100.0  ;;  %vm4396_vm15 = vcmp.lt.s32.totalorder %v12403_v33, 2 }
 0x7ef   : > { %v9512_v28 = vld [vmem:[#allocation9 + $0x6c] sm:$0xf0]  ;;  %v4380_v60 = vmul.f32 -0.001358992, %v12427_v15  ;;  %v4387_v12 = vmul.f32 -0.00019511016, %v12427_v15  ;;  %7455 = vmatpush.bf16.msra.mxu2 %v8717_v18  ;;  %7512 = vmatpush.bf16.msra.mxu1 %v9101_v14  ;;  %v8941_v61 = vor.u32 %v9576_v52, %v8940_v5  ;;  %v12445_v14 = vmul.f32 %v11692_v26, %v11492_v45 }
 0x7f0   : > { %v4042_v29 = vadd.s32 536870912, %v4041_v46  ;;  %v13300_v9 = vld [vmem:[#allocation25_spill] sm:$0xff]  ;;  %7475 = vmatpush.bf16.msra.mxu3 %v8829_v11  ;;  %v9540_v40 = vld [vmem:[#allocation9 + $0x14c] sm:$0xf0]  ;;  %v12441_v18 = vmul.f32 %v11631_v37, %v13303_v36  ;;  %v13304_v54 = vand.u32 2147483647, %v12172_v27  ;;  %v8685_v3 = vor.u32 %v9512_v28, %v12429_v25 }
 0x7f1   : > { %v12436_v49 = vmul.f32 %v13301_v58, %v13300_v9  ;;  %v9068_v0 = vld [vmem:[#allocation9 + $0x360] sm:$0xf]  ;;  %v9608_v32 = vld [vmem:[#allocation9 + $0x36c] sm:$0xf0]  ;;  %v4381_v13 = vadd.f32 0.041655596, %v4380_v60  ;;  %7494 = vmatpush.bf16.msra.mxu0 %v8957_v21  ;;  %v2842_v58 = vmul.f32 %v2841_v7, %v13299_v35 }
 0x7f2   : > { %v4388_v1 = vadd.f32 0.008332121, %v4387_v12  ;;  %v4043_v39 = vshrl.u32 %v4042_v29, 30  ;;  %vm12449_vm11 = vcmp.le.f32.partialorder %v13304_v54, 0.7853982  ;;  %v9069_v45 = vor.u32 %v9608_v32, %v9068_v0  ;;  %v13307_v0 = vld [vmem:[#allocation42_spill] sm:$0xff] }
 0x7f3   : > { %v8924_v11 = vld [vmem:[#allocation9 + $0x240] sm:$0xf]  ;;  %v9572_v20 = vld [vmem:[#allocation9 + $0x24c] sm:$0xf0]  ;;  %v4382_v21 = vmul.f32 %v4381_v13, %v12427_v15  ;;  %7456 = vmatpush.bf16.msra.mxu2 %v8701_v22  ;;  %7513 = vmatpush.bf16.msra.mxu1 %v9085_v38  ;;  %v8797_v12 = vor.u32 %v9540_v40, %v8796_v48  ;;  %v13165_v25 = vxor.u32 2147483648, %v12436_v49  ;;  %v12462_v32 = vmul.f32 %v13307_v0, %v11532_v62 }
 0x7f4   : > { %v8668_v43 = vld [vmem:[#allocation9 + $0x40] sm:$0xf]  ;;  %v4389_v37 = vmul.f32 %v4388_v1, %v12427_v15  ;;  %v4044_v56 = vshll.u32 %v4043_v39, 30  ;;  %v9508_v5 = vld [vmem:[#allocation9 + $0x4c] sm:$0xf0]  ;;  %v4067_v60 = vsub.s32 4, %v4043_v39  ;;  %7476 = vmatpush.bf16.msra.mxu3 %v8813_v47  ;;  %v8925_v22 = vor.u32 %v9572_v20, %v8924_v11 }
 0x7f5   : > { %v8780_v26 = vld [vmem:[#allocation9 + $0x120] sm:$0xf]  ;;  %v9536_v29 = vld [vmem:[#allocation9 + $0x12c] sm:$0xf0]  ;;  %v4383_v28 = vadd.f32 -0.4999988, %v4382_v21  ;;  %7495 = vmatpush.bf16.msra.mxu0 %v8941_v61  ;;  %v8669_v7 = vor.u32 %v9508_v5, %v8668_v43 }
 0x7f6   : > { %v9052_v52 = vld [vmem:[#allocation9 + $0x340] sm:$0xf]  ;;  %v9604_v9 = vld [vmem:[#allocation9 + $0x34c] sm:$0xf0]  ;;  %v4390_v13 = vadd.f32 -0.16666654, %v4389_v37  ;;  %v12458_v36 = vsub.s32 %v4041_v46, %v4044_v56  ;;  %v4068_v56 = vsel %vm3945_vm8, %v4067_v60, %v4043_v39  ;;  %v8781_v5 = vor.u32 %v9536_v29, %v8780_v26 }
 0x7f7   : > { %v8908_v38 = vld [vmem:[#allocation9 + $0x220] sm:$0xf]  ;;  %v9568_v40 = vld [vmem:[#allocation9 + $0x22c] sm:$0xf0]  ;;  %v9053_v54 = vor.u32 %v9604_v9, %v9052_v52  ;;  %v13310_v37 = vld [vmem:[#allocation28_spill] sm:$0xff]  ;;  %v4384_v46 = vmul.f32 %v4383_v28, %v12427_v15  ;;  %7457 = vmatpush.bf16.msra.mxu2 %v8685_v3  ;;  %7514 = vmatpush.bf16.msra.mxu1 %v9069_v45  ;;  %vm4397_vm0 = vcmp.eq.s32.totalorder %v12403_v33, 0 }
 0x7f8   : > { %v13308_v1 = vld [vmem:[#allocation37_spill] sm:$0xff]  ;;  %v9532_v21 = vld [vmem:[#allocation9 + $0x10c] sm:$0xf0]  ;;  %vm2857_vm9 = vcmp.eq.s32.totalorder %v13310_v37, 0  ;;  %v4391_v61 = vmul.f32 %v4390_v13, %v12427_v15  ;;  %vm4046_vm14 = vcmp.lt.s32.totalorder %v12458_v36, 0  ;;  %v4047_v62 = vsub.s32 0, %v12458_v36  ;;  %7477 = vmatpush.bf16.msra.mxu3 %v8797_v12 }
 0x7f9   : > { %v13309_v47 = vmin.f32 %v13308_v1, 100.0  ;;  %v8764_v24 = vld [vmem:[#allocation9 + $0x100] sm:$0xf]  ;;  %v9600_v9 = vld [vmem:[#allocation9 + $0x32c] sm:$0xf0]  ;;  %vm2860_vm12 = vcmp.eq.s32.totalorder %v13310_v37, 2  ;;  %7496 = vmatpush.bf16.msra.mxu0 %v8925_v22  ;;  %v8909_v45 = vor.u32 %v9568_v40, %v8908_v38 }
 0x7fa   : > { %v8652_v11 = vld [vmem:[#allocation9 + $0x20] sm:$0xf]  ;;  %v2843_v15 = vadd.f32 -0.4999988, %v2842_v58  ;;  %v4392_v28 = vadd.f32 1.0, %v4391_v61  ;;  %v4048_v3 = vsel %vm4046_vm14, %v4047_v62, %v12458_v36  ;;  %v8765_v13 = vor.u32 %v9532_v21, %v8764_v24  ;;  %v13312_v60 = vld [vmem:[#allocation34_spill] sm:$0xff] }
 0x7fb   : > { %v12467_v48 = vmul.f32 %v11914_v53, %v13309_v47  ;;  %v9504_v53 = vld [vmem:[#allocation9 + $0x2c] sm:$0xf0]  ;;  %v13311_v20 = vld [vmem:[#allocation45_spill] sm:$0xff]  ;;  %vm2856_vm4 = vcmp.lt.s32.totalorder %v13310_v37, 2  ;;  %v4049_v47 = vclz %v4048_v3  ;;  %v3302_v12 = vmul.f32 -0.001358992, %v13312_v60  ;;  %7458 = vmatpush.bf16.msra.mxu2 %v8669_v7  ;;  %7515 = vmatpush.bf16.msra.mxu1 %v9053_v54 }
 0x7fc   : > { %v12476_v43 = vmul.f32 %v12089_v2, %v13311_v20  ;;  %v9036_v52 = vld [vmem:[#allocation9 + $0x320] sm:$0xf]  ;;  %v12483_v2 = vadd.f32 1.0, %v4384_v46  ;;  %v9564_v39 = vld [vmem:[#allocation9 + $0x20c] sm:$0xf0]  ;;  %v2844_v26 = vmul.f32 %v2843_v15, %v13299_v35  ;;  %v12488_v29 = vmul.f32 %v4392_v28, %v12420_v42  ;;  %7478 = vmatpush.bf16.msra.mxu3 %v8781_v5  ;;  %v13313_v21 = vld [vmem:[#allocation40_spill] sm:$0xff] }
 0x7fd   : > { %v8892_v0 = vld [vmem:[#allocation9 + $0x200] sm:$0xf]  ;;  %v12493_v58 = vsel %vm12449_vm11, 0, %v4068_v56  ;;  %v8653_v24 = vor.u32 %v9504_v53, %v8652_v11  ;;  %v9037_v22 = vor.u32 %v9600_v9, %v9036_v52  ;;  %v8590_v38 = vadd.s32 4294967294, %v4049_v47  ;;  %7497 = vmatpush.bf16.msra.mxu0 %v8909_v45  ;;  %v9688_v3 = vld [vmem:[#allocation9 + $0x5ec] sm:$0xf0] }
 0x7fe   : > { %v12495_v40 = vadd.f32 1.0, %v2844_v26  ;;  %v3303_v35 = vadd.f32 0.041655596, %v3302_v12  ;;  %v12498_v46 = vand.u32 3, %v13313_v21  ;;  %v13164_v42 = vxor.u32 2147483648, %v12488_v29  ;;  %v13314_v5 = vld [vmem:[#allocation33_spill] sm:$0xff] }
 0x7ff   : > { %vm4400_vm10 = vcmp.eq.s32.totalorder %v12403_v33, 2  ;;  %v8893_v61 = vor.u32 %v9564_v39, %v8892_v0  ;;  %v13166_v7 = vxor.u32 2147483648, %v12483_v2  ;;  %vm8591_vm3 = vcmp.lt.s32.totalorder %v8590_v38, 0  ;;  %7459 = vmatpush.bf16.msra.mxu2 %v8653_v24  ;;  %7516 = vmatpush.bf16.msra.mxu1 %v9037_v22  ;;  %v9388_v56 = vld [vmem:[#allocation9 + $0x5e0] sm:$0xf] }
 0x800   : > { %v12506_v54 = vadd.s32 3, %v12493_v58  ;;  %v13163_v62 = vxor.u32 2147483648, %v12495_v40  ;;  %v4052_v11 = vsel %vm8591_vm3, 0, %v8590_v38  ;;  %v2859_v53 = vsel %vm2857_vm9, %v12495_v40, %v13165_v25  ;;  %7479 = vmatpush.bf16.msra.mxu3 %v8765_v13  ;;  %v13315_v28 = vld [vmem:[#allocation13_spill] sm:$0xff]  ;;  %v8750_v13 = vld [vmem:[#allocation9 + $0xf0] sm:$0xf0] }
 0x801   : > { %v3304_v20 = vmul.f32 %v3303_v35, %v13312_v60  ;;  %v2686_v52 = vmul.f32 -0.001358992, %v13314_v5  ;;  %v4037_v9 = vadd.s32 %v12399_v19, %v12396_v6  ;;  %v4053_v15 = vsub.s32 32, %v4052_v11  ;;  %v9526_v45 = vld [vmem:[#allocation9 + $0xe4] sm:$0xf]  ;;  %7498 = vmatpush.bf16.msra.mxu0 %v8893_v61 }
 0x802   : > { %vm13170_vm13 = vweird.f32 %v13315_v28  ;;  %vm3319_vm5 = vcmp.eq.s32.totalorder %v12498_v46, 0  ;;  %v4399_v0 = vsel %vm4397_vm0, %v12483_v2, %v13164_v42  ;;  %v4057_v47 = vsub.s32 4294967266, %v4052_v11  ;;  %v8636_v39 = vld [vmem:[#allocation9] sm:$0xf]  ;;  %v9500_v38 = vld [vmem:[#allocation9 + $0xc] sm:$0xf0] }
 0x803   : > { %v2862_v6 = vsel %vm2860_vm12, %v13163_v62, %v12436_v49  ;;  %v4402_v26 = vsel %vm4400_vm10, %v13166_v7, %v12488_v29  ;;  %v4054_v12 = vshll.u32 %v12458_v36, %v4052_v11  ;;  %v4055_v24 = vshrl.u32 %v4037_v9, %v4053_v15  ;;  %v9020_v35 = vld [vmem:[#allocation9 + $0x300] sm:$0xf]  ;;  %v9596_v21 = vld [vmem:[#allocation9 + $0x30c] sm:$0xf0]  ;;  %v13317_v11 = vld [vmem:[#allocation16_spill] sm:$0xff] }
 0x804   : > { %v2863_v22 = vsel %vm2856_vm4, %v2859_v53, %v2862_v6  ;;  %v4058_v61 = vadd.s32 127, %v4057_v47  ;;  %v3305_v42 = vadd.f32 -0.4999988, %v3304_v20  ;;  %vm3318_vm6 = vcmp.lt.s32.totalorder %v12498_v46, 2  ;;  %v9372_v7 = vld [vmem:[#allocation9 + $0x5c0] sm:$0xf] }
 0x805   : > { %v2864_v62 = vsel %vm13170_vm13, nan, %v2863_v22  ;;  %v12544_v25 = vpack.c.bf16 %v12467_v48, %v12441_v18  ;;  %v4403_v36 = vsel %vm4396_vm15, %v4399_v0, %v4402_v26  ;;  %v4056_v37 = vor.u32 %v4055_v24, %v4054_v12  ;;  %v9684_v15 = vld [vmem:[#allocation9 + $0x5cc] sm:$0xf0]  ;;  %v9522_v47 = vld [vmem:[#allocation9 + $0xc4] sm:$0xf]  ;;  %v13320_v12 = vld [vmem:[#allocation46_spill] sm:$0xff] }
 0x806   : > { %vm3316_vm7 = vweird.f32 %v13317_v11  ;;  %v9389_v53 = vor.u32 %v9688_v3, %v9388_v56  ;;  %v8753_v9 = vor.u32 %v9526_v45, %v8750_v13  ;;  %v8734_v6 = vld [vmem:[#allocation9 + $0xd0] sm:$0xf0]  ;;  %v4059_v22 = vshll.u32 %v4058_v61, 23  ;;  %v13318_v13 = vld [vmem:[#allocation18_spill] sm:$0xff]  ;;  %v9514_v16 = vld [vmem:[#allocation9 + $0x84] sm:$0xf] }
 0x807   : > { %13316 = vst [vmem:[#allocation27_spill] sm:$0xff] %v12544_v25  ;;  %v3306_v20 = vmul.f32 %v3305_v42, %v13312_v60  ;;  %7499 = vmatmul.bf16.vlgmr.msra.gmra.mxu0 %v12544_v25  ;;  %v8637_v19 = vor.u32 %v9500_v38, %v8636_v39  ;;  %v9021_v18 = vor.u32 %v9596_v21, %v9020_v35  ;;  %vm3322_vm9 = vcmp.eq.s32.totalorder %v12498_v46, 2  ;;  %v13326_v46 = vld [vmem:[#allocation44_spill] sm:$0xff] }
 0x808   : > { %7548 = vmatpush.bf16.msrb.mxu3 %v9389_v53  ;;  %7567 = vmatpush.bf16.msrb.mxu0 %v8753_v9  ;;  %v9373_v33 = vor.u32 %v9684_v15, %v9372_v7  ;;  %v8737_v48 = vor.u32 %v9522_v47, %v8734_v6  ;;  %v2687_v0 = vadd.f32 0.041655596, %v2686_v52  ;;  %v12554_v56 = vsel %vm13169_vm1, nan, %v4403_v36  ;;  %v13321_v7 = vld [vmem:[#allocation43_spill] sm:$0xff]  ;;  %v13324_v47 = vld [vmem:[#allocation36_spill] sm:$0xff] }
 0x809   : > { %v4060_v3 = vor.u32 4788187, %v4059_v22  ;;  %v12556_v45 = vadd.f32 1.0, %v3306_v20  ;;  %v13319_v60 = vmin.f32 %v13318_v13, 100.0  ;;  %7460 = vmatpush.bf16.msra.mxu2 %v8637_v19  ;;  %7517 = vmatpush.bf16.msra.mxu1 %v9021_v18  ;;  %v4063_v39 = vcvt.s32.f32 %v4056_v37  ;;  %v9260_v6 = vld [vmem:[#allocation9 + $0x4e0] sm:$0xf] }
 0x80a   : > { %v2688_v26 = vmul.f32 %v2687_v0, %v13314_v5  ;;  %v3148_v24 = vmul.f32 -0.001358992, %v13320_v12  ;;  %v12563_v38 = vand.u32 3, %v13321_v7  ;;  %v13322_v35 = vxor.u32 2147483648, %v12462_v32  ;;  %v9656_v22 = vld [vmem:[#allocation9 + $0x4ec] sm:$0xf0] }
 0x80b   : > { %v4406_v42 = vmul.f32 %v2864_v62, %v13319_v60  ;;  %v4061_v52 = vand.u32 2147483647, %v4060_v3  ;;  %v13167_v61 = vxor.u32 2147483648, %v12556_v45  ;;  %v13323_v62 = vld [vmem:[#allocation35_spill] sm:$0xff]  ;;  %v2704_v36 = vxor.u32 2147483648, %v12445_v14  ;;  %v13327_v7 = vld [vmem:[#allocation22_spill] sm:$0xff] }
 0x80c   : > { %v3321_v21 = vsel %vm3319_vm5, %v12556_v45, %v13322_v35  ;;  %vm2703_vm14 = vcmp.eq.s32.totalorder %v13323_v62, 0  ;;  %7549 = vmatpush.bf16.msrb.mxu3 %v9373_v33  ;;  %7568 = vmatpush.bf16.msrb.mxu0 %v8737_v48  ;;  %v2689_v19 = vadd.f32 -0.4999988, %v2688_v26  ;;  %vm2702_vm12 = vcmp.lt.s32.totalorder %v13323_v62, 2  ;;  %v13325_v33 = vld [vmem:[#allocation15_spill] sm:$0xff] }
 0x80d   : > { %vm2706_vm4 = vcmp.eq.s32.totalorder %v13323_v62, 2  ;;  %v3149_v37 = vadd.f32 0.041655596, %v3148_v24  ;;  %v4064_v53 = vmul.f32 %v4063_v39, %v4061_v52  ;;  %v3324_v9 = vsel %vm3322_vm9, %v13167_v61, %v12462_v32  ;;  %v9558_v0 = vld [vmem:[#allocation9 + $0x1e4] sm:$0xf] }
 0x80e   : > { %vm4563_vm15 = vcmp.lt.s32.totalorder %v13324_v47, 2  ;;  %v3325_v20 = vsel %vm3318_vm6, %v3321_v21, %v3324_v9  ;;  %v2690_v18 = vmul.f32 %v2689_v19, %v13314_v5  ;;  %vm2700_vm0 = vweird.f32 %v13325_v33  ;;  %v8878_v3 = vld [vmem:[#allocation9 + $0x1f0] sm:$0xf0]  ;;  %v9356_v5 = vld [vmem:[#allocation9 + $0x5a0] sm:$0xf] }
 0x80f   : > { %v3150_v48 = vmul.f32 %v3149_v37, %v13320_v12  ;;  %vm3165_vm10 = vcmp.eq.s32.totalorder %v12563_v38, 0  ;;  %vm4564_vm3 = vcmp.eq.s32.totalorder %v13324_v47, 0  ;;  %v4065_v60 = vxor.u32 2147483648, %v4064_v53  ;;  %v9680_v24 = vld [vmem:[#allocation9 + $0x5ac] sm:$0xf0] }
 0x810   : > { %v3326_v39 = vsel %vm3316_vm7, nan, %v3325_v20  ;;  %vm4567_vm5 = vcmp.eq.s32.totalorder %v13324_v47, 2  ;;  %v12593_v26 = vand.u32 3, %v13326_v46  ;;  %v13328_v52 = vmin.f32 %v13327_v7, 100.0  ;;  %v9518_v9 = vld [vmem:[#allocation9 + $0xa4] sm:$0xf] }
 0x811   : > { %v2691_v21 = vadd.f32 1.0, %v2690_v18  ;;  %v3151_v19 = vadd.f32 -0.4999988, %v3150_v48  ;;  %vm3168_vm6 = vcmp.eq.s32.totalorder %v12563_v38, 2  ;;  %v9261_v37 = vor.u32 %v9656_v22, %v9260_v6  ;;  %v8718_v20 = vld [vmem:[#allocation9 + $0xb0] sm:$0xf0] }
 0x812   : > { %v4409_v35 = vmul.f32 %v3326_v39, %v13328_v52  ;;  %v4066_v61 = vsel %vm3945_vm8, %v4065_v60, %v4064_v53  ;;  %vm3164_vm9 = vcmp.lt.s32.totalorder %v12563_v38, 2  ;;  %vm5028_vm2 = vcmp.lt.s32.totalorder %v12593_v26, 2  ;;  %v9244_v22 = vld [vmem:[#allocation9 + $0x4c0] sm:$0xf]  ;;  %v9554_v52 = vld [vmem:[#allocation9 + $0x1c4] sm:$0xf] }
 0x813   : > { %vm5029_vm1 = vcmp.eq.s32.totalorder %v12593_v26, 0  ;;  %vm5032_vm13 = vcmp.eq.s32.totalorder %v12593_v26, 2  ;;  %v12607_v18 = vsel %vm12449_vm11, %v12172_v27, %v4066_v61  ;;  %v2705_v6 = vsel %vm2703_vm14, %v2691_v21, %v2704_v36  ;;  %7529 = vmatpush.bf16.msrb.mxu2 %v9261_v37  ;;  %v9652_v61 = vld [vmem:[#allocation9 + $0x4cc] sm:$0xf0]  ;;  %v9550_v62 = vld [vmem:[#allocation9 + $0x1a4] sm:$0xf] }
 0x814   : > { %v12609_v48 = vpack.c.bf16 %v4409_v35, %v4406_v42  ;;  %v2707_v53 = vxor.u32 2147483648, %v2691_v21  ;;  %v12615_v60 = vmul.f32 %v12607_v18, %v12607_v18  ;;  %v3152_v39 = vmul.f32 %v3151_v19, %v13320_v12  ;;  %v8862_v42 = vld [vmem:[#allocation9 + $0x1d0] sm:$0xf0]  ;;  %v9340_v12 = vld [vmem:[#allocation9 + $0x580] sm:$0xf] }
 0x815   : > { %v4566_v46 = vsel %vm4564_vm3, %v2691_v21, %v2704_v36  ;;  %v8881_v59 = vor.u32 %v9558_v0, %v8878_v3  ;;  %v9357_v15 = vor.u32 %v9680_v24, %v9356_v5  ;;  %v8721_v25 = vor.u32 %v9518_v9, %v8718_v20  ;;  %v9676_v19 = vld [vmem:[#allocation9 + $0x58c] sm:$0xf0]  ;;  %v13331_v5 = vld [vmem:[#allocation30_spill] sm:$0xff]  ;;  %v9228_v20 = vld [vmem:[#allocation9 + $0x4a0] sm:$0xf] }
 0x816   : > { %13329 = vst [vmem:[#allocation25_spill] sm:$0xff] %v12609_v48  ;;  %7480 = vmatmul.bf16.vlgmr.msra.gmra.mxu3 %v12609_v48  ;;  %v2708_v35 = vsel %vm2706_vm4, %v2707_v53, %v12445_v14  ;;  %v4569_v37 = vsel %vm4567_vm5, %v2707_v53, %v12445_v14  ;;  %v4079_v36 = vmul.f32 -0.00019511016, %v12615_v60  ;;  %v3153_v3 = vadd.f32 1.0, %v3152_v39  ;;  %v8702_v48 = vld [vmem:[#allocation9 + $0x90] sm:$0xf0] }
 0x817   : > { %v2709_v0 = vsel %vm2702_vm12, %v2705_v6, %v2708_v35  ;;  %v4570_v21 = vsel %vm4563_vm15, %v4566_v46, %v4569_v37  ;;  %7586 = vmatpush.bf16.msrb.mxu1 %v8881_v59  ;;  %v13330_v13 = vmin.f32 %v12371_v8, 100.0  ;;  %vm3162_vm8 = vweird.f32 %v13331_v5  ;;  %7550 = vmatpush.bf16.msrb.mxu3 %v9357_v15  ;;  %v9648_v53 = vld [vmem:[#allocation9 + $0x4ac] sm:$0xf0]  ;;  %v13336_v38 = vld [vmem:[#allocation21_spill] sm:$0xff] }
 0x818   : > { %7569 = vmatpush.bf16.msrb.mxu0 %v8721_v25  ;;  %v9245_v24 = vor.u32 %v9652_v61, %v9244_v22  ;;  %v8865_v9 = vor.u32 %v9554_v52, %v8862_v42  ;;  %v4080_v6 = vadd.f32 0.008332121, %v4079_v36  ;;  %v2710_v47 = vsel %vm2700_vm0, nan, %v2709_v0  ;;  %v13334_v0 = vld [vmem:[#allocation17_spill] sm:$0xff] }
 0x819   : > { %v4416_v14 = vmul.f32 %v12554_v56, %v13330_v13  ;;  %v13332_v39 = vxor.u32 2147483648, %v12476_v43  ;;  %v3169_v59 = vxor.u32 2147483648, %v3153_v3  ;;  %v8846_v56 = vld [vmem:[#allocation9 + $0x1b0] sm:$0xf0]  ;;  %v4571_v13 = vsel %vm2700_vm0, nan, %v4570_v21 }
 0x81a   : > { %7530 = vmatpush.bf16.msrb.mxu2 %v9245_v24  ;;  %v9341_v22 = vor.u32 %v9676_v19, %v9340_v12  ;;  %v8705_v61 = vor.u32 %v9514_v16, %v8702_v48  ;;  %v4081_v52 = vmul.f32 %v4080_v6, %v12615_v60  ;;  %v9229_v33 = vor.u32 %v9648_v53, %v9228_v20 }
 0x81b   : > { %v3167_v46 = vsel %vm3165_vm10, %v3153_v3, %v13332_v39  ;;  %v13333_v25 = vmov %v13332_v39  ;;  %v3170_v42 = vsel %vm3168_vm6, %v3169_v59, %v12476_v43  ;;  %v5034_v35 = vsel %vm5032_vm13, %v3169_v59, %v12476_v43  ;;  %7587 = vmatpush.bf16.msrb.mxu1 %v8865_v9  ;;  %v9324_v39 = vld [vmem:[#allocation9 + $0x560] sm:$0xf]  ;;  %v9510_v59 = vld [vmem:[#allocation9 + $0x64] sm:$0xf] }
 0x81c   : > { %v5031_v15 = vsel %vm5029_vm1, %v3153_v3, %v13333_v25  ;;  %v3171_v37 = vsel %vm3164_vm9, %v3167_v46, %v3170_v42  ;;  %7551 = vmatpush.bf16.msrb.mxu3 %v9341_v22  ;;  %7570 = vmatpush.bf16.msrb.mxu0 %v8705_v61  ;;  %v8849_v16 = vor.u32 %v9550_v62, %v8846_v56  ;;  %v3764_v48 = vmul.f32 -0.001358992, %v11995_v41  ;;  %v9672_v46 = vld [vmem:[#allocation9 + $0x56c] sm:$0xf0]  ;;  %v8686_v56 = vld [vmem:[#allocation9 + $0x70] sm:$0xf0] }
 0x81d   : > { %v5035_v36 = vsel %vm5028_vm2, %v5031_v15, %v5034_v35  ;;  %v4082_v12 = vadd.f32 -0.16666654, %v4081_v52  ;;  %v3172_v19 = vsel %vm3162_vm8, nan, %v3171_v37  ;;  %v13335_v3 = vmin.f32 %v13334_v0, 100.0  ;;  %v13340_v25 = vld [vmem:[#allocation47_spill] sm:$0xff] }
 0x81e   : > { %v5036_v21 = vsel %vm3162_vm8, nan, %v5035_v36  ;;  %v13337_v24 = vmin.f32 %v13336_v38, 100.0  ;;  %7531 = vmatpush.bf16.msrb.mxu2 %v9229_v33  ;;  %v3765_v6 = vadd.f32 0.041655596, %v3764_v48  ;;  %v13341_v5 = vmin.f32 %v12041_v57, 100.0  ;;  %v13344_v38 = vld [vmem:[#allocation51_spill] sm:$0xff] }
 0x81f   : > { %v4405_v43 = vmul.f32 %v2710_v47, %v13335_v3  ;;  %v13338_v26 = vmov %v13335_v3  ;;  %v12674_v47 = vmul.f32 %v12201_v17, %v13340_v25  ;;  %v4083_v22 = vmul.f32 %v4082_v12, %v12615_v60  ;;  %7588 = vmatpush.bf16.msrb.mxu1 %v8849_v16  ;;  %v9212_v61 = vld [vmem:[#allocation9 + $0x480] sm:$0xf]  ;;  %v9644_v52 = vld [vmem:[#allocation9 + $0x48c] sm:$0xf0]  ;;  %v9546_v42 = vld [vmem:[#allocation9 + $0x184] sm:$0xf] }
 0x820   : > { %v4408_v9 = vmul.f32 %v3172_v19, %v13337_v24  ;;  %v6277_v20 = vmul.f32 %v4571_v13, %v13338_v26  ;;  %v13339_v53 = vmov %v13337_v24  ;;  %v4413_v15 = vmul.f32 %v12273_v63, %v13341_v5  ;;  %v8830_v17 = vld [vmem:[#allocation9 + $0x190] sm:$0xf0]  ;;  %v9308_v36 = vld [vmem:[#allocation9 + $0x540] sm:$0xf]  ;;  %v9668_v48 = vld [vmem:[#allocation9 + $0x54c] sm:$0xf0] }
 0x821   : > { %v6280_v62 = vmul.f32 %v5036_v21, %v13339_v53  ;;  %v4226_v13 = vmul.f32 -0.001358992, %v12300_v51  ;;  %v3766_v37 = vmul.f32 %v3765_v6, %v11995_v41  ;;  %v12688_v63 = vmul.f32 %v12361_v23, %v12198_v4  ;;  %v9506_v0 = vld [vmem:[#allocation9 + $0x44] sm:$0xf]  ;;  %v8670_v3 = vld [vmem:[#allocation9 + $0x50] sm:$0xf0] }
 0x822   : > { %v12681_v35 = vpack.c.bf16 %v4408_v9, %v4405_v43  ;;  %v12692_v16 = vmul.f32 %v12413_v55, %v12294_v50  ;;  %v12694_v19 = vpack.c.bf16 %v4416_v14, %v4413_v15  ;;  %v4084_v43 = vadd.f32 1.0, %v4083_v22  ;;  %v13345_v50 = vld [vmem:[#allocation31_spill] sm:$0xff] }
 0x823   : > { %v12683_v33 = vpack.c.bf16 %v6280_v62, %v6277_v20  ;;  %v4227_v12 = vadd.f32 0.041655596, %v4226_v13  ;;  %v3767_v21 = vadd.f32 -0.4999988, %v3766_v37  ;;  %vm3780_vm2 = vcmp.lt.s32.totalorder %v13344_v38, 2 }
 0x824   : > { %13343 = vst [vmem:[#allocation26_spill] sm:$0xff] %v12694_v19  ;;  %7461 = vmatmul.bf16.vlgmr.msra.gmra.mxu2 %v12681_v35  ;;  %vm3781_vm11 = vcmp.eq.s32.totalorder %v13344_v38, 0  ;;  %v12701_v4 = vand.u32 3, %v12346_v30  ;;  %vm3778_vm1 = vweird.f32 %v13345_v50  ;;  %v13177_v23 = vxor.u32 2147483648, %v12674_v47  ;;  %7504 = vmatmul.bf16.gmra.mxu0 %v12694_v19  ;;  %v9196_v13 = vld [vmem:[#allocation9 + $0x460] sm:$0xf] }
 0x825   : > { %13342 = vst [vmem:[#allocation32_spill] sm:$0xff] %v12683_v33  ;;  %7518 = vmatmul.bf16.vlgmr.msra.gmra.mxu1 %v12683_v33  ;;  %v4228_v55 = vmul.f32 %v4227_v12, %v12300_v51  ;;  %v9325_v14 = vor.u32 %v9672_v46, %v9324_v39  ;;  %v8689_v24 = vor.u32 %v9510_v59, %v8686_v56  ;;  %vm3784_vm13 = vcmp.eq.s32.totalorder %v13344_v38, 2  ;;  %v9640_v37 = vld [vmem:[#allocation9 + $0x46c] sm:$0xf0]  ;;  %v8814_v12 = vld [vmem:[#allocation9 + $0x170] sm:$0xf0] }
 0x826   : > { %v3768_v9 = vmul.f32 %v3767_v21, %v11995_v41  ;;  %v9213_v26 = vor.u32 %v9644_v52, %v9212_v61  ;;  %v8833_v20 = vor.u32 %v9546_v42, %v8830_v17  ;;  %v9309_v62 = vor.u32 %v9668_v48, %v9308_v36  ;;  %v13346_v52 = vld [vmem:[#allocation55_spill] sm:$0xff]  ;;  %v9542_v48 = vld [vmem:[#allocation9 + $0x164] sm:$0xf]  ;;  %v9164_v36 = vld [vmem:[#allocation9 + $0x420] sm:$0xf] }
 0x827   : > { %v4229_v53 = vadd.f32 -0.4999988, %v4228_v55  ;;  %7552 = vmatpush.bf16.msrb.mxu3 %v9325_v14  ;;  %7571 = vmatpush.bf16.msrb.mxu0 %v8689_v24  ;;  %v8673_v6 = vor.u32 %v9506_v0, %v8670_v3  ;;  %v3610_v25 = vmul.f32 -0.001358992, %v12214_v34  ;;  %v12711_v5 = vmul.f32 %v4084_v43, %v12607_v18  ;;  %v13347_v55 = vld [vmem:[#allocation56_spill] sm:$0xff] }
 0x828   : > { %v12713_v15 = vadd.f32 1.0, %v3768_v9  ;;  %vm4240_vm14 = vweird.f32 %v11881_v44  ;;  %vm4242_vm12 = vcmp.lt.s32.totalorder %v12701_v4, 2  ;;  %v13179_v41 = vxor.u32 2147483648, %v12692_v16  ;;  %7532 = vmatpush.bf16.msrb.mxu2 %v9213_v26  ;;  %7589 = vmatpush.bf16.msrb.mxu1 %v8833_v20  ;;  %v9292_v14 = vld [vmem:[#allocation9 + $0x520] sm:$0xf]  ;;  %v13348_v20 = vld [vmem:[#allocation14_spill] sm:$0xff] }
 0x829   : > { %v4230_v39 = vmul.f32 %v4229_v53, %v12300_v51  ;;  %vm4243_vm4 = vcmp.eq.s32.totalorder %v12701_v4, 0  ;;  %v3611_v46 = vadd.f32 0.041655596, %v3610_v25  ;;  %v4072_v59 = vmul.f32 -0.001358992, %v12615_v60 }
 0x82a   : > { %v3783_v18 = vsel %vm3781_vm11, %v12713_v15, %v13177_v23  ;;  %v13176_v56 = vxor.u32 2147483648, %v12713_v15  ;;  %vm4246_vm15 = vcmp.eq.s32.totalorder %v12701_v4, 2  ;;  %v12729_v22 = vand.u32 3, %v12493_v58  ;;  %v9664_v24 = vld [vmem:[#allocation9 + $0x52c] sm:$0xf0]  ;;  %v13351_v4 = vld [vmem:[#allocation24_spill] sm:$0xff] }
 0x82b   : > { %v12731_v51 = vadd.f32 1.0, %v4230_v39  ;;  %7553 = vmatpush.bf16.msrb.mxu3 %v9309_v62  ;;  %7572 = vmatpush.bf16.msrb.mxu0 %v8673_v6  ;;  %v3612_v61 = vmul.f32 %v3611_v46, %v12214_v34  ;;  %vm3627_vm0 = vcmp.eq.s32.totalorder %v13346_v52, 0  ;;  %v4073_v42 = vadd.f32 0.041655596, %v4072_v59  ;;  %v9502_v9 = vld [vmem:[#allocation9 + $0x24] sm:$0xf] }
 0x82c   : > { %v3786_v17 = vsel %vm3784_vm13, %v13176_v56, %v12674_v47  ;;  %v3628_v58 = vxor.u32 2147483648, %v12688_v63  ;;  %vm3630_vm10 = vcmp.eq.s32.totalorder %v13346_v52, 2  ;;  %vm3626_vm3 = vcmp.lt.s32.totalorder %v13346_v52, 2  ;;  %v8654_v26 = vld [vmem:[#allocation9 + $0x30] sm:$0xf0] }
 0x82d   : > { %v3787_v0 = vsel %vm3780_vm2, %v3783_v18, %v3786_v17  ;;  %v4245_v3 = vsel %vm4243_vm4, %v12731_v51, %v13179_v41  ;;  %v13178_v43 = vxor.u32 2147483648, %v12731_v51  ;;  %v3613_v21 = vadd.f32 -0.4999988, %v3612_v61  ;;  %v9180_v6 = vld [vmem:[#allocation9 + $0x440] sm:$0xf]  ;;  %v13349_v17 = vld [vmem:[#allocation20_spill] sm:$0xff] }
 0x82e   : > { %vm5493_vm5 = vcmp.lt.s32.totalorder %v13347_v55, 2  ;;  %v3788_v38 = vsel %vm3778_vm1, nan, %v3787_v0  ;;  %vm3624_vm6 = vweird.f32 %v13348_v20  ;;  %v4074_v53 = vmul.f32 %v4073_v42, %v12615_v60  ;;  %v9636_v25 = vld [vmem:[#allocation9 + $0x44c] sm:$0xf0]  ;;  %v9538_v18 = vld [vmem:[#allocation9 + $0x144] sm:$0xf] }
 0x82f   : > { %vm4089_vm9 = vcmp.eq.s32.totalorder %v12729_v22, 0  ;;  %v12759_v62 = vand.u32 3, %v12506_v54  ;;  %v4248_v39 = vsel %vm4246_vm15, %v13178_v43, %v12692_v16  ;;  %v3614_v46 = vmul.f32 %v3613_v21, %v12214_v34  ;;  %v8798_v61 = vld [vmem:[#allocation9 + $0x150] sm:$0xf0]  ;;  %v9276_v42 = vld [vmem:[#allocation9 + $0x500] sm:$0xf] }
 0x830   : > { %vm4092_vm8 = vcmp.eq.s32.totalorder %v12729_v22, 2  ;;  %vm5494_vm2 = vcmp.eq.s32.totalorder %v13347_v55, 0  ;;  %v9197_v59 = vor.u32 %v9640_v37, %v9196_v13  ;;  %v4249_v54 = vsel %vm4242_vm12, %v4245_v3, %v4248_v39  ;;  %v9660_v34 = vld [vmem:[#allocation9 + $0x50c] sm:$0xf0]  ;;  %v9498_v37 = vld [vmem:[#allocation9 + $0x4] sm:$0xf] }
 0x831   : > { %v13350_v0 = vmin.f32 %v13349_v17, 100.0  ;;  %v4075_v23 = vadd.f32 -0.4999988, %v4074_v53  ;;  %vm4088_vm11 = vcmp.lt.s32.totalorder %v12729_v22, 2  ;;  %vm5497_vm13 = vcmp.eq.s32.totalorder %v13347_v55, 2 }
 0x832   : > { %v4250_v21 = vsel %vm4240_vm14, nan, %v4249_v54  ;;  %v3615_v43 = vadd.f32 1.0, %v3614_v46  ;;  %vm5959_vm4 = vcmp.eq.s32.totalorder %v12759_v62, 0  ;;  %7533 = vmatpush.bf16.msrb.mxu2 %v9197_v59  ;;  %v8817_v13 = vor.u32 %v9542_v48, %v8814_v12  ;;  %v8638_v41 = vld [vmem:[#allocation9 + $0x10] sm:$0xf0] }
 0x833   : > { %v4412_v56 = vmul.f32 %v3788_v38, %v13350_v0  ;;  %v13352_v3 = vmin.f32 %v13351_v4, 100.0  ;;  %v4076_v38 = vmul.f32 %v4075_v23, %v12615_v60  ;;  %v9293_v53 = vor.u32 %v9664_v24, %v9292_v14  ;;  %v9632_v19 = vld [vmem:[#allocation9 + $0x42c] sm:$0xf0]  ;;  %v9534_v14 = vld [vmem:[#allocation9 + $0x124] sm:$0xf] }
 0x834   : > { %v8657_v0 = vor.u32 %v9502_v9, %v8654_v26  ;;  %v3629_v33 = vsel %vm3627_vm0, %v3615_v43, %v3628_v58  ;;  %v3631_v54 = vxor.u32 2147483648, %v3615_v43  ;;  %v5496_v46 = vsel %vm5494_vm2, %v3615_v43, %v3628_v58  ;;  %7590 = vmatpush.bf16.msrb.mxu1 %v8817_v13  ;;  %v8782_v24 = vld [vmem:[#allocation9 + $0x130] sm:$0xf0]  ;;  %v9628_v13 = vld [vmem:[#allocation9 + $0x40c] sm:$0xf0] }
 0x835   : > { %v4415_v39 = vmul.f32 %v4250_v21, %v13352_v3  ;;  %v9181_v48 = vor.u32 %v9636_v25, %v9180_v6  ;;  %v4077_v59 = vadd.f32 1.0, %v4076_v38  ;;  %7554 = vmatpush.bf16.msrb.mxu3 %v9293_v53  ;;  %v8801_v60 = vor.u32 %v9538_v18, %v8798_v61  ;;  %v9134_v6 = vld [vmem:[#allocation9 + $0x3f0] sm:$0xf0]  ;;  %v9618_v20 = vld [vmem:[#allocation9 + $0x3c4] sm:$0xf] }
 0x836   : > { %7573 = vmatpush.bf16.msrb.mxu0 %v8657_v0  ;;  %v9277_v23 = vor.u32 %v9660_v34, %v9276_v42  ;;  %v3632_v9 = vsel %vm3630_vm10, %v3631_v54, %v12688_v63  ;;  %v5499_v26 = vsel %vm5497_vm13, %v3631_v54, %v12688_v63  ;;  %v8641_v58 = vor.u32 %v9498_v37, %v8638_v41  ;;  %v9654_v63 = vld [vmem:[#allocation9 + $0x4e4] sm:$0xf]  ;;  %v9262_v21 = vld [vmem:[#allocation9 + $0x4f0] sm:$0xf0] }
 0x837   : > { %v12785_v12 = vpack.c.bf16 %v4415_v39, %v4412_v56  ;;  %7534 = vmatpush.bf16.msrb.mxu2 %v9181_v48  ;;  %v9165_v43 = vor.u32 %v9632_v19, %v9164_v36  ;;  %v9622_v56 = vld [vmem:[#allocation9 + $0x3e4] sm:$0xf]  ;;  %v3633_v25 = vsel %vm3626_vm3, %v3629_v33, %v3632_v9  ;;  %v13353_v18 = vxor.u32 2147483648, %v12711_v5  ;;  %v9148_v36 = vld [vmem:[#allocation9 + $0x400] sm:$0xf]  ;;  %v13355_v0 = vld [vmem:[#allocation19_spill] sm:$0xff] }
 0x838   : > { %v4093_v42 = vxor.u32 2147483648, %v4077_v59  ;;  %v5500_v34 = vsel %vm5493_vm5, %v5496_v46, %v5499_v26  ;;  %v3634_v19 = vsel %vm3624_vm6, nan, %v3633_v25  ;;  %vm5962_vm12 = vcmp.eq.s32.totalorder %v12759_v62, 2  ;;  %7591 = vmatpush.bf16.msrb.mxu1 %v8801_v60  ;;  %v9530_v39 = vld [vmem:[#allocation9 + $0x104] sm:$0xf]  ;;  %v13357_v26 = vld [vmem:[#allocation23_spill] sm:$0xff] }
 0x839   : > { %7485 = vmatmul.bf16.gmra.mxu3 %v12785_v12  ;;  %v4091_v61 = vsel %vm4089_vm9, %v4077_v59, %v13353_v18  ;;  %v13354_v41 = vmov %v13353_v18  ;;  %v8785_v33 = vor.u32 %v9534_v14, %v8782_v24  ;;  %v5501_v37 = vsel %vm3624_vm6, nan, %v5500_v34  ;;  %v8766_v38 = vld [vmem:[#allocation9 + $0x110] sm:$0xf0]  ;;  %v9650_v60 = vld [vmem:[#allocation9 + $0x4c4] sm:$0xf] }
 0x83a   : > { %v5961_v52 = vsel %vm5959_vm4, %v4077_v59, %v13354_v41  ;;  %v4094_v55 = vsel %vm4092_vm8, %v4093_v42, %v12711_v5  ;;  %vm5958_vm15 = vcmp.lt.s32.totalorder %v12759_v62, 2  ;;  %v5964_v3 = vsel %vm5962_vm12, %v4093_v42, %v12711_v5  ;;  %7555 = vmatpush.bf16.msrb.mxu3 %v9277_v23  ;;  %7574 = vmatpush.bf16.msrb.mxu0 %v8641_v58  ;;  %v9118_v59 = vld [vmem:[#allocation9 + $0x3d0] sm:$0xf0]  ;;  %v9590_v9 = vld [vmem:[#allocation9 + $0x2e4] sm:$0xf]  ;;  %v13361_v41 = vld [vmem:[#allocation52_spill] sm:$0xff] }
 0x83b   : > { %vm4086_vm0 = vweird.f32 %v12172_v27  ;;  %v4095_v53 = vsel %vm4088_vm11, %v4091_v61, %v4094_v55  ;;  %v13356_v54 = vmin.f32 %v13355_v0, 100.0  ;;  %v5965_v48 = vsel %vm5958_vm15, %v5961_v52, %v5964_v3  ;;  %7535 = vmatpush.bf16.msrb.mxu2 %v9165_v43  ;;  %v9246_v24 = vld [vmem:[#allocation9 + $0x4d0] sm:$0xf0]  ;;  %v9686_v34 = vld [vmem:[#allocation9 + $0x5e4] sm:$0xf] }
 0x83c   : > { %v4096_v62 = vsel %vm4086_vm0, nan, %v4095_v53  ;;  %v5966_v14 = vsel %vm4086_vm0, nan, %v5965_v48  ;;  %v9137_v5 = vor.u32 %v9622_v56, %v9134_v6  ;;  %v9265_v23 = vor.u32 %v9654_v63, %v9262_v21  ;;  %7592 = vmatpush.bf16.msrb.mxu1 %v8785_v33  ;;  %v9006_v43 = vld [vmem:[#allocation9 + $0x2f0] sm:$0xf0]  ;;  %v9614_v21 = vld [vmem:[#allocation9 + $0x3a4] sm:$0xf] }
 0x83d   : > { %v4411_v46 = vmul.f32 %v3634_v19, %v13356_v54  ;;  %v13358_v27 = vmin.f32 %v13357_v26, 100.0  ;;  %v13359_v22 = vmov %v13356_v54  ;;  %v9149_v58 = vor.u32 %v9628_v13, %v9148_v36  ;;  %v9390_v19 = vld [vmem:[#allocation9 + $0x5f0] sm:$0xf0]  ;;  %7575 = vmatmul.bf16.vlgmr.msrb.gmra.mxu0 %v12681_v35  ;;  %v13362_v36 = vld [vmem:[#allocation41_spill] sm:$0xff] }
 0x83e   : > { %v6283_v18 = vmul.f32 %v5501_v37, %v13359_v22  ;;  %v5801_v52 = vadd.s32 3, %v13361_v41  ;;  %v12829_v56 = vand.u32 3, %v12408_v31  ;;  %7624 = vmatpush.bf16.msra.mxu3 %v9137_v5  ;;  %v8769_v6 = vor.u32 %v9530_v39, %v8766_v38  ;;  %7643 = vmatpush.bf16.msra.mxu0 %v9265_v23  ;;  %v9102_v3 = vld [vmem:[#allocation9 + $0x3b0] sm:$0xf0]  ;;  %v9646_v53 = vld [vmem:[#allocation9 + $0x4a4] sm:$0xf] }
 0x83f   : > { %v4414_v25 = vmul.f32 %v4096_v62, %v13358_v27  ;;  %v13360_v61 = vmov %v13358_v27  ;;  %v9121_v63 = vor.u32 %v9618_v20, %v9118_v59  ;;  %7536 = vmatpush.bf16.msrb.mxu2 %v9149_v58  ;;  %v9249_v33 = vor.u32 %v9650_v60, %v9246_v24  ;;  %v9230_v54 = vld [vmem:[#allocation9 + $0x4b0] sm:$0xf0]  ;;  %v9586_v48 = vld [vmem:[#allocation9 + $0x2c4] sm:$0xf]  ;;  %v13364_v38 = vld [vmem:[#allocation38_spill] sm:$0xff] }
 0x840   : > { %v6286_v42 = vmul.f32 %v5966_v14, %v13360_v61  ;;  %v5182_v13 = vand.u32 3, %v13362_v36  ;;  %v9009_v0 = vor.u32 %v9590_v9, %v9006_v43  ;;  %v9393_v31 = vor.u32 %v9686_v34, %v9390_v19  ;;  %v8990_v62 = vld [vmem:[#allocation9 + $0x2d0] sm:$0xf0]  ;;  %v13366_v59 = vld [vmem:[#allocation48_spill] sm:$0xff]  ;;  %v13367_v5 = vld [vmem:[#allocation49_spill] sm:$0xff]  ;;  %7593 = vmatpush.bf16.msrb.mxu1 %v8769_v6 }
 0x841   : > { %v12832_v55 = vpack.c.bf16 %v4414_v25, %v4411_v46  ;;  %v13363_v39 = vmin.f32 %v13302_v10, 100.0  ;;  %v13365_v46 = vmin.f32 %v13308_v1, 100.0  ;;  %v12844_v23 = vadd.s32 3, %v13367_v5  ;;  %v9682_v60 = vld [vmem:[#allocation9 + $0x5c4] sm:$0xf] }
 0x842   : > { %v12834_v37 = vpack.c.bf16 %v6286_v42, %v6283_v18  ;;  %vm5184_vm10 = vcmp.eq.s32.totalorder %v5182_v13, 0  ;;  %v9374_v24 = vld [vmem:[#allocation9 + $0x5d0] sm:$0xf0]  ;;  %v12848_v9 = vand.u32 3, %v5801_v52  ;;  %vm6269_vm3 = vcmp.eq.s32.totalorder %v12829_v56, 0  ;;  %7625 = vmatpush.bf16.msra.mxu3 %v9121_v63  ;;  %7644 = vmatpush.bf16.msra.mxu0 %v9249_v33  ;;  %v13369_v22 = vld [vmem:[#allocation29_spill] sm:$0xff] }
 0x843   : > { %v6279_v20 = vmul.f32 %v13364_v38, %v13363_v39  ;;  %v6282_v14 = vmul.f32 %v13366_v59, %v13365_v46  ;;  %7466 = vmatmul.bf16.gmra.mxu2 %v12832_v55  ;;  %v13368_v10 = vxor.u32 2147483648, %v12462_v32  ;;  %v9105_v26 = vor.u32 %v9614_v21, %v9102_v3  ;;  %v9610_v27 = vld [vmem:[#allocation9 + $0x384] sm:$0xf]  ;;  %v9086_v25 = vld [vmem:[#allocation9 + $0x390] sm:$0xf0] }
 0x844   : > { %7523 = vmatmul.bf16.gmra.mxu1 %v12834_v37  ;;  %vm4719_vm5 = vcmp.eq.s32.totalorder %v13369_v22, 0  ;;  %vm5187_vm6 = vcmp.eq.s32.totalorder %v5182_v13, 2  ;;  %7605 = vmatpush.bf16.msra.mxu2 %v9009_v0  ;;  %v9233_v18 = vor.u32 %v9646_v53, %v9230_v54  ;;  %v8993_v61 = vor.u32 %v9586_v48, %v8990_v62  ;;  %v9642_v42 = vld [vmem:[#allocation9 + $0x484] sm:$0xf]  ;;  %v9214_v58 = vld [vmem:[#allocation9 + $0x490] sm:$0xf0] }
 0x845   : > { %v5186_v1 = vsel %vm5184_vm10, %v12556_v45, %v13368_v10  ;;  %v13370_v43 = vxor.u32 2147483648, %v12436_v49  ;;  %vm5183_vm9 = vcmp.lt.s32.totalorder %v5182_v13, 2  ;;  %v13371_v19 = vxor.u32 2147483648, %v12556_v45  ;;  %7662 = vmatpush.bf16.msra.mxu1 %v9393_v31  ;;  %v9582_v6 = vld [vmem:[#allocation9 + $0x2a4] sm:$0xf] }
 0x846   : > { %v9377_v52 = vor.u32 %v9682_v60, %v9374_v24  ;;  %v8974_v63 = vld [vmem:[#allocation9 + $0x2b0] sm:$0xf0]  ;;  %v6111_v21 = vadd.s32 3, %v12346_v30  ;;  %v13372_v33 = vxor.u32 2147483648, %v12488_v29  ;;  %vm4722_vm8 = vcmp.eq.s32.totalorder %v13369_v22, 2  ;;  %7626 = vmatpush.bf16.msra.mxu3 %v9105_v26  ;;  %7645 = vmatpush.bf16.msra.mxu0 %v9233_v18  ;;  %v13375_v10 = vld [vmem:[#allocation53_spill] sm:$0xff] }
 0x847   : > { %v4721_v34 = vsel %vm4719_vm5, %v12495_v40, %v13370_v43  ;;  %v5189_v41 = vsel %vm5187_vm6, %v13371_v19, %v12462_v32  ;;  %v9678_v13 = vld [vmem:[#allocation9 + $0x5a4] sm:$0xf]  ;;  %v9358_v53 = vld [vmem:[#allocation9 + $0x5b0] sm:$0xf0]  ;;  %v12868_v0 = vpack.c.bf16 %v6282_v14, %v6279_v20  ;;  %vm4718_vm2 = vcmp.lt.s32.totalorder %v13369_v22, 2  ;;  %v13377_v26 = vld [vmem:[#allocation54_spill] sm:$0xff] }
 0x848   : > { %v6271_v36 = vsel %vm6269_vm3, %v12483_v2, %v13372_v33  ;;  %v5190_v3 = vsel %vm5183_vm9, %v5186_v1, %v5189_v41  ;;  %v13373_v32 = vxor.u32 2147483648, %v12495_v40  ;;  %v9089_v30 = vor.u32 %v9610_v27, %v9086_v25  ;;  %v9606_v31 = vld [vmem:[#allocation9 + $0x364] sm:$0xf]  ;;  %7606 = vmatpush.bf16.msra.mxu2 %v8993_v61  ;;  %v9070_v39 = vld [vmem:[#allocation9 + $0x370] sm:$0xf0] }
 0x849   : > { %v9217_v48 = vor.u32 %v9642_v42, %v9214_v58  ;;  %v8977_v62 = vor.u32 %v9582_v6, %v8974_v63  ;;  %v9638_v38 = vld [vmem:[#allocation9 + $0x464] sm:$0xf]  ;;  %v9198_v46 = vld [vmem:[#allocation9 + $0x470] sm:$0xf0]  ;;  %vm6272_vm11 = vcmp.eq.s32.totalorder %v12829_v56, 2  ;;  %7556 = vmatmul.bf16.vlgmr.msrb.gmra.mxu3 %v12868_v0  ;;  %v5191_v20 = vsel %vm3316_vm7, nan, %v5190_v3  ;;  %7663 = vmatpush.bf16.msra.mxu1 %v9377_v52 }
 0x84a   : > { %v4724_v45 = vsel %vm4722_vm8, %v13373_v32, %v12436_v49  ;;  %v9361_v49 = vor.u32 %v9678_v13, %v9358_v53  ;;  %v9578_v40 = vld [vmem:[#allocation9 + $0x284] sm:$0xf]  ;;  %v8958_v59 = vld [vmem:[#allocation9 + $0x290] sm:$0xf0]  ;;  %vm5804_vm13 = vcmp.eq.s32.totalorder %v12848_v9, 0  ;;  %vm6268_vm4 = vcmp.lt.s32.totalorder %v12829_v56, 2  ;;  %7627 = vmatpush.bf16.msra.mxu3 %v9089_v30 }
 0x84b   : > { %v4725_v54 = vsel %vm4718_vm2, %v4721_v34, %v4724_v45  ;;  %v13374_v14 = vxor.u32 2147483648, %v12483_v2  ;;  %v9674_v60 = vld [vmem:[#allocation9 + $0x584] sm:$0xf]  ;;  %v9342_v24 = vld [vmem:[#allocation9 + $0x590] sm:$0xf0]  ;;  %v13376_v1 = vxor.u32 2147483648, %v13375_v10  ;;  %vm13378_vm7 = vweird.f32 %v13315_v28  ;;  %7646 = vmatpush.bf16.msra.mxu0 %v9217_v48 }
 0x84c   : > { %v4726_v25 = vsel %vm13378_vm7, nan, %v4725_v54  ;;  %v9073_v22 = vor.u32 %v9606_v31, %v9070_v39  ;;  %v9602_v18 = vld [vmem:[#allocation9 + $0x344] sm:$0xf]  ;;  %v13379_v61 = vmin.f32 %v13327_v7, 100.0  ;;  %7607 = vmatpush.bf16.msra.mxu2 %v8977_v62  ;;  %v9201_v2 = vor.u32 %v9638_v38, %v9198_v46  ;;  %v9054_v42 = vld [vmem:[#allocation9 + $0x350] sm:$0xf0] }
 0x84d   : > { %v6274_v5 = vsel %vm6272_vm11, %v13374_v14, %v12488_v29  ;;  %v5806_v27 = vsel %vm5804_vm13, %v13377_v26, %v13376_v1  ;;  %v8961_v29 = vor.u32 %v9578_v40, %v8958_v59  ;;  %v9634_v58 = vld [vmem:[#allocation9 + $0x444] sm:$0xf]  ;;  %v9182_v43 = vld [vmem:[#allocation9 + $0x450] sm:$0xf0]  ;;  %vm5807_vm12 = vcmp.eq.s32.totalorder %v12848_v9, 2  ;;  %7664 = vmatpush.bf16.msra.mxu1 %v9361_v49  ;;  %v13381_v63 = vld [vmem:[#allocation18_spill] sm:$0xff]  ;;  %7580 = vmatmul.bf16.gmra.mxu0 %v12832_v55 }
 0x84e   : > { %v6275_v11 = vsel %vm6268_vm4, %v6271_v36, %v6274_v5  ;;  %v6281_v56 = vmul.f32 %v5191_v20, %v13379_v61  ;;  %v9345_v34 = vor.u32 %v9674_v60, %v9342_v24  ;;  %v6112_v19 = vand.u32 3, %v6111_v21  ;;  %v9574_v28 = vld [vmem:[#allocation9 + $0x264] sm:$0xf]  ;;  %v8942_v41 = vld [vmem:[#allocation9 + $0x270] sm:$0xf0]  ;;  %v13383_v32 = vld [vmem:[#allocation50_spill] sm:$0xff]  ;;  %7628 = vmatpush.bf16.msra.mxu3 %v9073_v22 }
 0x84f   : > { %v12892_v52 = vand.u32 3, %v12844_v23  ;;  %vm5803_vm15 = vcmp.lt.s32.totalorder %v12848_v9, 2  ;;  %v13380_v7 = vxor.u32 2147483648, %v13377_v26  ;;  %v13382_v33 = vmin.f32 %v13381_v63, 100.0  ;;  %v9670_v3 = vld [vmem:[#allocation9 + $0x564] sm:$0xf]  ;;  %7647 = vmatpush.bf16.msra.mxu0 %v9201_v2 }
 0x850   : > { %v9326_v13 = vld [vmem:[#allocation9 + $0x570] sm:$0xf0]  ;;  %vm13384_vm0 = vweird.f32 %v13383_v32  ;;  %v9057_v23 = vor.u32 %v9602_v18, %v9054_v42  ;;  %v9598_v45 = vld [vmem:[#allocation9 + $0x324] sm:$0xf]  ;;  %7608 = vmatpush.bf16.msra.mxu2 %v8961_v29  ;;  %v9185_v9 = vor.u32 %v9634_v58, %v9182_v43  ;;  %v8945_v31 = vor.u32 %v9574_v28, %v8942_v41  ;;  %v8884_v28 = vld [vmem:[#allocation9 + $0x1e8] sm:$0xf] }
 0x851   : > { %v5809_v6 = vsel %vm5807_vm12, %v13380_v7, %v13375_v10  ;;  %v6278_v36 = vmul.f32 %v4726_v25, %v13382_v33  ;;  %v6276_v21 = vsel %vm13384_vm0, nan, %v6275_v11  ;;  %v9038_v54 = vld [vmem:[#allocation9 + $0x330] sm:$0xf0]  ;;  %v9630_v48 = vld [vmem:[#allocation9 + $0x424] sm:$0xf]  ;;  %7665 = vmatpush.bf16.msra.mxu1 %v9345_v34  ;;  %vm6114_vm10 = vcmp.eq.s32.totalorder %v6112_v19, 0 }
 0x852   : > { %v5810_v53 = vsel %vm5803_vm15, %v5806_v27, %v5809_v6  ;;  %v9166_v62 = vld [vmem:[#allocation9 + $0x430] sm:$0xf0]  ;;  %v9329_v39 = vor.u32 %v9670_v3, %v9326_v13  ;;  %v9570_v38 = vld [vmem:[#allocation9 + $0x244] sm:$0xf]  ;;  %v13387_v40 = vmin.f32 %v12371_v8, 100.0  ;;  %vm5649_vm5 = vcmp.eq.s32.totalorder %v12892_v52, 0  ;;  %7629 = vmatpush.bf16.msra.mxu3 %v9057_v23 }
 0x853   : > { %v12903_v30 = vpack.c.bf16 %v6281_v56, %v6278_v36  ;;  %v8926_v46 = vld [vmem:[#allocation9 + $0x250] sm:$0xf0]  ;;  %v13388_v14 = vld [vmem:[#allocation25_spill] sm:$0xff]  ;;  %v13389_v5 = vxor.u32 2147483648, %v12692_v16  ;;  %vm5652_vm6 = vcmp.eq.s32.totalorder %v12892_v52, 2  ;;  %vm6113_vm9 = vcmp.lt.s32.totalorder %v6112_v19, 2  ;;  %7648 = vmatpush.bf16.msra.mxu0 %v9185_v9 }
 0x854   : > { %v13385_v20 = vld [vmem:[#allocation39_spill] sm:$0xff]  ;;  %v6288_v59 = vmul.f32 %v6276_v21, %v13387_v40  ;;  %7594 = vmatmul.bf16.vlgmr.msrb.gmra.mxu1 %v13388_v14  ;;  %v9666_v24 = vld [vmem:[#allocation9 + $0x544] sm:$0xf]  ;;  %vm6117_vm8 = vcmp.eq.s32.totalorder %v6112_v19, 2  ;;  %v9041_v1 = vor.u32 %v9598_v45, %v9038_v54  ;;  %v13390_v26 = vxor.u32 2147483648, %v12731_v51  ;;  %7609 = vmatpush.bf16.msra.mxu2 %v8945_v31 }
 0x855   : > { %vm13386_vm3 = vweird.f32 %v13385_v20  ;;  %7537 = vmatmul.bf16.vlgmr.msrb.gmra.mxu2 %v12903_v30  ;;  %v6116_v60 = vsel %vm6114_vm10, %v12731_v51, %v13389_v5  ;;  %v9310_v10 = vld [vmem:[#allocation9 + $0x550] sm:$0xf0]  ;;  %v9594_v8 = vld [vmem:[#allocation9 + $0x304] sm:$0xf]  ;;  %v9169_v11 = vor.u32 %v9630_v48, %v9166_v62  ;;  %v8929_v25 = vor.u32 %v9570_v38, %v8926_v46  ;;  %7666 = vmatpush.bf16.msra.mxu1 %v9329_v39  ;;  %v9561_v41 = vld [vmem:[#allocation9 + $0x1f4] sm:$0xf0] }
 0x856   : > { %v5811_v49 = vsel %vm13386_vm3, nan, %v5810_v53  ;;  %v6119_v27 = vsel %vm6117_vm8, %v13390_v26, %v12692_v16  ;;  %v9022_v22 = vld [vmem:[#allocation9 + $0x310] sm:$0xf0]  ;;  %v9626_v18 = vld [vmem:[#allocation9 + $0x404] sm:$0xf]  ;;  %v13391_v56 = vmin.f32 %v12041_v57, 100.0  ;;  %v9313_v43 = vor.u32 %v9666_v24, %v9310_v10  ;;  %7630 = vmatpush.bf16.msra.mxu3 %v9041_v1 }
 0x857   : > { %v9150_v61 = vld [vmem:[#allocation9 + $0x410] sm:$0xf0]  ;;  %v13392_v29 = vxor.u32 2147483648, %v12674_v47  ;;  %v6120_v58 = vsel %vm6113_vm9, %v6116_v60, %v6119_v27  ;;  %v9566_v51 = vld [vmem:[#allocation9 + $0x224] sm:$0xf]  ;;  %vm5648_vm2 = vcmp.lt.s32.totalorder %v12892_v52, 2  ;;  %v9025_v63 = vor.u32 %v9594_v8, %v9022_v22  ;;  %7649 = vmatpush.bf16.msra.mxu0 %v9169_v11 }
 0x858   : > { %v6285_v2 = vmul.f32 %v5811_v49, %v13391_v56  ;;  %v8910_v16 = vld [vmem:[#allocation9 + $0x230] sm:$0xf0]  ;;  %v9662_v34 = vld [vmem:[#allocation9 + $0x524] sm:$0xf]  ;;  %v13393_v57 = vxor.u32 2147483648, %v12713_v15  ;;  %v6121_v13 = vsel %vm4240_vm14, nan, %v6120_v58  ;;  %7610 = vmatpush.bf16.msra.mxu2 %v8929_v25  ;;  %v9153_v53 = vor.u32 %v9626_v18, %v9150_v61 }
 0x859   : > { %v5651_v42 = vsel %vm5649_vm5, %v12713_v15, %v13392_v29  ;;  %v9294_v19 = vld [vmem:[#allocation9 + $0x530] sm:$0xf0]  ;;  %v9012_v33 = vld [vmem:[#allocation9 + $0x2e8] sm:$0xf]  ;;  %v9593_v36 = vld [vmem:[#allocation9 + $0x2f4] sm:$0xf0]  ;;  %v8913_v32 = vor.u32 %v9566_v51, %v8910_v16  ;;  %7667 = vmatpush.bf16.msra.mxu1 %v9313_v43  ;;  %v8885_v15 = vor.u32 %v9561_v41, %v8884_v28 }
 0x85a   : > { %v12926_v7 = vpack.c.bf16 %v6288_v59, %v6285_v2  ;;  %v5654_v6 = vsel %vm5652_vm6, %v13393_v57, %v12674_v47  ;;  %v9297_v21 = vor.u32 %v9662_v34, %v9294_v19  ;;  %v9562_v23 = vld [vmem:[#allocation9 + $0x204] sm:$0xf]  ;;  %v8894_v52 = vld [vmem:[#allocation9 + $0x210] sm:$0xf0]  ;;  %v9013_v45 = vor.u32 %v9593_v36, %v9012_v33  ;;  %v8868_v31 = vld [vmem:[#allocation9 + $0x1c8] sm:$0xf]  ;;  %7631 = vmatpush.bf16.msra.mxu3 %v9025_v63 }
 0x85b   : > { %v5655_v3 = vsel %vm5648_vm2, %v5651_v42, %v5654_v6  ;;  %v9658_v47 = vld [vmem:[#allocation9 + $0x504] sm:$0xf]  ;;  %v9278_v9 = vld [vmem:[#allocation9 + $0x510] sm:$0xf0]  ;;  %v9557_v54 = vld [vmem:[#allocation9 + $0x1d4] sm:$0xf0]  ;;  %7650 = vmatpush.bf16.msra.mxu0 %v9153_v53  ;;  %v8897_v38 = vor.u32 %v9562_v23, %v8894_v52 }
 0x85c   : > { %7561 = vmatmul.bf16.gmra.mxu3 %v12926_v7  ;;  %v5656_v44 = vsel %vm3778_vm1, nan, %v5655_v3  ;;  %v8996_v48 = vld [vmem:[#allocation9 + $0x2c8] sm:$0xf]  ;;  %v13394_v62 = vmin.f32 %v13351_v4, 100.0  ;;  %7611 = vmatpush.bf16.msra.mxu2 %v8913_v32  ;;  %v9589_v46 = vld [vmem:[#allocation9 + $0x2d4] sm:$0xf0]  ;;  %v9281_v40 = vor.u32 %v9658_v47, %v9278_v9  ;;  %v8869_v59 = vor.u32 %v9557_v54, %v8868_v31 }
 0x85d   : > { %v8756_v20 = vld [vmem:[#allocation9 + $0xe8] sm:$0xf]  ;;  %v9529_v49 = vld [vmem:[#allocation9 + $0xf4] sm:$0xf0]  ;;  %7668 = vmatpush.bf16.msra.mxu1 %v9297_v21  ;;  %v13395_v50 = vmin.f32 %v13349_v17, 100.0  ;;  %v8997_v4 = vor.u32 %v9589_v46, %v8996_v48  ;;  %vm7987_vm1 = vcmask 1045504  }
 0x85e   : > { %v6287_v39 = vmul.f32 %v6121_v13, %v13394_v62  ;;  %7700 = vmatpush.bf16.msrb.mxu3 %v8885_v15  ;;  %v9140_v5 = vld [vmem:[#allocation9 + $0x3e8] sm:$0xf]  ;;  %v9625_v60 = vld [vmem:[#allocation9 + $0x3f4] sm:$0xf0]  ;;  %7651 = vmatmul.bf16.vlgmr.msra.gmra.mxu0 %v12903_v30  ;;  %v8757_v8 = vor.u32 %v9529_v49, %v8756_v20  ;;  %vm8003_vm14 = vcmask 1046528  }
 0x85f   : > { %v6284_v24 = vmul.f32 %v5656_v44, %v13395_v50  ;;  %7719 = vmatpush.bf16.msrb.mxu0 %v9013_v45  ;;  %v8852_v10 = vld [vmem:[#allocation9 + $0x1a8] sm:$0xf]  ;;  %v9553_v1 = vld [vmem:[#allocation9 + $0x1b4] sm:$0xf0]  ;;  %v9141_v11 = vor.u32 %v9625_v60, %v9140_v5 }
 0x860   : > { %v8980_v26 = vld [vmem:[#allocation9 + $0x2a8] sm:$0xf]  ;;  %7612 = vmatpush.bf16.msra.mxu2 %v8897_v38  ;;  %v9585_v25 = vld [vmem:[#allocation9 + $0x2b4] sm:$0xf0]  ;;  %v8853_v61 = vor.u32 %v9553_v1, %v8852_v10 }
 0x861   : > { %v12944_v27 = vpack.c.bf16 %v6287_v39, %v6284_v24  ;;  %v8740_v22 = vld [vmem:[#allocation9 + $0xc8] sm:$0xf]  ;;  %v9525_v18 = vld [vmem:[#allocation9 + $0xd4] sm:$0xf0]  ;;  %7669 = vmatpush.bf16.msra.mxu1 %v9281_v40  ;;  %v8981_v2 = vor.u32 %v9585_v25, %v8980_v26 }
 0x862   : > { %7701 = vmatpush.bf16.msrb.mxu3 %v8869_v59  ;;  %v9124_v17 = vld [vmem:[#allocation9 + $0x3c8] sm:$0xf]  ;;  %v9621_v56 = vld [vmem:[#allocation9 + $0x3d4] sm:$0xf0]  ;;  %v8741_v29 = vor.u32 %v9525_v18, %v8740_v22 }
 0x863   : > { %7720 = vmatpush.bf16.msrb.mxu0 %v8997_v4  ;;  %v8836_v42 = vld [vmem:[#allocation9 + $0x188] sm:$0xf]  ;;  %v9549_v58 = vld [vmem:[#allocation9 + $0x194] sm:$0xf0]  ;;  %v9125_v51 = vor.u32 %v9621_v56, %v9124_v17 }
 0x864   : > { %7599 = vmatmul.bf16.gmra.mxu1 %v12785_v12  ;;  %7681 = vmatpush.bf16.msrb.mxu2 %v8757_v8  ;;  %v8964_v43 = vld [vmem:[#allocation9 + $0x288] sm:$0xf]  ;;  %v9581_v16 = vld [vmem:[#allocation9 + $0x294] sm:$0xf0]  ;;  %v8837_v57 = vor.u32 %v9549_v58, %v8836_v42 }
 0x865   : > { %7542 = vmatmul.bf16.gmra.mxu2 %v12944_v27  ;;  %7738 = vmatpush.bf16.msrb.mxu1 %v9141_v11  ;;  %v8724_v34 = vld [vmem:[#allocation9 + $0xa8] sm:$0xf]  ;;  %v9521_v19 = vld [vmem:[#allocation9 + $0xb4] sm:$0xf0]  ;;  %v8965_v6 = vor.u32 %v9581_v16, %v8964_v43  ;;  %v13397_v11 = vld [vmem:[#allocation27_spill] sm:$0xff] }
 0x866   : > { %7702 = vmatpush.bf16.msrb.mxu3 %v8853_v61  ;;  %v9108_v28 = vld [vmem:[#allocation9 + $0x3a8] sm:$0xf]  ;;  %v9617_v41 = vld [vmem:[#allocation9 + $0x3b4] sm:$0xf0]  ;;  %v8725_v63 = vor.u32 %v9521_v19, %v8724_v34  ;;  %v9527_v19 = vld [vmem:[#allocation9 + $0xec] sm:$0xf] }
 0x867   : > { %7721 = vmatpush.bf16.msrb.mxu0 %v8981_v2  ;;  %v8820_v33 = vld [vmem:[#allocation9 + $0x168] sm:$0xf]  ;;  %v9545_v36 = vld [vmem:[#allocation9 + $0x174] sm:$0xf0]  ;;  %v9109_v3 = vor.u32 %v9617_v41, %v9108_v28  ;;  %v8758_v28 = vld [vmem:[#allocation9 + $0xf8] sm:$0xf0] }
 0x868   : > { %7682 = vmatpush.bf16.msrb.mxu2 %v8741_v29  ;;  %v8948_v13 = vld [vmem:[#allocation9 + $0x268] sm:$0xf]  ;;  %v9517_v32 = vld [vmem:[#allocation9 + $0x94] sm:$0xf0]  ;;  %v8821_v47 = vor.u32 %v9545_v36, %v8820_v33 }
 0x869   : > { %7739 = vmatpush.bf16.msrb.mxu1 %v9125_v51  ;;  %v8708_v53 = vld [vmem:[#allocation9 + $0x88] sm:$0xf]  ;;  %v13396_v21 = vld [vmem:[#allocation32_spill] sm:$0xff] }
 0x86a   : > { %v9577_v15 = vld [vmem:[#allocation9 + $0x274] sm:$0xf0]  ;;  %v9092_v23 = vld [vmem:[#allocation9 + $0x388] sm:$0xf]  ;;  %7703 = vmatpush.bf16.msrb.mxu3 %v8837_v57  ;;  %v8709_v45 = vor.u32 %v9517_v32, %v8708_v53  ;;  %v8761_v32 = vor.u32 %v9527_v19, %v8758_v28  ;;  %v8694_v19 = vld [vmem:[#allocation9 + $0x78] sm:$0xf0] }
 0x86b   : > { %v9613_v52 = vld [vmem:[#allocation9 + $0x394] sm:$0xf0]  ;;  %7722 = vmatpush.bf16.msrb.mxu0 %v8965_v6  ;;  %v8804_v9 = vld [vmem:[#allocation9 + $0x148] sm:$0xf]  ;;  %v8949_v54 = vor.u32 %v9577_v15, %v8948_v13 }
 0x86c   : > { %7632 = vmatmul.bf16.vlgmr.msra.gmra.mxu3 %v13396_v21  ;;  %7683 = vmatpush.bf16.msrb.mxu2 %v8725_v63  ;;  %v9541_v31 = vld [vmem:[#allocation9 + $0x154] sm:$0xf0]  ;;  %v9093_v44 = vor.u32 %v9613_v52, %v9092_v23  ;;  %v8932_v48 = vld [vmem:[#allocation9 + $0x248] sm:$0xf] }
 0x86d   : > { %7740 = vmatpush.bf16.msrb.mxu1 %v9109_v3  ;;  %v8692_v62 = vld [vmem:[#allocation9 + $0x68] sm:$0xf]  ;;  %v9513_v39 = vld [vmem:[#allocation9 + $0x74] sm:$0xf0]  ;;  %v8805_v49 = vor.u32 %v9541_v31, %v8804_v9  ;;  %v8742_v9 = vld [vmem:[#allocation9 + $0xd8] sm:$0xf0] }
 0x86e   : > { %v9573_v38 = vld [vmem:[#allocation9 + $0x254] sm:$0xf0]  ;;  %v9076_v46 = vld [vmem:[#allocation9 + $0x368] sm:$0xf]  ;;  %7704 = vmatpush.bf16.msrb.mxu3 %v8821_v47  ;;  %7656 = vmatmul.bf16.gmra.mxu0 %v12944_v27  ;;  %v8693_v40 = vor.u32 %v9513_v39, %v8692_v62  ;;  %v8886_v62 = vld [vmem:[#allocation9 + $0x1f8] sm:$0xf0] }
 0x86f   : > { %v9609_v20 = vld [vmem:[#allocation9 + $0x374] sm:$0xf0]  ;;  %v8788_v59 = vld [vmem:[#allocation9 + $0x128] sm:$0xf]  ;;  %7723 = vmatpush.bf16.msrb.mxu0 %v8949_v54  ;;  %v8933_v60 = vor.u32 %v9573_v38, %v8932_v48  ;;  %v9559_v48 = vld [vmem:[#allocation9 + $0x1ec] sm:$0xf] }
 0x870   : > { %7684 = vmatpush.bf16.msrb.mxu2 %v8709_v45  ;;  %v9537_v5 = vld [vmem:[#allocation9 + $0x134] sm:$0xf0]  ;;  %v9077_v50 = vor.u32 %v9609_v20, %v9076_v46  ;;  %v8916_v24 = vld [vmem:[#allocation9 + $0x228] sm:$0xf]  ;;  %v9523_v45 = vld [vmem:[#allocation9 + $0xcc] sm:$0xf] }
 0x871   : > { %7741 = vmatpush.bf16.msrb.mxu1 %v9093_v44  ;;  %v8676_v10 = vld [vmem:[#allocation9 + $0x48] sm:$0xf]  ;;  %v9509_v1 = vld [vmem:[#allocation9 + $0x54] sm:$0xf0]  ;;  %v8789_v25 = vor.u32 %v9537_v5, %v8788_v59  ;;  %v8745_v38 = vor.u32 %v9523_v45, %v8742_v9  ;;  %v9519_v59 = vld [vmem:[#allocation9 + $0xac] sm:$0xf] }
 0x872   : > { %v9569_v4 = vld [vmem:[#allocation9 + $0x234] sm:$0xf0]  ;;  %v9060_v8 = vld [vmem:[#allocation9 + $0x348] sm:$0xf]  ;;  %7705 = vmatpush.bf16.msrb.mxu3 %v8805_v49  ;;  %v8677_v22 = vor.u32 %v9509_v1, %v8676_v10  ;;  %v8726_v5 = vld [vmem:[#allocation9 + $0xb8] sm:$0xf0] }
 0x873   : > { %v9605_v26 = vld [vmem:[#allocation9 + $0x354] sm:$0xf0]  ;;  %v8772_v18 = vld [vmem:[#allocation9 + $0x108] sm:$0xf]  ;;  %7724 = vmatpush.bf16.msrb.mxu0 %v8933_v60  ;;  %v8917_v56 = vor.u32 %v9569_v4, %v8916_v24  ;;  %v8889_v60 = vor.u32 %v9559_v48, %v8886_v62  ;;  %v9555_v24 = vld [vmem:[#allocation9 + $0x1cc] sm:$0xf]  ;;  %v8729_v4 = vor.u32 %v9519_v59, %v8726_v5 }
 0x874   : > { %7670 = vmatmul.bf16.vlgmr.msra.gmra.mxu1 %v12868_v0  ;;  %7685 = vmatpush.bf16.msrb.mxu2 %v8693_v40  ;;  %v9533_v61 = vld [vmem:[#allocation9 + $0x114] sm:$0xf0]  ;;  %v8900_v17 = vld [vmem:[#allocation9 + $0x208] sm:$0xf]  ;;  %v9061_v2 = vor.u32 %v9605_v26, %v9060_v8  ;;  %v8870_v10 = vld [vmem:[#allocation9 + $0x1d8] sm:$0xf0] }
 0x875   : > { %7613 = vmatmul.bf16.vlgmr.msra.gmra.mxu2 %v13397_v11  ;;  %7742 = vmatpush.bf16.msrb.mxu1 %v9077_v50  ;;  %v9565_v29 = vld [vmem:[#allocation9 + $0x214] sm:$0xf0]  ;;  %v8660_v42 = vld [vmem:[#allocation9 + $0x28] sm:$0xf]  ;;  %v8773_v41 = vor.u32 %v9533_v61, %v8772_v18  ;;  %v8710_v18 = vld [vmem:[#allocation9 + $0x98] sm:$0xf0]  ;;  %v8873_v61 = vor.u32 %v9555_v24, %v8870_v10 }
 0x876   : > { %v9505_v58 = vld [vmem:[#allocation9 + $0x34] sm:$0xf0]  ;;  %v9044_v43 = vld [vmem:[#allocation9 + $0x328] sm:$0xf]  ;;  %7706 = vmatpush.bf16.msrb.mxu3 %v8789_v25  ;;  %v8901_v63 = vor.u32 %v9565_v29, %v8900_v17  ;;  %v9551_v29 = vld [vmem:[#allocation9 + $0x1ac] sm:$0xf] }
 0x877   : > { %v9601_v51 = vld [vmem:[#allocation9 + $0x334] sm:$0xf0]  ;;  %v9396_v16 = vld [vmem:[#allocation9 + $0x5e8] sm:$0xf]  ;;  %v8661_v57 = vor.u32 %v9505_v58, %v8660_v42  ;;  %7725 = vmatpush.bf16.msrb.mxu0 %v8917_v56  ;;  %v8854_v42 = vld [vmem:[#allocation9 + $0x1b8] sm:$0xf0] }
 0x878   : > { %v9689_v34 = vld [vmem:[#allocation9 + $0x5f4] sm:$0xf0]  ;;  %7686 = vmatpush.bf16.msrb.mxu2 %v8677_v22  ;;  %v8644_v6 = vld [vmem:[#allocation9 + $0x8] sm:$0xf]  ;;  %v9045_v33 = vor.u32 %v9601_v51, %v9044_v43  ;;  %v9515_v22 = vld [vmem:[#allocation9 + $0x8c] sm:$0xf]  ;;  %v8857_v28 = vor.u32 %v9551_v29, %v8854_v42 }
 0x879   : > { %7743 = vmatpush.bf16.msrb.mxu1 %v9061_v2  ;;  %v9501_v36 = vld [vmem:[#allocation9 + $0x14] sm:$0xf0]  ;;  %v9028_v3 = vld [vmem:[#allocation9 + $0x308] sm:$0xf]  ;;  %v9397_v53 = vor.u32 %v9689_v34, %v9396_v16  ;;  %v8713_v58 = vor.u32 %v9515_v22, %v8710_v18  ;;  %v9511_v34 = vld [vmem:[#allocation9 + $0x6c] sm:$0xf] }
 0x87a   : > { %v9597_v13 = vld [vmem:[#allocation9 + $0x314] sm:$0xf0]  ;;  %v9380_v15 = vld [vmem:[#allocation9 + $0x5c8] sm:$0xf]  ;;  %7707 = vmatpush.bf16.msrb.mxu3 %v8773_v41  ;;  %v8645_v31 = vor.u32 %v9501_v36, %v8644_v6  ;;  %v8697_v36 = vor.u32 %v9511_v34, %v8694_v19  ;;  %v9543_v9 = vld [vmem:[#allocation9 + $0x16c] sm:$0xf] }
 0x87b   : > { %v9268_v23 = vld [vmem:[#allocation9 + $0x4e8] sm:$0xf]  ;;  %v9657_v52 = vld [vmem:[#allocation9 + $0x4f4] sm:$0xf0]  ;;  %7726 = vmatpush.bf16.msrb.mxu0 %v8901_v63  ;;  %v9029_v54 = vor.u32 %v9597_v13, %v9028_v3  ;;  %v9547_v63 = vld [vmem:[#allocation9 + $0x18c] sm:$0xf] }
 0x87c   : > { %7637 = vmatmul.bf16.gmra.mxu3 %v12834_v37  ;;  %v9685_v47 = vld [vmem:[#allocation9 + $0x5d4] sm:$0xf0]  ;;  %7687 = vmatpush.bf16.msrb.mxu2 %v8661_v57  ;;  %v9269_v44 = vor.u32 %v9657_v52, %v9268_v23  ;;  %v9364_v46 = vld [vmem:[#allocation9 + $0x5a8] sm:$0xf]  ;;  %v9503_v62 = vld [vmem:[#allocation9 + $0x2c] sm:$0xf] }
 0x87d   : > { %7744 = vmatpush.bf16.msrb.mxu1 %v9045_v33  ;;  %v9381_v39 = vor.u32 %v9685_v47, %v9380_v15  ;;  %v9252_v20 = vld [vmem:[#allocation9 + $0x4c8] sm:$0xf]  ;;  %v9653_v49 = vld [vmem:[#allocation9 + $0x4d4] sm:$0xf0]  ;;  %v8838_v33 = vld [vmem:[#allocation9 + $0x198] sm:$0xf0] }
 0x87e   : > { %7776 = vmatpush.bf16.msra.mxu3 %v9397_v53  ;;  %v9681_v40 = vld [vmem:[#allocation9 + $0x5b4] sm:$0xf0]  ;;  %7727 = vmatmul.bf16.vlgmr.msrb.gmra.mxu0 %v13397_v11  ;;  %v9253_v50 = vor.u32 %v9653_v49, %v9252_v20  ;;  %v9236_v8 = vld [vmem:[#allocation9 + $0x4a8] sm:$0xf]  ;;  %v8678_v15 = vld [vmem:[#allocation9 + $0x58] sm:$0xf0]  ;;  %v8841_v23 = vor.u32 %v9547_v63, %v8838_v33 }
 0x87f   : > { %7795 = vmatpush.bf16.msra.mxu0 %v8761_v32  ;;  %v9365_v1 = vor.u32 %v9681_v40, %v9364_v46  ;;  %v9649_v26 = vld [vmem:[#allocation9 + $0x4b4] sm:$0xf0]  ;;  %v13398_v25 = vld [vmem:[#allocation26_spill] sm:$0xff]  ;;  %v8806_v5 = vld [vmem:[#allocation9 + $0x158] sm:$0xf0] }
 0x880   : > { %7688 = vmatpush.bf16.msrb.mxu2 %v8645_v31  ;;  %v9348_v17 = vld [vmem:[#allocation9 + $0x588] sm:$0xf]  ;;  %v9677_v56 = vld [vmem:[#allocation9 + $0x594] sm:$0xf0]  ;;  %v9237_v2 = vor.u32 %v9649_v26, %v9236_v8  ;;  %v9507_v32 = vld [vmem:[#allocation9 + $0x4c] sm:$0xf] }
 0x881   : > { %7745 = vmatpush.bf16.msrb.mxu1 %v9029_v54  ;;  %v9220_v43 = vld [vmem:[#allocation9 + $0x488] sm:$0xf]  ;;  %v9645_v51 = vld [vmem:[#allocation9 + $0x494] sm:$0xf0]  ;;  %v9349_v16 = vor.u32 %v9677_v56, %v9348_v17  ;;  %v8822_v31 = vld [vmem:[#allocation9 + $0x178] sm:$0xf0]  ;;  %v8681_v54 = vor.u32 %v9507_v32, %v8678_v15 }
 0x882   : > { %7777 = vmatpush.bf16.msra.mxu3 %v9381_v39  ;;  %v9332_v41 = vld [vmem:[#allocation9 + $0x568] sm:$0xf]  ;;  %v9673_v57 = vld [vmem:[#allocation9 + $0x574] sm:$0xf0]  ;;  %v9221_v6 = vor.u32 %v9645_v51, %v9220_v43  ;;  %v8662_v39 = vld [vmem:[#allocation9 + $0x38] sm:$0xf0]  ;;  %v8825_v46 = vor.u32 %v9543_v9, %v8822_v31 }
 0x883   : > { %7796 = vmatpush.bf16.msra.mxu0 %v8745_v38  ;;  %v9204_v3 = vld [vmem:[#allocation9 + $0x468] sm:$0xf]  ;;  %v9641_v13 = vld [vmem:[#allocation9 + $0x474] sm:$0xf0]  ;;  %v9333_v53 = vor.u32 %v9673_v57, %v9332_v41  ;;  %v9539_v59 = vld [vmem:[#allocation9 + $0x14c] sm:$0xf] }
 0x884   : > { %7757 = vmatpush.bf16.msra.mxu2 %v9269_v44  ;;  %7675 = vmatmul.bf16.gmra.mxu1 %v12926_v7  ;;  %v9316_v52 = vld [vmem:[#allocation9 + $0x548] sm:$0xf]  ;;  %v9669_v47 = vld [vmem:[#allocation9 + $0x554] sm:$0xf0]  ;;  %v9205_v45 = vor.u32 %v9641_v13, %v9204_v3  ;;  %v8809_v26 = vor.u32 %v9539_v59, %v8806_v5  ;;  %v9655_v18 = vld [vmem:[#allocation9 + $0x4ec] sm:$0xf]  ;;  %v12960_v17 = vpop.f32.mrf.mxu0 }
 0x885   : > { %7618 = vmatmul.bf16.gmra.mxu2 %v13398_v25  ;;  %7814 = vmatpush.bf16.msra.mxu1 %v8889_v60  ;;  %v9188_v44 = vld [vmem:[#allocation9 + $0x448] sm:$0xf]  ;;  %v9637_v48 = vld [vmem:[#allocation9 + $0x454] sm:$0xf0]  ;;  %v9317_v38 = vor.u32 %v9669_v47, %v9316_v52  ;;  %v8665_v60 = vor.u32 %v9503_v62, %v8662_v39  ;;  %v8790_v29 = vld [vmem:[#allocation9 + $0x138] sm:$0xf0] }
 0x886   : > { %7778 = vmatpush.bf16.msra.mxu3 %v9365_v1  ;;  %v9300_v20 = vld [vmem:[#allocation9 + $0x528] sm:$0xf]  ;;  %v9665_v49 = vld [vmem:[#allocation9 + $0x534] sm:$0xf0]  ;;  %v9189_v40 = vor.u32 %v9637_v48, %v9188_v44  ;;  %v9499_v1 = vld [vmem:[#allocation9 + $0xc] sm:$0xf] }
 0x887   : > { %7797 = vmatpush.bf16.msra.mxu0 %v8729_v4  ;;  %v9633_v24 = vld [vmem:[#allocation9 + $0x434] sm:$0xf0]  ;;  %v9284_v10 = vld [vmem:[#allocation9 + $0x508] sm:$0xf]  ;;  %v8646_v4 = vld [vmem:[#allocation9 + $0x18] sm:$0xf0]  ;;  %v9301_v8 = vor.u32 %v9665_v49, %v9300_v20 }
 0x888   : > { %7758 = vmatpush.bf16.msra.mxu2 %v9253_v50  ;;  %v9172_v50 = vld [vmem:[#allocation9 + $0x428] sm:$0xf]  ;;  %v9661_v22 = vld [vmem:[#allocation9 + $0x514] sm:$0xf0]  ;;  %v9623_v42 = vld [vmem:[#allocation9 + $0x3ec] sm:$0xf] }
 0x889   : > { %7815 = vmatpush.bf16.msra.mxu1 %v8873_v61  ;;  %v9270_v61 = vld [vmem:[#allocation9 + $0x4f8] sm:$0xf0]  ;;  %v9173_v56 = vor.u32 %v9633_v24, %v9172_v50  ;;  %v9156_v51 = vld [vmem:[#allocation9 + $0x408] sm:$0xf]  ;;  %v9591_v19 = vld [vmem:[#allocation9 + $0x2ec] sm:$0xf]  ;;  %v9285_v41 = vor.u32 %v9661_v22, %v9284_v10 }
 0x88a   : > { %7779 = vmatpush.bf16.msra.mxu3 %v9349_v16  ;;  %v9142_v43 = vld [vmem:[#allocation9 + $0x3f8] sm:$0xf0]  ;;  %v9629_v16 = vld [vmem:[#allocation9 + $0x414] sm:$0xf0]  ;;  %v9273_v34 = vor.u32 %v9655_v18, %v9270_v61  ;;  %v9531_v3 = vld [vmem:[#allocation9 + $0x10c] sm:$0xf] }
 0x88b   : > { %7798 = vmatpush.bf16.msra.mxu0 %v8713_v58  ;;  %v8649_v58 = vor.u32 %v9499_v1, %v8646_v4  ;;  %v9254_v63 = vld [vmem:[#allocation9 + $0x4d8] sm:$0xf0]  ;;  %v9145_v33 = vor.u32 %v9623_v42, %v9142_v43  ;;  %v9615_v48 = vld [vmem:[#allocation9 + $0x3ac] sm:$0xf] }
 0x88c   : > { %7759 = vmatpush.bf16.msra.mxu2 %v9237_v2  ;;  %7708 = vmatmul.bf16.vlgmr.msrb.gmra.mxu3 %v13388_v14  ;;  %v9535_v2 = vld [vmem:[#allocation9 + $0x12c] sm:$0xf]  ;;  %v8774_v13 = vld [vmem:[#allocation9 + $0x118] sm:$0xf0] }
 0x88d   : > { %7816 = vmatpush.bf16.msra.mxu1 %v8857_v28  ;;  %v9014_v28 = vld [vmem:[#allocation9 + $0x2f8] sm:$0xf0]  ;;  %v8793_v57 = vor.u32 %v9535_v2, %v8790_v29  ;;  %v8777_v31 = vor.u32 %v9531_v3, %v8774_v13  ;;  %v9647_v62 = vld [vmem:[#allocation9 + $0x4ac] sm:$0xf] }
 0x88e   : > { %7780 = vmatpush.bf16.msra.mxu3 %v9333_v53  ;;  %7732 = vmatmul.bf16.gmra.mxu0 %v13398_v25  ;;  %v9619_v53 = vld [vmem:[#allocation9 + $0x3cc] sm:$0xf]  ;;  %v9126_v32 = vld [vmem:[#allocation9 + $0x3d8] sm:$0xf0]  ;;  %v9017_v15 = vor.u32 %v9591_v19, %v9014_v28 }
 0x88f   : > { %7799 = vmatpush.bf16.msra.mxu0 %v8697_v36  ;;  %v9157_v36 = vor.u32 %v9629_v16, %v9156_v51  ;;  %v9398_v52 = vld [vmem:[#allocation9 + $0x5f8] sm:$0xf0]  ;;  %v9683_v20 = vld [vmem:[#allocation9 + $0x5cc] sm:$0xf] }
 0x890   : > { %7760 = vmatpush.bf16.msra.mxu2 %v9221_v6  ;;  %v9651_v6 = vld [vmem:[#allocation9 + $0x4cc] sm:$0xf]  ;;  %v8998_v9 = vld [vmem:[#allocation9 + $0x2d8] sm:$0xf0] }
 0x891   : > { %7817 = vmatpush.bf16.msra.mxu1 %v8841_v23  ;;  %v9687_v23 = vld [vmem:[#allocation9 + $0x5ec] sm:$0xf]  ;;  %v9257_v47 = vor.u32 %v9651_v6, %v9254_v63  ;;  %v9238_v39 = vld [vmem:[#allocation9 + $0x4b8] sm:$0xf0] }
 0x892   : > { %7781 = vmatpush.bf16.msra.mxu3 %v9317_v38  ;;  %v9401_v44 = vor.u32 %v9687_v23, %v9398_v52  ;;  %v9110_v38 = vld [vmem:[#allocation9 + $0x3b8] sm:$0xf0]  ;;  %v9583_v59 = vld [vmem:[#allocation9 + $0x2ac] sm:$0xf] }
 0x893   : > { %7800 = vmatpush.bf16.msra.mxu0 %v8681_v54  ;;  %v9129_v54 = vor.u32 %v9619_v53, %v9126_v32  ;;  %v9382_v49 = vld [vmem:[#allocation9 + $0x5d8] sm:$0xf0]  ;;  %v9113_v50 = vor.u32 %v9615_v48, %v9110_v38  ;;  %v9611_v10 = vld [vmem:[#allocation9 + $0x38c] sm:$0xf] }
 0x894   : > { %7761 = vmatpush.bf16.msra.mxu2 %v9205_v45  ;;  %7746 = vmatmul.bf16.vlgmr.msrb.gmra.mxu1 %v13396_v21  ;;  %v9587_v45 = vld [vmem:[#allocation9 + $0x2cc] sm:$0xf]  ;;  %v8982_v5 = vld [vmem:[#allocation9 + $0x2b8] sm:$0xf0]  ;;  %v9385_v24 = vor.u32 %v9683_v20, %v9382_v49 }
 0x895   : > { %7689 = vmatmul.bf16.vlgmr.msrb.gmra.mxu2 %v12681_v35  ;;  %7818 = vmatpush.bf16.msra.mxu1 %v8825_v46  ;;  %v9001_v46 = vor.u32 %v9587_v45, %v8998_v9  ;;  %v9643_v1 = vld [vmem:[#allocation9 + $0x48c] sm:$0xf]  ;;  %v9222_v4 = vld [vmem:[#allocation9 + $0x498] sm:$0xf0] }
 0x896   : > { %7782 = vmatpush.bf16.msra.mxu3 %v9301_v8  ;;  %v9094_v8 = vld [vmem:[#allocation9 + $0x398] sm:$0xf0]  ;;  %v9679_v22 = vld [vmem:[#allocation9 + $0x5ac] sm:$0xf] }
 0x897   : > { %7801 = vmatpush.bf16.msra.mxu0 %v8665_v60  ;;  %v9241_v60 = vor.u32 %v9647_v62, %v9238_v39  ;;  %v9366_v18 = vld [vmem:[#allocation9 + $0x5b8] sm:$0xf0]  ;;  %v9579_v61 = vld [vmem:[#allocation9 + $0x28c] sm:$0xf]  ;;  %v9097_v2 = vor.u32 %v9611_v10, %v9094_v8 }
 0x898   : > { %7762 = vmatpush.bf16.msra.mxu2 %v9189_v40  ;;  %v12963_v40 = vpop.f32.mrf.mxu0  ;;  %v9369_v29 = vor.u32 %v9679_v22, %v9366_v18  ;;  %v9607_v42 = vld [vmem:[#allocation9 + $0x36c] sm:$0xf]  ;;  %v9206_v43 = vld [vmem:[#allocation9 + $0x478] sm:$0xf0] }
 0x899   : > { %7819 = vmatpush.bf16.msra.mxu1 %v8809_v26  ;;  %v8985_v26 = vor.u32 %v9583_v59, %v8982_v5  ;;  %v9078_v51 = vld [vmem:[#allocation9 + $0x378] sm:$0xf0]  ;;  %v9575_v28 = vld [vmem:[#allocation9 + $0x26c] sm:$0xf]  ;;  %v12968_v6 = vpop.f32.mrf.mxu3 }
 0x89a   : > { %7783 = vmatpush.bf16.msra.mxu3 %v9285_v41  ;;  %v9350_v19 = vld [vmem:[#allocation9 + $0x598] sm:$0xf0]  ;;  %v9603_v3 = vld [vmem:[#allocation9 + $0x34c] sm:$0xf] }
 0x89b   : > { %7802 = vmatpush.bf16.msra.mxu0 %v8649_v58  ;;  %v9639_v58 = vld [vmem:[#allocation9 + $0x46c] sm:$0xf]  ;;  %v8950_v41 = vld [vmem:[#allocation9 + $0x278] sm:$0xf0] }
 0x89c   : > { %7763 = vmatpush.bf16.msra.mxu2 %v9173_v56  ;;  %7713 = vmatmul.bf16.gmra.mxu3 %v12785_v12  ;;  %v9225_v56 = vor.u32 %v9643_v1, %v9222_v4  ;;  %v9062_v13 = vld [vmem:[#allocation9 + $0x358] sm:$0xf0]  ;;  %v9635_v53 = vld [vmem:[#allocation9 + $0x44c] sm:$0xf] }
 0x89d   : > { %7820 = vmatpush.bf16.msra.mxu1 %v8793_v57  ;;  %v9209_v57 = vor.u32 %v9639_v58, %v9206_v43  ;;  %v9190_v32 = vld [vmem:[#allocation9 + $0x458] sm:$0xf0]  ;;  %v9671_v23 = vld [vmem:[#allocation9 + $0x56c] sm:$0xf] }
 0x89e   : > { %7852 = vmatpush.bf16.msrb.mxu3 %v9145_v33  ;;  %7803 = vmatmul.bf16.vlgmr.msra.gmra.mxu0 %v12681_v35  ;;  %v8966_v35 = vld [vmem:[#allocation9 + $0x298] sm:$0xf0]  ;;  %v9081_v33 = vor.u32 %v9607_v42, %v9078_v51  ;;  %v9631_v39 = vld [vmem:[#allocation9 + $0x42c] sm:$0xf] }
 0x89f   : > { %7871 = vmatpush.bf16.msrb.mxu0 %v9273_v34  ;;  %v8969_v16 = vor.u32 %v9579_v61, %v8966_v35  ;;  %v9675_v34 = vld [vmem:[#allocation9 + $0x58c] sm:$0xf]  ;;  %v9334_v52 = vld [vmem:[#allocation9 + $0x578] sm:$0xf0] }
 0x8a0   : > { %7764 = vmatpush.bf16.msra.mxu2 %v9157_v36  ;;  %v9353_v36 = vor.u32 %v9675_v34, %v9350_v19  ;;  %v8934_v45 = vld [vmem:[#allocation9 + $0x258] sm:$0xf0]  ;;  %v9337_v62 = vor.u32 %v9671_v23, %v9334_v52  ;;  %v9667_v20 = vld [vmem:[#allocation9 + $0x54c] sm:$0xf]  ;;  %v9897_v19 = vmov 0.0  }
 0x8a1   : > { %7821 = vmatpush.bf16.msra.mxu1 %v8777_v31  ;;  %v12970_v63 = vpop.f32.mrf.mxu0  ;;  %v9065_v31 = vor.u32 %v9603_v3, %v9062_v13  ;;  %v9046_v48 = vld [vmem:[#allocation9 + $0x338] sm:$0xf0]  ;;  %v9567_v59 = vld [vmem:[#allocation9 + $0x22c] sm:$0xf]  ;;  %v7483_v18 = vpop.f32.mrf.mxu3  ;;  %7913 = vst [vmem:[#allocation6 + $0x20] sm:$0x7] %v9897_v19 }
 0x8a2   : > { %7853 = vmatpush.bf16.msrb.mxu3 %v9129_v54  ;;  %v12973_v9 = vpop.f32.mrf.mxu1  ;;  %v9193_v54 = vor.u32 %v9635_v53, %v9190_v32  ;;  %v9174_v38 = vld [vmem:[#allocation9 + $0x438] sm:$0xf0]  ;;  %v9627_v8 = vld [vmem:[#allocation9 + $0x40c] sm:$0xf] }
 0x8a3   : > { %7872 = vmatpush.bf16.msrb.mxu0 %v9257_v47  ;;  %v9571_v47 = vld [vmem:[#allocation9 + $0x24c] sm:$0xf]  ;;  %v9318_v49 = vld [vmem:[#allocation9 + $0x558] sm:$0xf0] }
 0x8a4   : > { %7833 = vmatpush.bf16.msrb.mxu2 %v9017_v15  ;;  %7751 = vmatmul.bf16.gmra.mxu1 %v12834_v37  ;;  %v8953_v15 = vor.u32 %v9575_v28, %v8950_v41  ;;  %v8918_v5 = vld [vmem:[#allocation9 + $0x238] sm:$0xf0]  ;;  %v9321_v1 = vor.u32 %v9667_v20, %v9318_v49 }
 0x8a5   : > { %7890 = vmatpush.bf16.msrb.mxu1 %v9401_v44  ;;  %7694 = vmatmul.bf16.gmra.mxu2 %v12832_v55  ;;  %v9599_v44 = vld [vmem:[#allocation9 + $0x32c] sm:$0xf]  ;;  %v9030_v4 = vld [vmem:[#allocation9 + $0x318] sm:$0xf0]  ;;  %v8921_v22 = vor.u32 %v9567_v59, %v8918_v5 }
 0x8a6   : > { %7854 = vmatpush.bf16.msrb.mxu3 %v9113_v50  ;;  %v9177_v50 = vor.u32 %v9631_v39, %v9174_v38  ;;  %v9302_v35 = vld [vmem:[#allocation9 + $0x538] sm:$0xf0] }
 0x8a7   : > { %7873 = vmatpush.bf16.msrb.mxu0 %v9241_v60  ;;  %v9049_v60 = vor.u32 %v9599_v44, %v9046_v48  ;;  %v7462_v10 = vpop.f32.mrf.mxu2  ;;  %v9286_v34 = vld [vmem:[#allocation9 + $0x518] sm:$0xf0] }
 0x8a8   : > { %7834 = vmatpush.bf16.msrb.mxu2 %v9001_v46  ;;  %v8937_v46 = vor.u32 %v9571_v47, %v8934_v45  ;;  %v7482_v32 = vadd.f32 %v12968_v6, %v7462_v10 }
 0x8a9   : > { %7891 = vmatpush.bf16.msrb.mxu1 %v9385_v24  ;;  %v9595_v24 = vld [vmem:[#allocation9 + $0x30c] sm:$0xf]  ;;  %v12978_v61 = vpop.f32.mrf.mxu0 }
 0x8aa   : > { %7855 = vmatpush.bf16.msrb.mxu3 %v9097_v2  ;;  %v8902_v2 = vld [vmem:[#allocation9 + $0x218] sm:$0xf0]  ;;  %v7521_v58 = vpop.f32.mrf.mxu1 }
 0x8ab   : > { %7874 = vmatpush.bf16.msrb.mxu0 %v9225_v56  ;;  %v9563_v56 = vld [vmem:[#allocation9 + $0x20c] sm:$0xf] }
 0x8ac   : > { %7835 = vmatpush.bf16.msrb.mxu2 %v8985_v26  ;;  %7784 = vmatmul.bf16.vlgmr.msra.gmra.mxu3 %v12868_v0  ;;  %v9158_v26 = vld [vmem:[#allocation9 + $0x418] sm:$0xf0]  ;;  %v8905_v51 = vor.u32 %v9563_v56, %v8902_v2 }
 0x8ad   : > { %7892 = vmatpush.bf16.msrb.mxu1 %v9369_v29  ;;  %v9033_v29 = vor.u32 %v9595_v24, %v9030_v4  ;;  %v9161_v42 = vor.u32 %v9627_v8, %v9158_v26 }
 0x8ae   : > { %7856 = vmatpush.bf16.msrb.mxu3 %v9081_v33  ;;  %7808 = vmatmul.bf16.gmra.mxu0 %v12832_v55  ;;  %v9663_v55 = vld [vmem:[#allocation9 + $0x52c] sm:$0xf] }
 0x8af   : > { %7875 = vmatpush.bf16.msrb.mxu0 %v9209_v57  ;;  %v9305_v43 = vor.u32 %v9663_v55, %v9302_v35  ;;  %v7464_v28 = vpop.f32.mrf.mxu2 }
 0x8b0   : > { %7836 = vmatpush.bf16.msrb.mxu2 %v8969_v16  ;;  %v9659_v16 = vld [vmem:[#allocation9 + $0x50c] sm:$0xf] }
 0x8b1   : > { %7893 = vmatpush.bf16.msrb.mxu1 %v9353_v36 }
 0x8b2   : > { %7857 = vmatpush.bf16.msrb.mxu3 %v9065_v31 }
 0x8b3   : > { %7876 = vmatpush.bf16.msrb.mxu0 %v9193_v54 }
 0x8b4   : > { %7837 = vmatpush.bf16.msrb.mxu2 %v8953_v15  ;;  %7822 = vmatmul.bf16.vlgmr.msra.gmra.mxu1 %v13388_v14  ;;  %v9289_v14 = vor.u32 %v9659_v16, %v9286_v34 }
 0x8b5   : > { %7894 = vmatpush.bf16.msrb.mxu1 %v9337_v62  ;;  %7765 = vmatmul.bf16.vlgmr.msra.gmra.mxu2 %v12903_v30 }
 0x8b6   : > { %7858 = vmatpush.bf16.msrb.mxu3 %v9049_v60 }
 0x8b7   : > { %7877 = vmatpush.bf16.msrb.mxu0 %v9177_v50 }
 0x8b8   : > { %7838 = vmatpush.bf16.msrb.mxu2 %v8937_v46 }
 0x8b9   : > { %7895 = vmatpush.bf16.msrb.mxu1 %v9321_v1 }
 0x8ba   : > { %7859 = vmatpush.bf16.msrb.mxu3 %v9033_v29  ;;  %v7576_v57 = vpop.f32.mrf.mxu0 }
 0x8bb   : > { %7878 = vmatpush.bf16.msrb.mxu0 %v9161_v42 }
 0x8bc   : > { %7839 = vmatpush.bf16.msrb.mxu2 %v8921_v22  ;;  %7789 = vmatmul.bf16.gmra.mxu3 %v12926_v7  ;;  %v7486_v41 = vpop.f32.mrf.mxu3 }
 0x8bd   : > { %7896 = vmatpush.bf16.msrb.mxu1 %v9305_v43 }
 0x8be   : > { %7879 = vmatmul.bf16.vlgmr.msrb.gmra.mxu0 %v12903_v30  ;;  %v7501_v30 = vadd.f32 %v12960_v17, %v7482_v32 }
 0x8c0   : > { %7840 = vmatpush.bf16.msrb.mxu2 %v8905_v51  ;;  %v7520_v45 = vadd.f32 %v12973_v9, %v7501_v30 }
 0x8c1   : > { %7897 = vmatpush.bf16.msrb.mxu1 %v9289_v14  ;;  %v7524_v33 = vpop.f32.mrf.mxu1 }
 0x8c2   : > { %v7578_v3 = vpop.f32.mrf.mxu0 }
 0x8c4   : > { %7827 = vmatmul.bf16.gmra.mxu1 %v12785_v12  ;;  %v7488_v36 = vpop.f32.mrf.mxu3  ;;  %v7484_v12 = vadd.f32 %v7483_v18, %v7464_v28 }
 0x8c5   : > { %7770 = vmatmul.bf16.gmra.mxu2 %v12944_v27 }
 0x8c6   : > { %v7467_v13 = vpop.f32.mrf.mxu2  ;;  %v7503_v48 = vadd.f32 %v12963_v40, %v7484_v12 }
 0x8c8   : > { %v7522_v17 = vadd.f32 %v7521_v58, %v7503_v48 }
 0x8c9   : > { %v7526_v53 = vpop.f32.mrf.mxu1 }
 0x8ca   : > { %v12986_v23 = vpop.f32.mrf.mxu0 }
 0x8cc   : > { %7860 = vmatmul.bf16.vlgmr.msrb.gmra.mxu3 %v13396_v21  ;;  %v7557_v15 = vpop.f32.mrf.mxu3 }
 0x8ce   : > { %v7469_v52 = vpop.f32.mrf.mxu2  ;;  %7884 = vmatmul.bf16.gmra.mxu0 %v12944_v27  ;;  %v7487_v27 = vadd.f32 %v7486_v41, %v7467_v13 }
 0x8cf   : > { %v7489_v49 = vadd.f32 %v7488_v36, %v7469_v52 }
 0x8d0   : > { %v7506_v9 = vadd.f32 %v12970_v63, %v7487_v27 }
 0x8d1   : > { %v7595_v47 = vpop.f32.mrf.mxu1  ;;  %v7508_v24 = vadd.f32 %v12978_v61, %v7489_v49 }
 0x8d2   : > { %v12993_v21 = vpop.f32.mrf.mxu0  ;;  %v7525_v40 = vadd.f32 %v7524_v33, %v7506_v9 }
 0x8d3   : > { %v7527_v1 = vadd.f32 %v7526_v53, %v7508_v24 }
 0x8d4   : > { %7898 = vmatmul.bf16.vlgmr.msrb.gmra.mxu1 %v12868_v0  ;;  %v7559_v31 = vpop.f32.mrf.mxu3 }
 0x8d5   : > { %7841 = vmatmul.bf16.vlgmr.msrb.gmra.mxu2 %v13397_v11 }
 0x8d8   : > { %v7538_v6 = vpop.f32.mrf.mxu2 }
 0x8d9   : > { %v7539_v54 = vadd.f32 %v7538_v6, %v7520_v45  ;;  %v7597_v44 = vpop.f32.mrf.mxu1 }
 0x8da   : > { %v7598_v58 = vadd.f32 %v7597_v44, %v7578_v3 }
 0x8db   : > { %v7558_v62 = vadd.f32 %v7557_v15, %v7539_v54  ;;  %v7652_v39 = vpop.f32.mrf.mxu0 }
 0x8dc   : > { %7865 = vmatmul.bf16.gmra.mxu3 %v12834_v37 }
 0x8dd   : > { %7922 = vst [vmem:[#allocation6] sm:$0xff] %v7558_v62 }
 0x8df   : > { %v7562_v11 = vpop.f32.mrf.mxu3 }
 0x8e0   : > { %v7540_v0 = vpop.f32.mrf.mxu2 }
 0x8e1   : > { %v7541_v38 = vadd.f32 %v7540_v0, %v7522_v17  ;;  %v7600_v46 = vpop.f32.mrf.mxu1 }
 0x8e2   : > { %v7601_v33 = vadd.f32 %v7600_v46, %v12986_v23 }
 0x8e3   : > { %v7560_v20 = vadd.f32 %v7559_v31, %v7541_v38  ;;  %v7654_v5 = vpop.f32.mrf.mxu0 }
 0x8e4   : > { %7903 = vmatmul.bf16.gmra.mxu1 %v12926_v7  ;;  %v7596_v7 = vadd.f32 %v7595_v47, %v7576_v57 }
 0x8e5   : > { %7846 = vmatmul.bf16.gmra.mxu2 %v13398_v25  ;;  %7923 = vst [vmem:[#allocation6 + $0x8] sm:$0xff] %v7560_v20 }
 0x8e7   : > { %v7564_v59 = vpop.f32.mrf.mxu3 }
 0x8e8   : > { %v7543_v37 = vpop.f32.mrf.mxu2 }
 0x8e9   : > { %v7544_v60 = vadd.f32 %v7543_v37, %v7525_v40  ;;  %v7602_v50 = vpop.f32.mrf.mxu1 }
 0x8ea   : > { %v7603_v12 = vadd.f32 %v7602_v50, %v12993_v21 }
 0x8eb   : > { %v7563_v10 = vadd.f32 %v7562_v11, %v7544_v60  ;;  %v7657_v25 = vpop.f32.mrf.mxu0 }
 0x8ec   : > { %v7926_v51 = vld [vmem:[#allocation6 + $0x1] sm:$0xff] }
 0x8ed   : > { %7924 = vst [vmem:[#allocation6 + $0x10] sm:$0xff] %v7563_v10 }
 0x8ef   : > { %v7633_v4 = vpop.f32.mrf.mxu3 }
 0x8f0   : > { %v7545_v63 = vpop.f32.mrf.mxu2 }
 0x8f1   : > { %v7546_v8 = vadd.f32 %v7545_v63, %v7527_v1  ;;  %v7671_v26 = vpop.f32.mrf.mxu1 }
 0x8f3   : > { %v7565_v22 = vadd.f32 %v7564_v59, %v7546_v8  ;;  %v7659_v29 = vpop.f32.mrf.mxu0 }
 0x8f4   : > { %v7927_v53 = vld [vmem:[#allocation6 + $0x9] sm:$0xff] }
 0x8f5   : > { %7925 = vst [vmem:[#allocation6 + $0x18] sm:$0xff] %v7565_v22 }
 0x8f7   : > { %v7635_v18 = vpop.f32.mrf.mxu3 }
 0x8f8   : > { %v7614_v55 = vpop.f32.mrf.mxu2 }
 0x8f9   : > { %v7615_v35 = vadd.f32 %v7614_v55, %v7596_v7  ;;  %v7673_v56 = vpop.f32.mrf.mxu1 }
 0x8fb   : > { %v7634_v2 = vadd.f32 %v7633_v4, %v7615_v35  ;;  %v7728_v57 = vpop.f32.mrf.mxu0 }
 0x8fc   : > { %v7928_v6 = vld [vmem:[#allocation6 + $0x11] sm:$0xff]  ;;  %v7929_v0 = vld [vmem:[#allocation6 + $0x19] sm:$0xff] }
 0x8fd   : > { %v7653_v42 = vadd.f32 %v7652_v39, %v7634_v2 }
 0x8ff   : > { %v7672_v61 = vadd.f32 %v7671_v26, %v7653_v42  ;;  %v7638_v43 = vpop.f32.mrf.mxu3 }
 0x900   : > { %v7616_v16 = vpop.f32.mrf.mxu2 }
 0x901   : > { %v7930_v34 = vadd.f32 %v7926_v51, %v7672_v61  ;;  %v7617_v14 = vadd.f32 %v7616_v16, %v7598_v58  ;;  %v7676_v19 = vpop.f32.mrf.mxu1 }
 0x903   : > { %7934 = vst [vmem:[#allocation6 + $0x1] sm:$0xff] %v7930_v34  ;;  %v7636_v28 = vadd.f32 %v7635_v18, %v7617_v14  ;;  %v7730_v44 = vpop.f32.mrf.mxu0 }
 0x905   : > { %v7655_v41 = vadd.f32 %v7654_v5, %v7636_v28 }
 0x907   : > { %v7674_v36 = vadd.f32 %v7673_v56, %v7655_v41  ;;  %v7640_v13 = vpop.f32.mrf.mxu3 }
 0x908   : > { %v7619_v32 = vpop.f32.mrf.mxu2 }
 0x909   : > { %v7931_v15 = vadd.f32 %v7927_v53, %v7674_v36  ;;  %v7620_v52 = vadd.f32 %v7619_v32, %v7601_v33  ;;  %v7678_v3 = vpop.f32.mrf.mxu1 }
 0x90b   : > { %7935 = vst [vmem:[#allocation6 + $0x9] sm:$0xff] %v7931_v15  ;;  %v7639_v47 = vadd.f32 %v7638_v43, %v7620_v52  ;;  %v7733_v20 = vpop.f32.mrf.mxu0 }
 0x90d   : > { %v7658_v30 = vadd.f32 %v7657_v25, %v7639_v47 }
 0x90f   : > { %v7677_v45 = vadd.f32 %v7676_v19, %v7658_v30  ;;  %v7709_v31 = vpop.f32.mrf.mxu3 }
 0x910   : > { %v7621_v54 = vpop.f32.mrf.mxu2 }
 0x911   : > { %v7932_v48 = vadd.f32 %v7928_v6, %v7677_v45  ;;  %v7622_v62 = vadd.f32 %v7621_v54, %v7603_v12  ;;  %v7747_v23 = vpop.f32.mrf.mxu1 }
 0x912   : > { %v7938_v2 = vld [vmem:[#allocation6 + $0x2] sm:$0xff] }
 0x913   : > { %7936 = vst [vmem:[#allocation6 + $0x11] sm:$0xff] %v7932_v48  ;;  %v7641_v27 = vadd.f32 %v7640_v13, %v7622_v62  ;;  %v7735_v59 = vpop.f32.mrf.mxu0 }
 0x915   : > { %v7660_v17 = vadd.f32 %v7659_v29, %v7641_v27 }
 0x917   : > { %v7679_v11 = vadd.f32 %v7678_v3, %v7660_v17  ;;  %v7711_v39 = vpop.f32.mrf.mxu3 }
 0x918   : > { %v7690_v38 = vpop.f32.mrf.mxu2 }
 0x919   : > { %v7933_v46 = vadd.f32 %v7929_v0, %v7679_v11  ;;  %v7749_v9 = vpop.f32.mrf.mxu1  ;;  %v7710_v24 = vadd.f32 %v7709_v31, %v7690_v38 }
 0x91a   : > { %v7939_v19 = vld [vmem:[#allocation6 + $0xa] sm:$0xff] }
 0x91b   : > { %7937 = vst [vmem:[#allocation6 + $0x19] sm:$0xff] %v7933_v46  ;;  %v7804_v50 = vpop.f32.mrf.mxu0  ;;  %v7729_v63 = vadd.f32 %v7728_v57, %v7710_v24 }
 0x91d   : > { %v7748_v26 = vadd.f32 %v7747_v23, %v7729_v63 }
 0x91f   : > { %v7714_v21 = vpop.f32.mrf.mxu3 }
 0x920   : > { %v7692_v49 = vpop.f32.mrf.mxu2 }
 0x921   : > { %v7752_v40 = vpop.f32.mrf.mxu1  ;;  %v7712_v8 = vadd.f32 %v7711_v39, %v7692_v49 }
 0x922   : > { %v7940_v3 = vld [vmem:[#allocation6 + $0x12] sm:$0xff]  ;;  %v7941_v54 = vld [vmem:[#allocation6 + $0x1a] sm:$0xff] }
 0x923   : > { %v7806_v22 = vpop.f32.mrf.mxu0  ;;  %v7731_v35 = vadd.f32 %v7730_v44, %v7712_v8 }
 0x925   : > { %v7750_v58 = vadd.f32 %v7749_v9, %v7731_v35 }
 0x927   : > { %v7716_v37 = vpop.f32.mrf.mxu3 }
 0x928   : > { %v7695_v5 = vpop.f32.mrf.mxu2 }
 0x929   : > { %v7754_v60 = vpop.f32.mrf.mxu1  ;;  %v7715_v42 = vadd.f32 %v7714_v21, %v7695_v5 }
 0x92b   : > { %v7809_v16 = vpop.f32.mrf.mxu0  ;;  %v7734_v34 = vadd.f32 %v7733_v20, %v7715_v42 }
 0x92d   : > { %v7753_v33 = vadd.f32 %v7752_v40, %v7734_v34 }
 0x92f   : > { %v7785_v10 = vpop.f32.mrf.mxu3 }
 0x930   : > { %v7697_v1 = vpop.f32.mrf.mxu2 }
 0x931   : > { %v7823_v4 = vpop.f32.mrf.mxu1  ;;  %v7717_v57 = vadd.f32 %v7716_v37, %v7697_v1 }
 0x932   : > { %v7824_v23 = vadd.f32 %v7823_v4, %v7804_v50 }
 0x933   : > { %v7736_v32 = vadd.f32 %v7735_v59, %v7717_v57  ;;  %v7811_v52 = vpop.f32.mrf.mxu0 }
 0x935   : > { %v7755_v12 = vadd.f32 %v7754_v60, %v7736_v32 }
 0x937   : > { %v7787_v25 = vpop.f32.mrf.mxu3 }
 0x938   : > { %v7766_v7 = vpop.f32.mrf.mxu2 }
 0x939   : > { %v7767_v18 = vadd.f32 %v7766_v7, %v7748_v26  ;;  %v7825_v55 = vpop.f32.mrf.mxu1 }
 0x93a   : > { %v7826_v46 = vadd.f32 %v7825_v55, %v7806_v22 }
 0x93b   : > { %v7786_v56 = vadd.f32 %v7785_v10, %v7767_v18  ;;  %v7880_v62 = vpop.f32.mrf.mxu0 }
 0x93d   : > { %v7942_v29 = vadd.f32 %v7938_v2, %v7786_v56 }
 0x93f   : > { %7946 = vst [vmem:[#allocation6 + $0x2] sm:$0xff] %v7942_v29  ;;  %v7790_v43 = vpop.f32.mrf.mxu3 }
 0x940   : > { %v7768_v61 = vpop.f32.mrf.mxu2 }
 0x941   : > { %v7769_v51 = vadd.f32 %v7768_v61, %v7750_v58  ;;  %v7828_v28 = vpop.f32.mrf.mxu1 }
 0x942   : > { %v7829_v24 = vadd.f32 %v7828_v28, %v7809_v16  ;;  %v7969_v28 = vld [vmem:[%s13400_s28 + $0x10] sm:$0xff] }
 0x943   : > { %v7788_v14 = vadd.f32 %v7787_v25, %v7769_v51  ;;  %v7882_v20 = vpop.f32.mrf.mxu0 }
 0x945   : > { %v7943_v41 = vadd.f32 %v7939_v19, %v7788_v14  ;;  %v7968_v19 = vld [vmem:[%s13399_s27 + $0x8] sm:$0xff] }
 0x947   : > { %7947 = vst [vmem:[#allocation6 + $0xa] sm:$0xff] %v7943_v41  ;;  %v7792_v53 = vpop.f32.mrf.mxu3 }
 0x948   : > { %v7771_v36 = vpop.f32.mrf.mxu2 }
 0x949   : > { %v7772_v13 = vadd.f32 %v7771_v36, %v7753_v33  ;;  %v7830_v30 = vpop.f32.mrf.mxu1  ;;  %v7967_v36 = vld [vmem:[%s13400_s28] sm:$0xff] }
 0x94a   : > { %v7831_v18 = vadd.f32 %v7830_v30, %v7811_v52 }
 0x94b   : > { %v7791_v15 = vadd.f32 %v7790_v43, %v7772_v13  ;;  %v7885_v26 = vpop.f32.mrf.mxu0 }
 0x94d   : > { %v7944_v47 = vadd.f32 %v7940_v3, %v7791_v15  ;;  %v7970_v3 = vld [vmem:[%s13400_s28 + $0x18] sm:$0xff] }
 0x94e   : > { %v7950_v21 = vld [vmem:[#allocation6 + $0x3] sm:$0xff] }
 0x94f   : > { %7948 = vst [vmem:[#allocation6 + $0x12] sm:$0xff] %v7944_v47  ;;  %v7861_v44 = vpop.f32.mrf.mxu3  ;;  %v7971_v47 = vld [vmem:[%s13400_s28 + $0x20] sm:$0x7] }
 0x950   : > { %v7773_v45 = vpop.f32.mrf.mxu2 }
 0x951   : > { %v7774_v31 = vadd.f32 %v7773_v45, %v7755_v12  ;;  %v7899_v27 = vpop.f32.mrf.mxu1 }
 0x953   : > { %v7793_v6 = vadd.f32 %v7792_v53, %v7774_v31  ;;  %v7887_v61 = vpop.f32.mrf.mxu0 }
 0x955   : > { %v7945_v48 = vadd.f32 %v7941_v54, %v7793_v6 }
 0x956   : > { %v7951_v10 = vld [vmem:[#allocation6 + $0xb] sm:$0xff] }
 0x957   : > { %7949 = vst [vmem:[#allocation6 + $0x1a] sm:$0xff] %v7945_v48  ;;  %v7863_v38 = vpop.f32.mrf.mxu3 }
 0x958   : > { %v7842_v17 = vpop.f32.mrf.mxu2 }
 0x959   : > { %v7843_v11 = vadd.f32 %v7842_v17, %v7824_v23  ;;  %v7901_v37 = vpop.f32.mrf.mxu1 }
 0x95b   : > { %v7862_v39 = vadd.f32 %v7861_v44, %v7843_v11 }
 0x95d   : > { %v7881_v0 = vadd.f32 %v7880_v62, %v7862_v39 }
 0x95e   : > { %v7952_v35 = vld [vmem:[#allocation6 + $0x13] sm:$0xff]  ;;  %v7953_v34 = vld [vmem:[#allocation6 + $0x1b] sm:$0xff] }
 0x95f   : > { %v7900_v9 = vadd.f32 %v7899_v27, %v7881_v0  ;;  %v7866_v1 = vpop.f32.mrf.mxu3 }
 0x960   : > { %v7844_v49 = vpop.f32.mrf.mxu2 }
 0x961   : > { %v7954_v40 = vadd.f32 %v7950_v21, %v7900_v9  ;;  %v7845_v59 = vadd.f32 %v7844_v49, %v7826_v46  ;;  %v7904_v22 = vpop.f32.mrf.mxu1  ;;  %v9898_v49 = vmov 3968.0  }
 0x962   : > { %9837 = vrcp.f32 %v9898_v49 }
 0x963   : > { %7958 = vst [vmem:[#allocation6 + $0x3] sm:$0xff] %v7954_v40  ;;  %v7864_v5 = vadd.f32 %v7863_v38, %v7845_v59 }
 0x965   : > { %v7883_v60 = vadd.f32 %v7882_v20, %v7864_v5 }
 0x967   : > { %v7902_v50 = vadd.f32 %v7901_v37, %v7883_v60  ;;  %v7868_v42 = vpop.f32.mrf.mxu3 }
 0x968   : > { %v7847_v4 = vpop.f32.mrf.mxu2  ;;  %v9838_v40 = vpop.eup %9837 }
 0x969   : > { %v7955_v63 = vadd.f32 %v7951_v10, %v7902_v50  ;;  %v7848_v8 = vadd.f32 %v7847_v4, %v7829_v24  ;;  %v7906_v51 = vpop.f32.mrf.mxu1  ;;  %v8016_v59 = vmul.f32 3968.0, %v9838_v40  ;;  %vm8020_vm11 = vweird.f32 %v9838_v40 }
 0x96a   : > { %v7962_v57 = vld [vmem:[#allocation6] sm:$0xff] }
 0x96b   : > { %7959 = vst [vmem:[#allocation6 + $0xb] sm:$0xff] %v7955_v63  ;;  %v7867_v25 = vadd.f32 %v7866_v1, %v7848_v8  ;;  %v13016_v32 = vmul.f32 %v7967_v36, %v7962_v57  ;;  %v8017_v37 = vsub.f32 1.0, %v8016_v59 }
 0x96d   : > { %v7886_v7 = vadd.f32 %v7885_v26, %v7867_v25  ;;  %v7977_v30 = vmul.f32 %v13016_v32, %v13016_v32  ;;  %v8018_v50 = vmul.f32 %v9838_v40, %v8017_v37 }
 0x96f   : > { %v7905_v55 = vadd.f32 %v7904_v22, %v7886_v7  ;;  %v7988_v23 = vrot.slane %v7977_v30, 2  ;;  %v8019_v4 = vadd.f32 %v9838_v40, %v8018_v50 }
 0x970   : > { %v7849_v56 = vpop.f32.mrf.mxu2 }
 0x971   : > { %v7956_v2 = vadd.f32 %v7952_v35, %v7905_v55  ;;  %v7850_v29 = vadd.f32 %v7849_v56, %v7831_v18  ;;  %v8021_v26 = vsel %vm8020_vm11, %v9838_v40, %v8019_v4 }
 0x972   : > { %v7963_v14 = vld [vmem:[#allocation6 + $0x8] sm:$0xff] }
 0x973   : > { %7960 = vst [vmem:[#allocation6 + $0x13] sm:$0xff] %v7956_v2  ;;  %v7869_v58 = vadd.f32 %v7868_v42, %v7850_v29  ;;  %v13012_v13 = vmul.f32 %v7968_v19, %v7963_v14 }
 0x975   : > { %v7888_v43 = vadd.f32 %v7887_v61, %v7869_v58  ;;  %v7978_v52 = vmul.f32 %v13012_v13, %v13012_v13 }
 0x977   : > { %v7907_v16 = vadd.f32 %v7906_v51, %v7888_v43  ;;  %v7989_v44 = vrot.slane %v7978_v52, 2 }
 0x979   : > { %v7957_v41 = vadd.f32 %v7953_v34, %v7907_v16  ;;  %v7990_v17 = vsel %vm7987_vm1, %v7988_v23, %v7989_v44 }
 0x97a   : > { %v7964_v33 = vld [vmem:[#allocation6 + $0x10] sm:$0xff] }
 0x97b   : > { %7961 = vst [vmem:[#allocation6 + $0x1b] sm:$0xff] %v7957_v41  ;;  %v13014_v53 = vmul.f32 %v7969_v28, %v7964_v33 }
 0x97d   : > { %v7979_v15 = vmul.f32 %v13014_v53, %v13014_v53 }
 0x97f   : > { %v7991_v12 = vrot.slane %v7979_v15, 2 }
 0x981   : > { %v7992_v27 = vsel %vm7987_vm1, %v7989_v44, %v7991_v12 }
 0x982   : > { %v7965_v45 = vld [vmem:[#allocation6 + $0x18] sm:$0xff]  ;;  %v7966_v31 = vld [vmem:[#allocation6 + $0x20] sm:$0x7]  ;;  %v8001_v0 = vadd.f32 %v7992_v27, %v7990_v17 }
 0x983   : > { %v7975_v6 = vmul.f32 %v7970_v3, %v7965_v45  ;;  %v7976_v54 = vmul.f32 %v7971_v47, %v7966_v31 }
 0x985   : > { %v7980_v48 = vmul.f32 %v7975_v6, %v7975_v6  ;;  %v7981_v62 = vmul.f32 %v7976_v54, %v7976_v54 }
 0x987   : > { %v7993_v11 = vrot.slane %v7980_v48, 2  ;;  %v7995_v39 = vrot.slane %v7981_v62, 2 }
 0x989   : > { %v7994_v38 = vsel %vm7987_vm1, %v7991_v12, %v7993_v11  ;;  %v7996_v46 = vsel %vm7987_vm1, %v7993_v11, %v7995_v39 }
 0x98a   : > { %v8002_v9 = vadd.f32 %v8001_v0, %v7994_v38  ;;  %v8004_v20 = vsel %vm8003_vm14, %v7996_v46, 0.0 }
 0x98c   : > { %v8005_v21 = vadd.f32 %v8004_v20, %v8002_v9 }
 0x98e   : > { %8006 = vadd.xlane.f32.xlu2 %v8005_v21 }
 0xa01   : > { %v8007_v5 = vpop.xlane.xlu2 %8006 }
 0xa02   : > { %v8008_v60 = vrot.slane %v8007_v5, 4 }
 0xa04   : > { %v8009_v24 = vadd.f32 %v8008_v60, %v8007_v5 }
 0xa06   : > { %v8010_v10 = vrot.slane %v8009_v24, 2 }
 0xa08   : > { %v8011_v1 = vadd.f32 %v8010_v10, %v8009_v24 }
 0xa0a   : > { %v8012_v63 = vrot.slane %v8011_v1, 1 }
 0xa0c   : > { %v8013_v8 = vadd.f32 %v8012_v63, %v8011_v1 }
 0xa0e   : > { %9718 = vpush %v8013_v8 }
 0xa0f   : > { %9720 = vpush %v8021_v26 }
 0xa3f   : > { %s9719_s25 = spop %9718 }
 0xa40   : > { %s9721_s3 = spop %9720 }
 0xa41   : > { %s8023_s1 = smul.f32 %s9721_s3, %s9719_s25 }
 0xa43   : > { %v8024_v25 = vstv %s8023_s1 }
 0xa44   : > { %9839 = vrsqrt.f32 %v8024_v25  ;;  %vm8031_vm4 = vweird.f32 %v8024_v25 }
 0xa4a   : > { %v9840_v22 = vpop.eup %9839 }
 0xa4b   : > { %v8026_v7 = vmul.f32 %v9840_v22, %v8024_v25  ;;  %vm8032_vm13 = vweird.f32 %v9840_v22 }
 0xa4c   : > { %vm8033_vm7 = vmor %vm8031_vm4, %vm8032_vm13 }
 0xa4d   : > { %v8027_v18 = vmul.f32 %v9840_v22, %v8026_v7 }
 0xa4f   : > { %v8028_v55 = vmul.f32 0.5, %v8027_v18 }
 0xa51   : > { %v8029_v35 = vsub.f32 1.5, %v8028_v55 }
 0xa53   : > { %v8030_v56 = vmul.f32 %v9840_v22, %v8029_v35 }
 0xa55   : > { %v8034_v2 = vsel %vm8033_vm7, %v9840_v22, %v8030_v56 }
 0xa56   : > { %9722 = vpush %v8034_v2 }
 0xa87   : > { %s9723_s19 = spop %9722 }
 0xa88   : > { %s8036_s22 = smul.f32 0.15, %s9723_s19 }
 0xa8a   : > { %v8037_v29 = vstv %s8036_s22 }
 0xa8b   : > { %v8038_v42 = vmul.f32 %v8037_v29, %v13016_v32  ;;  %v8039_v58 = vmul.f32 %v8037_v29, %v13012_v13  ;;  %v8040_v61 = vmul.f32 %v8037_v29, %v13014_v53  ;;  %v8041_v43 = vmul.f32 %v8037_v29, %v7975_v6 }
 0xa8c   : > { %v8042_v51 = vmul.f32 %v8037_v29, %v7976_v54 }
 0xa8d   : > { %8043 = vst [vmem:[%s13401_s21 - $0x2] sm:$0xfc] %v8038_v42 }
 0xa8e   : > { %8044 = vst [vmem:[%s13401_s21 + $0x6] sm:$0xff] %v8039_v58 }
 0xa8f   : > { %8045 = vst [vmem:[%s13401_s21 + $0xe] sm:$0xff] %v8040_v61 }
 0xa90   : > { %8046 = vst [vmem:[%s13401_s21 + $0x16] sm:$0xff] %v8041_v43 }
 0xa91   : > { %8047 = vst [vmem:[%s13401_s21 + $0x1e] sm:$0x1] %v8042_v51 }
 0xa92 PF: > { %s13402_s2 = sld [smem:[#allocation12_spill]] }
 0xa98   : > { %s33_s27 = sadd.s32 1, %s13402_s2  }
 0xa99   : > { %p30_p9 = scmp.ge.s32.totalorder %s33_s27, 4  }
 0xa9b   :  { %32 = sbr.rel (!%p30_p9) target bundleno = 19 (0x13), region = 164 }
 0xaa0   :  { %8059 = vsyncpa [#allocation10], 1 }
 0xaa1   :  { %8061 = vsyncpa [#allocation10 + $0x1], 1 }

</bundles_post_ra>
